<compile_context>
chip_gen: v5e
topology: v5e:2x2
jax: 0.10.0
libtpu: 0.0.40
codegen_flags: <defaults>
</compile_context>

<pallas_src>
import math

import jax
import jax.numpy as jnp
import numpy as np
from jax import lax
from jax.experimental import pallas as pl
from jax.experimental.pallas import tpu as pltpu

# ---- problem sizes (small, but num_hiddens is forced to 768 by dense1/ln) ----
B = 2
LQ = 8          # query sequence length
LK = 8          # key / value sequence length
Q_SIZE = 32     # query_size
K_SIZE = 32     # key_size
V_SIZE = 32     # value_size
D = 768         # num_hiddens (hard-coded by dense1/dense2/LayerNorm(768))
H = 6           # num_heads  -> head dim = 128 (lane aligned)
HD = D // H
LN_EPS = 1e-5
MASK_VALUE = -1000000.0


def cross_att_kernel(q_ref, k_ref, v_ref, keep_ref,        # activations + mask
                     wq_ref, wk_ref, wv_ref, wo_ref,       # projection weights (bf16)
                     w1_ref, b1_ref, w2_ref, b2_ref,       # FFN weights (bf16) + bias (f32)
                     gamma_ref, beta_ref,                   # LayerNorm affine (f32)
                     o_ref):                                # output (B*LQ, D) f32
    # --- QKV projections on batch-stacked activations (M = B*L, bf16 MXU) ---
    Q = jnp.dot(q_ref[...], wq_ref[...], preferred_element_type=jnp.float32)  # (B*LQ, D)
    K = jnp.dot(k_ref[...], wk_ref[...], preferred_element_type=jnp.float32)  # (B*LK, D)
    V = jnp.dot(v_ref[...], wv_ref[...], preferred_element_type=jnp.float32)  # (B*LK, D)

    scale = 1.0 / math.sqrt(HD)
    dnums = (((1,), (1,)), ((), ()))     # contract head dim of Q with head dim of K

    # --- per-(batch, head) attention; fold each head straight into W_o -------
    multi_parts = []
    for b in range(B):                                   # static unrolled (B=2)
        keep_b = keep_ref[b] != 0.0                      # (LQ, LK) keep mask
        multi_b = jnp.zeros((LQ, D), jnp.float32)
        for h in range(H):                               # static unrolled (H=6)
            Qh = Q[b * LQ:(b + 1) * LQ, h * HD:(h + 1) * HD]       # (LQ, HD)
            Kh = K[b * LK:(b + 1) * LK, h * HD:(h + 1) * HD]       # (LK, HD)
            Vh = V[b * LK:(b + 1) * LK, h * HD:(h + 1) * HD]       # (LK, HD)
            s = lax.dot_general(Qh, Kh, dnums,
                                preferred_element_type=jnp.float32) * scale
            s = jnp.where(keep_b, s, MASK_VALUE)         # -1e6 overwrite, as in torch
            s = s - jnp.max(s, axis=-1, keepdims=True)
            ps = jnp.exp(s)
            ps = ps / jnp.sum(ps, axis=-1, keepdims=True)
            # TODO(synk): dropout on attention weights / FFN output is identity (eval).
            head = jnp.dot(ps, Vh, preferred_element_type=jnp.float32)  # (LQ, HD)
            # Fold this head's 128 lanes directly into its slice of W_o.
            multi_b = multi_b + jnp.dot(head.astype(wo_ref.dtype),
                                        wo_ref[h * HD:(h + 1) * HD, :],
                                        preferred_element_type=jnp.float32)
        multi_parts.append(multi_b)
    # Sublane-axis concat of tile-aligned (8, 768) pieces — cheap.
    multi = jnp.concatenate(multi_parts, axis=0)                     # (B*LQ, D) f32

    # --- FFN + residual + LayerNorm on the stacked (B*LQ, 768) activations ---
    hdn = jnp.dot(multi.astype(w1_ref.dtype), w1_ref[...],
                  preferred_element_type=jnp.float32) + b1_ref[...]
    hdn = jnp.maximum(hdn, 0.0)
    ffn = jnp.dot(hdn.astype(w2_ref.dtype), w2_ref[...],
                  preferred_element_type=jnp.float32) + b2_ref[...]

    y = ffn + multi
    mean = jnp.mean(y, axis=-1, keepdims=True)
    var = jnp.mean((y - mean) ** 2, axis=-1, keepdims=True)
    out = (y - mean) * lax.rsqrt(var + LN_EPS) * gamma_ref[...] + beta_ref[...]
    o_ref[...] = out.astype(o_ref.dtype)


@jax.jit
def cross_att_forward(queries, keys, values, mask1, mask2, p):
    # Two-sided keep mask precomputed in XLA (tiny (B, LQ, LK) tensor): kernel
    # does a single select instead of iota/compare work.
    vl1 = jnp.count_nonzero(mask1, axis=1).astype(jnp.int32)   # valid KEY length
    vl2 = jnp.count_nonzero(mask2, axis=1).astype(jnp.int32)   # valid QUERY length
    kidx = jnp.arange(LK, dtype=jnp.int32)
    qidx = jnp.arange(LQ, dtype=jnp.int32)
    keep = ((kidx[None, None, :] < vl1[:, None, None]) &
            (qidx[None, :, None] < vl2[:, None, None])).astype(jnp.float32)

    # Fold batch into the M axis of every big matmul (lane-dense (16, 768) out).
    q2 = queries.reshape(B * LQ, Q_SIZE)
    k2 = keys.reshape(B * LK, K_SIZE)
    v2 = values.reshape(B * LK, V_SIZE)

    out = pl.pallas_call(
        cross_att_kernel,
        # No grid: whole arrays land in VMEM once (full-array blocks), so there
        # is no weight double-buffering and no per-step pipeline overhead.
        out_shape=jax.ShapeDtypeStruct((B * LQ, D), jnp.float32),
        compiler_params=pltpu.CompilerParams(
            vmem_limit_bytes=32 << 20,   # safe on v5e/v6e (128 MiB) and v7x (64 MiB)
        ),
    )(q2, k2, v2, keep,
      p["wq"], p["wk"], p["wv"], p["wo"],
      p["w1"], p["b1"], p["w2"], p["b2"],
      p["gamma"], p["beta"])
    return out.reshape(B, LQ, D)


def reference_forward(queries, keys, values, mask1, mask2, p):
    """Pure-JAX mirror of the PyTorch forward (eval mode) using the same
    mixed-precision policy as the kernel: bf16 matmul operands, f32
    accumulation, f32 softmax / LayerNorm."""
    f32 = jnp.float32
    hi = jax.lax.Precision.HIGHEST
    vl1 = jnp.count_nonzero(mask1, axis=1)
    vl2 = jnp.count_nonzero(mask2, axis=1)

    Q = jnp.einsum("bld,dh->blh", queries, p["wq"], preferred_element_type=f32)
    K = jnp.einsum("bld,dh->blh", keys, p["wk"], preferred_element_type=f32)
    V = jnp.einsum("bld,dh->blh", values, p["wv"], preferred_element_type=f32)

    def split(X):
        Bn, L, _ = X.shape
        return X.reshape(Bn, L, H, HD).transpose(0, 2, 1, 3)   # (B,H,L,HD)

    Qh, Kh, Vh = split(Q), split(K), split(V)
    s = jnp.einsum("bhqd,bhkd->bhqk", Qh, Kh, precision=hi) / math.sqrt(HD)
    kidx = jnp.arange(LK)
    qidx = jnp.arange(LQ)
    keep = ((kidx[None, None, None, :] < vl1[:, None, None, None]) &
            (qidx[None, None, :, None] < vl2[:, None, None, None]))
    s = jnp.where(keep, s, MASK_VALUE)
    attw = jax.nn.softmax(s, axis=-1)
    o = jnp.einsum("bhqk,bhkd->bhqd", attw, Vh, precision=hi)
    o = o.transpose(0, 2, 1, 3).reshape(B, LQ, D)
    multi = jnp.einsum("blh,hk->blk", o.astype(jnp.bfloat16), p["wo"],
                       preferred_element_type=f32)
    hdn = jax.nn.relu(jnp.einsum("blh,hk->blk", multi.astype(jnp.bfloat16),
                                 p["w1"], preferred_element_type=f32) + p["b1"])
    ffn = jnp.einsum("blh,hk->blk", hdn.astype(jnp.bfloat16), p["w2"],
                     preferred_element_type=f32) + p["b2"]
    y = ffn + multi
    mean = y.mean(-1, keepdims=True)
    var = ((y - mean) ** 2).mean(-1, keepdims=True)
    return (y - mean) / jnp.sqrt(var + LN_EPS) * p["gamma"] + p["beta"]


def make_params(key):
    ks = jax.random.split(key, 10)
    s = 0.02
    bf = jnp.bfloat16
    # MXU weight matrices stored in bf16 (halves HBM->VMEM traffic; f32
    # accumulation in the kernel). Biases / LayerNorm affine stay f32.
    return {
        "wq": (s * jax.random.normal(ks[0], (Q_SIZE, D), jnp.float32)).astype(bf),
        "wk": (s * jax.random.normal(ks[1], (K_SIZE, D), jnp.float32)).astype(bf),
        "wv": (s * jax.random.normal(ks[2], (V_SIZE, D), jnp.float32)).astype(bf),
        "wo": (s * jax.random.normal(ks[3], (D, D), jnp.float32)).astype(bf),
        "w1": (s * jax.random.normal(ks[4], (D, D), jnp.float32)).astype(bf),
        "b1": s * jax.random.normal(ks[5], (1, D), jnp.float32),
        "w2": (s * jax.random.normal(ks[6], (D, D), jnp.float32)).astype(bf),
        "b2": s * jax.random.normal(ks[7], (1, D), jnp.float32),
        "gamma": 1.0 + s * jax.random.normal(ks[8], (1, D), jnp.float32),
        "beta": s * jax.random.normal(ks[9], (1, D), jnp.float32),
    }


if __name__ == "__main__":
    key = jax.random.PRNGKey(0)
    kq, kk, kv, km1, km2, kp = jax.random.split(key, 6)

    # Activations in bf16 (same values fed to kernel and reference).
    queries = jax.random.normal(kq, (B, LQ, Q_SIZE), jnp.float32).astype(jnp.bfloat16)
    keys = jax.random.normal(kk, (B, LK, K_SIZE), jnp.float32).astype(jnp.bfloat16)
    values = jax.random.normal(kv, (B, LK, V_SIZE), jnp.float32).astype(jnp.bfloat16)
    # Binary masks (valid length = count of nonzeros, as in get_valid_len).
    mask_1 = (jax.random.uniform(km1, (B, LK)) > 0.3).astype(jnp.float32)
    mask_2 = (jax.random.uniform(km2, (B, LQ)) > 0.3).astype(jnp.float32)

    params = make_params(kp)

    out = cross_att_forward(queries, keys, values, mask_1, mask_2, params)
    out = jax.block_until_ready(out)

    ref = reference_forward(queries, keys, values, mask_1, mask_2, params)
    np.testing.assert_allclose(np.asarray(out), np.asarray(ref),
                               rtol=2e-3, atol=2e-3)
    print("KERNEL_OK")
</pallas_src>

<mosaic_0001>
module attributes {stable_mosaic.version = 11 : i64} {
  func.func @cross_att_kernel(%arg0: memref<16x32xbf16, #tpu.memory_space<vmem>>, %arg1: memref<16x32xbf16, #tpu.memory_space<vmem>>, %arg2: memref<16x32xbf16, #tpu.memory_space<vmem>>, %arg3: memref<2x8x8xf32, #tpu.memory_space<vmem>>, %arg4: memref<32x768xbf16, #tpu.memory_space<vmem>>, %arg5: memref<32x768xbf16, #tpu.memory_space<vmem>>, %arg6: memref<32x768xbf16, #tpu.memory_space<vmem>>, %arg7: memref<768x768xbf16, #tpu.memory_space<vmem>>, %arg8: memref<768x768xbf16, #tpu.memory_space<vmem>>, %arg9: memref<1x768xf32, #tpu.memory_space<vmem>>, %arg10: memref<768x768xbf16, #tpu.memory_space<vmem>>, %arg11: memref<1x768xf32, #tpu.memory_space<vmem>>, %arg12: memref<1x768xf32, #tpu.memory_space<vmem>>, %arg13: memref<1x768xf32, #tpu.memory_space<vmem>>, %arg14: memref<16x768xf32, #tpu.memory_space<vmem>>) attributes {dimension_semantics = [], scalar_prefetch = 0 : i64, scratch_operands = 0 : i64, tpu.core_type = #tpu.core_type<tc>} {
    %c0 = arith.constant 0 : index
    %c0_0 = arith.constant 0 : index
    %0 = vector.load %arg0[%c0, %c0_0] : memref<16x32xbf16, #tpu.memory_space<vmem>>, vector<16x32xbf16>
    %c0_1 = arith.constant 0 : index
    %c0_2 = arith.constant 0 : index
    %1 = vector.load %arg4[%c0_1, %c0_2] : memref<32x768xbf16, #tpu.memory_space<vmem>>, vector<32x768xbf16>
    %cst = arith.constant dense<0.000000e+00> : vector<16x768xf32>
    %2 = tpu.matmul %0, %1, %cst {dimension_numbers = #tpu.dot_dimension_numbers<[1], [0], [0], [1], [0, 0, 1, 1], [], []>} : vector<16x32xbf16>, vector<32x768xbf16>, vector<16x768xf32> -> vector<16x768xf32>
    %c0_3 = arith.constant 0 : index
    %c0_4 = arith.constant 0 : index
    %3 = vector.load %arg1[%c0_3, %c0_4] : memref<16x32xbf16, #tpu.memory_space<vmem>>, vector<16x32xbf16>
    %c0_5 = arith.constant 0 : index
    %c0_6 = arith.constant 0 : index
    %4 = vector.load %arg5[%c0_5, %c0_6] : memref<32x768xbf16, #tpu.memory_space<vmem>>, vector<32x768xbf16>
    %cst_7 = arith.constant dense<0.000000e+00> : vector<16x768xf32>
    %5 = tpu.matmul %3, %4, %cst_7 {dimension_numbers = #tpu.dot_dimension_numbers<[1], [0], [0], [1], [0, 0, 1, 1], [], []>} : vector<16x32xbf16>, vector<32x768xbf16>, vector<16x768xf32> -> vector<16x768xf32>
    %c0_8 = arith.constant 0 : index
    %c0_9 = arith.constant 0 : index
    %6 = vector.load %arg2[%c0_8, %c0_9] : memref<16x32xbf16, #tpu.memory_space<vmem>>, vector<16x32xbf16>
    %c0_10 = arith.constant 0 : index
    %c0_11 = arith.constant 0 : index
    %7 = vector.load %arg6[%c0_10, %c0_11] : memref<32x768xbf16, #tpu.memory_space<vmem>>, vector<32x768xbf16>
    %cst_12 = arith.constant dense<0.000000e+00> : vector<16x768xf32>
    %8 = tpu.matmul %6, %7, %cst_12 {dimension_numbers = #tpu.dot_dimension_numbers<[1], [0], [0], [1], [0, 0, 1, 1], [], []>} : vector<16x32xbf16>, vector<32x768xbf16>, vector<16x768xf32> -> vector<16x768xf32>
    %c0_13 = arith.constant 0 : index
    %c0_14 = arith.constant 0 : index
    %c0_15 = arith.constant 0 : index
    %9 = vector.load %arg3[%c0_13, %c0_14, %c0_15] : memref<2x8x8xf32, #tpu.memory_space<vmem>>, vector<1x8x8xf32>
    %10 = vector.shape_cast %9 : vector<1x8x8xf32> to vector<8x8xf32>
    %cst_16 = arith.constant 0.000000e+00 : f32
    %11 = vector.broadcast %cst_16 : f32 to vector<8x8xf32>
    %12 = arith.cmpf one, %10, %11 : vector<8x8xf32>
    %cst_17 = arith.constant 0.000000e+00 : f32
    %13 = vector.broadcast %cst_17 : f32 to vector<8x768xf32>
    %14 = vector.extract_strided_slice %2 {offsets = [0, 0], sizes = [8, 128], strides = [1, 1]} : vector<16x768xf32> to vector<8x128xf32>
    %15 = vector.extract_strided_slice %5 {offsets = [0, 0], sizes = [8, 128], strides = [1, 1]} : vector<16x768xf32> to vector<8x128xf32>
    %16 = vector.extract_strided_slice %8 {offsets = [0, 0], sizes = [8, 128], strides = [1, 1]} : vector<16x768xf32> to vector<8x128xf32>
    %cst_18 = arith.constant dense<0.000000e+00> : vector<8x8xf32>
    %17 = tpu.matmul %14, %15, %cst_18 {dimension_numbers = #tpu.dot_dimension_numbers<[1], [1], [0], [0], [0, 0, 1, 0], [], []>} : vector<8x128xf32>, vector<8x128xf32>, vector<8x8xf32> -> vector<8x8xf32>
    %cst_19 = arith.constant 0.0883883461 : f32
    %18 = vector.broadcast %cst_19 : f32 to vector<8x8xf32>
    %19 = arith.mulf %17, %18 : vector<8x8xf32>
    %cst_20 = arith.constant -1.000000e+06 : f32
    %20 = vector.broadcast %cst_20 : f32 to vector<8x8xf32>
    %21 = arith.select %12, %19, %20 : vector<8x8xi1>, vector<8x8xf32>
    %cst_21 = arith.constant dense<0xFF800000> : vector<8xf32>
    %22 = vector.multi_reduction <maximumf>, %21, %cst_21 [1] : vector<8x8xf32> to vector<8xf32>
    %23 = vector.shape_cast %22 : vector<8xf32> to vector<8x1xf32>
    %24 = vector.broadcast %23 : vector<8x1xf32> to vector<8x8xf32>
    %25 = arith.subf %21, %24 : vector<8x8xf32>
    %26 = math.exp %25 : vector<8x8xf32>
    %cst_22 = arith.constant dense<0.000000e+00> : vector<8xf32>
    %27 = vector.multi_reduction <add>, %26, %cst_22 [1] : vector<8x8xf32> to vector<8xf32>
    %28 = vector.shape_cast %27 : vector<8xf32> to vector<8x1xf32>
    %29 = vector.broadcast %28 : vector<8x1xf32> to vector<8x8xf32>
    %30 = arith.divf %26, %29 : vector<8x8xf32>
    %cst_23 = arith.constant dense<0.000000e+00> : vector<8x128xf32>
    %31 = tpu.matmul %30, %16, %cst_23 {dimension_numbers = #tpu.dot_dimension_numbers<[1], [0], [0], [1], [0, 0, 1, 1], [], []>} : vector<8x8xf32>, vector<8x128xf32>, vector<8x128xf32> -> vector<8x128xf32>
    %32 = arith.truncf %31 : vector<8x128xf32> to vector<8x128xbf16>
    %c0_24 = arith.constant 0 : index
    %c0_25 = arith.constant 0 : index
    %33 = vector.load %arg7[%c0_24, %c0_25] : memref<768x768xbf16, #tpu.memory_space<vmem>>, vector<128x768xbf16>
    %cst_26 = arith.constant dense<0.000000e+00> : vector<8x768xf32>
    %34 = tpu.matmul %32, %33, %cst_26 {dimension_numbers = #tpu.dot_dimension_numbers<[1], [0], [0], [1], [0, 0, 1, 1], [], []>} : vector<8x128xbf16>, vector<128x768xbf16>, vector<8x768xf32> -> vector<8x768xf32>
    %35 = arith.addf %13, %34 : vector<8x768xf32>
    %36 = vector.extract_strided_slice %2 {offsets = [0, 128], sizes = [8, 128], strides = [1, 1]} : vector<16x768xf32> to vector<8x128xf32>
    %37 = vector.extract_strided_slice %5 {offsets = [0, 128], sizes = [8, 128], strides = [1, 1]} : vector<16x768xf32> to vector<8x128xf32>
    %38 = vector.extract_strided_slice %8 {offsets = [0, 128], sizes = [8, 128], strides = [1, 1]} : vector<16x768xf32> to vector<8x128xf32>
    %cst_27 = arith.constant dense<0.000000e+00> : vector<8x8xf32>
    %39 = tpu.matmul %36, %37, %cst_27 {dimension_numbers = #tpu.dot_dimension_numbers<[1], [1], [0], [0], [0, 0, 1, 0], [], []>} : vector<8x128xf32>, vector<8x128xf32>, vector<8x8xf32> -> vector<8x8xf32>
    %cst_28 = arith.constant 0.0883883461 : f32
    %40 = vector.broadcast %cst_28 : f32 to vector<8x8xf32>
    %41 = arith.mulf %39, %40 : vector<8x8xf32>
    %cst_29 = arith.constant -1.000000e+06 : f32
    %42 = vector.broadcast %cst_29 : f32 to vector<8x8xf32>
    %43 = arith.select %12, %41, %42 : vector<8x8xi1>, vector<8x8xf32>
    %cst_30 = arith.constant dense<0xFF800000> : vector<8xf32>
    %44 = vector.multi_reduction <maximumf>, %43, %cst_30 [1] : vector<8x8xf32> to vector<8xf32>
    %45 = vector.shape_cast %44 : vector<8xf32> to vector<8x1xf32>
    %46 = vector.broadcast %45 : vector<8x1xf32> to vector<8x8xf32>
    %47 = arith.subf %43, %46 : vector<8x8xf32>
    %48 = math.exp %47 : vector<8x8xf32>
    %cst_31 = arith.constant dense<0.000000e+00> : vector<8xf32>
    %49 = vector.multi_reduction <add>, %48, %cst_31 [1] : vector<8x8xf32> to vector<8xf32>
    %50 = vector.shape_cast %49 : vector<8xf32> to vector<8x1xf32>
    %51 = vector.broadcast %50 : vector<8x1xf32> to vector<8x8xf32>
    %52 = arith.divf %48, %51 : vector<8x8xf32>
    %cst_32 = arith.constant dense<0.000000e+00> : vector<8x128xf32>
    %53 = tpu.matmul %52, %38, %cst_32 {dimension_numbers = #tpu.dot_dimension_numbers<[1], [0], [0], [1], [0, 0, 1, 1], [], []>} : vector<8x8xf32>, vector<8x128xf32>, vector<8x128xf32> -> vector<8x128xf32>
    %54 = arith.truncf %53 : vector<8x128xf32> to vector<8x128xbf16>
    %c128 = arith.constant 128 : index
    %c0_33 = arith.constant 0 : index
    %55 = vector.load %arg7[%c128, %c0_33] : memref<768x768xbf16, #tpu.memory_space<vmem>>, vector<128x768xbf16>
    %cst_34 = arith.constant dense<0.000000e+00> : vector<8x768xf32>
    %56 = tpu.matmul %54, %55, %cst_34 {dimension_numbers = #tpu.dot_dimension_numbers<[1], [0], [0], [1], [0, 0, 1, 1], [], []>} : vector<8x128xbf16>, vector<128x768xbf16>, vector<8x768xf32> -> vector<8x768xf32>
    %57 = arith.addf %35, %56 : vector<8x768xf32>
    %58 = vector.extract_strided_slice %2 {offsets = [0, 256], sizes = [8, 128], strides = [1, 1]} : vector<16x768xf32> to vector<8x128xf32>
    %59 = vector.extract_strided_slice %5 {offsets = [0, 256], sizes = [8, 128], strides = [1, 1]} : vector<16x768xf32> to vector<8x128xf32>
    %60 = vector.extract_strided_slice %8 {offsets = [0, 256], sizes = [8, 128], strides = [1, 1]} : vector<16x768xf32> to vector<8x128xf32>
    %cst_35 = arith.constant dense<0.000000e+00> : vector<8x8xf32>
    %61 = tpu.matmul %58, %59, %cst_35 {dimension_numbers = #tpu.dot_dimension_numbers<[1], [1], [0], [0], [0, 0, 1, 0], [], []>} : vector<8x128xf32>, vector<8x128xf32>, vector<8x8xf32> -> vector<8x8xf32>
    %cst_36 = arith.constant 0.0883883461 : f32
    %62 = vector.broadcast %cst_36 : f32 to vector<8x8xf32>
    %63 = arith.mulf %61, %62 : vector<8x8xf32>
    %cst_37 = arith.constant -1.000000e+06 : f32
    %64 = vector.broadcast %cst_37 : f32 to vector<8x8xf32>
    %65 = arith.select %12, %63, %64 : vector<8x8xi1>, vector<8x8xf32>
    %cst_38 = arith.constant dense<0xFF800000> : vector<8xf32>
    %66 = vector.multi_reduction <maximumf>, %65, %cst_38 [1] : vector<8x8xf32> to vector<8xf32>
    %67 = vector.shape_cast %66 : vector<8xf32> to vector<8x1xf32>
    %68 = vector.broadcast %67 : vector<8x1xf32> to vector<8x8xf32>
    %69 = arith.subf %65, %68 : vector<8x8xf32>
    %70 = math.exp %69 : vector<8x8xf32>
    %cst_39 = arith.constant dense<0.000000e+00> : vector<8xf32>
    %71 = vector.multi_reduction <add>, %70, %cst_39 [1] : vector<8x8xf32> to vector<8xf32>
    %72 = vector.shape_cast %71 : vector<8xf32> to vector<8x1xf32>
    %73 = vector.broadcast %72 : vector<8x1xf32> to vector<8x8xf32>
    %74 = arith.divf %70, %73 : vector<8x8xf32>
    %cst_40 = arith.constant dense<0.000000e+00> : vector<8x128xf32>
    %75 = tpu.matmul %74, %60, %cst_40 {dimension_numbers = #tpu.dot_dimension_numbers<[1], [0], [0], [1], [0, 0, 1, 1], [], []>} : vector<8x8xf32>, vector<8x128xf32>, vector<8x128xf32> -> vector<8x128xf32>
    %76 = arith.truncf %75 : vector<8x128xf32> to vector<8x128xbf16>
    %c256 = arith.constant 256 : index
    %c0_41 = arith.constant 0 : index
    %77 = vector.load %arg7[%c256, %c0_41] : memref<768x768xbf16, #tpu.memory_space<vmem>>, vector<128x768xbf16>
    %cst_42 = arith.constant dense<0.000000e+00> : vector<8x768xf32>
    %78 = tpu.matmul %76, %77, %cst_42 {dimension_numbers = #tpu.dot_dimension_numbers<[1], [0], [0], [1], [0, 0, 1, 1], [], []>} : vector<8x128xbf16>, vector<128x768xbf16>, vector<8x768xf32> -> vector<8x768xf32>
    %79 = arith.addf %57, %78 : vector<8x768xf32>
    %80 = vector.extract_strided_slice %2 {offsets = [0, 384], sizes = [8, 128], strides = [1, 1]} : vector<16x768xf32> to vector<8x128xf32>
    %81 = vector.extract_strided_slice %5 {offsets = [0, 384], sizes = [8, 128], strides = [1, 1]} : vector<16x768xf32> to vector<8x128xf32>
    %82 = vector.extract_strided_slice %8 {offsets = [0, 384], sizes = [8, 128], strides = [1, 1]} : vector<16x768xf32> to vector<8x128xf32>
    %cst_43 = arith.constant dense<0.000000e+00> : vector<8x8xf32>
    %83 = tpu.matmul %80, %81, %cst_43 {dimension_numbers = #tpu.dot_dimension_numbers<[1], [1], [0], [0], [0, 0, 1, 0], [], []>} : vector<8x128xf32>, vector<8x128xf32>, vector<8x8xf32> -> vector<8x8xf32>
    %cst_44 = arith.constant 0.0883883461 : f32
    %84 = vector.broadcast %cst_44 : f32 to vector<8x8xf32>
    %85 = arith.mulf %83, %84 : vector<8x8xf32>
    %cst_45 = arith.constant -1.000000e+06 : f32
    %86 = vector.broadcast %cst_45 : f32 to vector<8x8xf32>
    %87 = arith.select %12, %85, %86 : vector<8x8xi1>, vector<8x8xf32>
    %cst_46 = arith.constant dense<0xFF800000> : vector<8xf32>
    %88 = vector.multi_reduction <maximumf>, %87, %cst_46 [1] : vector<8x8xf32> to vector<8xf32>
    %89 = vector.shape_cast %88 : vector<8xf32> to vector<8x1xf32>
    %90 = vector.broadcast %89 : vector<8x1xf32> to vector<8x8xf32>
    %91 = arith.subf %87, %90 : vector<8x8xf32>
    %92 = math.exp %91 : vector<8x8xf32>
    %cst_47 = arith.constant dense<0.000000e+00> : vector<8xf32>
    %93 = vector.multi_reduction <add>, %92, %cst_47 [1] : vector<8x8xf32> to vector<8xf32>
    %94 = vector.shape_cast %93 : vector<8xf32> to vector<8x1xf32>
    %95 = vector.broadcast %94 : vector<8x1xf32> to vector<8x8xf32>
    %96 = arith.divf %92, %95 : vector<8x8xf32>
    %cst_48 = arith.constant dense<0.000000e+00> : vector<8x128xf32>
    %97 = tpu.matmul %96, %82, %cst_48 {dimension_numbers = #tpu.dot_dimension_numbers<[1], [0], [0], [1], [0, 0, 1, 1], [], []>} : vector<8x8xf32>, vector<8x128xf32>, vector<8x128xf32> -> vector<8x128xf32>
    %98 = arith.truncf %97 : vector<8x128xf32> to vector<8x128xbf16>
    %c384 = arith.constant 384 : index
    %c0_49 = arith.constant 0 : index
    %99 = vector.load %arg7[%c384, %c0_49] : memref<768x768xbf16, #tpu.memory_space<vmem>>, vector<128x768xbf16>
    %cst_50 = arith.constant dense<0.000000e+00> : vector<8x768xf32>
    %100 = tpu.matmul %98, %99, %cst_50 {dimension_numbers = #tpu.dot_dimension_numbers<[1], [0], [0], [1], [0, 0, 1, 1], [], []>} : vector<8x128xbf16>, vector<128x768xbf16>, vector<8x768xf32> -> vector<8x768xf32>
    %101 = arith.addf %79, %100 : vector<8x768xf32>
    %102 = vector.extract_strided_slice %2 {offsets = [0, 512], sizes = [8, 128], strides = [1, 1]} : vector<16x768xf32> to vector<8x128xf32>
    %103 = vector.extract_strided_slice %5 {offsets = [0, 512], sizes = [8, 128], strides = [1, 1]} : vector<16x768xf32> to vector<8x128xf32>
    %104 = vector.extract_strided_slice %8 {offsets = [0, 512], sizes = [8, 128], strides = [1, 1]} : vector<16x768xf32> to vector<8x128xf32>
    %cst_51 = arith.constant dense<0.000000e+00> : vector<8x8xf32>
    %105 = tpu.matmul %102, %103, %cst_51 {dimension_numbers = #tpu.dot_dimension_numbers<[1], [1], [0], [0], [0, 0, 1, 0], [], []>} : vector<8x128xf32>, vector<8x128xf32>, vector<8x8xf32> -> vector<8x8xf32>
    %cst_52 = arith.constant 0.0883883461 : f32
    %106 = vector.broadcast %cst_52 : f32 to vector<8x8xf32>
    %107 = arith.mulf %105, %106 : vector<8x8xf32>
    %cst_53 = arith.constant -1.000000e+06 : f32
    %108 = vector.broadcast %cst_53 : f32 to vector<8x8xf32>
    %109 = arith.select %12, %107, %108 : vector<8x8xi1>, vector<8x8xf32>
    %cst_54 = arith.constant dense<0xFF800000> : vector<8xf32>
    %110 = vector.multi_reduction <maximumf>, %109, %cst_54 [1] : vector<8x8xf32> to vector<8xf32>
    %111 = vector.shape_cast %110 : vector<8xf32> to vector<8x1xf32>
    %112 = vector.broadcast %111 : vector<8x1xf32> to vector<8x8xf32>
    %113 = arith.subf %109, %112 : vector<8x8xf32>
    %114 = math.exp %113 : vector<8x8xf32>
    %cst_55 = arith.constant dense<0.000000e+00> : vector<8xf32>
    %115 = vector.multi_reduction <add>, %114, %cst_55 [1] : vector<8x8xf32> to vector<8xf32>
    %116 = vector.shape_cast %115 : vector<8xf32> to vector<8x1xf32>
    %117 = vector.broadcast %116 : vector<8x1xf32> to vector<8x8xf32>
    %118 = arith.divf %114, %117 : vector<8x8xf32>
    %cst_56 = arith.constant dense<0.000000e+00> : vector<8x128xf32>
    %119 = tpu.matmul %118, %104, %cst_56 {dimension_numbers = #tpu.dot_dimension_numbers<[1], [0], [0], [1], [0, 0, 1, 1], [], []>} : vector<8x8xf32>, vector<8x128xf32>, vector<8x128xf32> -> vector<8x128xf32>
    %120 = arith.truncf %119 : vector<8x128xf32> to vector<8x128xbf16>
    %c512 = arith.constant 512 : index
    %c0_57 = arith.constant 0 : index
    %121 = vector.load %arg7[%c512, %c0_57] : memref<768x768xbf16, #tpu.memory_space<vmem>>, vector<128x768xbf16>
    %cst_58 = arith.constant dense<0.000000e+00> : vector<8x768xf32>
    %122 = tpu.matmul %120, %121, %cst_58 {dimension_numbers = #tpu.dot_dimension_numbers<[1], [0], [0], [1], [0, 0, 1, 1], [], []>} : vector<8x128xbf16>, vector<128x768xbf16>, vector<8x768xf32> -> vector<8x768xf32>
    %123 = arith.addf %101, %122 : vector<8x768xf32>
    %124 = vector.extract_strided_slice %2 {offsets = [0, 640], sizes = [8, 128], strides = [1, 1]} : vector<16x768xf32> to vector<8x128xf32>
    %125 = vector.extract_strided_slice %5 {offsets = [0, 640], sizes = [8, 128], strides = [1, 1]} : vector<16x768xf32> to vector<8x128xf32>
    %126 = vector.extract_strided_slice %8 {offsets = [0, 640], sizes = [8, 128], strides = [1, 1]} : vector<16x768xf32> to vector<8x128xf32>
    %cst_59 = arith.constant dense<0.000000e+00> : vector<8x8xf32>
    %127 = tpu.matmul %124, %125, %cst_59 {dimension_numbers = #tpu.dot_dimension_numbers<[1], [1], [0], [0], [0, 0, 1, 0], [], []>} : vector<8x128xf32>, vector<8x128xf32>, vector<8x8xf32> -> vector<8x8xf32>
    %cst_60 = arith.constant 0.0883883461 : f32
    %128 = vector.broadcast %cst_60 : f32 to vector<8x8xf32>
    %129 = arith.mulf %127, %128 : vector<8x8xf32>
    %cst_61 = arith.constant -1.000000e+06 : f32
    %130 = vector.broadcast %cst_61 : f32 to vector<8x8xf32>
    %131 = arith.select %12, %129, %130 : vector<8x8xi1>, vector<8x8xf32>
    %cst_62 = arith.constant dense<0xFF800000> : vector<8xf32>
    %132 = vector.multi_reduction <maximumf>, %131, %cst_62 [1] : vector<8x8xf32> to vector<8xf32>
    %133 = vector.shape_cast %132 : vector<8xf32> to vector<8x1xf32>
    %134 = vector.broadcast %133 : vector<8x1xf32> to vector<8x8xf32>
    %135 = arith.subf %131, %134 : vector<8x8xf32>
    %136 = math.exp %135 : vector<8x8xf32>
    %cst_63 = arith.constant dense<0.000000e+00> : vector<8xf32>
    %137 = vector.multi_reduction <add>, %136, %cst_63 [1] : vector<8x8xf32> to vector<8xf32>
    %138 = vector.shape_cast %137 : vector<8xf32> to vector<8x1xf32>
    %139 = vector.broadcast %138 : vector<8x1xf32> to vector<8x8xf32>
    %140 = arith.divf %136, %139 : vector<8x8xf32>
    %cst_64 = arith.constant dense<0.000000e+00> : vector<8x128xf32>
    %141 = tpu.matmul %140, %126, %cst_64 {dimension_numbers = #tpu.dot_dimension_numbers<[1], [0], [0], [1], [0, 0, 1, 1], [], []>} : vector<8x8xf32>, vector<8x128xf32>, vector<8x128xf32> -> vector<8x128xf32>
    %142 = arith.truncf %141 : vector<8x128xf32> to vector<8x128xbf16>
    %c640 = arith.constant 640 : index
    %c0_65 = arith.constant 0 : index
    %143 = vector.load %arg7[%c640, %c0_65] : memref<768x768xbf16, #tpu.memory_space<vmem>>, vector<128x768xbf16>
    %cst_66 = arith.constant dense<0.000000e+00> : vector<8x768xf32>
    %144 = tpu.matmul %142, %143, %cst_66 {dimension_numbers = #tpu.dot_dimension_numbers<[1], [0], [0], [1], [0, 0, 1, 1], [], []>} : vector<8x128xbf16>, vector<128x768xbf16>, vector<8x768xf32> -> vector<8x768xf32>
    %145 = arith.addf %123, %144 : vector<8x768xf32>
    %c1 = arith.constant 1 : index
    %c0_67 = arith.constant 0 : index
    %c0_68 = arith.constant 0 : index
    %146 = vector.load %arg3[%c1, %c0_67, %c0_68] : memref<2x8x8xf32, #tpu.memory_space<vmem>>, vector<1x8x8xf32>
    %147 = vector.shape_cast %146 : vector<1x8x8xf32> to vector<8x8xf32>
    %cst_69 = arith.constant 0.000000e+00 : f32
    %148 = vector.broadcast %cst_69 : f32 to vector<8x8xf32>
    %149 = arith.cmpf one, %147, %148 : vector<8x8xf32>
    %cst_70 = arith.constant 0.000000e+00 : f32
    %150 = vector.broadcast %cst_70 : f32 to vector<8x768xf32>
    %151 = vector.extract_strided_slice %2 {offsets = [8, 0], sizes = [8, 128], strides = [1, 1]} : vector<16x768xf32> to vector<8x128xf32>
    %152 = vector.extract_strided_slice %5 {offsets = [8, 0], sizes = [8, 128], strides = [1, 1]} : vector<16x768xf32> to vector<8x128xf32>
    %153 = vector.extract_strided_slice %8 {offsets = [8, 0], sizes = [8, 128], strides = [1, 1]} : vector<16x768xf32> to vector<8x128xf32>
    %cst_71 = arith.constant dense<0.000000e+00> : vector<8x8xf32>
    %154 = tpu.matmul %151, %152, %cst_71 {dimension_numbers = #tpu.dot_dimension_numbers<[1], [1], [0], [0], [0, 0, 1, 0], [], []>} : vector<8x128xf32>, vector<8x128xf32>, vector<8x8xf32> -> vector<8x8xf32>
    %cst_72 = arith.constant 0.0883883461 : f32
    %155 = vector.broadcast %cst_72 : f32 to vector<8x8xf32>
    %156 = arith.mulf %154, %155 : vector<8x8xf32>
    %cst_73 = arith.constant -1.000000e+06 : f32
    %157 = vector.broadcast %cst_73 : f32 to vector<8x8xf32>
    %158 = arith.select %149, %156, %157 : vector<8x8xi1>, vector<8x8xf32>
    %cst_74 = arith.constant dense<0xFF800000> : vector<8xf32>
    %159 = vector.multi_reduction <maximumf>, %158, %cst_74 [1] : vector<8x8xf32> to vector<8xf32>
    %160 = vector.shape_cast %159 : vector<8xf32> to vector<8x1xf32>
    %161 = vector.broadcast %160 : vector<8x1xf32> to vector<8x8xf32>
    %162 = arith.subf %158, %161 : vector<8x8xf32>
    %163 = math.exp %162 : vector<8x8xf32>
    %cst_75 = arith.constant dense<0.000000e+00> : vector<8xf32>
    %164 = vector.multi_reduction <add>, %163, %cst_75 [1] : vector<8x8xf32> to vector<8xf32>
    %165 = vector.shape_cast %164 : vector<8xf32> to vector<8x1xf32>
    %166 = vector.broadcast %165 : vector<8x1xf32> to vector<8x8xf32>
    %167 = arith.divf %163, %166 : vector<8x8xf32>
    %cst_76 = arith.constant dense<0.000000e+00> : vector<8x128xf32>
    %168 = tpu.matmul %167, %153, %cst_76 {dimension_numbers = #tpu.dot_dimension_numbers<[1], [0], [0], [1], [0, 0, 1, 1], [], []>} : vector<8x8xf32>, vector<8x128xf32>, vector<8x128xf32> -> vector<8x128xf32>
    %169 = arith.truncf %168 : vector<8x128xf32> to vector<8x128xbf16>
    %c0_77 = arith.constant 0 : index
    %c0_78 = arith.constant 0 : index
    %170 = vector.load %arg7[%c0_77, %c0_78] : memref<768x768xbf16, #tpu.memory_space<vmem>>, vector<128x768xbf16>
    %cst_79 = arith.constant dense<0.000000e+00> : vector<8x768xf32>
    %171 = tpu.matmul %169, %170, %cst_79 {dimension_numbers = #tpu.dot_dimension_numbers<[1], [0], [0], [1], [0, 0, 1, 1], [], []>} : vector<8x128xbf16>, vector<128x768xbf16>, vector<8x768xf32> -> vector<8x768xf32>
    %172 = arith.addf %150, %171 : vector<8x768xf32>
    %173 = vector.extract_strided_slice %2 {offsets = [8, 128], sizes = [8, 128], strides = [1, 1]} : vector<16x768xf32> to vector<8x128xf32>
    %174 = vector.extract_strided_slice %5 {offsets = [8, 128], sizes = [8, 128], strides = [1, 1]} : vector<16x768xf32> to vector<8x128xf32>
    %175 = vector.extract_strided_slice %8 {offsets = [8, 128], sizes = [8, 128], strides = [1, 1]} : vector<16x768xf32> to vector<8x128xf32>
    %cst_80 = arith.constant dense<0.000000e+00> : vector<8x8xf32>
    %176 = tpu.matmul %173, %174, %cst_80 {dimension_numbers = #tpu.dot_dimension_numbers<[1], [1], [0], [0], [0, 0, 1, 0], [], []>} : vector<8x128xf32>, vector<8x128xf32>, vector<8x8xf32> -> vector<8x8xf32>
    %cst_81 = arith.constant 0.0883883461 : f32
    %177 = vector.broadcast %cst_81 : f32 to vector<8x8xf32>
    %178 = arith.mulf %176, %177 : vector<8x8xf32>
    %cst_82 = arith.constant -1.000000e+06 : f32
    %179 = vector.broadcast %cst_82 : f32 to vector<8x8xf32>
    %180 = arith.select %149, %178, %179 : vector<8x8xi1>, vector<8x8xf32>
    %cst_83 = arith.constant dense<0xFF800000> : vector<8xf32>
    %181 = vector.multi_reduction <maximumf>, %180, %cst_83 [1] : vector<8x8xf32> to vector<8xf32>
    %182 = vector.shape_cast %181 : vector<8xf32> to vector<8x1xf32>
    %183 = vector.broadcast %182 : vector<8x1xf32> to vector<8x8xf32>
    %184 = arith.subf %180, %183 : vector<8x8xf32>
    %185 = math.exp %184 : vector<8x8xf32>
    %cst_84 = arith.constant dense<0.000000e+00> : vector<8xf32>
    %186 = vector.multi_reduction <add>, %185, %cst_84 [1] : vector<8x8xf32> to vector<8xf32>
    %187 = vector.shape_cast %186 : vector<8xf32> to vector<8x1xf32>
    %188 = vector.broadcast %187 : vector<8x1xf32> to vector<8x8xf32>
    %189 = arith.divf %185, %188 : vector<8x8xf32>
    %cst_85 = arith.constant dense<0.000000e+00> : vector<8x128xf32>
    %190 = tpu.matmul %189, %175, %cst_85 {dimension_numbers = #tpu.dot_dimension_numbers<[1], [0], [0], [1], [0, 0, 1, 1], [], []>} : vector<8x8xf32>, vector<8x128xf32>, vector<8x128xf32> -> vector<8x128xf32>
    %191 = arith.truncf %190 : vector<8x128xf32> to vector<8x128xbf16>
    %c128_86 = arith.constant 128 : index
    %c0_87 = arith.constant 0 : index
    %192 = vector.load %arg7[%c128_86, %c0_87] : memref<768x768xbf16, #tpu.memory_space<vmem>>, vector<128x768xbf16>
    %cst_88 = arith.constant dense<0.000000e+00> : vector<8x768xf32>
    %193 = tpu.matmul %191, %192, %cst_88 {dimension_numbers = #tpu.dot_dimension_numbers<[1], [0], [0], [1], [0, 0, 1, 1], [], []>} : vector<8x128xbf16>, vector<128x768xbf16>, vector<8x768xf32> -> vector<8x768xf32>
    %194 = arith.addf %172, %193 : vector<8x768xf32>
    %195 = vector.extract_strided_slice %2 {offsets = [8, 256], sizes = [8, 128], strides = [1, 1]} : vector<16x768xf32> to vector<8x128xf32>
    %196 = vector.extract_strided_slice %5 {offsets = [8, 256], sizes = [8, 128], strides = [1, 1]} : vector<16x768xf32> to vector<8x128xf32>
    %197 = vector.extract_strided_slice %8 {offsets = [8, 256], sizes = [8, 128], strides = [1, 1]} : vector<16x768xf32> to vector<8x128xf32>
    %cst_89 = arith.constant dense<0.000000e+00> : vector<8x8xf32>
    %198 = tpu.matmul %195, %196, %cst_89 {dimension_numbers = #tpu.dot_dimension_numbers<[1], [1], [0], [0], [0, 0, 1, 0], [], []>} : vector<8x128xf32>, vector<8x128xf32>, vector<8x8xf32> -> vector<8x8xf32>
    %cst_90 = arith.constant 0.0883883461 : f32
    %199 = vector.broadcast %cst_90 : f32 to vector<8x8xf32>
    %200 = arith.mulf %198, %199 : vector<8x8xf32>
    %cst_91 = arith.constant -1.000000e+06 : f32
    %201 = vector.broadcast %cst_91 : f32 to vector<8x8xf32>
    %202 = arith.select %149, %200, %201 : vector<8x8xi1>, vector<8x8xf32>
    %cst_92 = arith.constant dense<0xFF800000> : vector<8xf32>
    %203 = vector.multi_reduction <maximumf>, %202, %cst_92 [1] : vector<8x8xf32> to vector<8xf32>
    %204 = vector.shape_cast %203 : vector<8xf32> to vector<8x1xf32>
    %205 = vector.broadcast %204 : vector<8x1xf32> to vector<8x8xf32>
    %206 = arith.subf %202, %205 : vector<8x8xf32>
    %207 = math.exp %206 : vector<8x8xf32>
    %cst_93 = arith.constant dense<0.000000e+00> : vector<8xf32>
    %208 = vector.multi_reduction <add>, %207, %cst_93 [1] : vector<8x8xf32> to vector<8xf32>
    %209 = vector.shape_cast %208 : vector<8xf32> to vector<8x1xf32>
    %210 = vector.broadcast %209 : vector<8x1xf32> to vector<8x8xf32>
    %211 = arith.divf %207, %210 : vector<8x8xf32>
    %cst_94 = arith.constant dense<0.000000e+00> : vector<8x128xf32>
    %212 = tpu.matmul %211, %197, %cst_94 {dimension_numbers = #tpu.dot_dimension_numbers<[1], [0], [0], [1], [0, 0, 1, 1], [], []>} : vector<8x8xf32>, vector<8x128xf32>, vector<8x128xf32> -> vector<8x128xf32>
    %213 = arith.truncf %212 : vector<8x128xf32> to vector<8x128xbf16>
    %c256_95 = arith.constant 256 : index
    %c0_96 = arith.constant 0 : index
    %214 = vector.load %arg7[%c256_95, %c0_96] : memref<768x768xbf16, #tpu.memory_space<vmem>>, vector<128x768xbf16>
    %cst_97 = arith.constant dense<0.000000e+00> : vector<8x768xf32>
    %215 = tpu.matmul %213, %214, %cst_97 {dimension_numbers = #tpu.dot_dimension_numbers<[1], [0], [0], [1], [0, 0, 1, 1], [], []>} : vector<8x128xbf16>, vector<128x768xbf16>, vector<8x768xf32> -> vector<8x768xf32>
    %216 = arith.addf %194, %215 : vector<8x768xf32>
    %217 = vector.extract_strided_slice %2 {offsets = [8, 384], sizes = [8, 128], strides = [1, 1]} : vector<16x768xf32> to vector<8x128xf32>
    %218 = vector.extract_strided_slice %5 {offsets = [8, 384], sizes = [8, 128], strides = [1, 1]} : vector<16x768xf32> to vector<8x128xf32>
    %219 = vector.extract_strided_slice %8 {offsets = [8, 384], sizes = [8, 128], strides = [1, 1]} : vector<16x768xf32> to vector<8x128xf32>
    %cst_98 = arith.constant dense<0.000000e+00> : vector<8x8xf32>
    %220 = tpu.matmul %217, %218, %cst_98 {dimension_numbers = #tpu.dot_dimension_numbers<[1], [1], [0], [0], [0, 0, 1, 0], [], []>} : vector<8x128xf32>, vector<8x128xf32>, vector<8x8xf32> -> vector<8x8xf32>
    %cst_99 = arith.constant 0.0883883461 : f32
    %221 = vector.broadcast %cst_99 : f32 to vector<8x8xf32>
    %222 = arith.mulf %220, %221 : vector<8x8xf32>
    %cst_100 = arith.constant -1.000000e+06 : f32
    %223 = vector.broadcast %cst_100 : f32 to vector<8x8xf32>
    %224 = arith.select %149, %222, %223 : vector<8x8xi1>, vector<8x8xf32>
    %cst_101 = arith.constant dense<0xFF800000> : vector<8xf32>
    %225 = vector.multi_reduction <maximumf>, %224, %cst_101 [1] : vector<8x8xf32> to vector<8xf32>
    %226 = vector.shape_cast %225 : vector<8xf32> to vector<8x1xf32>
    %227 = vector.broadcast %226 : vector<8x1xf32> to vector<8x8xf32>
    %228 = arith.subf %224, %227 : vector<8x8xf32>
    %229 = math.exp %228 : vector<8x8xf32>
    %cst_102 = arith.constant dense<0.000000e+00> : vector<8xf32>
    %230 = vector.multi_reduction <add>, %229, %cst_102 [1] : vector<8x8xf32> to vector<8xf32>
    %231 = vector.shape_cast %230 : vector<8xf32> to vector<8x1xf32>
    %232 = vector.broadcast %231 : vector<8x1xf32> to vector<8x8xf32>
    %233 = arith.divf %229, %232 : vector<8x8xf32>
    %cst_103 = arith.constant dense<0.000000e+00> : vector<8x128xf32>
    %234 = tpu.matmul %233, %219, %cst_103 {dimension_numbers = #tpu.dot_dimension_numbers<[1], [0], [0], [1], [0, 0, 1, 1], [], []>} : vector<8x8xf32>, vector<8x128xf32>, vector<8x128xf32> -> vector<8x128xf32>
    %235 = arith.truncf %234 : vector<8x128xf32> to vector<8x128xbf16>
    %c384_104 = arith.constant 384 : index
    %c0_105 = arith.constant 0 : index
    %236 = vector.load %arg7[%c384_104, %c0_105] : memref<768x768xbf16, #tpu.memory_space<vmem>>, vector<128x768xbf16>
    %cst_106 = arith.constant dense<0.000000e+00> : vector<8x768xf32>
    %237 = tpu.matmul %235, %236, %cst_106 {dimension_numbers = #tpu.dot_dimension_numbers<[1], [0], [0], [1], [0, 0, 1, 1], [], []>} : vector<8x128xbf16>, vector<128x768xbf16>, vector<8x768xf32> -> vector<8x768xf32>
    %238 = arith.addf %216, %237 : vector<8x768xf32>
    %239 = vector.extract_strided_slice %2 {offsets = [8, 512], sizes = [8, 128], strides = [1, 1]} : vector<16x768xf32> to vector<8x128xf32>
    %240 = vector.extract_strided_slice %5 {offsets = [8, 512], sizes = [8, 128], strides = [1, 1]} : vector<16x768xf32> to vector<8x128xf32>
    %241 = vector.extract_strided_slice %8 {offsets = [8, 512], sizes = [8, 128], strides = [1, 1]} : vector<16x768xf32> to vector<8x128xf32>
    %cst_107 = arith.constant dense<0.000000e+00> : vector<8x8xf32>
    %242 = tpu.matmul %239, %240, %cst_107 {dimension_numbers = #tpu.dot_dimension_numbers<[1], [1], [0], [0], [0, 0, 1, 0], [], []>} : vector<8x128xf32>, vector<8x128xf32>, vector<8x8xf32> -> vector<8x8xf32>
    %cst_108 = arith.constant 0.0883883461 : f32
    %243 = vector.broadcast %cst_108 : f32 to vector<8x8xf32>
    %244 = arith.mulf %242, %243 : vector<8x8xf32>
    %cst_109 = arith.constant -1.000000e+06 : f32
    %245 = vector.broadcast %cst_109 : f32 to vector<8x8xf32>
    %246 = arith.select %149, %244, %245 : vector<8x8xi1>, vector<8x8xf32>
    %cst_110 = arith.constant dense<0xFF800000> : vector<8xf32>
    %247 = vector.multi_reduction <maximumf>, %246, %cst_110 [1] : vector<8x8xf32> to vector<8xf32>
    %248 = vector.shape_cast %247 : vector<8xf32> to vector<8x1xf32>
    %249 = vector.broadcast %248 : vector<8x1xf32> to vector<8x8xf32>
    %250 = arith.subf %246, %249 : vector<8x8xf32>
    %251 = math.exp %250 : vector<8x8xf32>
    %cst_111 = arith.constant dense<0.000000e+00> : vector<8xf32>
    %252 = vector.multi_reduction <add>, %251, %cst_111 [1] : vector<8x8xf32> to vector<8xf32>
    %253 = vector.shape_cast %252 : vector<8xf32> to vector<8x1xf32>
    %254 = vector.broadcast %253 : vector<8x1xf32> to vector<8x8xf32>
    %255 = arith.divf %251, %254 : vector<8x8xf32>
    %cst_112 = arith.constant dense<0.000000e+00> : vector<8x128xf32>
    %256 = tpu.matmul %255, %241, %cst_112 {dimension_numbers = #tpu.dot_dimension_numbers<[1], [0], [0], [1], [0, 0, 1, 1], [], []>} : vector<8x8xf32>, vector<8x128xf32>, vector<8x128xf32> -> vector<8x128xf32>
    %257 = arith.truncf %256 : vector<8x128xf32> to vector<8x128xbf16>
    %c512_113 = arith.constant 512 : index
    %c0_114 = arith.constant 0 : index
    %258 = vector.load %arg7[%c512_113, %c0_114] : memref<768x768xbf16, #tpu.memory_space<vmem>>, vector<128x768xbf16>
    %cst_115 = arith.constant dense<0.000000e+00> : vector<8x768xf32>
    %259 = tpu.matmul %257, %258, %cst_115 {dimension_numbers = #tpu.dot_dimension_numbers<[1], [0], [0], [1], [0, 0, 1, 1], [], []>} : vector<8x128xbf16>, vector<128x768xbf16>, vector<8x768xf32> -> vector<8x768xf32>
    %260 = arith.addf %238, %259 : vector<8x768xf32>
    %261 = vector.extract_strided_slice %2 {offsets = [8, 640], sizes = [8, 128], strides = [1, 1]} : vector<16x768xf32> to vector<8x128xf32>
    %262 = vector.extract_strided_slice %5 {offsets = [8, 640], sizes = [8, 128], strides = [1, 1]} : vector<16x768xf32> to vector<8x128xf32>
    %263 = vector.extract_strided_slice %8 {offsets = [8, 640], sizes = [8, 128], strides = [1, 1]} : vector<16x768xf32> to vector<8x128xf32>
    %cst_116 = arith.constant dense<0.000000e+00> : vector<8x8xf32>
    %264 = tpu.matmul %261, %262, %cst_116 {dimension_numbers = #tpu.dot_dimension_numbers<[1], [1], [0], [0], [0, 0, 1, 0], [], []>} : vector<8x128xf32>, vector<8x128xf32>, vector<8x8xf32> -> vector<8x8xf32>
    %cst_117 = arith.constant 0.0883883461 : f32
    %265 = vector.broadcast %cst_117 : f32 to vector<8x8xf32>
    %266 = arith.mulf %264, %265 : vector<8x8xf32>
    %cst_118 = arith.constant -1.000000e+06 : f32
    %267 = vector.broadcast %cst_118 : f32 to vector<8x8xf32>
    %268 = arith.select %149, %266, %267 : vector<8x8xi1>, vector<8x8xf32>
    %cst_119 = arith.constant dense<0xFF800000> : vector<8xf32>
    %269 = vector.multi_reduction <maximumf>, %268, %cst_119 [1] : vector<8x8xf32> to vector<8xf32>
    %270 = vector.shape_cast %269 : vector<8xf32> to vector<8x1xf32>
    %271 = vector.broadcast %270 : vector<8x1xf32> to vector<8x8xf32>
    %272 = arith.subf %268, %271 : vector<8x8xf32>
    %273 = math.exp %272 : vector<8x8xf32>
    %cst_120 = arith.constant dense<0.000000e+00> : vector<8xf32>
    %274 = vector.multi_reduction <add>, %273, %cst_120 [1] : vector<8x8xf32> to vector<8xf32>
    %275 = vector.shape_cast %274 : vector<8xf32> to vector<8x1xf32>
    %276 = vector.broadcast %275 : vector<8x1xf32> to vector<8x8xf32>
    %277 = arith.divf %273, %276 : vector<8x8xf32>
    %cst_121 = arith.constant dense<0.000000e+00> : vector<8x128xf32>
    %278 = tpu.matmul %277, %263, %cst_121 {dimension_numbers = #tpu.dot_dimension_numbers<[1], [0], [0], [1], [0, 0, 1, 1], [], []>} : vector<8x8xf32>, vector<8x128xf32>, vector<8x128xf32> -> vector<8x128xf32>
    %279 = arith.truncf %278 : vector<8x128xf32> to vector<8x128xbf16>
    %c640_122 = arith.constant 640 : index
    %c0_123 = arith.constant 0 : index
    %280 = vector.load %arg7[%c640_122, %c0_123] : memref<768x768xbf16, #tpu.memory_space<vmem>>, vector<128x768xbf16>
    %cst_124 = arith.constant dense<0.000000e+00> : vector<8x768xf32>
    %281 = tpu.matmul %279, %280, %cst_124 {dimension_numbers = #tpu.dot_dimension_numbers<[1], [0], [0], [1], [0, 0, 1, 1], [], []>} : vector<8x128xbf16>, vector<128x768xbf16>, vector<8x768xf32> -> vector<8x768xf32>
    %282 = arith.addf %260, %281 : vector<8x768xf32>
    %283 = tpu.concatenate %145, %282 in 0 : vector<8x768xf32>, vector<8x768xf32> -> vector<16x768xf32>
    %284 = arith.truncf %283 : vector<16x768xf32> to vector<16x768xbf16>
    %c0_125 = arith.constant 0 : index
    %c0_126 = arith.constant 0 : index
    %285 = vector.load %arg8[%c0_125, %c0_126] : memref<768x768xbf16, #tpu.memory_space<vmem>>, vector<768x768xbf16>
    %cst_127 = arith.constant dense<0.000000e+00> : vector<16x768xf32>
    %286 = tpu.matmul %284, %285, %cst_127 {dimension_numbers = #tpu.dot_dimension_numbers<[1], [0], [0], [1], [0, 0, 1, 1], [], []>} : vector<16x768xbf16>, vector<768x768xbf16>, vector<16x768xf32> -> vector<16x768xf32>
    %c0_128 = arith.constant 0 : index
    %c0_129 = arith.constant 0 : index
    %287 = vector.load %arg9[%c0_128, %c0_129] : memref<1x768xf32, #tpu.memory_space<vmem>>, vector<1x768xf32>
    %288 = vector.broadcast %287 : vector<1x768xf32> to vector<16x768xf32>
    %289 = arith.addf %286, %288 : vector<16x768xf32>
    %cst_130 = arith.constant 0.000000e+00 : f32
    %290 = vector.broadcast %cst_130 : f32 to vector<16x768xf32>
    %291 = arith.maximumf %289, %290 : vector<16x768xf32>
    %292 = arith.truncf %291 : vector<16x768xf32> to vector<16x768xbf16>
    %c0_131 = arith.constant 0 : index
    %c0_132 = arith.constant 0 : index
    %293 = vector.load %arg10[%c0_131, %c0_132] : memref<768x768xbf16, #tpu.memory_space<vmem>>, vector<768x768xbf16>
    %cst_133 = arith.constant dense<0.000000e+00> : vector<16x768xf32>
    %294 = tpu.matmul %292, %293, %cst_133 {dimension_numbers = #tpu.dot_dimension_numbers<[1], [0], [0], [1], [0, 0, 1, 1], [], []>} : vector<16x768xbf16>, vector<768x768xbf16>, vector<16x768xf32> -> vector<16x768xf32>
    %c0_134 = arith.constant 0 : index
    %c0_135 = arith.constant 0 : index
    %295 = vector.load %arg11[%c0_134, %c0_135] : memref<1x768xf32, #tpu.memory_space<vmem>>, vector<1x768xf32>
    %296 = vector.broadcast %295 : vector<1x768xf32> to vector<16x768xf32>
    %297 = arith.addf %294, %296 : vector<16x768xf32>
    %298 = arith.addf %297, %283 : vector<16x768xf32>
    %cst_136 = arith.constant dense<0.000000e+00> : vector<16xf32>
    %299 = vector.multi_reduction <add>, %298, %cst_136 [1] : vector<16x768xf32> to vector<16xf32>
    %300 = vector.shape_cast %299 : vector<16xf32> to vector<16x1xf32>
    %cst_137 = arith.constant 7.680000e+02 : f32
    %301 = vector.broadcast %cst_137 : f32 to vector<16x1xf32>
    %302 = arith.divf %300, %301 : vector<16x1xf32>
    %303 = vector.broadcast %302 : vector<16x1xf32> to vector<16x768xf32>
    %304 = arith.subf %298, %303 : vector<16x768xf32>
    %305 = arith.mulf %304, %304 : vector<16x768xf32>
    %cst_138 = arith.constant dense<0.000000e+00> : vector<16xf32>
    %306 = vector.multi_reduction <add>, %305, %cst_138 [1] : vector<16x768xf32> to vector<16xf32>
    %307 = vector.shape_cast %306 : vector<16xf32> to vector<16x1xf32>
    %cst_139 = arith.constant 7.680000e+02 : f32
    %308 = vector.broadcast %cst_139 : f32 to vector<16x1xf32>
    %309 = arith.divf %307, %308 : vector<16x1xf32>
    %310 = vector.broadcast %302 : vector<16x1xf32> to vector<16x768xf32>
    %311 = arith.subf %298, %310 : vector<16x768xf32>
    %cst_140 = arith.constant 9.99999974E-6 : f32
    %312 = vector.broadcast %cst_140 : f32 to vector<16x1xf32>
    %313 = arith.addf %309, %312 : vector<16x1xf32>
    %314 = math.rsqrt %313 : vector<16x1xf32>
    %315 = vector.broadcast %314 : vector<16x1xf32> to vector<16x768xf32>
    %316 = arith.mulf %311, %315 : vector<16x768xf32>
    %c0_141 = arith.constant 0 : index
    %c0_142 = arith.constant 0 : index
    %317 = vector.load %arg12[%c0_141, %c0_142] : memref<1x768xf32, #tpu.memory_space<vmem>>, vector<1x768xf32>
    %318 = vector.broadcast %317 : vector<1x768xf32> to vector<16x768xf32>
    %319 = arith.mulf %316, %318 : vector<16x768xf32>
    %c0_143 = arith.constant 0 : index
    %c0_144 = arith.constant 0 : index
    %320 = vector.load %arg13[%c0_143, %c0_144] : memref<1x768xf32, #tpu.memory_space<vmem>>, vector<1x768xf32>
    %321 = vector.broadcast %320 : vector<1x768xf32> to vector<16x768xf32>
    %322 = arith.addf %319, %321 : vector<16x768xf32>
    %c0_145 = arith.constant 0 : index
    %c0_146 = arith.constant 0 : index
    %323 = vector.load %arg14[%c0_145, %c0_146] : memref<16x768xf32, #tpu.memory_space<vmem>>, vector<16x768xf32>
    tpu.vector_store %arg14[%c0_145, %c0_146], %322 {strides = array<i32>} : memref<16x768xf32, #tpu.memory_space<vmem>>, vector<16x768xf32>,
    return
  }
}

</mosaic_0001>

<bundles_post_ra>
// kernel: cross_att_forward.1
= control target key start
LH: loop header
LB: loop body
LE: loop exit
PB: predicated region body
PF: predicated region fallthrough
CT: control target
= control target key end

     0   :  { %19 = vsyncpa [#allocation3], 0  ;;  %s16160_s0 = inlined_call_operand.hbm [shape: bf16[16,32], index: 0, kind: input, shape index: {}]   ;;  %s16161_s1 = inlined_call_operand.hbm [shape: bf16[16,32], index: 1, kind: input, shape index: {}]   ;;  %s16162_s2 = inlined_call_operand.hbm [shape: bf16[16,32], index: 2, kind: input, shape index: {}]   ;;  %s16163_s3 = inlined_call_operand.vmem [shape: f32[2,8,8], index: 3, kind: input, shape index: {}]   ;;  %s16164_s4 = inlined_call_operand.hbm [shape: bf16[32,768], index: 4, kind: input, shape index: {}]   ;;  %s16165_s5 = inlined_call_operand.hbm [shape: bf16[32,768], index: 5, kind: input, shape index: {}]   ;;  %s16166_s6 = inlined_call_operand.hbm [shape: bf16[32,768], index: 6, kind: input, shape index: {}]   ;;  %s16167_s7 = inlined_call_operand.hbm [shape: bf16[768,768], index: 7, kind: input, shape index: {}]   ;;  %s16168_s8 = inlined_call_operand.hbm [shape: bf16[768,768], index: 8, kind: input, shape index: {}]   ;;  %s16169_s9 = inlined_call_operand.hbm [shape: f32[1,768], index: 9, kind: input, shape index: {}]   ;;  %s16170_s10 = inlined_call_operand.hbm [shape: bf16[768,768], index: 10, kind: input, shape index: {}]   ;;  %s16171_s11 = inlined_call_operand.hbm [shape: f32[1,768], index: 11, kind: input, shape index: {}]   ;;  %s16172_s12 = inlined_call_operand.hbm [shape: f32[1,768], index: 12, kind: input, shape index: {}]   ;;  %s16173_s13 = inlined_call_operand.hbm [shape: f32[1,768], index: 13, kind: input, shape index: {}]   ;;  %s16174_s14 = inlined_call_operand.hbm [shape: f32[16,768], index: 14, kind: output, shape index: {}]  }
   0x1   :  { %20 = vsyncpa [#allocation6], 0 }
   0x2   :  { %21 = vsyncpa [#allocation9], 0 }
   0x3   :  { %22 = vsyncpa [#allocation12], 0 }
   0x4   :  { %23 = vsyncpa [#allocation15], 0 }
   0x5   :  { %24 = vsyncpa [#allocation18], 0 }
   0x6   :  { %25 = vsyncpa [#allocation21], 0 }
   0x7   :  { %26 = vsyncpa [#allocation4], 0  ;;  %s44_s15 = sshll.u32 %s16161_s1, 4  ;;  %s13989_s16 = smov [#allocation5]   ;;  %s45_s15 = int_to_ptr.hbm [resolvable:$true] %s44_s15 }
   0x8   :  { %s46_s17 = sshll.u32 %s13989_s16, 4  ;;  %s72_s20 = sshll.u32 %s16164_s4, 4  ;;  %s47_s17 = int_to_ptr.vmem [resolvable:$true] %s46_s17  ;;  %s73_s20 = int_to_ptr.hbm [resolvable:$true] %s72_s20 }
   0x9   :  { %s13990_s21 = smov 64   ;;  %s13991_s22 = smov 4  }
   0xa   :  { %52 = dma.hbm_to_vmem [thread:$0]  %s45_s15, 128, %s47_s17, [#allocation6], %s13990_s21, %s13990_s21, %s13991_s22  }
   0xb   :  { %s13992_s23 = smov [#allocation8]   ;;  %s13993_s25 = smov 384  }
   0xc   :  { %s74_s24 = sshll.u32 %s13992_s23, 4  ;;  %s13994_s1 = smov 24   ;;  %s75_s24 = int_to_ptr.vmem [resolvable:$true] %s74_s24 }
   0xd   :  { %80 = dma.hbm_to_vmem [thread:$0]  %s73_s20, 1536, %s75_s24, [#allocation9], %s13993_s25, %s13993_s25, %s13994_s1  }
   0xe   :  { %s98_s4 = sshll.u32 %s16166_s6, 4  ;;  %s13995_s28 = smov [#allocation11]   ;;  %s99_s4 = int_to_ptr.hbm [resolvable:$true] %s98_s4 }
   0xf   :  { %s100_s29 = sshll.u32 %s13995_s28, 4  ;;  %s124_s16 = sshll.u32 %s16168_s8, 4  ;;  %s101_s29 = int_to_ptr.vmem [resolvable:$true] %s100_s29  ;;  %s125_s16 = int_to_ptr.hbm [resolvable:$true] %s124_s16 }
  0x10   :  { %106 = dma.hbm_to_vmem [thread:$0]  %s99_s4, 1536, %s101_s29, [#allocation12], %s13993_s25, %s13993_s25, %s13994_s1  }
  0x11   :  { %s13996_s17 = smov [#allocation14]   ;;  %s148_s23 = sshll.u32 %s16170_s10, 4  ;;  %s149_s23 = int_to_ptr.hbm [resolvable:$true] %s148_s23 }
  0x12   :  { %s126_s18 = sshll.u32 %s13996_s17, 4  ;;  %s173_s8 = sshll.u32 %s16172_s12, 4  ;;  %s127_s18 = int_to_ptr.vmem [resolvable:$true] %s126_s18  ;;  %s174_s8 = int_to_ptr.hbm [resolvable:$true] %s173_s8 }
  0x13   :  { %132 = dma.hbm_to_vmem [thread:$0]  %s125_s16, 36864, %s127_s18, [#allocation15], %s13993_s25, %s13993_s25, %s13994_s1  }
  0x14   :  { %s13997_s26 = smov [#allocation17]   ;;  %s13998_s4 = smov [#allocation20]  }
  0x15   :  { %s150_s27 = sshll.u32 %s13997_s26, 4  ;;  %s175_s10 = sshll.u32 %s13998_s4, 4  ;;  %s151_s27 = int_to_ptr.vmem [resolvable:$true] %s150_s27  ;;  %s176_s10 = int_to_ptr.vmem [resolvable:$true] %s175_s10 }
  0x16   :  { %156 = dma.hbm_to_vmem [thread:$0]  %s149_s23, 36864, %s151_s27, [#allocation18], %s13993_s25, %s13993_s25, %s13994_s1  }
  0x17   :  { %s31_s30 = sshll.u32 %s16160_s0, 4  ;;  %s57_s12 = sshll.u32 %s16162_s2, 4  ;;  %s32_s30 = int_to_ptr.hbm [resolvable:$true] %s31_s30  ;;  %s58_s12 = int_to_ptr.hbm [resolvable:$true] %s57_s12 }
  0x18   :  { %178 = dma.hbm_to_vmem [thread:$0]  %s174_s8, 96, %s176_s10, [#allocation21]  }
  0x19   :  { %s13999_s17 = smov [#allocation2]   ;;  %s14000_s19 = smov [#allocation7]  }
  0x1a   :  { %s33_s18 = sshll.u32 %s13999_s17, 4  ;;  %s59_s20 = sshll.u32 %s14000_s19, 4  ;;  %s34_s18 = int_to_ptr.vmem [resolvable:$true] %s33_s18  ;;  %s60_s20 = int_to_ptr.vmem [resolvable:$true] %s59_s20 }
  0x1b   :  { %39 = dma.hbm_to_vmem [thread:$0]  %s32_s30, 128, %s34_s18, [#allocation3], %s13990_s21, %s13990_s21, %s13991_s22  }
  0x1c   :  { %s85_s0 = sshll.u32 %s16165_s5, 4  ;;  %s111_s8 = sshll.u32 %s16167_s7, 4  ;;  %s86_s0 = int_to_ptr.hbm [resolvable:$true] %s85_s0  ;;  %s112_s8 = int_to_ptr.hbm [resolvable:$true] %s111_s8 }
  0x1d   :  { %65 = dma.hbm_to_vmem [thread:$0]  %s58_s12, 128, %s60_s20, [#allocation6], %s13990_s21, %s13990_s21, %s13991_s22  }
  0x1e   :  { %s14001_s26 = smov [#allocation10]   ;;  %s14002_s4 = smov [#allocation13]  }
  0x1f   :  { %s87_s27 = sshll.u32 %s14001_s26, 4  ;;  %s113_s5 = sshll.u32 %s14002_s4, 4  ;;  %s88_s27 = int_to_ptr.vmem [resolvable:$true] %s87_s27  ;;  %s114_s5 = int_to_ptr.vmem [resolvable:$true] %s113_s5 }
  0x20   :  { %93 = dma.hbm_to_vmem [thread:$0]  %s86_s0, 1536, %s88_s27, [#allocation9], %s13993_s25, %s13993_s25, %s13994_s1  }
  0x21   :  { %s138_s29 = sshll.u32 %s16169_s9, 4  ;;  %s162_s22 = sshll.u32 %s16171_s11, 4  ;;  %s139_s29 = int_to_ptr.hbm [resolvable:$true] %s138_s29  ;;  %s163_s22 = int_to_ptr.hbm [resolvable:$true] %s162_s22 }
  0x22   :  { %119 = dma.hbm_to_vmem [thread:$0]  %s112_s8, 36864, %s114_s5, [#allocation12], %s13993_s25, %s13993_s25, %s13994_s1  }
  0x23   :  { %s14003_s30 = smov [#allocation16]   ;;  %s14004_s16 = smov [#allocation19]  }
  0x24   :  { %s140_s15 = sshll.u32 %s14003_s30, 4  ;;  %s164_s12 = sshll.u32 %s14004_s16, 4  ;;  %s141_s15 = int_to_ptr.vmem [resolvable:$true] %s140_s15  ;;  %s165_s12 = int_to_ptr.vmem [resolvable:$true] %s164_s12 }
  0x25   :  { %143 = dma.hbm_to_vmem [thread:$0]  %s139_s29, 96, %s141_s15, [#allocation15]  }
  0x26   :  { %s184_s9 = sshll.u32 %s16173_s13, 4  ;;  %s14005_s19 = smov [#allocation22]   ;;  %s185_s9 = int_to_ptr.hbm [resolvable:$true] %s184_s9 }
  0x27   :  { %167 = dma.hbm_to_vmem [thread:$0]  %s163_s22, 96, %s165_s12, [#allocation18]  }
  0x28   :  { %s186_s25 = sshll.u32 %s14005_s19, 4  ;;  %s187_s25 = int_to_ptr.vmem [resolvable:$true] %s186_s25 }
  0x29   :  { %189 = dma.hbm_to_vmem [thread:$0]  %s185_s9, 96, %s187_s25, [#allocation21]  }
  0x2a   :  { %13973 = dma.done.wait [#allocation3], 128  }
  0x2b   :  { %13974 = vsyncadd [#allocation3], 4294967168 }
  0x2c   :  { %13975 = dma.done.wait [#allocation6], 256  }
  0x2d   :  { %13976 = vsyncadd [#allocation6], 4294967040 }
  0x2e   :  { %13977 = dma.done.wait [#allocation9], 3072  }
  0x2f   :  { %13978 = vsyncadd [#allocation9], 4294964224 }
  0x30   :  { %13979 = dma.done.wait [#allocation12], 38400  }
  0x31   :  { %13980 = vsyncadd [#allocation12], 4294928896 }
  0x32   :  { %13981 = dma.done.wait [#allocation15], 36960  }
  0x33   :  { %13982 = vsyncadd [#allocation15], 4294930336 }
  0x34   :  { %13983 = dma.done.wait [#allocation18], 36960  }
  0x35   :  { %13984 = vsyncadd [#allocation18], 4294930336 }
  0x36   :  { %13985 = dma.done.wait [#allocation21], 192  }
  0x37   :  { %13986 = vsyncadd [#allocation21], 4294967104  ;;  %v9044_v0 = vld [vmem:[#allocation8 + $0x30] sm:$0xf]  ;;  %v12667_v1 = vld [vmem:[#allocation8 + $0x44] sm:$0xf0] }
  0x38   :  { %v12664_v2 = vld [vmem:[#allocation8 + $0x34] sm:$0xf]  ;;  %v9045_v3 = vor.u32 %v12667_v1, %v9044_v0  ;;  %v9046_v4 = vld [vmem:[#allocation8 + $0x48] sm:$0xf0]  ;;  %v9020_v5 = vld [vmem:[#allocation8] sm:$0xf] }
  0x39   :  { %v12661_v6 = vld [vmem:[#allocation8 + $0x14] sm:$0xf0]  ;;  %v9049_v7 = vor.u32 %v12664_v2, %v9046_v4  ;;  %v12658_v8 = vld [vmem:[#allocation8 + $0x4] sm:$0xf]  ;;  %v9022_v9 = vld [vmem:[#allocation8 + $0x18] sm:$0xf0] }
  0x3a   :  { %332 = vmatpush.bf16.msra.mxu2 %v9045_v3  ;;  %v9021_v10 = vor.u32 %v12661_v6, %v9020_v5  ;;  %v9052_v11 = vld [vmem:[#allocation8 + $0x38] sm:$0xf]  ;;  %v12668_v12 = vld [vmem:[#allocation8 + $0x4c] sm:$0xf0]  ;;  %v12665_v13 = vld [vmem:[#allocation8 + $0x3c] sm:$0xf]  ;;  %v9025_v14 = vor.u32 %v12658_v8, %v9022_v9 }
  0x3b   :  { %346 = vmatpush.bf16.msra.mxu3 %v9049_v7  ;;  %v14151_v15 = vld [vmem:[#allocation2] sm:$0xff]  ;;  %v9053_v16 = vor.u32 %v12668_v12, %v9052_v11  ;;  %v9054_v17 = vld [vmem:[#allocation8 + $0x50] sm:$0xf0]  ;;  %v12662_v20 = vld [vmem:[#allocation8 + $0x1c] sm:$0xf0]  ;;  %vm322_vm0 = vcmask 261120  }
  0x3c   :  { %v9057_v18 = vor.u32 %v12665_v13, %v9054_v17  ;;  %v9028_v19 = vld [vmem:[#allocation8 + $0x8] sm:$0xf]  ;;  %v12659_v21 = vld [vmem:[#allocation8 + $0xc] sm:$0xf]  ;;  %v9030_v22 = vld [vmem:[#allocation8 + $0x20] sm:$0xf0] }
  0x3d   :  { %v9102_v23 = vld [vmem:[#allocation10 + $0x30] sm:$0xf]  ;;  %v12680_v24 = vld [vmem:[#allocation10 + $0x44] sm:$0xf0]  ;;  %v12677_v25 = vld [vmem:[#allocation10 + $0x34] sm:$0xf]  ;;  %v9029_v27 = vor.u32 %v12662_v20, %v9028_v19  ;;  %v9033_v28 = vor.u32 %v12659_v21, %v9030_v22 }
  0x3e   :  { %333 = vmatpush.bf16.msra.mxu2 %v9021_v10  ;;  %v9104_v26 = vld [vmem:[#allocation10 + $0x48] sm:$0xf0]  ;;  %v9103_v29 = vor.u32 %v12680_v24, %v9102_v23  ;;  %v9078_v31 = vld [vmem:[#allocation10] sm:$0xf]  ;;  %v12674_v32 = vld [vmem:[#allocation10 + $0x14] sm:$0xf0] }
  0x3f   :  { %347 = vmatpush.bf16.msra.mxu3 %v9025_v14  ;;  %v9107_v30 = vor.u32 %v12677_v25, %v9104_v26  ;;  %v12671_v33 = vld [vmem:[#allocation10 + $0x4] sm:$0xf]  ;;  %v9080_v34 = vld [vmem:[#allocation10 + $0x18] sm:$0xf0]  ;;  %v9079_v35 = vor.u32 %v12674_v32, %v9078_v31  ;;  %v9118_v37 = vld [vmem:[#allocation10 + $0x40] sm:$0xf] }
  0x40   :  { %v9083_v36 = vor.u32 %v12671_v33, %v9080_v34  ;;  %v12682_v38 = vld [vmem:[#allocation10 + $0x54] sm:$0xf0]  ;;  %v9094_v40 = vld [vmem:[#allocation10 + $0x10] sm:$0xf]  ;;  %v12676_v41 = vld [vmem:[#allocation10 + $0x24] sm:$0xf0] }
  0x41   :  { %9066 = vmatmul.msk.bf16.vlgmr.msra.gmra.mxu2 %vm322_vm0, %v14151_v15  ;;  %v9119_v39 = vor.u32 %v12682_v38, %v9118_v37  ;;  %v9095_v42 = vor.u32 %v12676_v41, %v9094_v40  ;;  %v14161_v43 = vld [vmem:[#allocation5] sm:$0xff]  ;;  %v9168_v44 = vld [vmem:[#allocation11 + $0x38] sm:$0xf]  ;;  %v9144_v47 = vld [vmem:[#allocation11 + $0x8] sm:$0xf]  ;;  %vm766_vm2 = vcmask 64512  }
  0x42   :  { %360 = vmatpush.bf16.msrb.mxu2 %v9053_v16  ;;  %9067 = vmatmul.msk.bf16.vlgmr.msra.gmra.mxu3 %vm322_vm0, %v14151_v15  ;;  %v12694_v45 = vld [vmem:[#allocation11 + $0x4c] sm:$0xf0]  ;;  %v12688_v48 = vld [vmem:[#allocation11 + $0x1c] sm:$0xf0]  ;;  %v14169_v50 = vld [vmem:[#allocation7] sm:$0xff]  ;;  %s8995_s2 = sshll.u32 %s16174_s14, 4  ;;  %s8996_s2 = int_to_ptr.hbm [resolvable:$true] %s8995_s2 }
  0x43   :  { %374 = vmatpush.bf16.msrb.mxu3 %v9057_v18  ;;  %v9169_v46 = vor.u32 %v12694_v45, %v9168_v44  ;;  %v9145_v49 = vor.u32 %v12688_v48, %v9144_v47  ;;  %v9060_v0 = vld [vmem:[#allocation8 + $0x40] sm:$0xf]  ;;  %v12669_v1 = vld [vmem:[#allocation8 + $0x54] sm:$0xf0]  ;;  %v9036_v2 = vld [vmem:[#allocation8 + $0x10] sm:$0xf] }
  0x44   :  { %v9061_v4 = vor.u32 %v12669_v1, %v9060_v0  ;;  %v12663_v5 = vld [vmem:[#allocation8 + $0x24] sm:$0xf0]  ;;  %v12666_v6 = vld [vmem:[#allocation8 + $0x44] sm:$0xf]  ;;  %v9062_v7 = vld [vmem:[#allocation8 + $0x58] sm:$0xf0] }
  0x45   :  { %v9065_v8 = vor.u32 %v12666_v6, %v9062_v7  ;;  %v12660_v9 = vld [vmem:[#allocation8 + $0x14] sm:$0xf]  ;;  %v9038_v10 = vld [vmem:[#allocation8 + $0x28] sm:$0xf0]  ;;  %v9110_v11 = vld [vmem:[#allocation10 + $0x38] sm:$0xf]  ;;  %v9037_v12 = vor.u32 %v12663_v5, %v9036_v2 }
  0x46   :  { %361 = vmatpush.bf16.msrb.mxu2 %v9029_v27  ;;  %388 = vmatpush.bf16.msra.mxu0 %v9061_v4  ;;  %v12681_v13 = vld [vmem:[#allocation10 + $0x4c] sm:$0xf0]  ;;  %v9041_v14 = vor.u32 %v12660_v9, %v9038_v10  ;;  %v12678_v17 = vld [vmem:[#allocation10 + $0x3c] sm:$0xf]  ;;  %v9112_v18 = vld [vmem:[#allocation10 + $0x50] sm:$0xf0] }
  0x47   :  { %375 = vmatpush.bf16.msrb.mxu3 %v9033_v28  ;;  %402 = vmatpush.bf16.msra.mxu1 %v9065_v8  ;;  %v9111_v16 = vor.u32 %v12681_v13, %v9110_v11  ;;  %v9086_v19 = vld [vmem:[#allocation10 + $0x8] sm:$0xf]  ;;  %v12675_v20 = vld [vmem:[#allocation10 + $0x1c] sm:$0xf0]  ;;  %v9115_v21 = vor.u32 %v12678_v17, %v9112_v18  ;;  %v12672_v32 = vld [vmem:[#allocation10 + $0xc] sm:$0xf] }
  0x48   :  { %v9087_v22 = vor.u32 %v12675_v20, %v9086_v19  ;;  %v14202_v24 = vld [vmem:[%s16163_s3] sm:$0xff]  ;;  %v9088_v33 = vld [vmem:[#allocation10 + $0x20] sm:$0xf0]  ;;  %v9136_v38 = vld [vmem:[#allocation11] sm:$0xf]  ;;  %s14008_s24 = smov 768  }
  0x49   :  { %vm743_vm1 = vcmp.ne.f32.partialorder %v14202_v24, 0.0  ;;  %v9091_v34 = vor.u32 %v12672_v32, %v9088_v33  ;;  %v12690_v41 = vld [vmem:[#allocation11 + $0x34] sm:$0xf]  ;;  %v12684_v45 = vld [vmem:[#allocation11 + $0x4] sm:$0xf]  ;;  %s14009_s8 = smov 48  }
  0x4a   :  { %498 = vmatpush.bf16.msra.mxu2 %v9103_v29  ;;  %389 = vmatpush.bf16.msra.mxu0 %v9037_v12  ;;  %v12679_v48 = vld [vmem:[#allocation10 + $0x44] sm:$0xf]  ;;  %v9170_v0 = vld [vmem:[#allocation11 + $0x50] sm:$0xf0]  ;;  %v12685_v4 = vld [vmem:[#allocation11 + $0xc] sm:$0xf] }
  0x4b   :  { %512 = vmatpush.bf16.msra.mxu3 %v9107_v30  ;;  %403 = vmatpush.bf16.msra.mxu1 %v9041_v14  ;;  %v9146_v5 = vld [vmem:[#allocation11 + $0x20] sm:$0xf0]  ;;  %v9178_v32 = vld [vmem:[#allocation11 + $0x58] sm:$0xf0]  ;;  %v9152_v33 = vld [vmem:[#allocation11 + $0x10] sm:$0xf] }
  0x4c   :  { %v9149_v6 = vor.u32 %v12685_v4, %v9146_v5  ;;  %v12784_v4 = vld [vmem:[#allocation13 + $0x2bc] sm:$0xf0]  ;;  %v10324_v24 = vld [vmem:[#allocation13 + $0x8d0] sm:$0xf] }
  0x4d   :  { %9070 = vmatmul.msk.bf16.vlgmr.msra.gmra.mxu0 %vm322_vm0, %v14151_v15 }
  0x4e   :  { %499 = vmatpush.bf16.msra.mxu2 %v9079_v35  ;;  %526 = vmatpush.bf16.msrb.mxu0 %v9111_v16  ;;  %v9160_v35 = vld [vmem:[#allocation11 + $0x30] sm:$0xf] }
  0x4f   :  { %513 = vmatpush.bf16.msra.mxu3 %v9083_v36  ;;  %540 = vmatpush.bf16.msrb.mxu1 %v9115_v21  ;;  %v12693_v36 = vld [vmem:[#allocation11 + $0x44] sm:$0xf0] }
  0x50   :  { %9071 = vmatmul.msk.bf16.vlgmr.msra.gmra.mxu1 %vm322_vm0, %v14151_v15  ;;  %v9161_v37 = vor.u32 %v12693_v36, %v9160_v35  ;;  %v12686_v36 = vld [vmem:[#allocation11 + $0x14] sm:$0xf] }
  0x51   :  { %9068 = vmatmul.msk.bf16.vlgmr.msrb.gmra.mxu2 %vm322_vm0, %v14151_v15 }
  0x52   :  { %9069 = vmatmul.msk.bf16.vlgmr.msrb.gmra.mxu3 %vm322_vm0, %v14151_v15  ;;  %554 = vmatpush.bf16.msrb.mxu2 %v9119_v39  ;;  %v12687_v39 = vld [vmem:[#allocation11 + $0x14] sm:$0xf0] }
  0x53   :  { %527 = vmatpush.bf16.msrb.mxu0 %v9087_v22  ;;  %541 = vmatpush.bf16.msrb.mxu1 %v9091_v34  ;;  %v9137_v40 = vor.u32 %v12687_v39, %v9136_v38  ;;  %v12689_v34 = vld [vmem:[#allocation11 + $0x24] sm:$0xf0]  ;;  %v9360_v38 = vld [vmem:[#allocation13 + $0x2d0] sm:$0xf] }
  0x54   :  { %v9153_v39 = vor.u32 %v12689_v34, %v9152_v33  ;;  %v9296_v34 = vld [vmem:[#allocation13 + $0x248] sm:$0xf] }
  0x56   :  { %555 = vmatpush.bf16.msrb.mxu2 %v9095_v42  ;;  %v9162_v42 = vld [vmem:[#allocation11 + $0x48] sm:$0xf0] }
  0x57   :  { %664 = vmatpush.bf16.msra.mxu0 %v9161_v37  ;;  %v9165_v44 = vor.u32 %v12690_v41, %v9162_v42  ;;  %v9154_v37 = vld [vmem:[#allocation11 + $0x28] sm:$0xf0]  ;;  %v12786_v41 = vld [vmem:[#allocation13 + $0x2d4] sm:$0xf] }
  0x58   :  { %v9362_v42 = vld [vmem:[#allocation13 + $0x2e8] sm:$0xf0] }
  0x59   :  { %678 = vmatpush.bf16.msra.mxu1 %v9165_v44 }
  0x5b   :  { %665 = vmatpush.bf16.msra.mxu0 %v9137_v40  ;;  %v12789_v40 = vld [vmem:[#allocation13 + $0x2e4] sm:$0xf0] }
  0x5d   :  { %9126 = vmatmul.msk.bf16.vlgmr.msrb.gmra.mxu0 %vm322_vm0, %v14161_v43 }
  0x60   :  { %9127 = vmatmul.msk.bf16.vlgmr.msrb.gmra.mxu1 %vm322_vm0, %v14161_v43 }
  0x61   :  { %9124 = vmatmul.msk.bf16.vlgmr.msra.gmra.mxu2 %vm322_vm0, %v14161_v43 }
  0x62   :  { %9125 = vmatmul.msk.bf16.vlgmr.msra.gmra.mxu3 %vm322_vm0, %v14161_v43  ;;  %692 = vmatpush.bf16.msra.mxu2 %v9169_v46  ;;  %v9138_v46 = vld [vmem:[#allocation11 + $0x18] sm:$0xf0] }
  0x63   :  { %v9141_v47 = vor.u32 %v12684_v45, %v9138_v46  ;;  %v9157_v45 = vor.u32 %v12686_v36, %v9154_v37  ;;  %v14249_v46 = vor.u32 %v12789_v40, %v9360_v38  ;;  %v12787_v40 = vld [vmem:[#allocation13 + $0x2dc] sm:$0xf] }
  0x65   :  { %679 = vmatpush.bf16.msra.mxu1 %v9141_v47  ;;  %v9368_v47 = vld [vmem:[#allocation13 + $0x2d8] sm:$0xf] }
  0x66   :  { %693 = vmatpush.bf16.msra.mxu2 %v9145_v49  ;;  %v9120_v49 = vld [vmem:[#allocation10 + $0x58] sm:$0xf0] }
  0x6d   :  { %9182 = vmatmul.msk.bf16.vlgmr.msra.gmra.mxu0 %vm322_vm0, %v14169_v50 }
  0x70   :  { %9183 = vmatmul.msk.bf16.vlgmr.msra.gmra.mxu1 %vm322_vm0, %v14169_v50 }
  0x71   :  { %9128 = vmatmul.msk.bf16.vlgmr.msrb.gmra.mxu2 %vm322_vm0, %v14161_v43 }
  0x81   :  { %9184 = vmatmul.msk.bf16.vlgmr.msra.gmra.mxu2 %vm322_vm0, %v14169_v50 }
  0xc4   :  { %v335_v51 = vpop.f32.mrf.mxu2 }
  0xc5   :  { %v349_v52 = vpop.f32.mrf.mxu3 }
  0xca   :  { %v14231_v17 = vpop.f32.mrf.mxu0 }
  0xcc   :  { %v14173_v53 = vpop.f32.mrf.mxu2 }
  0xcd   :  { %v14175_v54 = vpop.f32.mrf.mxu3  ;;  %v14235_v19 = vpop.f32.mrf.mxu1 }
  0xd2   :  { %v14233_v18 = vpop.f32.mrf.mxu0 }
  0xd3   :  { %16422 = vst [vmem:[#allocation36_spill] sm:$0xff] %v14233_v18  ;;  %v9352_v18 = vld [vmem:[#allocation13 + $0x2b0] sm:$0xf] }
  0xd4   :  { %v14177_v55 = vpop.f32.mrf.mxu2 }
  0xd5   :  { %v14179_v56 = vpop.f32.mrf.mxu3  ;;  %v14237_v20 = vpop.f32.mrf.mxu1 }
  0xd6   :  { %16423 = vst [vmem:[#allocation37_spill] sm:$0xff] %v14237_v20 }
  0xda   :  { %v14239_v21 = vpop.f32.mrf.mxu0 }
  0xdc   :  { %v14181_v57 = vpop.f32.mrf.mxu2 }
  0xdd   :  { %16418 = vst [vmem:[#allocation32_spill] sm:$0xff] %v14181_v57  ;;  %v14183_v58 = vpop.f32.mrf.mxu3 }
  0xde   :  { %16419 = vst [vmem:[#allocation33_spill] sm:$0xff] %v14183_v58 }
  0xe2   :  { %v14241_v22 = vpop.f32.mrf.mxu0 }
  0xe3   :  { %16424 = vst [vmem:[#allocation38_spill] sm:$0xff] %v14241_v22  ;;  %v12770_v22 = vld [vmem:[#allocation13 + $0x254] sm:$0xf] }
  0xe4   :  { %v501_v59 = vpop.f32.mrf.mxu2 }
  0xe5   :  { %v515_v60 = vpop.f32.mrf.mxu3  ;;  %759 = vmatpush.xpose.msrb.mxu2 %v501_v59  ;;  %v9096_v59 = vld [vmem:[#allocation10 + $0x28] sm:$0xf0] }
  0xe8   :  { %760 = vmatmul.f32.vlgmr.msrb.gmra.mxu2 %v335_v51  ;;  %v12673_v51 = vld [vmem:[#allocation10 + $0x14] sm:$0xf] }
  0xe9   :  { %878 = vmatpush.xpose.msra.mxu2 %v515_v60  ;;  %v12691_v60 = vld [vmem:[#allocation11 + $0x3c] sm:$0xf]  ;;  %v9099_v1 = vor.u32 %v12673_v51, %v9096_v59  ;;  %v12783_v59 = vld [vmem:[#allocation13 + $0x2b4] sm:$0xf0] }
  0xea   :  { %v9173_v2 = vor.u32 %v12691_v60, %v9170_v0  ;;  %v12780_v60 = vld [vmem:[#allocation13 + $0x2a4] sm:$0xf]  ;;  %v9338_v0 = vld [vmem:[#allocation13 + $0x2b8] sm:$0xf0] }
  0xeb   :  { %v14261_v5 = vor.u32 %v12780_v60, %v9338_v0  ;;  %v9266_v60 = vld [vmem:[#allocation13 + $0x228] sm:$0xf0] }
  0xec   :  { %v14185_v61 = vpop.f32.mrf.mxu2 }
  0xf0   :  { %879 = vmatmul.f32.vlgmr.msra.gmra.mxu2 %v349_v52  ;;  %v9123_v52 = vor.u32 %v12679_v48, %v9120_v49  ;;  %v12790_v48 = vld [vmem:[#allocation13 + $0x2ec] sm:$0xf0]  ;;  %v14252_v49 = vor.u32 %v12786_v41, %v9362_v42 }
  0xf1   :  { %v14254_v51 = vor.u32 %v12790_v48, %v9368_v47  ;;  %v12765_v47 = vld [vmem:[#allocation13 + $0x224] sm:$0xf0] }
  0xf2   :  { %568 = vmatpush.bf16.msrb.mxu3 %v9123_v52  ;;  %v9336_v52 = vld [vmem:[#allocation13 + $0x2a0] sm:$0xf] }
  0xf3   :  { %1247 = vmatpush.bf16.msrb.mxu2 %v14254_v51 }
  0xf4   :  { %v14187_v62 = vpop.f32.mrf.mxu2 }
  0xf6   :  { %569 = vmatpush.bf16.msrb.mxu3 %v9099_v1  ;;  %v9344_v1 = vld [vmem:[#allocation13 + $0x2a8] sm:$0xf] }
  0xf9   :  { %9129 = vmatmul.msk.bf16.vlgmr.msrb.gmra.mxu3 %vm322_vm0, %v14161_v43 }
  0xfa   :  { %706 = vmatpush.bf16.msra.mxu3 %v9173_v2  ;;  %v14257_v2 = vor.u32 %v12783_v59, %v9336_v52  ;;  %v9370_v52 = vld [vmem:[#allocation13 + $0x2f0] sm:$0xf0] }
  0xfb   :  { %v12762_v59 = vld [vmem:[#allocation13 + $0x214] sm:$0xf] }
  0xfc   :  { %v14189_v63 = vpop.f32.mrf.mxu2 }
  0xfd   :  { %16420 = vst [vmem:[#allocation34_spill] sm:$0xff] %v14189_v63  ;;  %v12785_v63 = vld [vmem:[#allocation13 + $0x2c4] sm:$0xf0] }
  0xfe   :  { %707 = vmatpush.bf16.msra.mxu3 %v9149_v6  ;;  %v14263_v6 = vor.u32 %v12784_v4, %v9344_v1  ;;  %v9272_v4 = vld [vmem:[#allocation13 + $0x218] sm:$0xf] }
 0x100   :  { %1248 = vmatpush.bf16.msrb.mxu2 %v14263_v6 }
 0x104   :  { %v14191_v3 = vpop.f32.mrf.mxu2 }
 0x109   :  { %9185 = vmatmul.msk.bf16.vlgmr.msra.gmra.mxu3 %vm322_vm0, %v14169_v50 }
 0x10c   :  { %v14195_v23 = vpop.f32.mrf.mxu2 }
 0x10d   :  { %16421 = vst [vmem:[#allocation35_spill] sm:$0xff] %v14195_v23 }
 0x16b   :  { %v761_v25 = vpop.f32.mrf.mxu2 }
 0x16c   :  { %v764_v26 = vmul.f32 0.088388346, %v761_v25  ;;  %v14243_v25 = vpop.f32.mrf.mxu1 }
 0x16e   :  { %v765_v27 = vsel %vm743_vm1, %v764_v26, -1000000.0 }
 0x16f   :  { %v767_v28 = vsel %vm766_vm2, %v765_v27, -inf }
 0x170   :  { %768 = vmax.xlane.f32.xlu0 %v767_v28 }
 0x173   :  { %v880_v15 = vpop.f32.mrf.mxu2 }
 0x174   :  { %v883_v29 = vmul.f32 0.088388346, %v880_v15  ;;  %v14245_v26 = vpop.f32.mrf.mxu1  ;;  %v9176_v15 = vld [vmem:[#allocation11 + $0x40] sm:$0xf] }
 0x175   :  { %16425 = vst [vmem:[#allocation39_spill] sm:$0xff] %v14245_v26  ;;  %v12729_v26 = vld [vmem:[#allocation13 + $0x104] sm:$0xf0] }
 0x176   :  { %v884_v30 = vsel %vm743_vm1, %v883_v29, -1000000.0  ;;  %v12695_v29 = vld [vmem:[#allocation11 + $0x54] sm:$0xf0] }
 0x177   :  { %v885_v31 = vsel %vm766_vm2, %v884_v30, -inf }
 0x178   :  { %886 = vmax.xlane.f32.xlu0 %v885_v31  ;;  %v9177_v31 = vor.u32 %v12695_v29, %v9176_v15  ;;  %v9288_v15 = vld [vmem:[#allocation13 + $0x240] sm:$0xf] }
 0x17a   :  { %720 = vmatpush.bf16.msrb.mxu0 %v9177_v31  ;;  %v12768_v31 = vld [vmem:[#allocation13 + $0x244] sm:$0xf] }
 0x17c   :  { %v681_v28 = vpop.f32.mrf.mxu1 }
 0x17e   :  { %721 = vmatpush.bf16.msrb.mxu0 %v9153_v39 }
 0x181   :  { %9186 = vmatmul.msk.bf16.vlgmr.msrb.gmra.mxu0 %vm322_vm0, %v14169_v50 }
 0x182   :  { %1221 = vmatpush.bf16.msra.mxu0 %v14249_v46 }
 0x186   :  { %1222 = vmatpush.bf16.msra.mxu0 %v14257_v2 }
 0x1e3   :  { %v769_v7 = vpop.xlane.xlu0 %768 }
 0x1e4   :  { %v770_v8 = vsub.f32 %v765_v27, %v769_v7  ;;  %v667_v27 = vpop.f32.mrf.mxu0  ;;  %v9312_v7 = vld [vmem:[#allocation13 + $0x270] sm:$0xf] }
 0x1e5   :  { %809 = vmatpush.msrb.mxu3 %v667_v27 }
 0x1e6   :  { %v771_v9 = vmul.f32 1.442695, %v770_v8  ;;  %v12777_v8 = vld [vmem:[#allocation13 + $0x284] sm:$0xf0] }
 0x1e7   :  { %927 = vmatpush.msra.mxu3 %v681_v28  ;;  %v14273_v28 = vor.u32 %v12777_v8, %v9312_v7  ;;  %v12766_v7 = vld [vmem:[#allocation13 + $0x22c] sm:$0xf0] }
 0x1e8   :  { %13581 = vpow2.f32 %v771_v9  ;;  %v12774_v9 = vld [vmem:[#allocation13 + $0x274] sm:$0xf] }
 0x1e9   :  { %1223 = vmatpush.bf16.msra.mxu0 %v14273_v28 }
 0x1eb   :  { %v887_v10 = vpop.xlane.xlu0 %886 }
 0x1ec   :  { %v888_v11 = vsub.f32 %v884_v30, %v887_v10  ;;  %v12692_v30 = vld [vmem:[#allocation11 + $0x44] sm:$0xf]  ;;  %v9314_v10 = vld [vmem:[#allocation13 + $0x288] sm:$0xf0] }
 0x1ed   :  { %v9181_v35 = vor.u32 %v12692_v30, %v9178_v32  ;;  %v14278_v29 = vor.u32 %v12774_v9, %v9314_v10  ;;  %v9290_v32 = vld [vmem:[#allocation13 + $0x258] sm:$0xf0]  ;;  %v12781_v10 = vld [vmem:[#allocation13 + $0x2ac] sm:$0xf] }
 0x1ee   :  { %v14221_v12 = vpop.eup %13581  ;;  %v889_v13 = vmul.f32 1.442695, %v888_v11  ;;  %v9320_v11 = vld [vmem:[#allocation13 + $0x278] sm:$0xf]  ;;  %v14289_v41 = vor.u32 %v12768_v31, %v9290_v32 }
 0x1ef   :  { %v773_v14 = vsel %vm766_vm2, %v14221_v12, 0.0  ;;  %734 = vmatpush.bf16.msrb.mxu1 %v9181_v35  ;;  %v12772_v35 = vld [vmem:[#allocation13 + $0x25c] sm:$0xf0] }
 0x1f0   :  { %13583 = vpow2.f32 %v889_v13  ;;  %774 = vadd.xlane.f32.xlu1 %v773_v14  ;;  %v12778_v13 = vld [vmem:[#allocation13 + $0x28c] sm:$0xf0]  ;;  %v14291_v42 = vor.u32 %v12772_v35, %v9296_v34  ;;  %v12756_v34 = vld [vmem:[#allocation13 + $0x1e4] sm:$0xf]  ;;  %v9242_v35 = vld [vmem:[#allocation13 + $0x1f8] sm:$0xf0] }
 0x1f1   :  { %v14280_v30 = vor.u32 %v12778_v13, %v9320_v11 }
 0x1f3   :  { %735 = vmatpush.bf16.msrb.mxu1 %v9157_v45  ;;  %1249 = vmatpush.bf16.msrb.mxu2 %v14280_v30  ;;  %v9264_v45 = vld [vmem:[#allocation13 + $0x210] sm:$0xf] }
 0x1f4   :  { %v14297_v11 = vor.u32 %v12765_v47, %v9264_v45 }
 0x1f6   :  { %v14227_v16 = vpop.eup %13583  ;;  %9187 = vmatmul.msk.bf16.vlgmr.msrb.gmra.mxu1 %vm322_vm0, %v14169_v50  ;;  %v12771_v50 = vld [vmem:[#allocation13 + $0x254] sm:$0xf0] }
 0x1f7   :  { %v891_v43 = vsel %vm766_vm2, %v14227_v16, 0.0  ;;  %1234 = vmatpush.bf16.msra.mxu1 %v14252_v49  ;;  %v14285_v39 = vor.u32 %v12771_v50, %v9288_v15  ;;  %1250 = vmatpush.bf16.msrb.mxu2 %v14291_v42  ;;  %v14303_v15 = vor.u32 %v12762_v59, %v9266_v60  ;;  %v9240_v50 = vld [vmem:[#allocation13 + $0x1e0] sm:$0xf]  ;;  %v9216_v59 = vld [vmem:[#allocation13 + $0x1b0] sm:$0xf] }
 0x1f8   :  { %892 = vadd.xlane.f32.xlu1 %v891_v43  ;;  %v12753_v60 = vld [vmem:[#allocation13 + $0x1c4] sm:$0xf0] }
 0x1f9   :  { %1224 = vmatpush.bf16.msra.mxu0 %v14285_v39 }
 0x1fb   :  { %1235 = vmatpush.bf16.msra.mxu1 %v14261_v5 }
 0x1fd   :  { %1225 = vmatpush.bf16.msra.mxu0 %v14297_v11 }
 0x1ff   :  { %1236 = vmatpush.bf16.msra.mxu1 %v14278_v29 }
 0x203   :  { %1237 = vmatpush.bf16.msra.mxu1 %v14289_v41 }
 0x207   :  { %1238 = vmatpush.bf16.msra.mxu1 %v14303_v15 }
 0x263   :  { %v14247_v44 = vpop.xlane.xlu1 %774 }
 0x264   :  { %13585 = vrcp.f32 %v14247_v44  ;;  %v787_v36 = vand.u32 2147483648, %v14247_v44  ;;  %v785_v38 = vand.u32 2147483647, %v14247_v44  ;;  %vm781_vm4 = vweird.f32 %v14247_v44 }
 0x266   :  { %v788_v1 = vor.u32 1.1754944e-38, %v787_v36  ;;  %vm786_vm6 = vcmp.eq.f32.partialorder %v785_v38, 8.507059e+37  ;;  %v12760_v38 = vld [vmem:[#allocation13 + $0x1fc] sm:$0xf0] }
 0x26a   :  { %v13586_v14 = vpop.eup %13585 }
 0x26b   :  { %v777_v43 = vmul.f32 %v13586_v14, %v14247_v44  ;;  %v14270_v27 = vpop.xlane.xlu1 %892  ;;  %vm782_vm3 = vweird.f32 %v13586_v14  ;;  %v14299_v44 = vor.u32 %v12787_v40, %v9370_v52  ;;  %v14318_v52 = vor.u32 %v12756_v34, %v9242_v35 }
 0x26c   :  { %13587 = vrcp.f32 %v14270_v27  ;;  %vm783_vm5 = vmor %vm781_vm4, %vm782_vm3  ;;  %v905_v36 = vand.u32 2147483648, %v14270_v27  ;;  %v903_v45 = vand.u32 2147483647, %v14270_v27  ;;  %vm899_vm8 = vweird.f32 %v14270_v27 }
 0x26d   :  { %v778_v33 = vsub.f32 1.0, %v777_v43  ;;  %16426 = vst [vmem:[#allocation40_spill] sm:$0xff] %v14299_v44  ;;  %v9346_v43 = vld [vmem:[#allocation13 + $0x2c0] sm:$0xf0]  ;;  %1239 = vmatpush.bf16.msra.mxu1 %v14318_v52 }
 0x26e   :  { %vm904_vm10 = vcmp.eq.f32.partialorder %v903_v45, 8.507059e+37  ;;  %v9194_v45 = vld [vmem:[#allocation13 + $0x198] sm:$0xf0] }
 0x26f   :  { %v779_v37 = vmul.f32 %v13586_v14, %v778_v33  ;;  %v14306_v33 = vor.u32 %v12766_v7, %v9272_v4  ;;  %v9322_v4 = vld [vmem:[#allocation13 + $0x290] sm:$0xf0] }
 0x271   :  { %v780_v48 = vadd.f32 %v13586_v14, %v779_v37  ;;  %16427 = vst [vmem:[#allocation41_spill] sm:$0xff] %v14306_v33  ;;  %v9248_v37 = vld [vmem:[#allocation13 + $0x1e8] sm:$0xf]  ;;  %1251 = vmatpush.bf16.msrb.mxu2 %v14306_v33  ;;  %v12836_v33 = vld [vmem:[#allocation13 + $0x464] sm:$0xf] }
 0x272   :  { %v13588_v0 = vpop.eup %13587  ;;  %v14322_v7 = vor.u32 %v12760_v38, %v9248_v37  ;;  %v12747_v37 = vld [vmem:[#allocation13 + $0x194] sm:$0xf0]  ;;  %v12744_v38 = vld [vmem:[#allocation13 + $0x184] sm:$0xf] }
 0x273   :  { %v784_v8 = vsel %vm783_vm5, %v13586_v14, %v780_v48  ;;  %v895_v9 = vmul.f32 %v13588_v0, %v14270_v27  ;;  %v12759_v14 = vld [vmem:[#allocation13 + $0x1f4] sm:$0xf0]  ;;  %vm900_vm7 = vweird.f32 %v13588_v0  ;;  %v12775_v48 = vld [vmem:[#allocation13 + $0x27c] sm:$0xf] }
 0x274   :  { %v789_v13 = vsel %vm786_vm6, %v788_v1, %v784_v8  ;;  %v14312_v47 = vor.u32 %v12759_v14, %v9240_v50  ;;  %16429 = vst [vmem:[#allocation43_spill] sm:$0xff] %v14322_v7  ;;  %v12750_v8 = vld [vmem:[#allocation13 + $0x1b4] sm:$0xf]  ;;  %vm901_vm9 = vmor %vm899_vm8, %vm900_vm7  ;;  %v12769_v14 = vld [vmem:[#allocation13 + $0x24c] sm:$0xf]  ;;  %v14329_v34 = vor.u32 %v12775_v48, %v9322_v4 }
 0x275   :  { %v896_v31 = vsub.f32 1.0, %v895_v9  ;;  %v790_v32 = vmul.f32 %v14221_v12, %v789_v13  ;;  %v14315_v12 = vor.u32 %v12781_v10, %v9346_v43  ;;  %v9218_v9 = vld [vmem:[#allocation13 + $0x1c8] sm:$0xf0]  ;;  %v906_v10 = vor.u32 1.1754944e-38, %v905_v36  ;;  %v9224_v13 = vld [vmem:[#allocation13 + $0x1b8] sm:$0xf]  ;;  %1252 = vmatpush.bf16.msrb.mxu2 %v14322_v7 }
 0x276   :  { %v12754_v43 = vld [vmem:[#allocation13 + $0x1cc] sm:$0xf0]  ;;  %1226 = vmatpush.bf16.msra.mxu0 %v14312_v47  ;;  %16430 = vst [vmem:[#allocation44_spill] sm:$0xff] %v14329_v34  ;;  %v14332_v35 = vor.u32 %v12750_v8, %v9218_v9  ;;  %v9192_v36 = vld [vmem:[#allocation13 + $0x180] sm:$0xf] }
 0x277   :  { %v897_v40 = vmul.f32 %v13588_v0, %v896_v31  ;;  %9188 = vmatmul.msk.f32.vlgmr.msrb.gmra.mxu3 %vm766_vm2, %v790_v32  ;;  %16428 = vst [vmem:[#allocation42_spill] sm:$0xff] %v14315_v12  ;;  %v9298_v31 = vld [vmem:[#allocation13 + $0x260] sm:$0xf0]  ;;  %v14326_v32 = vor.u32 %v12753_v60, %v9216_v59  ;;  %v9200_v59 = vld [vmem:[#allocation13 + $0x188] sm:$0xf]  ;;  %v14340_v4 = vor.u32 %v12747_v37, %v9192_v36 }
 0x278   :  { %1260 = vmatpush.bf16.msrb.mxu3 %v14299_v44  ;;  %v12748_v60 = vld [vmem:[#allocation13 + $0x19c] sm:$0xf0]  ;;  %v12788_v48 = vld [vmem:[#allocation13 + $0x2e4] sm:$0xf]  ;;  %v9378_v8 = vld [vmem:[#allocation13 + $0x2f8] sm:$0xf0]  ;;  %1240 = vmatpush.bf16.msra.mxu1 %v14332_v35 }
 0x279   :  { %v898_v1 = vadd.f32 %v13588_v0, %v897_v40  ;;  %v14336_v40 = vor.u32 %v12754_v43, %v9224_v13  ;;  %v9552_v9 = vld [vmem:[#allocation13 + $0x150] sm:$0xf]  ;;  %v14346_v13 = vor.u32 %v12744_v38, %v9194_v45  ;;  %v12763_v43 = vld [vmem:[#allocation13 + $0x21c] sm:$0xf]  ;;  %v14353_v36 = vor.u32 %v12788_v48, %v9378_v8  ;;  %v9528_v38 = vld [vmem:[#allocation13 + $0x120] sm:$0xf] }
 0x27a   :  { %1227 = vmatpush.bf16.msra.mxu0 %v14326_v32  ;;  %v12735_v45 = vld [vmem:[#allocation13 + $0x134] sm:$0xf0]  ;;  %v9328_v8 = vld [vmem:[#allocation13 + $0x280] sm:$0xf]  ;;  %v9456_v44 = vld [vmem:[#allocation13 + $0x90] sm:$0xf] }
 0x27b   :  { %v902_v50 = vsel %vm901_vm9, %v13588_v0, %v898_v1  ;;  %16431 = vst [vmem:[#allocation45_spill] sm:$0xff] %v14336_v40  ;;  %v9376_v1 = vld [vmem:[#allocation13 + $0x2e0] sm:$0xf]  ;;  %1253 = vmatpush.bf16.msrb.mxu2 %v14336_v40  ;;  %v14370_v48 = vor.u32 %v12735_v45, %v9528_v38  ;;  %v9304_v38 = vld [vmem:[#allocation13 + $0x250] sm:$0xf] }
 0x27c   :  { %v907_v27 = vsel %vm904_vm10, %v906_v10, %v902_v50  ;;  %1261 = vmatpush.bf16.msrb.mxu3 %v14315_v12  ;;  %v12791_v10 = vld [vmem:[#allocation13 + $0x2f4] sm:$0xf0]  ;;  %v12741_v50 = vld [vmem:[#allocation13 + $0x164] sm:$0xf0]  ;;  %16435 = vst [vmem:[#allocation49_spill] sm:$0xff] %v14353_v36  ;;  %1241 = vmatpush.bf16.msra.mxu1 %v14346_v13 }
 0x27d   :  { %v908_v0 = vmul.f32 %v14227_v16, %v907_v27  ;;  %v14343_v16 = vor.u32 %v12769_v14, %v9298_v31  ;;  %v9274_v27 = vld [vmem:[#allocation13 + $0x230] sm:$0xf0]  ;;  %v14351_v20 = vor.u32 %v12791_v10, %v9376_v1  ;;  %v14355_v37 = vor.u32 %v12741_v50, %v9552_v9  ;;  %v9354_v31 = vld [vmem:[#allocation13 + $0x2c8] sm:$0xf0]  ;;  %16440 = vst [vmem:[#allocation54_spill] sm:$0xff] %v14370_v48 }
 0x27e   :  { %v12782_v14 = vld [vmem:[#allocation13 + $0x2b4] sm:$0xf]  ;;  %1228 = vmatpush.bf16.msra.mxu0 %v14340_v4  ;;  %v14359_v58 = vor.u32 %v12763_v43, %v9274_v27  ;;  %v14364_v1 = vor.u32 %v12785_v63, %v9352_v18  ;;  %v12779_v9 = vld [vmem:[#allocation13 + $0x294] sm:$0xf0]  ;;  %v12776_v50 = vld [vmem:[#allocation13 + $0x284] sm:$0xf] }
 0x27f   :  { %9189 = vmatmul.msk.f32.vlgmr.msra.gmra.mxu3 %vm766_vm2, %v908_v0  ;;  %16432 = vst [vmem:[#allocation46_spill] sm:$0xff] %v14343_v16  ;;  %v14349_v0 = vor.u32 %v12748_v60, %v9200_v59  ;;  %v12757_v59 = vld [vmem:[#allocation13 + $0x1ec] sm:$0xf]  ;;  %v9250_v60 = vld [vmem:[#allocation13 + $0x200] sm:$0xf0]  ;;  %v14368_v10 = vor.u32 %v12782_v14, %v9354_v31  ;;  %v14376_v23 = vor.u32 %v12779_v9, %v9328_v8 }
 0x280   :  { %1262 = vmatpush.bf16.msrb.mxu3 %v14329_v34  ;;  %16434 = vst [vmem:[#allocation48_spill] sm:$0xff] %v14351_v20  ;;  %1286 = vmatpush.bf16.msrb.mxu1 %v14353_v36  ;;  %v9330_v43 = vld [vmem:[#allocation13 + $0x298] sm:$0xf0]  ;;  %v9504_v27 = vld [vmem:[#allocation13 + $0xf0] sm:$0xf]  ;;  %v14373_v57 = vor.u32 %v12757_v59, %v9250_v60 }
 0x281   :  { %16433 = vst [vmem:[#allocation47_spill] sm:$0xff] %v14349_v0  ;;  %1254 = vmatpush.bf16.msrb.mxu2 %v14349_v0  ;;  %v12751_v63 = vld [vmem:[#allocation13 + $0x1bc] sm:$0xf]  ;;  %v9226_v18 = vld [vmem:[#allocation13 + $0x1d0] sm:$0xf0]  ;;  %v14380_v14 = vor.u32 %v12776_v50, %v9330_v43  ;;  %v14382_v31 = vor.u32 %v12729_v26, %v9504_v27 }
 0x282   :  { %16436 = vst [vmem:[#allocation50_spill] sm:$0xff] %v14355_v37  ;;  %1273 = vmatpush.bf16.msrb.mxu0 %v14351_v20  ;;  %v12773_v45 = vld [vmem:[#allocation13 + $0x264] sm:$0xf0]  ;;  %v9480_v59 = vld [vmem:[#allocation13 + $0xc0] sm:$0xf] }
 0x283   :  { %16437 = vst [vmem:[#allocation51_spill] sm:$0xff] %v14359_v58  ;;  %v12723_v60 = vld [vmem:[#allocation13 + $0xd4] sm:$0xf0]  ;;  %v12745_v8 = vld [vmem:[#allocation13 + $0x18c] sm:$0xf]  ;;  %v14388_v50 = vor.u32 %v12773_v45, %v9304_v38 }
 0x284   :  { %1263 = vmatpush.bf16.msrb.mxu3 %v14343_v16  ;;  %16438 = vst [vmem:[#allocation52_spill] sm:$0xff] %v14364_v1  ;;  %1287 = vmatpush.bf16.msrb.mxu1 %v14368_v10  ;;  %v14385_v16 = vor.u32 %v12751_v63, %v9226_v18  ;;  %v9202_v9 = vld [vmem:[#allocation13 + $0x1a0] sm:$0xf0]  ;;  %v12738_v34 = vld [vmem:[#allocation13 + $0x154] sm:$0xf]  ;;  %v14394_v43 = vor.u32 %v12723_v60, %v9480_v59 }
 0x285   :  { %1539 = vmatpush.bf16.msra.mxu2 %v14355_v37  ;;  %16439 = vst [vmem:[#allocation53_spill] sm:$0xff] %v14368_v10  ;;  %v9554_v12 = vld [vmem:[#allocation13 + $0x168] sm:$0xf0]  ;;  %v9280_v27 = vld [vmem:[#allocation13 + $0x220] sm:$0xf]  ;;  %v14397_v37 = vor.u32 %v12745_v8, %v9202_v9 }
 0x286   :  { %16441 = vst [vmem:[#allocation55_spill] sm:$0xff] %v14373_v57  ;;  %1274 = vmatpush.bf16.msrb.mxu0 %v14364_v1  ;;  %v12764_v63 = vld [vmem:[#allocation13 + $0x224] sm:$0xf]  ;;  %v9282_v18 = vld [vmem:[#allocation13 + $0x238] sm:$0xf0]  ;;  %v14399_v38 = vor.u32 %v12738_v34, %v9554_v12 }
 0x287   :  { %16442 = vst [vmem:[#allocation56_spill] sm:$0xff] %v14376_v23  ;;  %v14406_v59 = vor.u32 %v12764_v63, %v9282_v18  ;;  %v9506_v34 = vld [vmem:[#allocation13 + $0x108] sm:$0xf0]  ;;  %v12737_v40 = vld [vmem:[#allocation13 + $0x144] sm:$0xf0] }
 0x288   :  { %1264 = vmatpush.bf16.msrb.mxu3 %v14359_v58  ;;  %16443 = vst [vmem:[#allocation57_spill] sm:$0xff] %v14380_v14  ;;  %v9306_v58 = vld [vmem:[#allocation13 + $0x268] sm:$0xf0]  ;;  %1288 = vmatpush.bf16.msrb.mxu1 %v14380_v14  ;;  %v12728_v7 = vld [vmem:[#allocation13 + $0x104] sm:$0xf] }
 0x289   :  { %1540 = vmatpush.bf16.msra.mxu2 %v14370_v48  ;;  %16444 = vst [vmem:[#allocation58_spill] sm:$0xff] %v14382_v31  ;;  %v14392_v26 = vor.u32 %v12770_v22, %v9306_v58  ;;  %v12717_v48 = vld [vmem:[#allocation13 + $0xa4] sm:$0xf0]  ;;  %v12732_v58 = vld [vmem:[#allocation13 + $0x124] sm:$0xf] }
 0x28a   :  { %16445 = vst [vmem:[#allocation59_spill] sm:$0xff] %v14385_v16  ;;  %1275 = vmatpush.bf16.msrb.mxu0 %v14376_v23  ;;  %v9530_v22 = vld [vmem:[#allocation13 + $0x138] sm:$0xf0]  ;;  %v14408_v60 = vor.u32 %v12717_v48, %v9456_v44  ;;  %v12720_v44 = vld [vmem:[#allocation13 + $0xc4] sm:$0xf] }
 0x28b   :  { %16446 = vst [vmem:[#allocation60_spill] sm:$0xff] %v14388_v50  ;;  %v14412_v12 = vor.u32 %v12732_v58, %v9530_v22  ;;  %v9482_v48 = vld [vmem:[#allocation13 + $0xd8] sm:$0xf0]  ;;  %v9458_v63 = vld [vmem:[#allocation13 + $0xa8] sm:$0xf0]  ;;  %v14427_v58 = vpop.f32.mrf.mxu3 }
 0x28c   :  { %1265 = vmatpush.bf16.msrb.mxu3 %v14373_v57  ;;  %16447 = vst [vmem:[#allocation61_spill] sm:$0xff] %v14392_v26  ;;  %v12767_v57 = vld [vmem:[#allocation13 + $0x234] sm:$0xf0]  ;;  %1289 = vmatpush.bf16.msrb.mxu1 %v14392_v26  ;;  %v14421_v9 = vor.u32 %v12720_v44, %v9482_v48  ;;  %v9432_v44 = vld [vmem:[#allocation13 + $0x60] sm:$0xf] }
 0x28d   :  { %1541 = vmatpush.bf16.msra.mxu2 %v14382_v31  ;;  %16448 = vst [vmem:[#allocation62_spill] sm:$0xff] %v14394_v43  ;;  %v14402_v45 = vor.u32 %v12767_v57, %v9280_v27  ;;  %v12726_v57 = vld [vmem:[#allocation13 + $0xf4] sm:$0xf]  ;;  %v12711_v48 = vld [vmem:[#allocation13 + $0x74] sm:$0xf0] }
 0x28e   :  { %16449 = vst [vmem:[#allocation63_spill] sm:$0xff] %v14397_v37  ;;  %1276 = vmatpush.bf16.msrb.mxu0 %v14388_v50  ;;  %v14418_v8 = vor.u32 %v12726_v57, %v9506_v34  ;;  %v12714_v27 = vld [vmem:[#allocation13 + $0x94] sm:$0xf]  ;;  %v9256_v57 = vld [vmem:[#allocation13 + $0x1f0] sm:$0xf] }
 0x28f   :  { %16450 = vst [vmem:[#allocation64_spill] sm:$0xff] %v14399_v38  ;;  %v14424_v18 = vor.u32 %v12714_v27, %v9458_v63  ;;  %v12761_v34 = vld [vmem:[#allocation13 + $0x204] sm:$0xf0]  ;;  %v12708_v27 = vld [vmem:[#allocation13 + $0x64] sm:$0xf] }
 0x290   :  { %1266 = vmatpush.bf16.msrb.mxu3 %v14385_v16  ;;  %16451 = vst [vmem:[#allocation65_spill] sm:$0xff] %v14402_v45  ;;  %1290 = vmatpush.bf16.msrb.mxu1 %v14406_v59  ;;  %v14435_v16 = vor.u32 %v12711_v48, %v9432_v44  ;;  %v9434_v63 = vld [vmem:[#allocation13 + $0x78] sm:$0xf0]  ;;  %v12702_v44 = vld [vmem:[#allocation13 + $0x34] sm:$0xf] }
 0x291   :  { %1542 = vmatpush.bf16.msra.mxu2 %v14394_v43  ;;  %16452 = vst [vmem:[#allocation66_spill] sm:$0xff] %v14406_v59  ;;  %v12752_v43 = vld [vmem:[#allocation13 + $0x1c4] sm:$0xf]  ;;  %v9234_v31 = vld [vmem:[#allocation13 + $0x1d8] sm:$0xf0] }
 0x292   :  { %16453 = vst [vmem:[#allocation67_spill] sm:$0xff] %v14408_v60  ;;  %1277 = vmatpush.bf16.msrb.mxu0 %v14402_v45  ;;  %v12733_v0 = vld [vmem:[#allocation13 + $0x12c] sm:$0xf]  ;;  %v9538_v26 = vld [vmem:[#allocation13 + $0x140] sm:$0xf0] }
 0x293   :  { %16454 = vst [vmem:[#allocation68_spill] sm:$0xff] %v14412_v12  ;;  %v14429_v22 = vpop.f32.mrf.mxu3  ;;  %v9544_v50 = vld [vmem:[#allocation13 + $0x130] sm:$0xf]  ;;  %v9546_v14 = vld [vmem:[#allocation13 + $0x148] sm:$0xf0] }
 0x294   :  { %1267 = vmatpush.bf16.msrb.mxu3 %v14397_v37  ;;  %16455 = vst [vmem:[#allocation69_spill] sm:$0xff] %v14418_v8  ;;  %v9520_v23 = vld [vmem:[#allocation13 + $0x100] sm:$0xf]  ;;  %v12839_v1 = vld [vmem:[#allocation13 + $0x474] sm:$0xf0] }
 0x295   :  { %1543 = vmatpush.bf16.msra.mxu2 %v14408_v60  ;;  %16456 = vst [vmem:[#allocation70_spill] sm:$0xff] %v14421_v9  ;;  %v12755_v60 = vld [vmem:[#allocation13 + $0x1d4] sm:$0xf0]  ;;  %v9763_v36 = vld [vmem:[#allocation13 + $0x478] sm:$0xf0] }
 0x296   :  { %16457 = vst [vmem:[#allocation71_spill] sm:$0xff] %v14424_v18 }
 0x297   :  { %16460 = vst [vmem:[#allocation74_spill] sm:$0xff] %v14435_v16 }
 0x298   :  { %1552 = vmatpush.bf16.msra.mxu3 %v14399_v38  ;;  %v14431_v38 = vor.u32 %v12761_v34, %v9256_v57  ;;  %v9408_v57 = vld [vmem:[#allocation13 + $0x30] sm:$0xf]  ;;  %v12705_v34 = vld [vmem:[#allocation13 + $0x44] sm:$0xf0] }
 0x299   :  { %1544 = vmatpush.bf16.msra.mxu2 %v14435_v16  ;;  %v14449_v48 = vor.u32 %v12705_v34, %v9408_v57  ;;  %v12699_v57 = vld [vmem:[#allocation13 + $0x14] sm:$0xf0]  ;;  %v9386_v16 = vld [vmem:[#allocation13 + $0x18] sm:$0xf0] }
 0x29a   :  { %16458 = vst [vmem:[#allocation72_spill] sm:$0xff] %v14431_v38  ;;  %1278 = vmatpush.bf16.msrb.mxu0 %v14431_v38  ;;  %v12736_v38 = vld [vmem:[#allocation13 + $0x13c] sm:$0xf0] }
 0x29b   :  { %v14440_v59 = vpop.f32.mrf.mxu3  ;;  %16465 = vst [vmem:[#allocation79_spill] sm:$0xff] %v14449_v48 }
 0x29c   :  { %1553 = vmatpush.bf16.msra.mxu3 %v14412_v12  ;;  %v12758_v12 = vld [vmem:[#allocation13 + $0x1f4] sm:$0xf]  ;;  %16462 = vst [vmem:[#allocation76_spill] sm:$0xff] %v14440_v59  ;;  %v9210_v59 = vld [vmem:[#allocation13 + $0x1a8] sm:$0xf0] }
 0x29d   :  { %1545 = vmatpush.bf16.msra.mxu2 %v14449_v48  ;;  %v9568_v48 = vld [vmem:[#allocation13 + $0x160] sm:$0xf] }
 0x2a0   :  { %1554 = vmatpush.bf16.msra.mxu3 %v14418_v8  ;;  %v9258_v8 = vld [vmem:[#allocation13 + $0x208] sm:$0xf0] }
 0x2a1   :  { %v14433_v37 = vor.u32 %v12758_v12, %v9258_v8  ;;  %v14446_v8 = vor.u32 %v12752_v43, %v9234_v31  ;;  %v12746_v31 = vld [vmem:[#allocation13 + $0x194] sm:$0xf] }
 0x2a2   :  { %v14459_v34 = vor.u32 %v12746_v31, %v9210_v59  ;;  %v12742_v31 = vld [vmem:[#allocation13 + $0x16c] sm:$0xf0] }
 0x2a3   :  { %16459 = vst [vmem:[#allocation73_spill] sm:$0xff] %v14433_v37  ;;  %1291 = vmatpush.bf16.msrb.mxu1 %v14433_v37  ;;  %v9536_v37 = vld [vmem:[#allocation13 + $0x128] sm:$0xf] }
 0x2a4   :  { %1555 = vmatpush.bf16.msra.mxu3 %v14421_v9  ;;  %v9232_v9 = vld [vmem:[#allocation13 + $0x1c0] sm:$0xf]  ;;  %16464 = vst [vmem:[#allocation78_spill] sm:$0xff] %v14446_v8 }
 0x2a5   :  { %v14444_v12 = vor.u32 %v12755_v60, %v9232_v9  ;;  %v9208_v60 = vld [vmem:[#allocation13 + $0x190] sm:$0xf]  ;;  %v12749_v9 = vld [vmem:[#allocation13 + $0x1a4] sm:$0xf0]  ;;  %16468 = vst [vmem:[#allocation82_spill] sm:$0xff] %v14459_v34 }
 0x2a6   :  { %v14457_v43 = vor.u32 %v12749_v9, %v9208_v60  ;;  %v14469_v60 = vpop.f32.mrf.mxu3 }
 0x2a7   :  { %16463 = vst [vmem:[#allocation77_spill] sm:$0xff] %v14444_v12  ;;  %1279 = vmatpush.bf16.msrb.mxu0 %v14444_v12  ;;  %1292 = vmatpush.bf16.msrb.mxu1 %v14446_v8 }
 0x2a8   :  { %1556 = vmatpush.bf16.msra.mxu3 %v14424_v18  ;;  %v14438_v18 = vor.u32 %v12708_v27, %v9434_v63  ;;  %v9410_v27 = vld [vmem:[#allocation13 + $0x48] sm:$0xf0]  ;;  %16467 = vst [vmem:[#allocation81_spill] sm:$0xff] %v14457_v43 }
 0x2a9   :  { %v14451_v63 = vor.u32 %v12702_v44, %v9410_v27  ;;  %v12696_v27 = vld [vmem:[#allocation13 + $0x4] sm:$0xf] }
 0x2aa   :  { %16461 = vst [vmem:[#allocation75_spill] sm:$0xff] %v14438_v18  ;;  %v14464_v8 = vor.u32 %v12696_v27, %v9386_v16  ;;  %v12740_v16 = vld [vmem:[#allocation13 + $0x164] sm:$0xf]  ;;  %v9570_v27 = vld [vmem:[#allocation13 + $0x178] sm:$0xf0] }
 0x2ab   :  { %16466 = vst [vmem:[#allocation80_spill] sm:$0xff] %v14451_v63  ;;  %1280 = vmatpush.bf16.msrb.mxu0 %v14457_v43  ;;  %1293 = vmatpush.bf16.msrb.mxu1 %v14459_v34  ;;  %v12743_v43 = vld [vmem:[#allocation13 + $0x174] sm:$0xf0]  ;;  %v14483_v45 = vor.u32 %v12740_v16, %v9570_v27  ;;  %v12727_v16 = vld [vmem:[#allocation13 + $0xfc] sm:$0xf] }
 0x2ac   :  { %1557 = vmatpush.bf16.msra.mxu3 %v14438_v18  ;;  %v9384_v18 = vld [vmem:[#allocation13] sm:$0xf]  ;;  %16470 = vst [vmem:[#allocation84_spill] sm:$0xff] %v14464_v8  ;;  %v9514_v27 = vld [vmem:[#allocation13 + $0x110] sm:$0xf0] }
 0x2ad   :  { %v14461_v44 = vor.u32 %v12699_v57, %v9384_v18  ;;  %v9560_v18 = vld [vmem:[#allocation13 + $0x158] sm:$0xf]  ;;  %v12739_v57 = vld [vmem:[#allocation13 + $0x15c] sm:$0xf]  ;;  %16475 = vst [vmem:[#allocation89_spill] sm:$0xff] %v14483_v45 }
 0x2ae   :  { %v14471_v9 = vpop.f32.mrf.mxu3 }
 0x2af   :  { %16469 = vst [vmem:[#allocation83_spill] sm:$0xff] %v14461_v44  ;;  %1546 = vmatpush.bf16.msra.mxu2 %v14461_v44  ;;  %v14477_v44 = vor.u32 %v12742_v31, %v9560_v18  ;;  %v12730_v18 = vld [vmem:[#allocation13 + $0x10c] sm:$0xf0]  ;;  %v14497_v31 = vor.u32 %v12737_v40, %v9544_v50  ;;  %v12721_v50 = vld [vmem:[#allocation13 + $0xcc] sm:$0xf] }
 0x2b0   :  { %1558 = vmatpush.bf16.msra.mxu3 %v14451_v63  ;;  %16471 = vst [vmem:[#allocation85_spill] sm:$0xff] %v14471_v9  ;;  %v9562_v63 = vld [vmem:[#allocation13 + $0x170] sm:$0xf0]  ;;  %v14481_v9 = vor.u32 %v12743_v43, %v9568_v48  ;;  %v14491_v48 = vor.u32 %v12736_v38, %v9536_v37  ;;  %v9512_v43 = vld [vmem:[#allocation13 + $0xf8] sm:$0xf]  ;;  %v14505_v37 = vor.u32 %v12727_v16, %v9514_v27 }
 0x2b1   :  { %16472 = vst [vmem:[#allocation86_spill] sm:$0xff] %v14477_v44  ;;  %v12724_v38 = vld [vmem:[#allocation13 + $0xdc] sm:$0xf0]  ;;  %v9464_v16 = vld [vmem:[#allocation13 + $0x98] sm:$0xf] }
 0x2b2   :  { %16474 = vst [vmem:[#allocation88_spill] sm:$0xff] %v14481_v9  ;;  %v12718_v27 = vld [vmem:[#allocation13 + $0xac] sm:$0xf0] }
 0x2b3   :  { %16476 = vst [vmem:[#allocation90_spill] sm:$0xff] %v14491_v48 }
 0x2b4   :  { %1559 = vmatpush.bf16.msra.mxu3 %v14464_v8  ;;  %v14479_v8 = vor.u32 %v12739_v57, %v9562_v63  ;;  %v14493_v63 = vor.u32 %v12733_v0, %v9538_v26  ;;  %16478 = vst [vmem:[#allocation92_spill] sm:$0xff] %v14497_v31  ;;  %v14503_v0 = vor.u32 %v12730_v18, %v9512_v43  ;;  %v9488_v26 = vld [vmem:[#allocation13 + $0xc8] sm:$0xf] }
 0x2b5   :  { %16481 = vst [vmem:[#allocation95_spill] sm:$0xff] %v14505_v37  ;;  %v14515_v43 = vor.u32 %v12724_v38, %v9488_v26  ;;  %v14527_v26 = vor.u32 %v12718_v27, %v9464_v16  ;;  %v9448_v16 = vld [vmem:[#allocation13 + $0x70] sm:$0xf]  ;;  %v12713_v27 = vld [vmem:[#allocation13 + $0x84] sm:$0xf0] }
 0x2b6   :  { %16473 = vst [vmem:[#allocation87_spill] sm:$0xff] %v14479_v8 }
 0x2b7   :  { %16477 = vst [vmem:[#allocation91_spill] sm:$0xff] %v14493_v63 }
 0x2b8   :  { %16480 = vst [vmem:[#allocation94_spill] sm:$0xff] %v14503_v0 }
 0x2b9   :  { %16484 = vst [vmem:[#allocation98_spill] sm:$0xff] %v14515_v43 }
 0x2ba   :  { %16488 = vst [vmem:[#allocation102_spill] sm:$0xff] %v14527_v26 }
 0x2fa   :  { %v14473_v59 = vpop.f32.mrf.mxu3 }
 0x302   :  { %v929_v12 = vpop.f32.mrf.mxu3 }
 0x303   :  { %v14475_v34 = vpack.c.bf16 %v929_v12, %v929_v12  ;;  %v12734_v12 = vld [vmem:[#allocation13 + $0x134] sm:$0xf] }
 0x304   :  { %v14499_v57 = vor.u32 %v12734_v12, %v9546_v14  ;;  %v9490_v12 = vld [vmem:[#allocation13 + $0xe0] sm:$0xf0] }
 0x305   :  { %1229 = vmatmul.bf16.vlgmr.msra.gmra.mxu0 %v14475_v34  ;;  %1242 = vmatmul.bf16.vlgmr.msra.gmra.mxu1 %v14475_v34  ;;  %v14517_v18 = vor.u32 %v12721_v50, %v9490_v12  ;;  %v9440_v50 = vld [vmem:[#allocation13 + $0x68] sm:$0xf]  ;;  %v12712_v12 = vld [vmem:[#allocation13 + $0x7c] sm:$0xf0] }
 0x306   :  { %1255 = vmatmul.bf16.vlgmr.msrb.gmra.mxu2 %v14475_v34  ;;  %1268 = vmatmul.bf16.vlgmr.msrb.gmra.mxu3 %v14475_v34  ;;  %16479 = vst [vmem:[#allocation93_spill] sm:$0xff] %v14499_v57 }
 0x307   :  { %1565 = vmatpush.bf16.msra.mxu0 %v14477_v44  ;;  %1578 = vmatpush.bf16.msra.mxu1 %v14479_v8  ;;  %v12731_v44 = vld [vmem:[#allocation13 + $0x114] sm:$0xf0]  ;;  %v9522_v8 = vld [vmem:[#allocation13 + $0x118] sm:$0xf0]  ;;  %16485 = vst [vmem:[#allocation99_spill] sm:$0xff] %v14517_v18 }
 0x308   :  { %1591 = vmatpush.bf16.msrb.mxu2 %v14481_v9  ;;  %1604 = vmatpush.bf16.msrb.mxu3 %v14483_v45  ;;  %v14509_v40 = vor.u32 %v12731_v44, %v9520_v23  ;;  %v14511_v14 = vor.u32 %v12728_v7, %v9522_v8  ;;  %v9496_v45 = vld [vmem:[#allocation13 + $0xd0] sm:$0xf]  ;;  %v12722_v9 = vld [vmem:[#allocation13 + $0xd4] sm:$0xf]  ;;  %v12715_v8 = vld [vmem:[#allocation13 + $0x9c] sm:$0xf] }
 0x309   :  { %v9466_v44 = vld [vmem:[#allocation13 + $0xb0] sm:$0xf0] }
 0x30a   :  { %16482 = vst [vmem:[#allocation96_spill] sm:$0xff] %v14509_v40  ;;  %v14529_v38 = vor.u32 %v12715_v8, %v9466_v44  ;;  %v12710_v8 = vld [vmem:[#allocation13 + $0x74] sm:$0xf]  ;;  %v9450_v44 = vld [vmem:[#allocation13 + $0x88] sm:$0xf0] }
 0x30b   :  { %1566 = vmatpush.bf16.msra.mxu0 %v14491_v48  ;;  %1579 = vmatpush.bf16.msra.mxu1 %v14493_v63  ;;  %16483 = vst [vmem:[#allocation97_spill] sm:$0xff] %v14511_v14  ;;  %v12725_v48 = vld [vmem:[#allocation13 + $0xe4] sm:$0xf0]  ;;  %v9498_v63 = vld [vmem:[#allocation13 + $0xe8] sm:$0xf0] }
 0x30c   :  { %1592 = vmatpush.bf16.msrb.mxu2 %v14497_v31  ;;  %1605 = vmatpush.bf16.msrb.mxu3 %v14499_v57  ;;  %v14521_v23 = vor.u32 %v12725_v48, %v9496_v45  ;;  %v14523_v7 = vor.u32 %v12722_v9, %v9498_v63  ;;  %v9472_v57 = vld [vmem:[#allocation13 + $0xa0] sm:$0xf]  ;;  %v12716_v31 = vld [vmem:[#allocation13 + $0xa4] sm:$0xf]  ;;  %16489 = vst [vmem:[#allocation103_spill] sm:$0xff] %v14529_v38 }
 0x30d   :  { %v14533_v45 = vpack.c.bf16 %v14473_v59, %v14473_v59  ;;  %v12709_v63 = vld [vmem:[#allocation13 + $0x6c] sm:$0xf]  ;;  %v14547_v59 = vor.u32 %v12712_v12, %v9440_v50  ;;  %v9392_v12 = vld [vmem:[#allocation13 + $0x8] sm:$0xf] }
 0x30e   :  { %16486 = vst [vmem:[#allocation100_spill] sm:$0xff] %v14521_v23 }
 0x30f   :  { %1567 = vmatpush.bf16.msra.mxu0 %v14503_v0  ;;  %1580 = vmatpush.bf16.msra.mxu1 %v14505_v37  ;;  %16487 = vst [vmem:[#allocation101_spill] sm:$0xff] %v14523_v7  ;;  %v12719_v0 = vld [vmem:[#allocation13 + $0xb4] sm:$0xf0]  ;;  %v9474_v37 = vld [vmem:[#allocation13 + $0xb8] sm:$0xf0] }
 0x310   :  { %1593 = vmatpush.bf16.msrb.mxu2 %v14509_v40  ;;  %1606 = vmatpush.bf16.msrb.mxu3 %v14511_v14  ;;  %v14537_v9 = vor.u32 %v12719_v0, %v9472_v57  ;;  %v14539_v48 = vor.u32 %v12716_v31, %v9474_v37  ;;  %16492 = vst [vmem:[#allocation106_spill] sm:$0xff] %v14547_v59  ;;  %v9416_v57 = vld [vmem:[#allocation13 + $0x38] sm:$0xf]  ;;  %v12706_v0 = vld [vmem:[#allocation13 + $0x4c] sm:$0xf0] }
 0x311   :  { %v14555_v37 = vor.u32 %v12710_v8, %v9450_v44  ;;  %v12704_v14 = vld [vmem:[#allocation13 + $0x44] sm:$0xf]  ;;  %v12697_v8 = vld [vmem:[#allocation13 + $0xc] sm:$0xf] }
 0x312   :  { %16490 = vst [vmem:[#allocation104_spill] sm:$0xff] %v14537_v9  ;;  %v9394_v44 = vld [vmem:[#allocation13 + $0x20] sm:$0xf0] }
 0x313   :  { %1568 = vmatpush.bf16.msra.mxu0 %v14515_v43  ;;  %1581 = vmatpush.bf16.msra.mxu1 %v14517_v18  ;;  %16491 = vst [vmem:[#allocation105_spill] sm:$0xff] %v14539_v48  ;;  %v9442_v18 = vld [vmem:[#allocation13 + $0x80] sm:$0xf0]  ;;  %v9424_v43 = vld [vmem:[#allocation13 + $0x40] sm:$0xf] }
 0x314   :  { %1594 = vmatpush.bf16.msrb.mxu2 %v14521_v23  ;;  %1607 = vmatpush.bf16.msrb.mxu3 %v14523_v7  ;;  %v14549_v31 = vor.u32 %v12709_v63, %v9442_v18  ;;  %16495 = vst [vmem:[#allocation109_spill] sm:$0xff] %v14555_v37  ;;  %v12703_v7 = vld [vmem:[#allocation13 + $0x3c] sm:$0xf]  ;;  %v9418_v23 = vld [vmem:[#allocation13 + $0x50] sm:$0xf0]  ;;  %v14559_v18 = vor.u32 %v12706_v0, %v9416_v57 }
 0x315   :  { %1281 = vmatmul.bf16.vlgmr.msrb.gmra.mxu0 %v14475_v34  ;;  %1294 = vmatmul.bf16.vlgmr.msrb.gmra.mxu1 %v14475_v34  ;;  %v14553_v34 = vor.u32 %v12713_v27, %v9448_v16  ;;  %v14561_v50 = vor.u32 %v12703_v7, %v9418_v23  ;;  %v12700_v63 = vld [vmem:[#allocation13 + $0x1c] sm:$0xf0]  ;;  %v14573_v7 = vor.u32 %v12697_v8, %v9394_v44  ;;  %v12826_v0 = vld [vmem:[#allocation13 + $0x40c] sm:$0xf0]  ;;  %v9657_v8 = vld [vmem:[#allocation13 + $0x398] sm:$0xf] }
 0x316   :  { %1547 = vmatmul.bf16.vlgmr.msra.gmra.mxu2 %v14533_v45  ;;  %1560 = vmatmul.bf16.vlgmr.msra.gmra.mxu3 %v14533_v45  ;;  %16493 = vst [vmem:[#allocation107_spill] sm:$0xff] %v14549_v31  ;;  %v14571_v23 = vor.u32 %v12700_v63, %v9392_v12  ;;  %v12820_v12 = vld [vmem:[#allocation13 + $0x3dc] sm:$0xf0]  ;;  %v12814_v44 = vld [vmem:[#allocation13 + $0x3ac] sm:$0xf0] }
 0x317   :  { %1569 = vmatpush.bf16.msra.mxu0 %v14527_v26  ;;  %1582 = vmatpush.bf16.msra.mxu1 %v14529_v38  ;;  %16494 = vst [vmem:[#allocation108_spill] sm:$0xff] %v14553_v34  ;;  %v12707_v26 = vld [vmem:[#allocation13 + $0x54] sm:$0xf0]  ;;  %v9426_v38 = vld [vmem:[#allocation13 + $0x58] sm:$0xf0] }
 0x318   :  { %1595 = vmatpush.bf16.msrb.mxu2 %v14537_v9  ;;  %1608 = vmatpush.bf16.msrb.mxu3 %v14539_v48  ;;  %16496 = vst [vmem:[#allocation110_spill] sm:$0xff] %v14559_v18  ;;  %v14565_v16 = vor.u32 %v12707_v26, %v9424_v43  ;;  %v14567_v27 = vor.u32 %v12704_v14, %v9426_v38  ;;  %v9400_v48 = vld [vmem:[#allocation13 + $0x10] sm:$0xf]  ;;  %v12698_v9 = vld [vmem:[#allocation13 + $0x14] sm:$0xf] }
 0x319   :  { %16497 = vst [vmem:[#allocation111_spill] sm:$0xff] %v14561_v50  ;;  %v9753_v26 = vld [vmem:[#allocation13 + $0x458] sm:$0xf]  ;;  %v12838_v38 = vld [vmem:[#allocation13 + $0x46c] sm:$0xf0] }
 0x31a   :  { %16498 = vst [vmem:[#allocation112_spill] sm:$0xff] %v14565_v16  ;;  %v14585_v57 = vor.u32 %v12838_v38, %v9753_v26  ;;  %v9633_v26 = vld [vmem:[#allocation13 + $0x368] sm:$0xf]  ;;  %v12808_v38 = vld [vmem:[#allocation13 + $0x37c] sm:$0xf0] }
 0x31b   :  { %1570 = vmatpush.bf16.msra.mxu0 %v14547_v59  ;;  %1583 = vmatpush.bf16.msra.mxu1 %v14549_v31  ;;  %16499 = vst [vmem:[#allocation113_spill] sm:$0xff] %v14567_v27  ;;  %v12701_v59 = vld [vmem:[#allocation13 + $0x24] sm:$0xf0]  ;;  %v9402_v31 = vld [vmem:[#allocation13 + $0x28] sm:$0xf0] }
 0x31c   :  { %1596 = vmatpush.bf16.msrb.mxu2 %v14553_v34  ;;  %1609 = vmatpush.bf16.msrb.mxu3 %v14555_v37  ;;  %16500 = vst [vmem:[#allocation114_spill] sm:$0xff] %v14571_v23  ;;  %v14577_v14 = vor.u32 %v12701_v59, %v9400_v48  ;;  %v14579_v43 = vor.u32 %v12698_v9, %v9402_v31  ;;  %v9729_v48 = vld [vmem:[#allocation13 + $0x428] sm:$0xf]  ;;  %v12832_v59 = vld [vmem:[#allocation13 + $0x43c] sm:$0xf0] }
 0x31d   :  { %16501 = vst [vmem:[#allocation115_spill] sm:$0xff] %v14573_v7  ;;  %v14594_v9 = vor.u32 %v12832_v59, %v9729_v48  ;;  %v9705_v31 = vld [vmem:[#allocation13 + $0x3f8] sm:$0xf]  ;;  %v14607_v48 = vor.u32 %v12808_v38, %v9633_v26 }
 0x31e   :  { %16502 = vst [vmem:[#allocation116_spill] sm:$0xff] %v14577_v14  ;;  %v9609_v59 = vld [vmem:[#allocation13 + $0x338] sm:$0xf] }
 0x31f   :  { %1571 = vmatpush.bf16.msra.mxu0 %v14559_v18  ;;  %1584 = vmatpush.bf16.msra.mxu1 %v14561_v50  ;;  %16503 = vst [vmem:[#allocation117_spill] sm:$0xff] %v14579_v43  ;;  %v12822_v50 = vld [vmem:[#allocation13 + $0x3f4] sm:$0xf] }
 0x320   :  { %1597 = vmatpush.bf16.msrb.mxu2 %v14565_v16  ;;  %1610 = vmatpush.bf16.msrb.mxu3 %v14567_v27  ;;  %16504 = vst [vmem:[#allocation118_spill] sm:$0xff] %v14585_v57 }
 0x321   :  { %16505 = vst [vmem:[#allocation119_spill] sm:$0xff] %v14594_v9 }
 0x322   :  { %16509 = vst [vmem:[#allocation123_spill] sm:$0xff] %v14607_v48 }
 0x323   :  { %1572 = vmatpush.bf16.msra.mxu0 %v14571_v23  ;;  %1585 = vmatpush.bf16.msra.mxu1 %v14573_v7 }
 0x324   :  { %1598 = vmatpush.bf16.msrb.mxu2 %v14577_v14  ;;  %1611 = vmatpush.bf16.msrb.mxu3 %v14579_v43 }
 0x326   :  { %1573 = vmatmul.bf16.vlgmr.msra.gmra.mxu0 %v14533_v45  ;;  %1586 = vmatmul.bf16.vlgmr.msra.gmra.mxu1 %v14533_v45 }
 0x327   :  { %1632 = vmatpush.xpose.msrb.mxu0 %v14239_v21  ;;  %1681 = vmatpush.msrb.mxu1 %v14191_v3  ;;  %v14597_v21 = vor.u32 %v12826_v0, %v9705_v31  ;;  %v9681_v3 = vld [vmem:[#allocation13 + $0x3c8] sm:$0xf]  ;;  %v12802_v31 = vld [vmem:[#allocation13 + $0x34c] sm:$0xf0] }
 0x328   :  { %1599 = vmatmul.bf16.vlgmr.msrb.gmra.mxu2 %v14533_v45  ;;  %1612 = vmatmul.bf16.vlgmr.msrb.gmra.mxu3 %v14533_v45  ;;  %v14600_v63 = vor.u32 %v12820_v12, %v9681_v3  ;;  %v14603_v45 = vor.u32 %v12814_v44, %v9657_v8  ;;  %v14610_v0 = vor.u32 %v12802_v31, %v9609_v59  ;;  %v9585_v3 = vld [vmem:[#allocation13 + $0x308] sm:$0xf]  ;;  %v12796_v12 = vld [vmem:[#allocation13 + $0x31c] sm:$0xf0]  ;;  %v14619_v44 = vpop.f32.mrf.mxu0 }
 0x329   :  { %16506 = vst [vmem:[#allocation120_spill] sm:$0xff] %v14597_v21  ;;  %v14613_v8 = vor.u32 %v12796_v12, %v9585_v3 }
 0x32a   :  { %16507 = vst [vmem:[#allocation121_spill] sm:$0xff] %v14600_v63 }
 0x32b   :  { %2001 = vmatpush.bf16.msra.mxu0 %v14585_v57  ;;  %16508 = vst [vmem:[#allocation122_spill] sm:$0xff] %v14603_v45 }
 0x32c   :  { %16510 = vst [vmem:[#allocation124_spill] sm:$0xff] %v14610_v0 }
 0x32d   :  { %16511 = vst [vmem:[#allocation125_spill] sm:$0xff] %v14613_v8 }
 0x32f   :  { %2002 = vmatpush.bf16.msra.mxu0 %v14594_v9 }
 0x330   :  { %v14623_v38 = vpop.f32.mrf.mxu0 }
 0x333   :  { %2003 = vmatpush.bf16.msra.mxu0 %v14597_v21 }
 0x336   :  { %1633 = vmatmul.f32.vlgmr.msrb.gmra.mxu0 %v14177_v55  ;;  %v14617_v55 = vpop.f32.mrf.mxu1 }
 0x337   :  { %2004 = vmatpush.bf16.msra.mxu0 %v14600_v63 }
 0x338   :  { %v14627_v31 = vpop.f32.mrf.mxu0 }
 0x339   :  { %16513 = vst [vmem:[#allocation127_spill] sm:$0xff] %v14627_v31 }
 0x33b   :  { %2005 = vmatpush.bf16.msra.mxu0 %v14603_v45 }
 0x33e   :  { %v14621_v26 = vpop.f32.mrf.mxu1 }
 0x33f   :  { %2006 = vmatpush.bf16.msra.mxu0 %v14607_v48 }
 0x343   :  { %2007 = vmatpush.bf16.msra.mxu0 %v14610_v0 }
 0x346   :  { %v14625_v59 = vpop.f32.mrf.mxu1 }
 0x347   :  { %2008 = vmatpush.bf16.msra.mxu0 %v14613_v8  ;;  %16512 = vst [vmem:[#allocation126_spill] sm:$0xff] %v14625_v59 }
 0x34b   :  { %2074 = vmatpush.xpose.msrb.mxu0 %v14243_v25 }
 0x382   :  { %v14629_v48 = vpop.f32.mrf.mxu0  ;;  %v14631_v3 = vpop.f32.mrf.mxu1 }
 0x383   :  { %16514 = vst [vmem:[#allocation128_spill] sm:$0xff] %v14629_v48 }
 0x384   :  { %16515 = vst [vmem:[#allocation129_spill] sm:$0xff] %v14631_v3 }
 0x389   :  { %v14633_v12 = vpop.f32.mrf.mxu2  ;;  %v14635_v8 = vpop.f32.mrf.mxu3 }
 0x38a   :  { %v1232_v25 = vpop.f32.mrf.mxu0  ;;  %v1245_v0 = vpop.f32.mrf.mxu1 }
 0x391   :  { %v1258_v45 = vpop.f32.mrf.mxu2  ;;  %v1271_v63 = vpop.f32.mrf.mxu3 }
 0x392   :  { %v14637_v21 = vpop.f32.mrf.mxu0  ;;  %v14639_v9 = vpop.f32.mrf.mxu1 }
 0x393   :  { %16516 = vst [vmem:[#allocation130_spill] sm:$0xff] %v14637_v21 }
 0x394   :  { %16517 = vst [vmem:[#allocation131_spill] sm:$0xff] %v14639_v9 }
 0x399   :  { %v14641_v57 = vpop.f32.mrf.mxu2  ;;  %v14643_v59 = vpop.f32.mrf.mxu3 }
 0x39a   :  { %16518 = vst [vmem:[#allocation132_spill] sm:$0xff] %v14641_v57  ;;  %v1284_v31 = vpop.f32.mrf.mxu0  ;;  %v1297_v48 = vpop.f32.mrf.mxu1 }
 0x39b   :  { %16519 = vst [vmem:[#allocation133_spill] sm:$0xff] %v14643_v59  ;;  %v12835_v48 = vld [vmem:[#allocation13 + $0x45c] sm:$0xf]  ;;  %v12829_v59 = vld [vmem:[#allocation13 + $0x42c] sm:$0xf] }
 0x3a1   :  { %v1550_v43 = vpop.f32.mrf.mxu2  ;;  %v1563_v3 = vpop.f32.mrf.mxu3 }
 0x3a2   :  { %v9755_v3 = vld [vmem:[#allocation13 + $0x470] sm:$0xf0] }
 0x3a3   :  { %v14645_v14 = vpop.f32.mrf.mxu0  ;;  %v14647_v7 = vpop.f32.mrf.mxu1  ;;  %v14656_v27 = vor.u32 %v12835_v48, %v9755_v3 }
 0x3a5   :  { %16522 = vst [vmem:[#allocation136_spill] sm:$0xff] %v14656_v27  ;;  %2014 = vmatpush.bf16.msra.mxu1 %v14656_v27 }
 0x3ab   :  { %v14649_v25 = vpop.f32.mrf.mxu2  ;;  %v14651_v45 = vpop.f32.mrf.mxu3 }
 0x3ac   :  { %16520 = vst [vmem:[#allocation134_spill] sm:$0xff] %v14649_v25  ;;  %v1576_v63 = vpop.f32.mrf.mxu0  ;;  %v1589_v0 = vpop.f32.mrf.mxu1  ;;  %v9731_v25 = vld [vmem:[#allocation13 + $0x440] sm:$0xf0] }
 0x3ad   :  { %16521 = vst [vmem:[#allocation135_spill] sm:$0xff] %v14651_v45  ;;  %v14659_v63 = vor.u32 %v12829_v59, %v9731_v25  ;;  %v12817_v59 = vld [vmem:[#allocation13 + $0x3cc] sm:$0xf]  ;;  %v9683_v25 = vld [vmem:[#allocation13 + $0x3e0] sm:$0xf0] }
 0x3ae   :  { %v14669_v3 = vor.u32 %v12817_v59, %v9683_v25  ;;  %v12793_v59 = vld [vmem:[#allocation13 + $0x30c] sm:$0xf]  ;;  %v9587_v25 = vld [vmem:[#allocation13 + $0x320] sm:$0xf0] }
 0x3af   :  { %16523 = vst [vmem:[#allocation137_spill] sm:$0xff] %v14659_v63  ;;  %2015 = vmatpush.bf16.msra.mxu1 %v14659_v63 }
 0x3b0   :  { %16525 = vst [vmem:[#allocation139_spill] sm:$0xff] %v14669_v3 }
 0x3b3   :  { %v1602_v21 = vpop.f32.mrf.mxu2  ;;  %v1615_v9 = vpop.f32.mrf.mxu3 }
 0x3b4   :  { %v1634_v23 = vpop.f32.mrf.mxu0  ;;  %v12823_v21 = vld [vmem:[#allocation13 + $0x3fc] sm:$0xf]  ;;  %v9707_v9 = vld [vmem:[#allocation13 + $0x410] sm:$0xf0] }
 0x3b5   :  { %v1637_v57 = vmul.f32 0.088388346, %v1634_v23  ;;  %v14662_v23 = vor.u32 %v12823_v21, %v9707_v9  ;;  %v12811_v21 = vld [vmem:[#allocation13 + $0x39c] sm:$0xf]  ;;  %v9659_v9 = vld [vmem:[#allocation13 + $0x3b0] sm:$0xf0] }
 0x3b6   :  { %v14672_v63 = vor.u32 %v12811_v21, %v9659_v9  ;;  %v9745_v21 = vld [vmem:[#allocation13 + $0x450] sm:$0xf]  ;;  %v12837_v9 = vld [vmem:[#allocation13 + $0x464] sm:$0xf0] }
 0x3b7   :  { %v1638_v31 = vsel %vm743_vm1, %v1637_v57, -1000000.0  ;;  %16524 = vst [vmem:[#allocation138_spill] sm:$0xff] %v14662_v23  ;;  %2016 = vmatpush.bf16.msra.mxu1 %v14662_v23  ;;  %v14684_v27 = vor.u32 %v12837_v9, %v9745_v21  ;;  %v9699_v21 = vld [vmem:[#allocation13 + $0x408] sm:$0xf0] }
 0x3b8   :  { %v1639_v43 = vsel %vm766_vm2, %v1638_v31, -inf  ;;  %16526 = vst [vmem:[#allocation140_spill] sm:$0xff] %v14672_v63 }
 0x3b9   :  { %1640 = vmax.xlane.f32.xlu2 %v1639_v43  ;;  %16530 = vst [vmem:[#allocation144_spill] sm:$0xff] %v14684_v27  ;;  %1975 = vmatpush.bf16.msra.mxu2 %v14684_v27  ;;  %v12819_v27 = vld [vmem:[#allocation13 + $0x3d4] sm:$0xf0] }
 0x3bb   :  { %2017 = vmatpush.bf16.msra.mxu1 %v14669_v3  ;;  %v14681_v3 = vor.u32 %v12793_v59, %v9587_v25  ;;  %v9697_v25 = vld [vmem:[#allocation13 + $0x3f0] sm:$0xf] }
 0x3bd   :  { %16529 = vst [vmem:[#allocation143_spill] sm:$0xff] %v14681_v3 }
 0x3bf   :  { %2018 = vmatpush.bf16.msra.mxu1 %v14672_v63  ;;  %v12834_v63 = vld [vmem:[#allocation13 + $0x454] sm:$0xf] }
 0x42c   :  { %v1641_v57 = vpop.xlane.xlu2 %1640 }
 0x42d   :  { %v1642_v0 = vsub.f32 %v1638_v31, %v1641_v57  ;;  %v12805_v31 = vld [vmem:[#allocation13 + $0x36c] sm:$0xf]  ;;  %v9635_v57 = vld [vmem:[#allocation13 + $0x380] sm:$0xf0] }
 0x42f   :  { %v1643_v43 = vmul.f32 1.442695, %v1642_v0  ;;  %v14675_v0 = vor.u32 %v12805_v31, %v9635_v57  ;;  %v9747_v31 = vld [vmem:[#allocation13 + $0x468] sm:$0xf0]  ;;  %v9721_v57 = vld [vmem:[#allocation13 + $0x420] sm:$0xf] }
 0x430   :  { %v14686_v16 = vor.u32 %v12834_v63, %v9747_v31  ;;  %v14698_v63 = vor.u32 %v12822_v50, %v9699_v21  ;;  %v9673_v31 = vld [vmem:[#allocation13 + $0x3c0] sm:$0xf] }
 0x431   :  { %13589 = vpow2.f32 %v1643_v43  ;;  %16527 = vst [vmem:[#allocation141_spill] sm:$0xff] %v14675_v0  ;;  %2019 = vmatpush.bf16.msra.mxu1 %v14675_v0  ;;  %v12799_v43 = vld [vmem:[#allocation13 + $0x33c] sm:$0xf]  ;;  %v12831_v0 = vld [vmem:[#allocation13 + $0x434] sm:$0xf0] }
 0x432   :  { %16531 = vst [vmem:[#allocation145_spill] sm:$0xff] %v14686_v16  ;;  %1988 = vmatpush.bf16.msra.mxu3 %v14686_v16  ;;  %v9627_v16 = vld [vmem:[#allocation13 + $0x378] sm:$0xf0] }
 0x433   :  { %16535 = vst [vmem:[#allocation149_spill] sm:$0xff] %v14698_v63 }
 0x437   :  { %v14665_v45 = vpop.eup %13589 }
 0x438   :  { %v1645_v48 = vsel %vm766_vm2, %v14665_v45, 0.0 }
 0x439   :  { %1646 = vadd.xlane.f32.xlu2 %v1645_v48  ;;  %v9611_v48 = vld [vmem:[#allocation13 + $0x350] sm:$0xf0] }
 0x43a   :  { %v14678_v23 = vor.u32 %v12799_v43, %v9611_v48  ;;  %v12828_v43 = vld [vmem:[#allocation13 + $0x424] sm:$0xf]  ;;  %v9723_v48 = vld [vmem:[#allocation13 + $0x438] sm:$0xf0] }
 0x43b   :  { %v14692_v59 = vor.u32 %v12828_v43, %v9723_v48  ;;  %v14701_v43 = vor.u32 %v12819_v27, %v9673_v31  ;;  %v12807_v27 = vld [vmem:[#allocation13 + $0x374] sm:$0xf0]  ;;  %v12804_v31 = vld [vmem:[#allocation13 + $0x364] sm:$0xf] }
 0x43c   :  { %16528 = vst [vmem:[#allocation142_spill] sm:$0xff] %v14678_v23  ;;  %2020 = vmatpush.bf16.msra.mxu1 %v14678_v23  ;;  %v14689_v23 = vor.u32 %v12831_v0, %v9721_v57  ;;  %v12816_v0 = vld [vmem:[#allocation13 + $0x3c4] sm:$0xf]  ;;  %v9675_v57 = vld [vmem:[#allocation13 + $0x3d8] sm:$0xf0] }
 0x43d   :  { %16533 = vst [vmem:[#allocation147_spill] sm:$0xff] %v14692_v59  ;;  %1989 = vmatpush.bf16.msra.mxu3 %v14692_v59  ;;  %v14704_v48 = vor.u32 %v12816_v0, %v9675_v57  ;;  %v9651_v59 = vld [vmem:[#allocation13 + $0x3a8] sm:$0xf0]  ;;  %v14716_v57 = vor.u32 %v12804_v31, %v9627_v16  ;;  %v12795_v16 = vld [vmem:[#allocation13 + $0x314] sm:$0xf0] }
 0x43e   :  { %16532 = vst [vmem:[#allocation146_spill] sm:$0xff] %v14689_v23  ;;  %1976 = vmatpush.bf16.msra.mxu2 %v14689_v23  ;;  %v12810_v23 = vld [vmem:[#allocation13 + $0x394] sm:$0xf]  ;;  %v12792_v31 = vld [vmem:[#allocation13 + $0x304] sm:$0xf] }
 0x43f   :  { %16536 = vst [vmem:[#allocation150_spill] sm:$0xff] %v14701_v43  ;;  %v14710_v21 = vor.u32 %v12810_v23, %v9651_v59  ;;  %v9603_v23 = vld [vmem:[#allocation13 + $0x348] sm:$0xf0] }
 0x440   :  { %2021 = vmatpush.bf16.msra.mxu1 %v14681_v3  ;;  %v12825_v3 = vld [vmem:[#allocation13 + $0x404] sm:$0xf0]  ;;  %16537 = vst [vmem:[#allocation151_spill] sm:$0xff] %v14704_v48 }
 0x441   :  { %v14695_v9 = vor.u32 %v12825_v3, %v9697_v25  ;;  %1990 = vmatpush.bf16.msra.mxu3 %v14698_v63  ;;  %v9649_v3 = vld [vmem:[#allocation13 + $0x390] sm:$0xf]  ;;  %v12813_v25 = vld [vmem:[#allocation13 + $0x3a4] sm:$0xf0]  ;;  %16539 = vst [vmem:[#allocation153_spill] sm:$0xff] %v14710_v21 }
 0x442   :  { %v14707_v50 = vor.u32 %v12813_v25, %v9649_v3  ;;  %16541 = vst [vmem:[#allocation155_spill] sm:$0xff] %v14716_v57  ;;  %v9601_v3 = vld [vmem:[#allocation13 + $0x330] sm:$0xf]  ;;  %v12801_v25 = vld [vmem:[#allocation13 + $0x344] sm:$0xf0] }
 0x443   :  { %16534 = vst [vmem:[#allocation148_spill] sm:$0xff] %v14695_v9  ;;  %1977 = vmatpush.bf16.msra.mxu2 %v14695_v9  ;;  %v9625_v9 = vld [vmem:[#allocation13 + $0x360] sm:$0xf]  ;;  %v14719_v10 = vor.u32 %v12801_v25, %v9601_v3 }
 0x444   :  { %16538 = vst [vmem:[#allocation152_spill] sm:$0xff] %v14707_v50  ;;  %v14713_v0 = vor.u32 %v12807_v27, %v9625_v9  ;;  %v9577_v27 = vld [vmem:[#allocation13 + $0x300] sm:$0xf] }
 0x445   :  { %1991 = vmatpush.bf16.msra.mxu3 %v14704_v48  ;;  %v12798_v48 = vld [vmem:[#allocation13 + $0x334] sm:$0xf]  ;;  %v14725_v3 = vor.u32 %v12795_v16, %v9577_v27  ;;  %v12821_v27 = vld [vmem:[#allocation13 + $0x3e4] sm:$0xf0] }
 0x446   :  { %16540 = vst [vmem:[#allocation154_spill] sm:$0xff] %v14713_v0  ;;  %v14722_v9 = vor.u32 %v12798_v48, %v9603_v23  ;;  %v14733_v23 = vor.u32 %v12836_v33, %v9763_v36  ;;  %v9713_v36 = vld [vmem:[#allocation13 + $0x400] sm:$0xf]  ;;  %v12818_v16 = vld [vmem:[#allocation13 + $0x3d4] sm:$0xf] }
 0x447   :  { %1978 = vmatpush.bf16.msra.mxu2 %v14701_v43 }
 0x449   :  { %1992 = vmatpush.bf16.msra.mxu3 %v14710_v21 }
 0x44b   :  { %1979 = vmatpush.bf16.msra.mxu2 %v14707_v50  ;;  %v9761_v50 = vld [vmem:[#allocation13 + $0x460] sm:$0xf] }
 0x44d   :  { %1993 = vmatpush.bf16.msra.mxu3 %v14716_v57  ;;  %v12833_v57 = vld [vmem:[#allocation13 + $0x444] sm:$0xf0] }
 0x44f   :  { %1980 = vmatpush.bf16.msra.mxu2 %v14713_v0  ;;  %v12830_v0 = vld [vmem:[#allocation13 + $0x434] sm:$0xf] }
 0x451   :  { %1994 = vmatpush.bf16.msra.mxu3 %v14722_v9 }
 0x453   :  { %1981 = vmatpush.bf16.msra.mxu2 %v14719_v10 }
 0x457   :  { %1982 = vmatpush.bf16.msra.mxu2 %v14725_v3 }
 0x4ac   :  { %v1647_v18 = vpop.xlane.xlu2 %1646 }
 0x4ad   :  { %13591 = vrcp.f32 %v1647_v18  ;;  %v1659_v59 = vand.u32 2147483648, %v1647_v18  ;;  %v1657_v40 = vand.u32 2147483647, %v1647_v18  ;;  %vm1653_vm12 = vweird.f32 %v1647_v18 }
 0x4af   :  { %vm1658_vm14 = vcmp.eq.f32.partialorder %v1657_v40, 8.507059e+37  ;;  %v12824_v40 = vld [vmem:[#allocation13 + $0x404] sm:$0xf] }
 0x4b3   :  { %v13592_v37 = vpop.eup %13591 }
 0x4b4   :  { %v1649_v63 = vmul.f32 %v13592_v37, %v1647_v18  ;;  %vm1654_vm11 = vweird.f32 %v13592_v37  ;;  %v14731_v18 = vor.u32 %v12839_v1, %v9761_v50  ;;  %v12827_v1 = vld [vmem:[#allocation13 + $0x414] sm:$0xf0] }
 0x4b5   :  { %vm1655_vm13 = vmor %vm1653_vm12, %vm1654_vm11  ;;  %v14747_v50 = vor.u32 %v12827_v1, %v9713_v36  ;;  %v9641_v36 = vld [vmem:[#allocation13 + $0x370] sm:$0xf]  ;;  %v12809_v1 = vld [vmem:[#allocation13 + $0x384] sm:$0xf0] }
 0x4b6   :  { %v1650_v43 = vsub.f32 1.0, %v1649_v63  ;;  %v9579_v63 = vld [vmem:[#allocation13 + $0x318] sm:$0xf0]  ;;  %2027 = vmatpush.bf16.msrb.mxu2 %v14731_v18 }
 0x4b7   :  { %v14728_v25 = vor.u32 %v12792_v31, %v9579_v63  ;;  %16543 = vst [vmem:[#allocation157_spill] sm:$0xff] %v14747_v50  ;;  %v9691_v31 = vld [vmem:[#allocation13 + $0x3e8] sm:$0xf0]  ;;  %v9665_v63 = vld [vmem:[#allocation13 + $0x3a0] sm:$0xf] }
 0x4b8   :  { %v1651_v34 = vmul.f32 %v13592_v37, %v1650_v43  ;;  %v1660_v43 = vor.u32 1.1754944e-38, %v1659_v59  ;;  %v9737_v59 = vld [vmem:[#allocation13 + $0x430] sm:$0xf] }
 0x4b9   :  { %1995 = vmatpush.bf16.msra.mxu3 %v14728_v25 }
 0x4ba   :  { %v1652_v21 = vadd.f32 %v13592_v37, %v1651_v34 }
 0x4bc   :  { %v1656_v20 = vsel %vm1655_vm13, %v13592_v37, %v1652_v21  ;;  %v9739_v37 = vld [vmem:[#allocation13 + $0x448] sm:$0xf0]  ;;  %v9689_v21 = vld [vmem:[#allocation13 + $0x3d0] sm:$0xf] }
 0x4bd   :  { %v1661_v48 = vsel %vm1658_vm14, %v1660_v43, %v1656_v20  ;;  %2040 = vmatpush.bf16.msrb.mxu3 %v14733_v23  ;;  %v14741_v20 = vor.u32 %v12833_v57, %v9737_v59  ;;  %v14743_v33 = vor.u32 %v12830_v0, %v9739_v37  ;;  %v14753_v0 = vor.u32 %v12821_v27, %v9689_v21  ;;  %v12815_v43 = vld [vmem:[#allocation13 + $0x3b4] sm:$0xf0] }
 0x4be   :  { %v1662_v34 = vmul.f32 %v14665_v45, %v1661_v48  ;;  %v9715_v45 = vld [vmem:[#allocation13 + $0x418] sm:$0xf0]  ;;  %v14755_v57 = vor.u32 %v12818_v16, %v9691_v31  ;;  %v12812_v48 = vld [vmem:[#allocation13 + $0x3a4] sm:$0xf]  ;;  %v14759_v59 = vor.u32 %v12815_v43, %v9665_v63  ;;  %v14765_v21 = vor.u32 %v12809_v1, %v9641_v36  ;;  %v9617_v16 = vld [vmem:[#allocation13 + $0x340] sm:$0xf] }
 0x4bf   :  { %16542 = vst [vmem:[#allocation156_spill] sm:$0xff] %v14743_v33  ;;  %2028 = vmatpush.bf16.msrb.mxu2 %v14741_v20  ;;  %v12803_v31 = vld [vmem:[#allocation13 + $0x354] sm:$0xf0]  ;;  %v12794_v36 = vld [vmem:[#allocation13 + $0x314] sm:$0xf] }
 0x4c0   :  { %9574 = vmatmul.msk.f32.vlgmr.msrb.gmra.mxu1 %vm766_vm2, %v1662_v34  ;;  %16545 = vst [vmem:[#allocation159_spill] sm:$0xff] %v14753_v0  ;;  %v9667_v34 = vld [vmem:[#allocation13 + $0x3b8] sm:$0xf0]  ;;  %v14771_v63 = vor.u32 %v12803_v31, %v9617_v16  ;;  %v9946_v16 = vld [vmem:[#allocation13 + $0x5d8] sm:$0xf] }
 0x4c1   :  { %2123 = vmatpush.msrb.mxu1 %v14469_v60  ;;  %2041 = vmatpush.bf16.msrb.mxu3 %v14743_v33  ;;  %v14749_v60 = vor.u32 %v12824_v40, %v9715_v45  ;;  %16546 = vst [vmem:[#allocation160_spill] sm:$0xff] %v14755_v57  ;;  %v14761_v37 = vor.u32 %v12812_v48, %v9667_v34  ;;  %v12806_v40 = vld [vmem:[#allocation13 + $0x374] sm:$0xf]  ;;  %v9643_v45 = vld [vmem:[#allocation13 + $0x388] sm:$0xf0] }
 0x4c2   :  { %16547 = vst [vmem:[#allocation161_spill] sm:$0xff] %v14759_v59  ;;  %v14767_v27 = vor.u32 %v12806_v40, %v9643_v45  ;;  %v9593_v48 = vld [vmem:[#allocation13 + $0x310] sm:$0xf]  ;;  %v12797_v34 = vld [vmem:[#allocation13 + $0x324] sm:$0xf0] }
 0x4c3   :  { %16544 = vst [vmem:[#allocation158_spill] sm:$0xff] %v14749_v60  ;;  %2029 = vmatpush.bf16.msrb.mxu2 %v14747_v50  ;;  %v14777_v1 = vor.u32 %v12797_v34, %v9593_v48  ;;  %v9595_v40 = vld [vmem:[#allocation13 + $0x328] sm:$0xf0]  ;;  %v12886_v31 = vld [vmem:[#allocation13 + $0x5ec] sm:$0xf0] }
 0x4c4   :  { %16548 = vst [vmem:[#allocation162_spill] sm:$0xff] %v14761_v37  ;;  %v14779_v45 = vor.u32 %v12794_v36, %v9595_v40  ;;  %v12880_v48 = vld [vmem:[#allocation13 + $0x5bc] sm:$0xf0]  ;;  %v12877_v34 = vld [vmem:[#allocation13 + $0x5ac] sm:$0xf] }
 0x4c5   :  { %2042 = vmatpush.bf16.msrb.mxu3 %v14749_v60  ;;  %16549 = vst [vmem:[#allocation163_spill] sm:$0xff] %v14765_v21  ;;  %v12865_v60 = vld [vmem:[#allocation13 + $0x54c] sm:$0xf] }
 0x4c6   :  { %16550 = vst [vmem:[#allocation164_spill] sm:$0xff] %v14767_v27 }
 0x4c7   :  { %2030 = vmatpush.bf16.msrb.mxu2 %v14753_v0  ;;  %v12800_v0 = vld [vmem:[#allocation13 + $0x344] sm:$0xf]  ;;  %16551 = vst [vmem:[#allocation165_spill] sm:$0xff] %v14771_v63 }
 0x4c8   :  { %16553 = vst [vmem:[#allocation167_spill] sm:$0xff] %v14777_v1 }
 0x4c9   :  { %2043 = vmatpush.bf16.msrb.mxu3 %v14755_v57  ;;  %v9619_v57 = vld [vmem:[#allocation13 + $0x358] sm:$0xf0]  ;;  %16554 = vst [vmem:[#allocation168_spill] sm:$0xff] %v14779_v45 }
 0x4ca   :  { %v14773_v43 = vor.u32 %v12800_v0, %v9619_v57  ;;  %v12883_v0 = vld [vmem:[#allocation13 + $0x5dc] sm:$0xf]  ;;  %v9948_v57 = vld [vmem:[#allocation13 + $0x5f0] sm:$0xf0] }
 0x4cb   :  { %2031 = vmatpush.bf16.msrb.mxu2 %v14759_v59  ;;  %v9924_v59 = vld [vmem:[#allocation13 + $0x5c0] sm:$0xf0] }
 0x4cc   :  { %16552 = vst [vmem:[#allocation166_spill] sm:$0xff] %v14773_v43  ;;  %v14791_v40 = vor.u32 %v12877_v34, %v9924_v59  ;;  %v12862_v34 = vld [vmem:[#allocation13 + $0x52c] sm:$0xf0] }
 0x4cd   :  { %2044 = vmatpush.bf16.msrb.mxu3 %v14761_v37  ;;  %v9922_v37 = vld [vmem:[#allocation13 + $0x5a8] sm:$0xf] }
 0x4ce   :  { %v14789_v36 = vor.u32 %v12880_v48, %v9922_v37  ;;  %16558 = vst [vmem:[#allocation172_spill] sm:$0xff] %v14791_v40  ;;  %v9850_v48 = vld [vmem:[#allocation13 + $0x518] sm:$0xf] }
 0x4cf   :  { %2032 = vmatpush.bf16.msrb.mxu2 %v14765_v21  ;;  %v14783_v21 = vor.u32 %v12886_v31, %v9946_v16  ;;  %v12874_v16 = vld [vmem:[#allocation13 + $0x58c] sm:$0xf0]  ;;  %v12871_v31 = vld [vmem:[#allocation13 + $0x57c] sm:$0xf] }
 0x4d0   :  { %16557 = vst [vmem:[#allocation171_spill] sm:$0xff] %v14789_v36 }
 0x4d1   :  { %2045 = vmatpush.bf16.msrb.mxu3 %v14767_v27  ;;  %16555 = vst [vmem:[#allocation169_spill] sm:$0xff] %v14783_v21 }
 0x4d3   :  { %2033 = vmatpush.bf16.msrb.mxu2 %v14771_v63 }
 0x4d5   :  { %2046 = vmatpush.bf16.msrb.mxu3 %v14773_v43  ;;  %v14785_v43 = vor.u32 %v12883_v0, %v9948_v57  ;;  %v9900_v0 = vld [vmem:[#allocation13 + $0x590] sm:$0xf0] }
 0x4d7   :  { %2034 = vmatpush.bf16.msrb.mxu2 %v14777_v1  ;;  %16556 = vst [vmem:[#allocation170_spill] sm:$0xff] %v14785_v43  ;;  %v9874_v1 = vld [vmem:[#allocation13 + $0x548] sm:$0xf] }
 0x4d9   :  { %2047 = vmatpush.bf16.msrb.mxu3 %v14779_v45  ;;  %v14797_v45 = vor.u32 %v12871_v31, %v9900_v0  ;;  %v9826_v31 = vld [vmem:[#allocation13 + $0x4e8] sm:$0xf]  ;;  %v12856_v0 = vld [vmem:[#allocation13 + $0x4fc] sm:$0xf0] }
 0x4db   :  { %16560 = vst [vmem:[#allocation174_spill] sm:$0xff] %v14797_v45 }
 0x53d   :  { %v1683_v27 = vpop.f32.mrf.mxu1 }
 0x53e   :  { %v1686_v63 = vpack.c.bf16 %v1683_v27, %v1683_v27  ;;  %v9898_v27 = vld [vmem:[#allocation13 + $0x578] sm:$0xf] }
 0x53f   :  { %v14795_v57 = vor.u32 %v12874_v16, %v9898_v27  ;;  %v14807_v27 = vor.u32 %v12862_v34, %v9850_v48  ;;  %v12844_v34 = vld [vmem:[#allocation13 + $0x49c] sm:$0xf0] }
 0x540   :  { %1983 = vmatmul.bf16.vlgmr.msra.gmra.mxu2 %v1686_v63  ;;  %1996 = vmatmul.bf16.vlgmr.msra.gmra.mxu3 %v1686_v63 }
 0x541   :  { %2009 = vmatmul.bf16.vlgmr.msra.gmra.mxu0 %v1686_v63  ;;  %2022 = vmatmul.bf16.vlgmr.msra.gmra.mxu1 %v1686_v63  ;;  %16559 = vst [vmem:[#allocation173_spill] sm:$0xff] %v14795_v57 }
 0x542   :  { %2443 = vmatpush.bf16.msra.mxu2 %v14783_v21  ;;  %2456 = vmatpush.bf16.msra.mxu3 %v14785_v43  ;;  %v12868_v21 = vld [vmem:[#allocation13 + $0x55c] sm:$0xf0]  ;;  %v9876_v43 = vld [vmem:[#allocation13 + $0x560] sm:$0xf0]  ;;  %16563 = vst [vmem:[#allocation177_spill] sm:$0xff] %v14807_v27 }
 0x543   :  { %v14801_v59 = vor.u32 %v12868_v21, %v9874_v1  ;;  %v14803_v37 = vor.u32 %v12865_v60, %v9876_v43  ;;  %v14814_v60 = vor.u32 %v12856_v0, %v9826_v31  ;;  %v9802_v43 = vld [vmem:[#allocation13 + $0x4b8] sm:$0xf]  ;;  %v12850_v1 = vld [vmem:[#allocation13 + $0x4cc] sm:$0xf0]  ;;  %v1575_v31 = vadd.f32 %v14645_v14, %v14633_v12 }
 0x544   :  { %v14820_v48 = vor.u32 %v12850_v1, %v9802_v43  ;;  %v1588_v0 = vadd.f32 %v14647_v7, %v14635_v8 }
 0x545   :  { %16561 = vst [vmem:[#allocation175_spill] sm:$0xff] %v14801_v59 }
 0x546   :  { %2444 = vmatpush.bf16.msra.mxu2 %v14789_v36  ;;  %2457 = vmatpush.bf16.msra.mxu3 %v14791_v40  ;;  %16562 = vst [vmem:[#allocation176_spill] sm:$0xff] %v14803_v37  ;;  %v12859_v36 = vld [vmem:[#allocation13 + $0x51c] sm:$0xf]  ;;  %v9852_v40 = vld [vmem:[#allocation13 + $0x530] sm:$0xf0] }
 0x547   :  { %v14809_v16 = vor.u32 %v12859_v36, %v9852_v40  ;;  %16565 = vst [vmem:[#allocation179_spill] sm:$0xff] %v14814_v60  ;;  %v12847_v36 = vld [vmem:[#allocation13 + $0x4bc] sm:$0xf]  ;;  %v9804_v40 = vld [vmem:[#allocation13 + $0x4d0] sm:$0xf0] }
 0x548   :  { %16567 = vst [vmem:[#allocation181_spill] sm:$0xff] %v14820_v48 }
 0x549   :  { %16564 = vst [vmem:[#allocation178_spill] sm:$0xff] %v14809_v16 }
 0x54a   :  { %2445 = vmatpush.bf16.msra.mxu2 %v14795_v57  ;;  %2458 = vmatpush.bf16.msra.mxu3 %v14797_v45  ;;  %v12853_v57 = vld [vmem:[#allocation13 + $0x4ec] sm:$0xf]  ;;  %v9828_v45 = vld [vmem:[#allocation13 + $0x500] sm:$0xf0] }
 0x54b   :  { %v14816_v21 = vor.u32 %v12853_v57, %v9828_v45 }
 0x54d   :  { %16566 = vst [vmem:[#allocation180_spill] sm:$0xff] %v14816_v21 }
 0x54e   :  { %2446 = vmatpush.bf16.msra.mxu2 %v14801_v59  ;;  %2459 = vmatpush.bf16.msra.mxu3 %v14803_v37  ;;  %v12852_v37 = vld [vmem:[#allocation13 + $0x4e4] sm:$0xf]  ;;  %v9820_v59 = vld [vmem:[#allocation13 + $0x4f8] sm:$0xf0] }
 0x550   :  { %2035 = vmatmul.bf16.vlgmr.msrb.gmra.mxu2 %v1686_v63  ;;  %2048 = vmatmul.bf16.vlgmr.msrb.gmra.mxu3 %v1686_v63  ;;  %v14822_v63 = vor.u32 %v12847_v36, %v9804_v40 }
 0x551   :  { %2075 = vmatmul.f32.vlgmr.msrb.gmra.mxu0 %v14179_v56  ;;  %v9778_v56 = vld [vmem:[#allocation13 + $0x488] sm:$0xf] }
 0x552   :  { %2447 = vmatpush.bf16.msra.mxu2 %v14807_v27  ;;  %2460 = vmatpush.bf16.msra.mxu3 %v14809_v16  ;;  %16568 = vst [vmem:[#allocation182_spill] sm:$0xff] %v14822_v63  ;;  %v12841_v27 = vld [vmem:[#allocation13 + $0x48c] sm:$0xf]  ;;  %v9780_v16 = vld [vmem:[#allocation13 + $0x4a0] sm:$0xf0]  ;;  %v14826_v45 = vor.u32 %v12844_v34, %v9778_v56 }
 0x553   :  { %v14828_v57 = vor.u32 %v12841_v27, %v9780_v16 }
 0x554   :  { %16569 = vst [vmem:[#allocation183_spill] sm:$0xff] %v14826_v45 }
 0x555   :  { %16570 = vst [vmem:[#allocation184_spill] sm:$0xff] %v14828_v57 }
 0x556   :  { %2448 = vmatpush.bf16.msra.mxu2 %v14814_v60  ;;  %2461 = vmatpush.bf16.msra.mxu3 %v14816_v21  ;;  %v9842_v21 = vld [vmem:[#allocation13 + $0x510] sm:$0xf]  ;;  %v9844_v60 = vld [vmem:[#allocation13 + $0x528] sm:$0xf0] }
 0x55a   :  { %2449 = vmatpush.bf16.msra.mxu2 %v14820_v48  ;;  %2462 = vmatpush.bf16.msra.mxu3 %v14822_v63  ;;  %v12867_v63 = vld [vmem:[#allocation13 + $0x554] sm:$0xf0] }
 0x55e   :  { %2450 = vmatpush.bf16.msra.mxu2 %v14826_v45  ;;  %2463 = vmatpush.bf16.msra.mxu3 %v14828_v57 }
 0x562   :  { %2516 = vmatpush.xpose.msrb.mxu2 %v14187_v62  ;;  %2565 = vmatpush.msrb.mxu3 %v14623_v38 }
 0x5be   :  { %v2010_v43 = vpop.f32.mrf.mxu0  ;;  %v2023_v1 = vpop.f32.mrf.mxu1 }
 0x5bf   :  { %v14838_v36 = vadd.f32 %v2010_v43, %v1575_v31  ;;  %v14840_v27 = vadd.f32 %v2023_v1, %v1588_v0 }
 0x5c3   :  { %v14842_v16 = vpop.f32.mrf.mxu2  ;;  %v14844_v40 = vpop.f32.mrf.mxu3 }
 0x5c4   :  { %16571 = vst [vmem:[#allocation185_spill] sm:$0xff] %v14842_v16  ;;  %v12870_v16 = vld [vmem:[#allocation13 + $0x574] sm:$0xf] }
 0x5c5   :  { %16572 = vst [vmem:[#allocation186_spill] sm:$0xff] %v14844_v40  ;;  %v9914_v40 = vld [vmem:[#allocation13 + $0x5a0] sm:$0xf] }
 0x5c6   :  { %v2012_v56 = vpop.f32.mrf.mxu0  ;;  %v2025_v62 = vpop.f32.mrf.mxu1 }
 0x5cb   :  { %v1986_v34 = vpop.f32.mrf.mxu2  ;;  %v1999_v38 = vpop.f32.mrf.mxu3 }
 0x5cc   :  { %v12885_v34 = vld [vmem:[#allocation13 + $0x5e4] sm:$0xf0]  ;;  %v12882_v38 = vld [vmem:[#allocation13 + $0x5d4] sm:$0xf] }
 0x5ce   :  { %v2076_v57 = vpop.f32.mrf.mxu0 }
 0x5cf   :  { %v2079_v45 = vmul.f32 0.088388346, %v2076_v57 }
 0x5d1   :  { %v2080_v14 = vsel %vm743_vm1, %v2079_v45, -1000000.0  ;;  %v9938_v45 = vld [vmem:[#allocation13 + $0x5d0] sm:$0xf] }
 0x5d2   :  { %v2081_v7 = vsel %vm766_vm2, %v2080_v14, -inf }
 0x5d3   :  { %2082 = vmax.xlane.f32.xlu0 %v2081_v7  ;;  %v14849_v8 = vpop.f32.mrf.mxu2  ;;  %v14851_v12 = vpop.f32.mrf.mxu3  ;;  %v14857_v7 = vor.u32 %v12885_v34, %v9938_v45  ;;  %v9892_v45 = vld [vmem:[#allocation13 + $0x588] sm:$0xf0] }
 0x5d4   :  { %16573 = vst [vmem:[#allocation187_spill] sm:$0xff] %v14849_v8  ;;  %v9940_v8 = vld [vmem:[#allocation13 + $0x5e8] sm:$0xf0] }
 0x5d5   :  { %16574 = vst [vmem:[#allocation188_spill] sm:$0xff] %v14851_v12  ;;  %v12879_v12 = vld [vmem:[#allocation13 + $0x5b4] sm:$0xf0]  ;;  %2417 = vmatpush.bf16.msra.mxu0 %v14857_v7 }
 0x5d6   :  { %16575 = vst [vmem:[#allocation189_spill] sm:$0xff] %v14857_v7  ;;  %v12840_v7 = vld [vmem:[#allocation13 + $0x484] sm:$0xf] }
 0x5db   :  { %v2038_v31 = vpop.f32.mrf.mxu2  ;;  %v2051_v0 = vpop.f32.mrf.mxu3 }
 0x5dc   :  { %v14859_v31 = vor.u32 %v12882_v38, %v9940_v8  ;;  %v12876_v0 = vld [vmem:[#allocation13 + $0x5a4] sm:$0xf]  ;;  %v14871_v8 = vor.u32 %v12870_v16, %v9892_v45  ;;  %v9866_v38 = vld [vmem:[#allocation13 + $0x540] sm:$0xf] }
 0x5de   :  { %16576 = vst [vmem:[#allocation190_spill] sm:$0xff] %v14859_v31  ;;  %2430 = vmatpush.bf16.msra.mxu1 %v14859_v31 }
 0x5df   :  { %16580 = vst [vmem:[#allocation194_spill] sm:$0xff] %v14871_v8 }
 0x646   :  { %v2083_v43 = vpop.xlane.xlu0 %2082 }
 0x647   :  { %v2084_v1 = vsub.f32 %v2080_v14, %v2083_v43  ;;  %v9916_v14 = vld [vmem:[#allocation13 + $0x5b8] sm:$0xf0]  ;;  %v14862_v43 = vor.u32 %v12879_v12, %v9914_v40  ;;  %v12864_v40 = vld [vmem:[#allocation13 + $0x544] sm:$0xf] }
 0x648   :  { %v9868_v12 = vld [vmem:[#allocation13 + $0x558] sm:$0xf0] }
 0x649   :  { %v2085_v56 = vmul.f32 1.442695, %v2084_v1  ;;  %16577 = vst [vmem:[#allocation191_spill] sm:$0xff] %v14862_v43  ;;  %v14865_v1 = vor.u32 %v12876_v0, %v9916_v14  ;;  %2418 = vmatpush.bf16.msra.mxu0 %v14862_v43  ;;  %v14874_v0 = vor.u32 %v12867_v63, %v9866_v38  ;;  %v14877_v48 = vor.u32 %v12864_v40, %v9868_v12  ;;  %v9818_v63 = vld [vmem:[#allocation13 + $0x4e0] sm:$0xf] }
 0x64a   :  { %v12855_v38 = vld [vmem:[#allocation13 + $0x4f4] sm:$0xf0] }
 0x64b   :  { %13593 = vpow2.f32 %v2085_v56  ;;  %16578 = vst [vmem:[#allocation192_spill] sm:$0xff] %v14865_v1  ;;  %v9890_v56 = vld [vmem:[#allocation13 + $0x570] sm:$0xf]  ;;  %2431 = vmatpush.bf16.msra.mxu1 %v14865_v1  ;;  %v14886_v40 = vor.u32 %v12855_v38, %v9818_v63  ;;  %v9770_v38 = vld [vmem:[#allocation13 + $0x480] sm:$0xf] }
 0x64c   :  { %16581 = vst [vmem:[#allocation195_spill] sm:$0xff] %v14874_v0 }
 0x64d   :  { %16582 = vst [vmem:[#allocation196_spill] sm:$0xff] %v14877_v48 }
 0x64e   :  { %16585 = vst [vmem:[#allocation199_spill] sm:$0xff] %v14886_v40 }
 0x64f   :  { %2432 = vmatpush.bf16.msra.mxu1 %v14871_v8 }
 0x651   :  { %v14853_v62 = vpop.eup %13593 }
 0x652   :  { %v2087_v57 = vsel %vm766_vm2, %v14853_v62, 0.0 }
 0x653   :  { %2088 = vadd.xlane.f32.xlu1 %v2087_v57  ;;  %v12873_v57 = vld [vmem:[#allocation13 + $0x584] sm:$0xf0]  ;;  %2433 = vmatpush.bf16.msra.mxu1 %v14877_v48  ;;  %v9796_v48 = vld [vmem:[#allocation13 + $0x4c8] sm:$0xf0] }
 0x654   :  { %v14868_v34 = vor.u32 %v12873_v57, %v9890_v56  ;;  %v12861_v56 = vld [vmem:[#allocation13 + $0x524] sm:$0xf0]  ;;  %v12858_v57 = vld [vmem:[#allocation13 + $0x514] sm:$0xf] }
 0x655   :  { %v14880_v16 = vor.u32 %v12861_v56, %v9842_v21  ;;  %v14883_v45 = vor.u32 %v12858_v57, %v9844_v60  ;;  %v9794_v21 = vld [vmem:[#allocation13 + $0x4b0] sm:$0xf]  ;;  %v12849_v56 = vld [vmem:[#allocation13 + $0x4c4] sm:$0xf0] }
 0x656   :  { %16579 = vst [vmem:[#allocation193_spill] sm:$0xff] %v14868_v34  ;;  %2419 = vmatpush.bf16.msra.mxu0 %v14868_v34  ;;  %v14889_v34 = vor.u32 %v12852_v37, %v9820_v59  ;;  %v14892_v1 = vor.u32 %v12849_v56, %v9794_v21  ;;  %v12843_v59 = vld [vmem:[#allocation13 + $0x494] sm:$0xf0]  ;;  %v9954_v37 = vld [vmem:[#allocation13 + $0x5e0] sm:$0xf] }
 0x657   :  { %16583 = vst [vmem:[#allocation197_spill] sm:$0xff] %v14880_v16  ;;  %2434 = vmatpush.bf16.msra.mxu1 %v14883_v45  ;;  %v14898_v21 = vor.u32 %v12843_v59, %v9770_v38  ;;  %v12884_v56 = vld [vmem:[#allocation13 + $0x5e4] sm:$0xf]  ;;  %v12878_v38 = vld [vmem:[#allocation13 + $0x5b4] sm:$0xf] }
 0x658   :  { %16584 = vst [vmem:[#allocation198_spill] sm:$0xff] %v14883_v45  ;;  %v12887_v45 = vld [vmem:[#allocation13 + $0x5f4] sm:$0xf0]  ;;  %v9932_v59 = vld [vmem:[#allocation13 + $0x5c8] sm:$0xf0] }
 0x659   :  { %16586 = vst [vmem:[#allocation200_spill] sm:$0xff] %v14889_v34 }
 0x65a   :  { %2420 = vmatpush.bf16.msra.mxu0 %v14874_v0  ;;  %v12846_v0 = vld [vmem:[#allocation13 + $0x4b4] sm:$0xf] }
 0x65b   :  { %2435 = vmatpush.bf16.msra.mxu1 %v14889_v34  ;;  %v14895_v63 = vor.u32 %v12846_v0, %v9796_v48  ;;  %v14901_v48 = vor.u32 %v12887_v45, %v9954_v37 }
 0x65d   :  { %16587 = vst [vmem:[#allocation201_spill] sm:$0xff] %v14901_v48 }
 0x65e   :  { %2421 = vmatpush.bf16.msra.mxu0 %v14880_v16 }
 0x65f   :  { %2436 = vmatpush.bf16.msra.mxu1 %v14895_v63 }
 0x662   :  { %2422 = vmatpush.bf16.msra.mxu0 %v14886_v40 }
 0x666   :  { %2423 = vmatpush.bf16.msra.mxu0 %v14892_v1 }
 0x66a   :  { %2424 = vmatpush.bf16.msra.mxu0 %v14898_v21 }
 0x66e   :  { %2469 = vmatpush.bf16.msrb.mxu0 %v14901_v48 }
 0x6c6   :  { %v2089_v14 = vpop.xlane.xlu1 %2088 }
 0x6c7   :  { %13595 = vrcp.f32 %v2089_v14  ;;  %v2101_v57 = vand.u32 2147483648, %v2089_v14  ;;  %v2099_v16 = vand.u32 2147483647, %v2089_v14  ;;  %vm2095_vm0 = vweird.f32 %v2089_v14 }
 0x6c9   :  { %v2102_v50 = vor.u32 1.1754944e-38, %v2101_v57  ;;  %vm2100_vm4 = vcmp.eq.f32.partialorder %v2099_v16, 8.507059e+37  ;;  %v9908_v16 = vld [vmem:[#allocation13 + $0x598] sm:$0xf0] }
 0x6cd   :  { %v13596_v8 = vpop.eup %13595 }
 0x6ce   :  { %v2091_v12 = vmul.f32 %v13596_v8, %v2089_v14  ;;  %vm2096_vm15 = vweird.f32 %v13596_v8  ;;  %v12881_v14 = vld [vmem:[#allocation13 + $0x5c4] sm:$0xf0] }
 0x6cf   :  { %vm2097_vm3 = vmor %vm2095_vm0, %vm2096_vm15 }
 0x6d0   :  { %v2092_v60 = vsub.f32 1.0, %v2091_v12  ;;  %v9772_v12 = vld [vmem:[#allocation13 + $0x498] sm:$0xf0] }
 0x6d1   :  { %v14903_v34 = vor.u32 %v12840_v7, %v9772_v12  ;;  %v12875_v7 = vld [vmem:[#allocation13 + $0x594] sm:$0xf0]  ;;  %v12866_v12 = vld [vmem:[#allocation13 + $0x554] sm:$0xf] }
 0x6d2   :  { %v2093_v43 = vmul.f32 %v13596_v8, %v2092_v60  ;;  %v9956_v60 = vld [vmem:[#allocation13 + $0x5f8] sm:$0xf0] }
 0x6d3   :  { %16588 = vst [vmem:[#allocation202_spill] sm:$0xff] %v14903_v34  ;;  %v14906_v57 = vor.u32 %v12884_v56, %v9956_v60  ;;  %2437 = vmatpush.bf16.msra.mxu1 %v14903_v34  ;;  %v9884_v56 = vld [vmem:[#allocation13 + $0x568] sm:$0xf0] }
 0x6d4   :  { %v2094_v31 = vadd.f32 %v13596_v8, %v2093_v43  ;;  %v9930_v43 = vld [vmem:[#allocation13 + $0x5b0] sm:$0xf] }
 0x6d5   :  { %16589 = vst [vmem:[#allocation203_spill] sm:$0xff] %v14906_v57 }
 0x6d6   :  { %v2098_v40 = vsel %vm2097_vm3, %v13596_v8, %v2094_v31  ;;  %v14911_v31 = vor.u32 %v12881_v14, %v9930_v43  ;;  %v14915_v8 = vor.u32 %v12878_v38, %v9932_v59  ;;  %v12863_v43 = vld [vmem:[#allocation13 + $0x534] sm:$0xf0]  ;;  %v14927_v14 = vor.u32 %v12866_v12, %v9884_v56  ;;  %v12860_v38 = vld [vmem:[#allocation13 + $0x524] sm:$0xf]  ;;  %v9860_v59 = vld [vmem:[#allocation13 + $0x538] sm:$0xf0] }
 0x6d7   :  { %v2103_v0 = vsel %vm2100_vm4, %v2102_v50, %v2098_v40  ;;  %v9906_v50 = vld [vmem:[#allocation13 + $0x580] sm:$0xf]  ;;  %v9882_v40 = vld [vmem:[#allocation13 + $0x550] sm:$0xf]  ;;  %v12851_v56 = vld [vmem:[#allocation13 + $0x4d4] sm:$0xf0] }
 0x6d8   :  { %v2104_v33 = vmul.f32 %v14853_v62, %v2103_v0  ;;  %16590 = vst [vmem:[#allocation204_spill] sm:$0xff] %v14911_v31  ;;  %v12872_v62 = vld [vmem:[#allocation13 + $0x584] sm:$0xf]  ;;  %2470 = vmatpush.bf16.msrb.mxu0 %v14911_v31  ;;  %v14918_v45 = vor.u32 %v12875_v7, %v9906_v50  ;;  %v9858_v0 = vld [vmem:[#allocation13 + $0x520] sm:$0xf] }
 0x6d9   :  { %16591 = vst [vmem:[#allocation205_spill] sm:$0xff] %v14915_v8  ;;  %v14921_v37 = vor.u32 %v12872_v62, %v9908_v16  ;;  %v14930_v50 = vor.u32 %v12863_v43, %v9858_v0  ;;  %v9834_v7 = vld [vmem:[#allocation13 + $0x4f0] sm:$0xf]  ;;  %v12857_v62 = vld [vmem:[#allocation13 + $0x504] sm:$0xf0]  ;;  %v14933_v16 = vor.u32 %v12860_v38, %v9860_v59 }
 0x6da   :  { %9767 = vmatmul.msk.f32.vlgmr.msrb.gmra.mxu1 %vm766_vm2, %v2104_v33  ;;  %16592 = vst [vmem:[#allocation206_spill] sm:$0xff] %v14918_v45  ;;  %v12869_v33 = vld [vmem:[#allocation13 + $0x564] sm:$0xf0]  ;;  %v9810_v12 = vld [vmem:[#allocation13 + $0x4c0] sm:$0xf] }
 0x6db   :  { %2482 = vmatpush.bf16.msrb.mxu1 %v14906_v57  ;;  %16593 = vst [vmem:[#allocation207_spill] sm:$0xff] %v14921_v37  ;;  %v14924_v60 = vor.u32 %v12869_v33, %v9882_v40  ;;  %v12854_v40 = vld [vmem:[#allocation13 + $0x4f4] sm:$0xf]  ;;  %v9836_v33 = vld [vmem:[#allocation13 + $0x508] sm:$0xf0]  ;;  %v14942_v57 = vor.u32 %v12851_v56, %v9810_v12 }
 0x6dc   :  { %2471 = vmatpush.bf16.msrb.mxu0 %v14918_v45  ;;  %16595 = vst [vmem:[#allocation209_spill] sm:$0xff] %v14927_v14  ;;  %v12848_v0 = vld [vmem:[#allocation13 + $0x4c4] sm:$0xf]  ;;  %v9812_v43 = vld [vmem:[#allocation13 + $0x4d8] sm:$0xf0] }
 0x6dd   :  { %16594 = vst [vmem:[#allocation208_spill] sm:$0xff] %v14924_v60  ;;  %v14945_v38 = vor.u32 %v12848_v0, %v9812_v43  ;;  %v9786_v59 = vld [vmem:[#allocation13 + $0x490] sm:$0xf]  ;;  %v10139_v12 = vld [vmem:[#allocation13 + $0x758] sm:$0xf] }
 0x6de   :  { %16596 = vst [vmem:[#allocation210_spill] sm:$0xff] %v14930_v50  ;;  %v12934_v56 = vld [vmem:[#allocation13 + $0x76c] sm:$0xf0]  ;;  %v12931_v0 = vld [vmem:[#allocation13 + $0x75c] sm:$0xf] }
 0x6df   :  { %2483 = vmatpush.bf16.msrb.mxu1 %v14915_v8  ;;  %16597 = vst [vmem:[#allocation211_spill] sm:$0xff] %v14933_v16  ;;  %v14936_v8 = vor.u32 %v12857_v62, %v9834_v7  ;;  %v12845_v7 = vld [vmem:[#allocation13 + $0x4a4] sm:$0xf0]  ;;  %v12842_v62 = vld [vmem:[#allocation13 + $0x494] sm:$0xf] }
 0x6e0   :  { %2472 = vmatpush.bf16.msrb.mxu0 %v14924_v60  ;;  %16600 = vst [vmem:[#allocation214_spill] sm:$0xff] %v14942_v57  ;;  %v10141_v43 = vld [vmem:[#allocation13 + $0x770] sm:$0xf0]  ;;  %v12913_v60 = vld [vmem:[#allocation13 + $0x6cc] sm:$0xf] }
 0x6e1   :  { %16598 = vst [vmem:[#allocation212_spill] sm:$0xff] %v14936_v8  ;;  %v12888_v31 = vld [vmem:[#allocation13 + $0x604] sm:$0xf] }
 0x6e2   :  { %16601 = vst [vmem:[#allocation215_spill] sm:$0xff] %v14945_v38 }
 0x6e3   :  { %2484 = vmatpush.bf16.msrb.mxu1 %v14921_v37  ;;  %v14939_v37 = vor.u32 %v12854_v40, %v9836_v33  ;;  %v9788_v40 = vld [vmem:[#allocation13 + $0x4a8] sm:$0xf0] }
 0x6e4   :  { %2473 = vmatpush.bf16.msrb.mxu0 %v14930_v50  ;;  %v14951_v33 = vor.u32 %v12842_v62, %v9788_v40  ;;  %v10117_v50 = vld [vmem:[#allocation13 + $0x740] sm:$0xf0] }
 0x6e5   :  { %16599 = vst [vmem:[#allocation213_spill] sm:$0xff] %v14939_v37 }
 0x6e6   :  { %16603 = vst [vmem:[#allocation217_spill] sm:$0xff] %v14951_v33 }
 0x6e7   :  { %2485 = vmatpush.bf16.msrb.mxu1 %v14927_v14 }
 0x6e8   :  { %2474 = vmatpush.bf16.msrb.mxu0 %v14936_v8  ;;  %v10115_v8 = vld [vmem:[#allocation13 + $0x728] sm:$0xf] }
 0x6eb   :  { %2486 = vmatpush.bf16.msrb.mxu1 %v14933_v16  ;;  %v14949_v16 = vor.u32 %v12845_v7, %v9786_v59  ;;  %v12928_v59 = vld [vmem:[#allocation13 + $0x73c] sm:$0xf0]  ;;  %v12925_v7 = vld [vmem:[#allocation13 + $0x72c] sm:$0xf] }
 0x6ec   :  { %2475 = vmatpush.bf16.msrb.mxu0 %v14942_v57  ;;  %v14955_v57 = vor.u32 %v12934_v56, %v10139_v12  ;;  %v14961_v62 = vor.u32 %v12928_v59, %v10115_v8  ;;  %v14963_v40 = vor.u32 %v12925_v7, %v10117_v50  ;;  %v12922_v12 = vld [vmem:[#allocation13 + $0x70c] sm:$0xf0]  ;;  %v12919_v56 = vld [vmem:[#allocation13 + $0x6fc] sm:$0xf]  ;;  %v10043_v59 = vld [vmem:[#allocation13 + $0x698] sm:$0xf] }
 0x6ed   :  { %16602 = vst [vmem:[#allocation216_spill] sm:$0xff] %v14949_v16  ;;  %v12910_v7 = vld [vmem:[#allocation13 + $0x6ac] sm:$0xf0] }
 0x6ee   :  { %16604 = vst [vmem:[#allocation218_spill] sm:$0xff] %v14955_v57 }
 0x6ef   :  { %2487 = vmatpush.bf16.msrb.mxu1 %v14939_v37  ;;  %16606 = vst [vmem:[#allocation220_spill] sm:$0xff] %v14961_v62 }
 0x6f0   :  { %2476 = vmatpush.bf16.msrb.mxu0 %v14949_v16  ;;  %16607 = vst [vmem:[#allocation221_spill] sm:$0xff] %v14963_v40  ;;  %v10067_v16 = vld [vmem:[#allocation13 + $0x6c8] sm:$0xf] }
 0x6f3   :  { %2488 = vmatpush.bf16.msrb.mxu1 %v14945_v38  ;;  %v14957_v38 = vor.u32 %v12931_v0, %v10141_v43  ;;  %v10093_v0 = vld [vmem:[#allocation13 + $0x710] sm:$0xf0] }
 0x6f5   :  { %16605 = vst [vmem:[#allocation219_spill] sm:$0xff] %v14957_v38 }
 0x6f7   :  { %2489 = vmatpush.bf16.msrb.mxu1 %v14951_v33  ;;  %v14969_v33 = vor.u32 %v12919_v56, %v10093_v0  ;;  %v10019_v56 = vld [vmem:[#allocation13 + $0x668] sm:$0xf]  ;;  %v12904_v0 = vld [vmem:[#allocation13 + $0x67c] sm:$0xf0] }
 0x6f9   :  { %16609 = vst [vmem:[#allocation223_spill] sm:$0xff] %v14969_v33 }
 0x757   :  { %v2125_v37 = vpop.f32.mrf.mxu1 }
 0x758   :  { %v2128_v14 = vpack.c.bf16 %v2125_v37, %v2125_v37  ;;  %v10091_v37 = vld [vmem:[#allocation13 + $0x6f8] sm:$0xf] }
 0x759   :  { %v14967_v43 = vor.u32 %v12922_v12, %v10091_v37  ;;  %v14979_v37 = vor.u32 %v12910_v7, %v10043_v59  ;;  %v12892_v7 = vld [vmem:[#allocation13 + $0x61c] sm:$0xf0] }
 0x75a   :  { %2425 = vmatmul.bf16.vlgmr.msra.gmra.mxu0 %v2128_v14  ;;  %2438 = vmatmul.bf16.vlgmr.msra.gmra.mxu1 %v2128_v14 }
 0x75b   :  { %2451 = vmatmul.bf16.vlgmr.msra.gmra.mxu2 %v2128_v14  ;;  %2464 = vmatmul.bf16.vlgmr.msra.gmra.mxu3 %v2128_v14  ;;  %16608 = vst [vmem:[#allocation222_spill] sm:$0xff] %v14967_v43 }
 0x75c   :  { %2885 = vmatpush.bf16.msra.mxu0 %v14955_v57  ;;  %2898 = vmatpush.bf16.msra.mxu1 %v14957_v38  ;;  %v12916_v57 = vld [vmem:[#allocation13 + $0x6dc] sm:$0xf0]  ;;  %v10069_v38 = vld [vmem:[#allocation13 + $0x6e0] sm:$0xf0]  ;;  %16612 = vst [vmem:[#allocation226_spill] sm:$0xff] %v14979_v37 }
 0x75d   :  { %v14973_v8 = vor.u32 %v12916_v57, %v10067_v16  ;;  %v14975_v50 = vor.u32 %v12913_v60, %v10069_v38  ;;  %v14986_v57 = vor.u32 %v12904_v0, %v10019_v56  ;;  %v9995_v16 = vld [vmem:[#allocation13 + $0x638] sm:$0xf]  ;;  %v12898_v38 = vld [vmem:[#allocation13 + $0x64c] sm:$0xf0] }
 0x75e   :  { %v14992_v59 = vor.u32 %v12898_v38, %v9995_v16 }
 0x75f   :  { %16610 = vst [vmem:[#allocation224_spill] sm:$0xff] %v14973_v8 }
 0x760   :  { %2886 = vmatpush.bf16.msra.mxu0 %v14961_v62  ;;  %2899 = vmatpush.bf16.msra.mxu1 %v14963_v40  ;;  %16611 = vst [vmem:[#allocation225_spill] sm:$0xff] %v14975_v50  ;;  %v12907_v62 = vld [vmem:[#allocation13 + $0x69c] sm:$0xf]  ;;  %v10045_v40 = vld [vmem:[#allocation13 + $0x6b0] sm:$0xf0] }
 0x761   :  { %v14981_v12 = vor.u32 %v12907_v62, %v10045_v40  ;;  %16614 = vst [vmem:[#allocation228_spill] sm:$0xff] %v14986_v57  ;;  %v12895_v62 = vld [vmem:[#allocation13 + $0x63c] sm:$0xf]  ;;  %v9997_v40 = vld [vmem:[#allocation13 + $0x650] sm:$0xf0] }
 0x762   :  { %16616 = vst [vmem:[#allocation230_spill] sm:$0xff] %v14992_v59 }
 0x763   :  { %16613 = vst [vmem:[#allocation227_spill] sm:$0xff] %v14981_v12 }
 0x764   :  { %2887 = vmatpush.bf16.msra.mxu0 %v14967_v43  ;;  %2900 = vmatpush.bf16.msra.mxu1 %v14969_v33  ;;  %v12901_v43 = vld [vmem:[#allocation13 + $0x66c] sm:$0xf]  ;;  %v10021_v33 = vld [vmem:[#allocation13 + $0x680] sm:$0xf0] }
 0x765   :  { %v14988_v60 = vor.u32 %v12901_v43, %v10021_v33 }
 0x767   :  { %16615 = vst [vmem:[#allocation229_spill] sm:$0xff] %v14988_v60 }
 0x768   :  { %2888 = vmatpush.bf16.msra.mxu0 %v14973_v8  ;;  %2901 = vmatpush.bf16.msra.mxu1 %v14975_v50  ;;  %v10035_v50 = vld [vmem:[#allocation13 + $0x690] sm:$0xf]  ;;  %v10037_v8 = vld [vmem:[#allocation13 + $0x6a8] sm:$0xf0] }
 0x76a   :  { %2477 = vmatmul.bf16.vlgmr.msrb.gmra.mxu0 %v2128_v14  ;;  %2490 = vmatmul.bf16.vlgmr.msrb.gmra.mxu1 %v2128_v14  ;;  %v14994_v14 = vor.u32 %v12895_v62, %v9997_v40 }
 0x76b   :  { %2517 = vmatmul.f32.vlgmr.msrb.gmra.mxu2 %v14231_v17  ;;  %v9971_v17 = vld [vmem:[#allocation13 + $0x608] sm:$0xf] }
 0x76c   :  { %2889 = vmatpush.bf16.msra.mxu0 %v14979_v37  ;;  %2902 = vmatpush.bf16.msra.mxu1 %v14981_v12  ;;  %16617 = vst [vmem:[#allocation231_spill] sm:$0xff] %v14994_v14  ;;  %v12889_v37 = vld [vmem:[#allocation13 + $0x60c] sm:$0xf]  ;;  %v9973_v12 = vld [vmem:[#allocation13 + $0x620] sm:$0xf0]  ;;  %v14998_v33 = vor.u32 %v12892_v7, %v9971_v17 }
 0x76d   :  { %v15000_v43 = vor.u32 %v12889_v37, %v9973_v12 }
 0x76e   :  { %16618 = vst [vmem:[#allocation232_spill] sm:$0xff] %v14998_v33 }
 0x76f   :  { %16619 = vst [vmem:[#allocation233_spill] sm:$0xff] %v15000_v43 }
 0x770   :  { %2890 = vmatpush.bf16.msra.mxu0 %v14986_v57  ;;  %2903 = vmatpush.bf16.msra.mxu1 %v14988_v60  ;;  %v12915_v60 = vld [vmem:[#allocation13 + $0x6d4] sm:$0xf0] }
 0x774   :  { %2891 = vmatpush.bf16.msra.mxu0 %v14992_v59  ;;  %2904 = vmatpush.bf16.msra.mxu1 %v14994_v14  ;;  %v12918_v59 = vld [vmem:[#allocation13 + $0x6f4] sm:$0xf] }
 0x778   :  { %2892 = vmatpush.bf16.msra.mxu0 %v14998_v33  ;;  %2905 = vmatpush.bf16.msra.mxu1 %v15000_v43 }
 0x77c   :  { %2958 = vmatpush.xpose.msrb.mxu0 %v14429_v22  ;;  %3007 = vmatpush.msrb.mxu1 %v14621_v26 }
 0x7d7   :  { %v15006_v56 = vpop.f32.mrf.mxu0  ;;  %v15008_v0 = vpop.f32.mrf.mxu1 }
 0x7d8   :  { %16620 = vst [vmem:[#allocation234_spill] sm:$0xff] %v15006_v56 }
 0x7d9   :  { %16621 = vst [vmem:[#allocation235_spill] sm:$0xff] %v15008_v0 }
 0x7de   :  { %v2452_v16 = vpop.f32.mrf.mxu2  ;;  %v2465_v38 = vpop.f32.mrf.mxu3 }
 0x7df   :  { %v15011_v62 = vadd.f32 %v2452_v16, %v14838_v36  ;;  %v15014_v37 = vadd.f32 %v2465_v38, %v14840_v27  ;;  %v2428_v12 = vpop.f32.mrf.mxu0  ;;  %v2441_v40 = vpop.f32.mrf.mxu1 }
 0x7e6   :  { %v2454_v17 = vpop.f32.mrf.mxu2  ;;  %v2467_v7 = vpop.f32.mrf.mxu3 }
 0x7e7   :  { %v15016_v43 = vpop.f32.mrf.mxu0  ;;  %v15018_v22 = vpop.f32.mrf.mxu1  ;;  %v10131_v17 = vld [vmem:[#allocation13 + $0x750] sm:$0xf]  ;;  %v12933_v7 = vld [vmem:[#allocation13 + $0x764] sm:$0xf0] }
 0x7e8   :  { %16622 = vst [vmem:[#allocation236_spill] sm:$0xff] %v15016_v43 }
 0x7e9   :  { %16623 = vst [vmem:[#allocation237_spill] sm:$0xff] %v15018_v22  ;;  %v12927_v22 = vld [vmem:[#allocation13 + $0x734] sm:$0xf0] }
 0x7ee   :  { %v2518_v26 = vpop.f32.mrf.mxu2 }
 0x7ef   :  { %v2521_v56 = vmul.f32 0.088388346, %v2518_v26  ;;  %v2480_v33 = vpop.f32.mrf.mxu0  ;;  %v2493_v0 = vpop.f32.mrf.mxu1  ;;  %v10133_v26 = vld [vmem:[#allocation13 + $0x768] sm:$0xf0] }
 0x7f0   :  { %v12930_v33 = vld [vmem:[#allocation13 + $0x754] sm:$0xf]  ;;  %v15027_v0 = vor.u32 %v12933_v7, %v10131_v17  ;;  %v10085_v17 = vld [vmem:[#allocation13 + $0x708] sm:$0xf0] }
 0x7f1   :  { %v2522_v14 = vsel %vm743_vm1, %v2521_v56, -1000000.0  ;;  %v10107_v56 = vld [vmem:[#allocation13 + $0x720] sm:$0xf]  ;;  %v15029_v43 = vor.u32 %v12930_v33, %v10133_v26  ;;  %v15041_v33 = vor.u32 %v12918_v59, %v10085_v17 }
 0x7f2   :  { %v2523_v36 = vsel %vm766_vm2, %v2522_v14, -inf  ;;  %16624 = vst [vmem:[#allocation238_spill] sm:$0xff] %v15027_v0  ;;  %2859 = vmatpush.bf16.msra.mxu2 %v15027_v0  ;;  %v10059_v26 = vld [vmem:[#allocation13 + $0x6c0] sm:$0xf] }
 0x7f3   :  { %2524 = vmax.xlane.f32.xlu2 %v2523_v36  ;;  %16625 = vst [vmem:[#allocation239_spill] sm:$0xff] %v15029_v43  ;;  %v12924_v36 = vld [vmem:[#allocation13 + $0x724] sm:$0xf]  ;;  %2872 = vmatpush.bf16.msra.mxu3 %v15029_v43 }
 0x7f4   :  { %16629 = vst [vmem:[#allocation243_spill] sm:$0xff] %v15041_v33 }
 0x866   :  { %v2525_v27 = vpop.xlane.xlu2 %2524 }
 0x867   :  { %v2526_v16 = vsub.f32 %v2522_v14, %v2525_v27  ;;  %v10109_v14 = vld [vmem:[#allocation13 + $0x738] sm:$0xf0]  ;;  %v15032_v27 = vor.u32 %v12927_v22, %v10107_v56  ;;  %v12912_v22 = vld [vmem:[#allocation13 + $0x6c4] sm:$0xf] }
 0x868   :  { %v10061_v56 = vld [vmem:[#allocation13 + $0x6d8] sm:$0xf0] }
 0x869   :  { %v2527_v38 = vmul.f32 1.442695, %v2526_v16  ;;  %16626 = vst [vmem:[#allocation240_spill] sm:$0xff] %v15032_v27  ;;  %v15035_v16 = vor.u32 %v12924_v36, %v10109_v14  ;;  %2860 = vmatpush.bf16.msra.mxu2 %v15032_v27  ;;  %v15044_v36 = vor.u32 %v12915_v60, %v10059_v26  ;;  %v15047_v57 = vor.u32 %v12912_v22, %v10061_v56  ;;  %v10011_v60 = vld [vmem:[#allocation13 + $0x660] sm:$0xf] }
 0x86a   :  { %v12903_v26 = vld [vmem:[#allocation13 + $0x674] sm:$0xf0] }
 0x86b   :  { %13597 = vpow2.f32 %v2527_v38  ;;  %16627 = vst [vmem:[#allocation241_spill] sm:$0xff] %v15035_v16  ;;  %v10083_v38 = vld [vmem:[#allocation13 + $0x6f0] sm:$0xf]  ;;  %2873 = vmatpush.bf16.msra.mxu3 %v15035_v16  ;;  %v10013_v16 = vld [vmem:[#allocation13 + $0x678] sm:$0xf0]  ;;  %v15056_v22 = vor.u32 %v12903_v26, %v10011_v60 }
 0x86c   :  { %16630 = vst [vmem:[#allocation244_spill] sm:$0xff] %v15044_v36  ;;  %v9963_v26 = vld [vmem:[#allocation13 + $0x600] sm:$0xf] }
 0x86d   :  { %16631 = vst [vmem:[#allocation245_spill] sm:$0xff] %v15047_v57 }
 0x86e   :  { %16634 = vst [vmem:[#allocation248_spill] sm:$0xff] %v15056_v22 }
 0x86f   :  { %2874 = vmatpush.bf16.msra.mxu3 %v15041_v33 }
 0x871   :  { %v15023_v12 = vpop.eup %13597 }
 0x872   :  { %v2529_v40 = vsel %vm766_vm2, %v15023_v12, 0.0 }
 0x873   :  { %2530 = vadd.xlane.f32.xlu0 %v2529_v40  ;;  %v12921_v40 = vld [vmem:[#allocation13 + $0x704] sm:$0xf0]  ;;  %2875 = vmatpush.bf16.msra.mxu3 %v15047_v57  ;;  %v9989_v57 = vld [vmem:[#allocation13 + $0x648] sm:$0xf0] }
 0x874   :  { %v15038_v7 = vor.u32 %v12921_v40, %v10083_v38  ;;  %v12909_v38 = vld [vmem:[#allocation13 + $0x6a4] sm:$0xf0]  ;;  %v12906_v40 = vld [vmem:[#allocation13 + $0x694] sm:$0xf] }
 0x875   :  { %v15050_v59 = vor.u32 %v12909_v38, %v10035_v50  ;;  %v15053_v17 = vor.u32 %v12906_v40, %v10037_v8  ;;  %v9987_v50 = vld [vmem:[#allocation13 + $0x630] sm:$0xf]  ;;  %v12897_v38 = vld [vmem:[#allocation13 + $0x644] sm:$0xf0] }
 0x876   :  { %16628 = vst [vmem:[#allocation242_spill] sm:$0xff] %v15038_v7  ;;  %2861 = vmatpush.bf16.msra.mxu2 %v15038_v7  ;;  %v12900_v7 = vld [vmem:[#allocation13 + $0x664] sm:$0xf]  ;;  %v15062_v43 = vor.u32 %v12897_v38, %v9987_v50 }
 0x877   :  { %16632 = vst [vmem:[#allocation246_spill] sm:$0xff] %v15050_v59  ;;  %2876 = vmatpush.bf16.msra.mxu3 %v15053_v17  ;;  %v15059_v27 = vor.u32 %v12900_v7, %v10013_v16  ;;  %v12891_v16 = vld [vmem:[#allocation13 + $0x614] sm:$0xf0]  ;;  %v10147_v7 = vld [vmem:[#allocation13 + $0x760] sm:$0xf] }
 0x878   :  { %16633 = vst [vmem:[#allocation247_spill] sm:$0xff] %v15053_v17  ;;  %v12935_v17 = vld [vmem:[#allocation13 + $0x774] sm:$0xf0]  ;;  %v15068_v50 = vor.u32 %v12891_v16, %v9963_v26  ;;  %v12932_v38 = vld [vmem:[#allocation13 + $0x764] sm:$0xf] }
 0x879   :  { %16635 = vst [vmem:[#allocation249_spill] sm:$0xff] %v15059_v27  ;;  %v12926_v26 = vld [vmem:[#allocation13 + $0x734] sm:$0xf]  ;;  %v10125_v16 = vld [vmem:[#allocation13 + $0x748] sm:$0xf0] }
 0x87a   :  { %2862 = vmatpush.bf16.msra.mxu2 %v15044_v36  ;;  %v12894_v36 = vld [vmem:[#allocation13 + $0x634] sm:$0xf] }
 0x87b   :  { %2877 = vmatpush.bf16.msra.mxu3 %v15059_v27  ;;  %v15065_v60 = vor.u32 %v12894_v36, %v9989_v57  ;;  %v15071_v57 = vor.u32 %v12935_v17, %v10147_v7 }
 0x87e   :  { %2863 = vmatpush.bf16.msra.mxu2 %v15050_v59 }
 0x87f   :  { %2878 = vmatpush.bf16.msra.mxu3 %v15065_v60 }
 0x882   :  { %2864 = vmatpush.bf16.msra.mxu2 %v15056_v22 }
 0x886   :  { %2865 = vmatpush.bf16.msra.mxu2 %v15062_v43 }
 0x88a   :  { %2866 = vmatpush.bf16.msra.mxu2 %v15068_v50 }
 0x88e   :  { %2911 = vmatpush.bf16.msrb.mxu2 %v15071_v57 }
 0x8e6   :  { %v2531_v14 = vpop.xlane.xlu0 %2530 }
 0x8e7   :  { %13599 = vrcp.f32 %v2531_v14  ;;  %v2543_v40 = vand.u32 2147483648, %v2531_v14  ;;  %v2541_v59 = vand.u32 2147483647, %v2531_v14  ;;  %vm2537_vm6 = vweird.f32 %v2531_v14 }
 0x8e9   :  { %v2544_v48 = vor.u32 1.1754944e-38, %v2543_v40  ;;  %vm2542_vm8 = vcmp.eq.f32.partialorder %v2541_v59, 8.507059e+37  ;;  %v10101_v59 = vld [vmem:[#allocation13 + $0x718] sm:$0xf0] }
 0x8ed   :  { %v13600_v33 = vpop.eup %13599 }
 0x8ee   :  { %v2533_v56 = vmul.f32 %v13600_v33, %v2531_v14  ;;  %vm2538_vm5 = vweird.f32 %v13600_v33  ;;  %v12929_v14 = vld [vmem:[#allocation13 + $0x744] sm:$0xf0] }
 0x8ef   :  { %vm2539_vm7 = vmor %vm2537_vm6, %vm2538_vm5 }
 0x8f0   :  { %v2534_v8 = vsub.f32 1.0, %v2533_v56  ;;  %v9965_v56 = vld [vmem:[#allocation13 + $0x618] sm:$0xf0] }
 0x8f1   :  { %v15073_v27 = vor.u32 %v12888_v31, %v9965_v56  ;;  %v12923_v31 = vld [vmem:[#allocation13 + $0x714] sm:$0xf0]  ;;  %v12914_v56 = vld [vmem:[#allocation13 + $0x6d4] sm:$0xf] }
 0x8f2   :  { %v2535_v0 = vmul.f32 %v13600_v33, %v2534_v8  ;;  %v10149_v8 = vld [vmem:[#allocation13 + $0x778] sm:$0xf0] }
 0x8f3   :  { %v15076_v40 = vor.u32 %v12932_v38, %v10149_v8  ;;  %2879 = vmatpush.bf16.msra.mxu3 %v15073_v27  ;;  %v10077_v38 = vld [vmem:[#allocation13 + $0x6e8] sm:$0xf0] }
 0x8f4   :  { %v2536_v45 = vadd.f32 %v13600_v33, %v2535_v0  ;;  %v10123_v0 = vld [vmem:[#allocation13 + $0x730] sm:$0xf] }
 0x8f5   :  { %16636 = vst [vmem:[#allocation250_spill] sm:$0xff] %v15076_v40 }
 0x8f6   :  { %v2540_v22 = vsel %vm2539_vm7, %v13600_v33, %v2536_v45  ;;  %v15081_v45 = vor.u32 %v12929_v14, %v10123_v0  ;;  %v15085_v33 = vor.u32 %v12926_v26, %v10125_v16  ;;  %v12911_v0 = vld [vmem:[#allocation13 + $0x6b4] sm:$0xf0]  ;;  %v15097_v14 = vor.u32 %v12914_v56, %v10077_v38  ;;  %v12908_v26 = vld [vmem:[#allocation13 + $0x6a4] sm:$0xf]  ;;  %v10053_v16 = vld [vmem:[#allocation13 + $0x6b8] sm:$0xf0] }
 0x8f7   :  { %v2545_v36 = vsel %vm2542_vm8, %v2544_v48, %v2540_v22  ;;  %v10099_v48 = vld [vmem:[#allocation13 + $0x700] sm:$0xf]  ;;  %v10075_v22 = vld [vmem:[#allocation13 + $0x6d0] sm:$0xf]  ;;  %v12899_v38 = vld [vmem:[#allocation13 + $0x654] sm:$0xf0] }
 0x8f8   :  { %v2546_v34 = vmul.f32 %v15023_v12, %v2545_v36  ;;  %16637 = vst [vmem:[#allocation251_spill] sm:$0xff] %v15085_v33  ;;  %v12920_v12 = vld [vmem:[#allocation13 + $0x704] sm:$0xf]  ;;  %2912 = vmatpush.bf16.msrb.mxu2 %v15081_v45  ;;  %v15088_v17 = vor.u32 %v12923_v31, %v10099_v48  ;;  %v10051_v36 = vld [vmem:[#allocation13 + $0x6a0] sm:$0xf] }
 0x8f9   :  { %v15091_v7 = vor.u32 %v12920_v12, %v10101_v59  ;;  %16641 = vst [vmem:[#allocation255_spill] sm:$0xff] %v15097_v14  ;;  %v15100_v48 = vor.u32 %v12911_v0, %v10051_v36  ;;  %v10027_v31 = vld [vmem:[#allocation13 + $0x670] sm:$0xf]  ;;  %v12905_v12 = vld [vmem:[#allocation13 + $0x684] sm:$0xf0]  ;;  %v15103_v59 = vor.u32 %v12908_v26, %v10053_v16 }
 0x8fa   :  { %9960 = vmatmul.msk.f32.vlgmr.msrb.gmra.mxu3 %vm766_vm2, %v2546_v34  ;;  %16638 = vst [vmem:[#allocation252_spill] sm:$0xff] %v15088_v17  ;;  %v12917_v34 = vld [vmem:[#allocation13 + $0x6e4] sm:$0xf0]  ;;  %v10003_v56 = vld [vmem:[#allocation13 + $0x640] sm:$0xf] }
 0x8fb   :  { %2924 = vmatpush.bf16.msrb.mxu3 %v15076_v40  ;;  %16639 = vst [vmem:[#allocation253_spill] sm:$0xff] %v15091_v7  ;;  %v15094_v8 = vor.u32 %v12917_v34, %v10075_v22  ;;  %v12902_v22 = vld [vmem:[#allocation13 + $0x674] sm:$0xf]  ;;  %v10029_v34 = vld [vmem:[#allocation13 + $0x688] sm:$0xf0]  ;;  %v15112_v40 = vor.u32 %v12899_v38, %v10003_v56 }
 0x8fc   :  { %2913 = vmatpush.bf16.msrb.mxu2 %v15088_v17  ;;  %16642 = vst [vmem:[#allocation256_spill] sm:$0xff] %v15100_v48  ;;  %v12896_v36 = vld [vmem:[#allocation13 + $0x644] sm:$0xf]  ;;  %v10005_v0 = vld [vmem:[#allocation13 + $0x658] sm:$0xf0] }
 0x8fd   :  { %16640 = vst [vmem:[#allocation254_spill] sm:$0xff] %v15094_v8  ;;  %v15115_v26 = vor.u32 %v12896_v36, %v10005_v0  ;;  %v9979_v16 = vld [vmem:[#allocation13 + $0x610] sm:$0xf]  ;;  %v10332_v56 = vld [vmem:[#allocation13 + $0x8d8] sm:$0xf] }
 0x8fe   :  { %16643 = vst [vmem:[#allocation257_spill] sm:$0xff] %v15103_v59  ;;  %v12982_v38 = vld [vmem:[#allocation13 + $0x8ec] sm:$0xf0]  ;;  %v12979_v36 = vld [vmem:[#allocation13 + $0x8dc] sm:$0xf] }
 0x8ff   :  { %2925 = vmatpush.bf16.msrb.mxu3 %v15085_v33  ;;  %v15106_v33 = vor.u32 %v12905_v12, %v10027_v31  ;;  %16646 = vst [vmem:[#allocation260_spill] sm:$0xff] %v15112_v40  ;;  %v12893_v31 = vld [vmem:[#allocation13 + $0x624] sm:$0xf0]  ;;  %v12890_v12 = vld [vmem:[#allocation13 + $0x614] sm:$0xf] }
 0x900   :  { %2914 = vmatpush.bf16.msrb.mxu2 %v15094_v8  ;;  %16647 = vst [vmem:[#allocation261_spill] sm:$0xff] %v15115_v26  ;;  %v10334_v0 = vld [vmem:[#allocation13 + $0x8f0] sm:$0xf0]  ;;  %v12961_v8 = vld [vmem:[#allocation13 + $0x84c] sm:$0xf] }
 0x901   :  { %16644 = vst [vmem:[#allocation258_spill] sm:$0xff] %v15106_v33 }
 0x903   :  { %2926 = vmatpush.bf16.msrb.mxu3 %v15091_v7  ;;  %v15109_v7 = vor.u32 %v12902_v22, %v10029_v34  ;;  %v9981_v22 = vld [vmem:[#allocation13 + $0x628] sm:$0xf0] }
 0x904   :  { %2915 = vmatpush.bf16.msrb.mxu2 %v15100_v48  ;;  %v15121_v34 = vor.u32 %v12890_v12, %v9981_v22  ;;  %v10310_v48 = vld [vmem:[#allocation13 + $0x8c0] sm:$0xf0] }
 0x905   :  { %16645 = vst [vmem:[#allocation259_spill] sm:$0xff] %v15109_v7 }
 0x906   :  { %16649 = vst [vmem:[#allocation263_spill] sm:$0xff] %v15121_v34 }
 0x907   :  { %2927 = vmatpush.bf16.msrb.mxu3 %v15097_v14 }
 0x908   :  { %2916 = vmatpush.bf16.msrb.mxu2 %v15106_v33  ;;  %v10308_v33 = vld [vmem:[#allocation13 + $0x8a8] sm:$0xf] }
 0x90b   :  { %2928 = vmatpush.bf16.msrb.mxu3 %v15103_v59  ;;  %v15119_v59 = vor.u32 %v12893_v31, %v9979_v16  ;;  %v12976_v16 = vld [vmem:[#allocation13 + $0x8bc] sm:$0xf0]  ;;  %v12973_v31 = vld [vmem:[#allocation13 + $0x8ac] sm:$0xf] }
 0x90c   :  { %2917 = vmatpush.bf16.msrb.mxu2 %v15112_v40  ;;  %v15125_v40 = vor.u32 %v12982_v38, %v10332_v56  ;;  %v15131_v12 = vor.u32 %v12976_v16, %v10308_v33  ;;  %v15133_v22 = vor.u32 %v12973_v31, %v10310_v48  ;;  %v12970_v56 = vld [vmem:[#allocation13 + $0x88c] sm:$0xf0]  ;;  %v12967_v38 = vld [vmem:[#allocation13 + $0x87c] sm:$0xf]  ;;  %v10236_v16 = vld [vmem:[#allocation13 + $0x818] sm:$0xf] }
 0x90d   :  { %16648 = vst [vmem:[#allocation262_spill] sm:$0xff] %v15119_v59  ;;  %v12958_v31 = vld [vmem:[#allocation13 + $0x82c] sm:$0xf0] }
 0x90e   :  { %16650 = vst [vmem:[#allocation264_spill] sm:$0xff] %v15125_v40 }
 0x90f   :  { %2929 = vmatpush.bf16.msrb.mxu3 %v15109_v7  ;;  %16652 = vst [vmem:[#allocation266_spill] sm:$0xff] %v15131_v12 }
 0x910   :  { %2918 = vmatpush.bf16.msrb.mxu2 %v15119_v59  ;;  %16653 = vst [vmem:[#allocation267_spill] sm:$0xff] %v15133_v22  ;;  %v10260_v59 = vld [vmem:[#allocation13 + $0x848] sm:$0xf] }
 0x913   :  { %2930 = vmatpush.bf16.msrb.mxu3 %v15115_v26  ;;  %v15127_v26 = vor.u32 %v12979_v36, %v10334_v0  ;;  %v10286_v36 = vld [vmem:[#allocation13 + $0x890] sm:$0xf0] }
 0x915   :  { %16651 = vst [vmem:[#allocation265_spill] sm:$0xff] %v15127_v26 }
 0x917   :  { %2931 = vmatpush.bf16.msrb.mxu3 %v15121_v34  ;;  %v15139_v34 = vor.u32 %v12967_v38, %v10286_v36  ;;  %v10212_v38 = vld [vmem:[#allocation13 + $0x7e8] sm:$0xf]  ;;  %v12952_v36 = vld [vmem:[#allocation13 + $0x7fc] sm:$0xf0] }
 0x919   :  { %16655 = vst [vmem:[#allocation269_spill] sm:$0xff] %v15139_v34 }
 0x97d   :  { %v2567_v7 = vpop.f32.mrf.mxu3 }
 0x97e   :  { %v2570_v14 = vpack.c.bf16 %v2567_v7, %v2567_v7  ;;  %v10284_v7 = vld [vmem:[#allocation13 + $0x878] sm:$0xf] }
 0x97f   :  { %v15137_v0 = vor.u32 %v12970_v56, %v10284_v7  ;;  %v15149_v7 = vor.u32 %v12958_v31, %v10236_v16  ;;  %v12940_v31 = vld [vmem:[#allocation13 + $0x79c] sm:$0xf0] }
 0x980   :  { %2867 = vmatmul.bf16.vlgmr.msra.gmra.mxu2 %v2570_v14  ;;  %2880 = vmatmul.bf16.vlgmr.msra.gmra.mxu3 %v2570_v14 }
 0x981   :  { %2893 = vmatmul.bf16.vlgmr.msra.gmra.mxu0 %v2570_v14  ;;  %2906 = vmatmul.bf16.vlgmr.msra.gmra.mxu1 %v2570_v14  ;;  %16654 = vst [vmem:[#allocation268_spill] sm:$0xff] %v15137_v0 }
 0x982   :  { %3327 = vmatpush.bf16.msra.mxu2 %v15125_v40  ;;  %3340 = vmatpush.bf16.msra.mxu3 %v15127_v26  ;;  %v12964_v40 = vld [vmem:[#allocation13 + $0x85c] sm:$0xf0]  ;;  %v10262_v26 = vld [vmem:[#allocation13 + $0x860] sm:$0xf0]  ;;  %16658 = vst [vmem:[#allocation272_spill] sm:$0xff] %v15149_v7 }
 0x983   :  { %v15143_v33 = vor.u32 %v12964_v40, %v10260_v59  ;;  %v15145_v48 = vor.u32 %v12961_v8, %v10262_v26  ;;  %v15156_v40 = vor.u32 %v12952_v36, %v10212_v38  ;;  %v10188_v59 = vld [vmem:[#allocation13 + $0x7b8] sm:$0xf]  ;;  %v12946_v26 = vld [vmem:[#allocation13 + $0x7cc] sm:$0xf0] }
 0x984   :  { %v15162_v16 = vor.u32 %v12946_v26, %v10188_v59 }
 0x985   :  { %16656 = vst [vmem:[#allocation270_spill] sm:$0xff] %v15143_v33 }
 0x986   :  { %3328 = vmatpush.bf16.msra.mxu2 %v15131_v12  ;;  %3341 = vmatpush.bf16.msra.mxu3 %v15133_v22  ;;  %16657 = vst [vmem:[#allocation271_spill] sm:$0xff] %v15145_v48  ;;  %v12955_v12 = vld [vmem:[#allocation13 + $0x81c] sm:$0xf]  ;;  %v10238_v22 = vld [vmem:[#allocation13 + $0x830] sm:$0xf0] }
 0x987   :  { %v15151_v56 = vor.u32 %v12955_v12, %v10238_v22  ;;  %16660 = vst [vmem:[#allocation274_spill] sm:$0xff] %v15156_v40  ;;  %v12943_v12 = vld [vmem:[#allocation13 + $0x7bc] sm:$0xf]  ;;  %v10190_v22 = vld [vmem:[#allocation13 + $0x7d0] sm:$0xf0] }
 0x988   :  { %16662 = vst [vmem:[#allocation276_spill] sm:$0xff] %v15162_v16 }
 0x989   :  { %16659 = vst [vmem:[#allocation273_spill] sm:$0xff] %v15151_v56 }
 0x98a   :  { %3329 = vmatpush.bf16.msra.mxu2 %v15137_v0  ;;  %3342 = vmatpush.bf16.msra.mxu3 %v15139_v34  ;;  %v12949_v0 = vld [vmem:[#allocation13 + $0x7ec] sm:$0xf]  ;;  %v10214_v34 = vld [vmem:[#allocation13 + $0x800] sm:$0xf0] }
 0x98b   :  { %v15158_v8 = vor.u32 %v12949_v0, %v10214_v34 }
 0x98d   :  { %16661 = vst [vmem:[#allocation275_spill] sm:$0xff] %v15158_v8 }
 0x98e   :  { %3330 = vmatpush.bf16.msra.mxu2 %v15143_v33  ;;  %3343 = vmatpush.bf16.msra.mxu3 %v15145_v48  ;;  %v10206_v48 = vld [vmem:[#allocation13 + $0x7f8] sm:$0xf0] }
 0x990   :  { %2919 = vmatmul.bf16.vlgmr.msrb.gmra.mxu2 %v2570_v14  ;;  %2932 = vmatmul.bf16.vlgmr.msrb.gmra.mxu3 %v2570_v14  ;;  %v15164_v14 = vor.u32 %v12943_v12, %v10190_v22 }
 0x991   :  { %2959 = vmatmul.f32.vlgmr.msrb.gmra.mxu0 %v14235_v19  ;;  %v10164_v19 = vld [vmem:[#allocation13 + $0x788] sm:$0xf] }
 0x992   :  { %3331 = vmatpush.bf16.msra.mxu2 %v15149_v7  ;;  %3344 = vmatpush.bf16.msra.mxu3 %v15151_v56  ;;  %16663 = vst [vmem:[#allocation277_spill] sm:$0xff] %v15164_v14  ;;  %v12937_v7 = vld [vmem:[#allocation13 + $0x78c] sm:$0xf]  ;;  %v10166_v56 = vld [vmem:[#allocation13 + $0x7a0] sm:$0xf0]  ;;  %v15168_v34 = vor.u32 %v12940_v31, %v10164_v19 }
 0x993   :  { %v15170_v0 = vor.u32 %v12937_v7, %v10166_v56 }
 0x994   :  { %16664 = vst [vmem:[#allocation278_spill] sm:$0xff] %v15168_v34 }
 0x995   :  { %16665 = vst [vmem:[#allocation279_spill] sm:$0xff] %v15170_v0 }
 0x996   :  { %3332 = vmatpush.bf16.msra.mxu2 %v15156_v40  ;;  %3345 = vmatpush.bf16.msra.mxu3 %v15158_v8  ;;  %v10230_v8 = vld [vmem:[#allocation13 + $0x828] sm:$0xf0]  ;;  %v12948_v40 = vld [vmem:[#allocation13 + $0x7e4] sm:$0xf] }
 0x99a   :  { %3333 = vmatpush.bf16.msra.mxu2 %v15162_v16  ;;  %3346 = vmatpush.bf16.msra.mxu3 %v15164_v14  ;;  %v10228_v16 = vld [vmem:[#allocation13 + $0x810] sm:$0xf] }
 0x99e   :  { %3334 = vmatpush.bf16.msra.mxu2 %v15168_v34  ;;  %3347 = vmatpush.bf16.msra.mxu3 %v15170_v0 }
 0x9a2   :  { %3403 = vmatpush.xpose.msrb.mxu2 %v14185_v61  ;;  %3452 = vmatpush.msrb.mxu3 %v14619_v44 }
 0x9fe   :  { %v2894_v38 = vpop.f32.mrf.mxu0  ;;  %v2907_v36 = vpop.f32.mrf.mxu1 }
 0x9ff   :  { %v15177_v59 = vadd.f32 %v2894_v38, %v15011_v62  ;;  %v15180_v26 = vadd.f32 %v2907_v36, %v15014_v37 }
 0xa01   :  { %16666 = vst [vmem:[#allocation280_spill] sm:$0xff] %v15177_v59 }
 0xa02   :  { %16667 = vst [vmem:[#allocation281_spill] sm:$0xff] %v15180_v26 }
 0xa03   :  { %v15182_v12 = vpop.f32.mrf.mxu2  ;;  %v15184_v7 = vpop.f32.mrf.mxu3 }
 0xa04   :  { %16668 = vst [vmem:[#allocation282_spill] sm:$0xff] %v15182_v12  ;;  %v12963_v12 = vld [vmem:[#allocation13 + $0x854] sm:$0xf0] }
 0xa05   :  { %16669 = vst [vmem:[#allocation283_spill] sm:$0xff] %v15184_v7  ;;  %v12966_v7 = vld [vmem:[#allocation13 + $0x874] sm:$0xf] }
 0xa06   :  { %v2896_v56 = vpop.f32.mrf.mxu0  ;;  %v2909_v22 = vpop.f32.mrf.mxu1 }
 0xa0b   :  { %v2870_v19 = vpop.f32.mrf.mxu2  ;;  %v2883_v31 = vpop.f32.mrf.mxu3 }
 0xa0c   :  { %v12981_v19 = vld [vmem:[#allocation13 + $0x8e4] sm:$0xf0]  ;;  %v12978_v31 = vld [vmem:[#allocation13 + $0x8d4] sm:$0xf] }
 0xa0e   :  { %v2960_v0 = vpop.f32.mrf.mxu0 }
 0xa0f   :  { %v2963_v61 = vmul.f32 0.088388346, %v2960_v0 }
 0xa11   :  { %v2964_v44 = vsel %vm743_vm1, %v2963_v61, -1000000.0  ;;  %v10326_v61 = vld [vmem:[#allocation13 + $0x8e8] sm:$0xf0] }
 0xa12   :  { %v2965_v34 = vsel %vm766_vm2, %v2964_v44, -inf }
 0xa13   :  { %2966 = vmax.xlane.f32.xlu1 %v2965_v34  ;;  %v15189_v62 = vpop.f32.mrf.mxu2  ;;  %v15191_v37 = vpop.f32.mrf.mxu3  ;;  %v15197_v34 = vor.u32 %v12981_v19, %v10324_v24  ;;  %v10278_v24 = vld [vmem:[#allocation13 + $0x888] sm:$0xf0] }
 0xa14   :  { %16670 = vst [vmem:[#allocation284_spill] sm:$0xff] %v15189_v62  ;;  %v10300_v62 = vld [vmem:[#allocation13 + $0x8a0] sm:$0xf] }
 0xa15   :  { %16671 = vst [vmem:[#allocation285_spill] sm:$0xff] %v15191_v37  ;;  %v12975_v37 = vld [vmem:[#allocation13 + $0x8b4] sm:$0xf0]  ;;  %3301 = vmatpush.bf16.msra.mxu0 %v15197_v34 }
 0xa16   :  { %16672 = vst [vmem:[#allocation286_spill] sm:$0xff] %v15197_v34 }
 0xa1b   :  { %v2922_v38 = vpop.f32.mrf.mxu2  ;;  %v2935_v36 = vpop.f32.mrf.mxu3 }
 0xa1c   :  { %v15199_v38 = vor.u32 %v12978_v31, %v10326_v61  ;;  %v12972_v36 = vld [vmem:[#allocation13 + $0x8a4] sm:$0xf]  ;;  %v15211_v31 = vor.u32 %v12966_v7, %v10278_v24  ;;  %v10252_v61 = vld [vmem:[#allocation13 + $0x840] sm:$0xf] }
 0xa1e   :  { %16673 = vst [vmem:[#allocation287_spill] sm:$0xff] %v15199_v38  ;;  %3314 = vmatpush.bf16.msra.mxu1 %v15199_v38  ;;  %v12936_v38 = vld [vmem:[#allocation13 + $0x784] sm:$0xf] }
 0xa1f   :  { %16677 = vst [vmem:[#allocation291_spill] sm:$0xff] %v15211_v31 }
 0xa86   :  { %v2967_v26 = vpop.xlane.xlu1 %2966 }
 0xa87   :  { %v2968_v59 = vsub.f32 %v2964_v44, %v2967_v26  ;;  %v10302_v26 = vld [vmem:[#allocation13 + $0x8b8] sm:$0xf0] }
 0xa88   :  { %v15205_v44 = vor.u32 %v12972_v36, %v10302_v26  ;;  %v15214_v36 = vor.u32 %v12963_v12, %v10252_v61  ;;  %v10204_v12 = vld [vmem:[#allocation13 + $0x7e0] sm:$0xf]  ;;  %v12951_v61 = vld [vmem:[#allocation13 + $0x7f4] sm:$0xf0] }
 0xa89   :  { %v2969_v56 = vmul.f32 1.442695, %v2968_v59  ;;  %v15202_v59 = vor.u32 %v12975_v37, %v10300_v62  ;;  %v12960_v62 = vld [vmem:[#allocation13 + $0x844] sm:$0xf]  ;;  %v10254_v37 = vld [vmem:[#allocation13 + $0x858] sm:$0xf0] }
 0xa8a   :  { %16675 = vst [vmem:[#allocation289_spill] sm:$0xff] %v15205_v44  ;;  %3315 = vmatpush.bf16.msra.mxu1 %v15205_v44  ;;  %v15217_v14 = vor.u32 %v12960_v62, %v10254_v37  ;;  %v15226_v62 = vor.u32 %v12951_v61, %v10204_v12  ;;  %v10156_v61 = vld [vmem:[#allocation13 + $0x780] sm:$0xf] }
 0xa8b   :  { %13601 = vpow2.f32 %v2969_v56  ;;  %16674 = vst [vmem:[#allocation288_spill] sm:$0xff] %v15202_v59  ;;  %v10276_v56 = vld [vmem:[#allocation13 + $0x870] sm:$0xf]  ;;  %3302 = vmatpush.bf16.msra.mxu0 %v15202_v59 }
 0xa8c   :  { %16678 = vst [vmem:[#allocation292_spill] sm:$0xff] %v15214_v36 }
 0xa8d   :  { %16679 = vst [vmem:[#allocation293_spill] sm:$0xff] %v15217_v14 }
 0xa8e   :  { %3316 = vmatpush.bf16.msra.mxu1 %v15211_v31  ;;  %16682 = vst [vmem:[#allocation296_spill] sm:$0xff] %v15226_v62  ;;  %v15229_v31 = vor.u32 %v12948_v40, %v10206_v48  ;;  %v12939_v48 = vld [vmem:[#allocation13 + $0x794] sm:$0xf0]  ;;  %v10340_v40 = vld [vmem:[#allocation13 + $0x8e0] sm:$0xf] }
 0xa90   :  { %16683 = vst [vmem:[#allocation297_spill] sm:$0xff] %v15229_v31 }
 0xa91   :  { %v15193_v22 = vpop.eup %13601 }
 0xa92   :  { %v2971_v0 = vsel %vm766_vm2, %v15193_v22, 0.0  ;;  %3317 = vmatpush.bf16.msra.mxu1 %v15217_v14  ;;  %v10182_v14 = vld [vmem:[#allocation13 + $0x7c8] sm:$0xf0] }
 0xa93   :  { %2972 = vadd.xlane.f32.xlu2 %v2971_v0  ;;  %v12969_v0 = vld [vmem:[#allocation13 + $0x884] sm:$0xf0] }
 0xa94   :  { %v15208_v19 = vor.u32 %v12969_v0, %v10276_v56  ;;  %v12957_v56 = vld [vmem:[#allocation13 + $0x824] sm:$0xf0]  ;;  %v12954_v0 = vld [vmem:[#allocation13 + $0x814] sm:$0xf] }
 0xa95   :  { %v15220_v7 = vor.u32 %v12957_v56, %v10228_v16  ;;  %v15223_v24 = vor.u32 %v12954_v0, %v10230_v8  ;;  %v10180_v16 = vld [vmem:[#allocation13 + $0x7b0] sm:$0xf]  ;;  %v12945_v56 = vld [vmem:[#allocation13 + $0x7c4] sm:$0xf0] }
 0xa96   :  { %16676 = vst [vmem:[#allocation290_spill] sm:$0xff] %v15208_v19  ;;  %3303 = vmatpush.bf16.msra.mxu0 %v15208_v19  ;;  %v15232_v19 = vor.u32 %v12945_v56, %v10180_v16  ;;  %v15238_v16 = vor.u32 %v12939_v48, %v10156_v61  ;;  %v12980_v56 = vld [vmem:[#allocation13 + $0x8e4] sm:$0xf]  ;;  %v12974_v61 = vld [vmem:[#allocation13 + $0x8b4] sm:$0xf] }
 0xa97   :  { %16680 = vst [vmem:[#allocation294_spill] sm:$0xff] %v15220_v7  ;;  %3318 = vmatpush.bf16.msra.mxu1 %v15223_v24  ;;  %v10318_v48 = vld [vmem:[#allocation13 + $0x8c8] sm:$0xf0] }
 0xa98   :  { %16681 = vst [vmem:[#allocation295_spill] sm:$0xff] %v15223_v24  ;;  %v12983_v24 = vld [vmem:[#allocation13 + $0x8f4] sm:$0xf0] }
 0xa9a   :  { %3304 = vmatpush.bf16.msra.mxu0 %v15214_v36  ;;  %v12942_v36 = vld [vmem:[#allocation13 + $0x7b4] sm:$0xf] }
 0xa9b   :  { %3319 = vmatpush.bf16.msra.mxu1 %v15229_v31  ;;  %v15235_v12 = vor.u32 %v12942_v36, %v10182_v14  ;;  %v15241_v14 = vor.u32 %v12983_v24, %v10340_v40  ;;  %v12965_v40 = vld [vmem:[#allocation13 + $0x864] sm:$0xf0] }
 0xa9e   :  { %3305 = vmatpush.bf16.msra.mxu0 %v15220_v7 }
 0xa9f   :  { %3320 = vmatpush.bf16.msra.mxu1 %v15235_v12 }
 0xaa2   :  { %3306 = vmatpush.bf16.msra.mxu0 %v15226_v62 }
 0xaa6   :  { %3307 = vmatpush.bf16.msra.mxu0 %v15232_v19 }
 0xaaa   :  { %3308 = vmatpush.bf16.msra.mxu0 %v15238_v16 }
 0xaae   :  { %3353 = vmatpush.bf16.msrb.mxu0 %v15241_v14 }
 0xb06   :  { %v2973_v26 = vpop.xlane.xlu2 %2972 }
 0xb07   :  { %13603 = vrcp.f32 %v2973_v26  ;;  %v2985_v0 = vand.u32 2147483648, %v2973_v26  ;;  %v2983_v7 = vand.u32 2147483647, %v2973_v26  ;;  %vm2979_vm9 = vweird.f32 %v2973_v26 }
 0xb09   :  { %v2986_v34 = vor.u32 1.1754944e-38, %v2985_v0  ;;  %vm2984_vm11 = vcmp.eq.f32.partialorder %v2983_v7, 8.507059e+37  ;;  %v10294_v7 = vld [vmem:[#allocation13 + $0x898] sm:$0xf0] }
 0xb0d   :  { %v13604_v33 = vpop.eup %13603 }
 0xb0e   :  { %v2975_v37 = vmul.f32 %v13604_v33, %v2973_v26  ;;  %vm2980_vm1 = vweird.f32 %v13604_v33  ;;  %v12977_v26 = vld [vmem:[#allocation13 + $0x8c4] sm:$0xf0] }
 0xb0f   :  { %vm2981_vm10 = vmor %vm2979_vm9, %vm2980_vm1 }
 0xb10   :  { %v2976_v8 = vsub.f32 1.0, %v2975_v37  ;;  %v10158_v37 = vld [vmem:[#allocation13 + $0x798] sm:$0xf0] }
 0xb11   :  { %v15243_v31 = vor.u32 %v12936_v38, %v10158_v37  ;;  %v12971_v38 = vld [vmem:[#allocation13 + $0x894] sm:$0xf0]  ;;  %v12962_v37 = vld [vmem:[#allocation13 + $0x854] sm:$0xf] }
 0xb12   :  { %v2977_v44 = vmul.f32 %v13604_v33, %v2976_v8  ;;  %v10342_v8 = vld [vmem:[#allocation13 + $0x8f8] sm:$0xf0] }
 0xb13   :  { %v15246_v0 = vor.u32 %v12980_v56, %v10342_v8  ;;  %3321 = vmatpush.bf16.msra.mxu1 %v15243_v31  ;;  %v10270_v8 = vld [vmem:[#allocation13 + $0x868] sm:$0xf0] }
 0xb14   :  { %v2978_v59 = vadd.f32 %v13604_v33, %v2977_v44  ;;  %v10316_v44 = vld [vmem:[#allocation13 + $0x8b0] sm:$0xf] }
 0xb15   :  { %16684 = vst [vmem:[#allocation298_spill] sm:$0xff] %v15246_v0 }
 0xb16   :  { %v2982_v62 = vsel %vm2981_vm10, %v13604_v33, %v2978_v59  ;;  %v15251_v33 = vor.u32 %v12977_v26, %v10316_v44  ;;  %v15255_v59 = vor.u32 %v12974_v61, %v10318_v48  ;;  %v10244_v44 = vld [vmem:[#allocation13 + $0x820] sm:$0xf]  ;;  %v12959_v26 = vld [vmem:[#allocation13 + $0x834] sm:$0xf0]  ;;  %v12956_v61 = vld [vmem:[#allocation13 + $0x824] sm:$0xf] }
 0xb17   :  { %v2987_v36 = vsel %vm2984_vm11, %v2986_v34, %v2982_v62  ;;  %v10292_v34 = vld [vmem:[#allocation13 + $0x880] sm:$0xf]  ;;  %v10268_v62 = vld [vmem:[#allocation13 + $0x850] sm:$0xf]  ;;  %v15271_v48 = vor.u32 %v12959_v26, %v10244_v44  ;;  %v10198_v44 = vld [vmem:[#allocation13 + $0x7d8] sm:$0xf0] }
 0xb18   :  { %v2988_v17 = vmul.f32 %v15193_v22, %v2987_v36  ;;  %16685 = vst [vmem:[#allocation299_spill] sm:$0xff] %v15255_v59  ;;  %v12968_v22 = vld [vmem:[#allocation13 + $0x884] sm:$0xf]  ;;  %3354 = vmatpush.bf16.msrb.mxu0 %v15251_v33  ;;  %v15258_v24 = vor.u32 %v12971_v38, %v10292_v34  ;;  %v15265_v56 = vor.u32 %v12965_v40, %v10268_v62  ;;  %v10246_v34 = vld [vmem:[#allocation13 + $0x838] sm:$0xf0] }
 0xb19   :  { %v15267_v36 = vor.u32 %v12962_v37, %v10270_v8  ;;  %v15273_v38 = vor.u32 %v12956_v61, %v10246_v34  ;;  %v10222_v40 = vld [vmem:[#allocation13 + $0x808] sm:$0xf0]  ;;  %v10196_v8 = vld [vmem:[#allocation13 + $0x7c0] sm:$0xf]  ;;  %v10172_v34 = vld [vmem:[#allocation13 + $0x790] sm:$0xf] }
 0xb1a   :  { %10153 = vmatmul.msk.f32.vlgmr.msrb.gmra.mxu1 %vm766_vm2, %v2988_v17  ;;  %v15261_v17 = vor.u32 %v12968_v22, %v10294_v7  ;;  %v10220_v22 = vld [vmem:[#allocation13 + $0x7f0] sm:$0xf]  ;;  %v12953_v7 = vld [vmem:[#allocation13 + $0x804] sm:$0xf0] }
 0xb1b   :  { %3366 = vmatpush.bf16.msrb.mxu1 %v15246_v0  ;;  %16687 = vst [vmem:[#allocation301_spill] sm:$0xff] %v15267_v36  ;;  %v15276_v62 = vor.u32 %v12953_v7, %v10220_v22  ;;  %v12941_v22 = vld [vmem:[#allocation13 + $0x7a4] sm:$0xf0]  ;;  %v12938_v7 = vld [vmem:[#allocation13 + $0x794] sm:$0xf] }
 0xb1c   :  { %16686 = vst [vmem:[#allocation300_spill] sm:$0xff] %v15261_v17  ;;  %3355 = vmatpush.bf16.msrb.mxu0 %v15258_v24  ;;  %v10174_v0 = vld [vmem:[#allocation13 + $0x7a8] sm:$0xf0] }
 0xb1f   :  { %3367 = vmatpush.bf16.msrb.mxu1 %v15255_v59  ;;  %v12944_v59 = vld [vmem:[#allocation13 + $0x7c4] sm:$0xf] }
 0xb20   :  { %3356 = vmatpush.bf16.msrb.mxu0 %v15265_v56  ;;  %v15285_v61 = vor.u32 %v12944_v59, %v10198_v44  ;;  %v16713_v59 = vld [vmem:[#allocation74_spill] sm:$0xff]  ;;  %v16714_v44 = vld [vmem:[#allocation79_spill] sm:$0xff] }
 0xb23   :  { %3368 = vmatpush.bf16.msrb.mxu1 %v15261_v17  ;;  %v12950_v17 = vld [vmem:[#allocation13 + $0x7f4] sm:$0xf] }
 0xb24   :  { %3357 = vmatpush.bf16.msrb.mxu0 %v15271_v48  ;;  %v15279_v37 = vor.u32 %v12950_v17, %v10222_v40  ;;  %v15288_v17 = vor.u32 %v12941_v22, %v10172_v34  ;;  %v15291_v40 = vor.u32 %v12938_v7, %v10174_v0  ;;  %v16712_v0 = vld [vmem:[#allocation67_spill] sm:$0xff] }
 0xb25   :  { %v16715_v34 = vld [vmem:[#allocation83_spill] sm:$0xff] }
 0xb27   :  { %3369 = vmatpush.bf16.msrb.mxu1 %v15267_v36  ;;  %v12947_v36 = vld [vmem:[#allocation13 + $0x7d4] sm:$0xf0] }
 0xb28   :  { %3358 = vmatpush.bf16.msrb.mxu0 %v15276_v62  ;;  %v15282_v26 = vor.u32 %v12947_v36, %v10196_v8 }
 0xb2b   :  { %3370 = vmatpush.bf16.msrb.mxu1 %v15273_v38 }
 0xb2c   :  { %3359 = vmatpush.bf16.msrb.mxu0 %v15282_v26 }
 0xb2f   :  { %3371 = vmatpush.bf16.msrb.mxu1 %v15279_v37 }
 0xb30   :  { %3360 = vmatpush.bf16.msrb.mxu0 %v15288_v17 }
 0xb33   :  { %3372 = vmatpush.bf16.msrb.mxu1 %v15285_v61 }
 0xb37   :  { %3373 = vmatpush.bf16.msrb.mxu1 %v15291_v40 }
 0xb97   :  { %v3009_v36 = vpop.f32.mrf.mxu1 }
 0xb98   :  { %v3012_v8 = vpack.c.bf16 %v3009_v36, %v3009_v36 }
 0xb9a   :  { %3309 = vmatmul.bf16.vlgmr.msra.gmra.mxu0 %v3012_v8  ;;  %3322 = vmatmul.bf16.vlgmr.msra.gmra.mxu1 %v3012_v8 }
 0xb9b   :  { %3335 = vmatmul.bf16.vlgmr.msra.gmra.mxu2 %v3012_v8  ;;  %3348 = vmatmul.bf16.vlgmr.msra.gmra.mxu3 %v3012_v8 }
 0xb9c   :  { %3473 = vmatpush.xpose.msra.mxu2 %v14427_v58  ;;  %3522 = vmatpush.msra.mxu3 %v14617_v55  ;;  %v16710_v58 = vld [vmem:[#allocation81_spill] sm:$0xff]  ;;  %v16711_v55 = vld [vmem:[#allocation82_spill] sm:$0xff] }
 0xb9d   :  { %3528 = vmatpush.bf16.msra.mxu0 %v14249_v46  ;;  %3541 = vmatpush.bf16.msra.mxu1 %v14252_v49  ;;  %v16689_v46 = vld [vmem:[#allocation49_spill] sm:$0xff] }
 0xb9e   :  { %v16690_v49 = vld [vmem:[#allocation41_spill] sm:$0xff] }
 0xba1   :  { %3529 = vmatpush.bf16.msra.mxu0 %v14257_v2  ;;  %3542 = vmatpush.bf16.msra.mxu1 %v14261_v5  ;;  %v16693_v2 = vld [vmem:[#allocation43_spill] sm:$0xff]  ;;  %v16694_v5 = vld [vmem:[#allocation56_spill] sm:$0xff] }
 0xba5   :  { %3530 = vmatpush.bf16.msra.mxu0 %v14273_v28  ;;  %3543 = vmatpush.bf16.msra.mxu1 %v14278_v29  ;;  %v16696_v28 = vld [vmem:[#allocation45_spill] sm:$0xff]  ;;  %v16697_v29 = vld [vmem:[#allocation60_spill] sm:$0xff] }
 0xba9   :  { %3531 = vmatpush.bf16.msra.mxu0 %v14285_v39  ;;  %3544 = vmatpush.bf16.msra.mxu1 %v14289_v41  ;;  %v16699_v39 = vld [vmem:[#allocation47_spill] sm:$0xff]  ;;  %v16700_v41 = vld [vmem:[#allocation50_spill] sm:$0xff] }
 0xbaa   :  { %3361 = vmatmul.bf16.vlgmr.msrb.gmra.mxu0 %v3012_v8  ;;  %3374 = vmatmul.bf16.vlgmr.msrb.gmra.mxu1 %v3012_v8 }
 0xbab   :  { %3404 = vmatmul.f32.vlgmr.msrb.gmra.mxu2 %v14173_v53  ;;  %v16688_v53 = vld [vmem:[#allocation48_spill] sm:$0xff] }
 0xbac   :  { %3554 = vmatpush.bf16.msrb.mxu2 %v14254_v51  ;;  %v16691_v51 = vld [vmem:[#allocation52_spill] sm:$0xff] }
 0xbad   :  { %3532 = vmatpush.bf16.msra.mxu0 %v14297_v11  ;;  %3545 = vmatpush.bf16.msra.mxu1 %v14303_v15  ;;  %v16702_v11 = vld [vmem:[#allocation66_spill] sm:$0xff] }
 0xbae   :  { %v16703_v15 = vld [vmem:[#allocation54_spill] sm:$0xff] }
 0xbb0   :  { %3555 = vmatpush.bf16.msrb.mxu2 %v14263_v6  ;;  %v16695_v6 = vld [vmem:[#allocation57_spill] sm:$0xff] }
 0xbb1   :  { %3533 = vmatpush.bf16.msra.mxu0 %v14312_v47  ;;  %3546 = vmatpush.bf16.msra.mxu1 %v14318_v52  ;;  %v16704_v47 = vld [vmem:[#allocation72_spill] sm:$0xff]  ;;  %v16705_v52 = vld [vmem:[#allocation73_spill] sm:$0xff] }
 0xbb3   :  { %3474 = vmatmul.f32.vlgmr.msra.gmra.mxu2 %v14175_v54  ;;  %v16692_v54 = vld [vmem:[#allocation53_spill] sm:$0xff] }
 0xbb4   :  { %3556 = vmatpush.bf16.msrb.mxu2 %v14280_v30  ;;  %v16698_v30 = vld [vmem:[#allocation61_spill] sm:$0xff] }
 0xbb5   :  { %3534 = vmatpush.bf16.msra.mxu0 %v14326_v32  ;;  %3547 = vmatpush.bf16.msra.mxu1 %v14332_v35  ;;  %v16706_v32 = vld [vmem:[#allocation58_spill] sm:$0xff]  ;;  %v16707_v35 = vld [vmem:[#allocation77_spill] sm:$0xff] }
 0xbb8   :  { %3557 = vmatpush.bf16.msrb.mxu2 %v14291_v42  ;;  %v16701_v42 = vld [vmem:[#allocation65_spill] sm:$0xff] }
 0xbb9   :  { %3535 = vmatpush.bf16.msra.mxu0 %v14340_v4  ;;  %3548 = vmatpush.bf16.msra.mxu1 %v14346_v13  ;;  %v16708_v4 = vld [vmem:[#allocation78_spill] sm:$0xff] }
 0xbba   :  { %v16709_v13 = vld [vmem:[#allocation62_spill] sm:$0xff] }
 0xbbc   :  { %3558 = vmatpush.bf16.msrb.mxu2 %v16690_v49 }
 0xbbd   :  { %3580 = vmatpush.bf16.msrb.mxu0 %v16688_v53  ;;  %3593 = vmatpush.bf16.msrb.mxu1 %v16689_v46 }
 0xbc0   :  { %3559 = vmatpush.bf16.msrb.mxu2 %v16693_v2 }
 0xbc1   :  { %3581 = vmatpush.bf16.msrb.mxu0 %v16691_v51  ;;  %3594 = vmatpush.bf16.msrb.mxu1 %v16692_v54 }
 0xbc4   :  { %3560 = vmatpush.bf16.msrb.mxu2 %v16696_v28 }
 0xbc5   :  { %3582 = vmatpush.bf16.msrb.mxu0 %v16694_v5  ;;  %3595 = vmatpush.bf16.msrb.mxu1 %v16695_v6  ;;  %v15362_v5 = vld [vmem:[%s16163_s3 + $0x8] sm:$0xff]  ;;  %s14007_s3 = smov [#allocation23]  }
 0xbc6   :  { %vm3387_vm12 = vcmp.ne.f32.partialorder %v15362_v5, 0.0  ;;  %s8993_s23 = sshll.u32 %s14007_s3, 4  ;;  %s8994_s23 = int_to_ptr.vmem [resolvable:$true] %s8993_s23 }
 0xbc8   :  { %3561 = vmatpush.bf16.msrb.mxu2 %v16699_v39 }
 0xbc9   :  { %3583 = vmatpush.bf16.msrb.mxu0 %v16697_v29  ;;  %3596 = vmatpush.bf16.msrb.mxu1 %v16698_v30 }
 0xbcc   :  { %3606 = vmatpush.bf16.msra.mxu2 %v16700_v41 }
 0xbcd   :  { %3584 = vmatpush.bf16.msrb.mxu0 %v16701_v42  ;;  %3597 = vmatpush.bf16.msrb.mxu1 %v16702_v11 }
 0xbd0   :  { %3607 = vmatpush.bf16.msra.mxu2 %v16703_v15 }
 0xbd1   :  { %3585 = vmatpush.bf16.msrb.mxu0 %v16704_v47  ;;  %3598 = vmatpush.bf16.msrb.mxu1 %v16705_v52 }
 0xbd4   :  { %3608 = vmatpush.bf16.msra.mxu2 %v16706_v32 }
 0xbd5   :  { %3586 = vmatpush.bf16.msrb.mxu0 %v16707_v35  ;;  %3599 = vmatpush.bf16.msrb.mxu1 %v16708_v4 }
 0xbd8   :  { %3609 = vmatpush.bf16.msra.mxu2 %v16709_v13 }
 0xbd9   :  { %3587 = vmatpush.bf16.msrb.mxu0 %v16710_v58  ;;  %3600 = vmatpush.bf16.msrb.mxu1 %v16711_v55 }
 0xbdc   :  { %3610 = vmatpush.bf16.msra.mxu2 %v16712_v0 }
 0xbe0   :  { %3611 = vmatpush.bf16.msra.mxu2 %v16713_v59 }
 0xbe4   :  { %3612 = vmatpush.bf16.msra.mxu2 %v16714_v44 }
 0xbe8   :  { %3613 = vmatpush.bf16.msra.mxu2 %v16715_v34 }
 0xc17   :  { %v15347_v22 = vpop.f32.mrf.mxu0  ;;  %v15349_v7 = vpop.f32.mrf.mxu1 }
 0xc1e   :  { %v15351_v36 = vpop.f32.mrf.mxu2  ;;  %v15353_v8 = vpop.f32.mrf.mxu3 }
 0xc1f   :  { %v3312_v53 = vpop.f32.mrf.mxu0  ;;  %v3325_v46 = vpop.f32.mrf.mxu1 }
 0xc26   :  { %v3338_v49 = vpop.f32.mrf.mxu2  ;;  %v3351_v51 = vpop.f32.mrf.mxu3 }
 0xc27   :  { %v15355_v54 = vpop.f32.mrf.mxu0  ;;  %v15357_v2 = vpop.f32.mrf.mxu1 }
 0xc28   :  { %16716 = vst [vmem:[#allocation48_spill] sm:$0xff] %v15355_v54 }
 0xc29   :  { %16717 = vst [vmem:[#allocation49_spill] sm:$0xff] %v15357_v2  ;;  %v13143_v2 = vld [vmem:[#allocation14 + $0x4f4] sm:$0xf0] }
 0xc2e   :  { %v3405_v6 = vpop.f32.mrf.mxu2 }
 0xc2f   :  { %v3408_v28 = vmul.f32 0.088388346, %v3405_v6  ;;  %v3364_v29 = vpop.f32.mrf.mxu0  ;;  %v3377_v30 = vpop.f32.mrf.mxu1 }
 0xc31   :  { %v3409_v39 = vsel %vm3387_vm12, %v3408_v28, -1000000.0 }
 0xc32   :  { %v3410_v41 = vsel %vm766_vm2, %v3409_v39, -inf }
 0xc33   :  { %3411 = vmax.xlane.f32.xlu0 %v3410_v41 }
 0xc36   :  { %v3475_v42 = vpop.f32.mrf.mxu2 }
 0xc37   :  { %v3478_v11 = vmul.f32 0.088388346, %v3475_v42 }
 0xc39   :  { %v3479_v15 = vsel %vm3387_vm12, %v3478_v11, -1000000.0 }
 0xc3a   :  { %v3480_v47 = vsel %vm766_vm2, %v3479_v15, -inf }
 0xc3b   :  { %3481 = vmax.xlane.f32.xlu1 %v3480_v47 }
 0xca6   :  { %v3412_v52 = vpop.xlane.xlu0 %3411 }
 0xca7   :  { %v3413_v32 = vsub.f32 %v3409_v39, %v3412_v52 }
 0xca9   :  { %v3414_v35 = vmul.f32 1.442695, %v3413_v32 }
 0xcab   :  { %13605 = vpow2.f32 %v3414_v35 }
 0xcae   :  { %v3482_v4 = vpop.xlane.xlu1 %3481 }
 0xcaf   :  { %v3483_v13 = vsub.f32 %v3479_v15, %v3482_v4 }
 0xcb1   :  { %v13606_v58 = vpop.eup %13605  ;;  %v3484_v55 = vmul.f32 1.442695, %v3483_v13  ;;  %v16718_v13 = vld [vmem:[#allocation40_spill] sm:$0xff] }
 0xcb2   :  { %v3416_v0 = vsel %vm766_vm2, %v13606_v58, 0.0 }
 0xcb3   :  { %13607 = vpow2.f32 %v3484_v55  ;;  %3417 = vadd.xlane.f32.xlu2 %v3416_v0 }
 0xcb9   :  { %v13608_v59 = vpop.eup %13607 }
 0xcba   :  { %v3486_v44 = vsel %vm766_vm2, %v13608_v59, 0.0 }
 0xcbb   :  { %3487 = vadd.xlane.f32.xlu0 %v3486_v44 }
 0xd26   :  { %v3418_v34 = vpop.xlane.xlu2 %3417 }
 0xd27   :  { %13609 = vrcp.f32 %v3418_v34  ;;  %v3430_v6 = vand.u32 2147483648, %v3418_v34  ;;  %v3428_v29 = vand.u32 2147483647, %v3418_v34  ;;  %vm3424_vm14 = vweird.f32 %v3418_v34 }
 0xd29   :  { %v3431_v41 = vor.u32 1.1754944e-38, %v3430_v6  ;;  %vm3429_vm0 = vcmp.eq.f32.partialorder %v3428_v29, 8.507059e+37  ;;  %v16722_v6 = vld [vmem:[#allocation51_spill] sm:$0xff] }
 0xd2a   :  { %v16724_v29 = vld [vmem:[#allocation59_spill] sm:$0xff] }
 0xd2d   :  { %v13610_v53 = vpop.eup %13609 }
 0xd2e   :  { %v3420_v46 = vmul.f32 %v13610_v53, %v3418_v34  ;;  %v3488_v49 = vpop.xlane.xlu0 %3487  ;;  %vm3425_vm13 = vweird.f32 %v13610_v53 }
 0xd2f   :  { %13611 = vrcp.f32 %v3488_v49  ;;  %vm3426_vm15 = vmor %vm3424_vm14, %vm3425_vm13  ;;  %v3500_v32 = vand.u32 2147483648, %v3488_v49  ;;  %v3498_v4 = vand.u32 2147483647, %v3488_v49  ;;  %vm3494_vm4 = vweird.f32 %v3488_v49 }
 0xd30   :  { %v3421_v51 = vsub.f32 1.0, %v3420_v46 }
 0xd31   :  { %v3501_v0 = vor.u32 1.1754944e-38, %v3500_v32  ;;  %vm3499_vm6 = vcmp.eq.f32.partialorder %v3498_v4, 8.507059e+37  ;;  %v16734_v4 = vld [vmem:[#allocation86_spill] sm:$0xff] }
 0xd32   :  { %v3422_v28 = vmul.f32 %v13610_v53, %v3421_v51  ;;  %v16721_v51 = vld [vmem:[#allocation46_spill] sm:$0xff] }
 0xd34   :  { %v3423_v30 = vadd.f32 %v13610_v53, %v3422_v28  ;;  %v16723_v28 = vld [vmem:[#allocation55_spill] sm:$0xff] }
 0xd35   :  { %v13612_v39 = vpop.eup %13611 }
 0xd36   :  { %v3427_v42 = vsel %vm3426_vm15, %v13610_v53, %v3423_v30  ;;  %v3490_v11 = vmul.f32 %v13612_v39, %v3488_v49  ;;  %vm3495_vm3 = vweird.f32 %v13612_v39  ;;  %v16719_v53 = vld [vmem:[#allocation42_spill] sm:$0xff]  ;;  %v16725_v49 = vld [vmem:[#allocation63_spill] sm:$0xff]  ;;  %v16726_v30 = vld [vmem:[#allocation64_spill] sm:$0xff] }
 0xd37   :  { %v3432_v15 = vsel %vm3429_vm0, %v3431_v41, %v3427_v42  ;;  %vm3496_vm5 = vmor %vm3494_vm4, %vm3495_vm3  ;;  %v16728_v41 = vld [vmem:[#allocation69_spill] sm:$0xff]  ;;  %v16730_v42 = vld [vmem:[#allocation71_spill] sm:$0xff] }
 0xd38   :  { %v3433_v47 = vmul.f32 %v13606_v58, %v3432_v15  ;;  %v3491_v52 = vsub.f32 1.0, %v3490_v11  ;;  %v16720_v58 = vld [vmem:[#allocation44_spill] sm:$0xff]  ;;  %v16731_v11 = vld [vmem:[#allocation75_spill] sm:$0xff] }
 0xd39   :  { %v16732_v15 = vld [vmem:[#allocation80_spill] sm:$0xff] }
 0xd3a   :  { %v3492_v35 = vmul.f32 %v13612_v39, %v3491_v52  ;;  %10347 = vmatmul.msk.f32.vlgmr.msrb.gmra.mxu3 %vm766_vm2, %v3433_v47  ;;  %v16733_v47 = vld [vmem:[#allocation84_spill] sm:$0xff] }
 0xd3b   :  { %3567 = vmatpush.bf16.msrb.mxu3 %v16718_v13  ;;  %v16735_v13 = vld [vmem:[#allocation87_spill] sm:$0xff] }
 0xd3c   :  { %v3493_v55 = vadd.f32 %v13612_v39, %v3492_v35 }
 0xd3e   :  { %v3497_v44 = vsel %vm3496_vm5, %v13612_v39, %v3493_v55  ;;  %v16727_v39 = vld [vmem:[#allocation68_spill] sm:$0xff] }
 0xd3f   :  { %v3502_v34 = vsel %vm3499_vm6, %v3501_v0, %v3497_v44  ;;  %3568 = vmatpush.bf16.msrb.mxu3 %v16719_v53  ;;  %v16736_v55 = vld [vmem:[#allocation88_spill] sm:$0xff]  ;;  %v16737_v0 = vld [vmem:[#allocation89_spill] sm:$0xff]  ;;  %v16738_v44 = vld [vmem:[#allocation90_spill] sm:$0xff] }
 0xd40   :  { %v3503_v46 = vmul.f32 %v13608_v59, %v3502_v34  ;;  %v16729_v59 = vld [vmem:[#allocation70_spill] sm:$0xff]  ;;  %v16739_v34 = vld [vmem:[#allocation91_spill] sm:$0xff]  ;;  %v16740_v53 = vld [vmem:[#allocation92_spill] sm:$0xff] }
 0xd42   :  { %10348 = vmatmul.msk.f32.vlgmr.msra.gmra.mxu3 %vm766_vm2, %v3503_v46  ;;  %v16741_v46 = vld [vmem:[#allocation93_spill] sm:$0xff] }
 0xd43   :  { %3569 = vmatpush.bf16.msrb.mxu3 %v16720_v58  ;;  %v16742_v58 = vld [vmem:[#allocation94_spill] sm:$0xff] }
 0xd47   :  { %3570 = vmatpush.bf16.msrb.mxu3 %v16721_v51  ;;  %v16743_v51 = vld [vmem:[#allocation95_spill] sm:$0xff] }
 0xd4b   :  { %3571 = vmatpush.bf16.msrb.mxu3 %v16722_v6  ;;  %v16744_v6 = vld [vmem:[#allocation96_spill] sm:$0xff] }
 0xd4f   :  { %3572 = vmatpush.bf16.msrb.mxu3 %v16723_v28  ;;  %v16745_v28 = vld [vmem:[#allocation97_spill] sm:$0xff] }
 0xd53   :  { %3573 = vmatpush.bf16.msrb.mxu3 %v16724_v29  ;;  %v16746_v29 = vld [vmem:[#allocation98_spill] sm:$0xff] }
 0xd57   :  { %3574 = vmatpush.bf16.msrb.mxu3 %v16725_v49  ;;  %v16747_v49 = vld [vmem:[#allocation99_spill] sm:$0xff] }
 0xd5b   :  { %3619 = vmatpush.bf16.msra.mxu3 %v16726_v30 }
 0xd5f   :  { %3620 = vmatpush.bf16.msra.mxu3 %v16727_v39  ;;  %v16748_v39 = vld [vmem:[#allocation100_spill] sm:$0xff] }
 0xd63   :  { %3621 = vmatpush.bf16.msra.mxu3 %v16728_v41  ;;  %v16749_v41 = vld [vmem:[#allocation101_spill] sm:$0xff] }
 0xd67   :  { %3622 = vmatpush.bf16.msra.mxu3 %v16729_v59  ;;  %v16750_v59 = vld [vmem:[#allocation102_spill] sm:$0xff] }
 0xd6b   :  { %3623 = vmatpush.bf16.msra.mxu3 %v16730_v42  ;;  %v16751_v42 = vld [vmem:[#allocation103_spill] sm:$0xff] }
 0xd6f   :  { %3624 = vmatpush.bf16.msra.mxu3 %v16731_v11  ;;  %v16752_v11 = vld [vmem:[#allocation104_spill] sm:$0xff] }
 0xd73   :  { %3625 = vmatpush.bf16.msra.mxu3 %v16732_v15  ;;  %v16753_v15 = vld [vmem:[#allocation105_spill] sm:$0xff] }
 0xd77   :  { %3626 = vmatpush.bf16.msra.mxu3 %v16733_v47  ;;  %v16754_v47 = vld [vmem:[#allocation106_spill] sm:$0xff] }
 0xdbd   :  { %v3454_v52 = vpop.f32.mrf.mxu3 }
 0xdbe   :  { %v3457_v30 = vpack.c.bf16 %v3454_v52, %v3454_v52  ;;  %v16756_v52 = vld [vmem:[#allocation108_spill] sm:$0xff] }
 0xdc5   :  { %v3524_v32 = vpop.f32.mrf.mxu3 }
 0xdc6   :  { %v3527_v35 = vpack.c.bf16 %v3524_v32, %v3524_v32  ;;  %v16755_v32 = vld [vmem:[#allocation107_spill] sm:$0xff] }
 0xdc8   :  { %3536 = vmatmul.bf16.vlgmr.msra.gmra.mxu0 %v3527_v35  ;;  %3549 = vmatmul.bf16.vlgmr.msra.gmra.mxu1 %v3527_v35 }
 0xdc9   :  { %3562 = vmatmul.bf16.vlgmr.msrb.gmra.mxu2 %v3527_v35  ;;  %3575 = vmatmul.bf16.vlgmr.msrb.gmra.mxu3 %v3527_v35 }
 0xdca   :  { %3632 = vmatpush.bf16.msra.mxu0 %v16734_v4  ;;  %3645 = vmatpush.bf16.msra.mxu1 %v16735_v13  ;;  %v16757_v4 = vld [vmem:[#allocation109_spill] sm:$0xff]  ;;  %v16758_v13 = vld [vmem:[#allocation110_spill] sm:$0xff] }
 0xdcb   :  { %3658 = vmatpush.bf16.msrb.mxu2 %v16736_v55  ;;  %3671 = vmatpush.bf16.msrb.mxu3 %v16737_v0  ;;  %v16760_v55 = vld [vmem:[#allocation112_spill] sm:$0xff]  ;;  %v16761_v0 = vld [vmem:[#allocation113_spill] sm:$0xff] }
 0xdce   :  { %3633 = vmatpush.bf16.msra.mxu0 %v16738_v44  ;;  %3646 = vmatpush.bf16.msra.mxu1 %v16739_v34  ;;  %v16762_v44 = vld [vmem:[#allocation114_spill] sm:$0xff]  ;;  %v16763_v34 = vld [vmem:[#allocation115_spill] sm:$0xff] }
 0xdcf   :  { %3659 = vmatpush.bf16.msrb.mxu2 %v16740_v53  ;;  %3672 = vmatpush.bf16.msrb.mxu3 %v16741_v46  ;;  %v16764_v53 = vld [vmem:[#allocation116_spill] sm:$0xff]  ;;  %v16765_v46 = vld [vmem:[#allocation117_spill] sm:$0xff] }
 0xdd2   :  { %3634 = vmatpush.bf16.msra.mxu0 %v16742_v58  ;;  %3647 = vmatpush.bf16.msra.mxu1 %v16743_v51  ;;  %v16766_v58 = vld [vmem:[#allocation38_spill] sm:$0xff]  ;;  %v16767_v51 = vld [vmem:[#allocation35_spill] sm:$0xff] }
 0xdd3   :  { %3660 = vmatpush.bf16.msrb.mxu2 %v16744_v6  ;;  %3673 = vmatpush.bf16.msrb.mxu3 %v16745_v28  ;;  %v16768_v6 = vld [vmem:[#allocation118_spill] sm:$0xff]  ;;  %v16769_v28 = vld [vmem:[#allocation136_spill] sm:$0xff] }
 0xdd6   :  { %3635 = vmatpush.bf16.msra.mxu0 %v16746_v29  ;;  %3648 = vmatpush.bf16.msra.mxu1 %v16747_v49  ;;  %v16770_v29 = vld [vmem:[#allocation144_spill] sm:$0xff]  ;;  %v16771_v49 = vld [vmem:[#allocation145_spill] sm:$0xff] }
 0xdd7   :  { %3661 = vmatpush.bf16.msrb.mxu2 %v16748_v39  ;;  %3674 = vmatpush.bf16.msrb.mxu3 %v16749_v41  ;;  %v16772_v39 = vld [vmem:[#allocation119_spill] sm:$0xff]  ;;  %v16773_v41 = vld [vmem:[#allocation137_spill] sm:$0xff] }
 0xdd8   :  { %3588 = vmatmul.bf16.vlgmr.msrb.gmra.mxu0 %v3527_v35  ;;  %3601 = vmatmul.bf16.vlgmr.msrb.gmra.mxu1 %v3527_v35  ;;  %v16759_v35 = vld [vmem:[#allocation111_spill] sm:$0xff] }
 0xdd9   :  { %3614 = vmatmul.bf16.vlgmr.msra.gmra.mxu2 %v3457_v30  ;;  %3627 = vmatmul.bf16.vlgmr.msra.gmra.mxu3 %v3457_v30 }
 0xdda   :  { %3636 = vmatpush.bf16.msra.mxu0 %v16750_v59  ;;  %3649 = vmatpush.bf16.msra.mxu1 %v16751_v42  ;;  %v16774_v59 = vld [vmem:[#allocation146_spill] sm:$0xff]  ;;  %v16775_v42 = vld [vmem:[#allocation147_spill] sm:$0xff] }
 0xddb   :  { %3662 = vmatpush.bf16.msrb.mxu2 %v16752_v11  ;;  %3675 = vmatpush.bf16.msrb.mxu3 %v16753_v15  ;;  %v16776_v11 = vld [vmem:[#allocation120_spill] sm:$0xff]  ;;  %v16777_v15 = vld [vmem:[#allocation138_spill] sm:$0xff] }
 0xdde   :  { %3637 = vmatpush.bf16.msra.mxu0 %v16754_v47  ;;  %3650 = vmatpush.bf16.msra.mxu1 %v16755_v32  ;;  %v16779_v47 = vld [vmem:[#allocation149_spill] sm:$0xff] }
 0xddf   :  { %3663 = vmatpush.bf16.msrb.mxu2 %v16756_v52  ;;  %3676 = vmatpush.bf16.msrb.mxu3 %v16757_v4  ;;  %v16780_v32 = vld [vmem:[#allocation121_spill] sm:$0xff]  ;;  %v16781_v52 = vld [vmem:[#allocation139_spill] sm:$0xff]  ;;  %v16782_v4 = vld [vmem:[#allocation150_spill] sm:$0xff] }
 0xde2   :  { %3638 = vmatpush.bf16.msra.mxu0 %v16758_v13  ;;  %3651 = vmatpush.bf16.msra.mxu1 %v16759_v35  ;;  %v16783_v13 = vld [vmem:[#allocation151_spill] sm:$0xff]  ;;  %v16784_v35 = vld [vmem:[#allocation32_spill] sm:$0xff] }
 0xde3   :  { %3664 = vmatpush.bf16.msrb.mxu2 %v16760_v55  ;;  %3677 = vmatpush.bf16.msrb.mxu3 %v16761_v0  ;;  %v16785_v55 = vld [vmem:[#allocation122_spill] sm:$0xff]  ;;  %v16786_v0 = vld [vmem:[#allocation140_spill] sm:$0xff] }
 0xde6   :  { %3639 = vmatpush.bf16.msra.mxu0 %v16762_v44  ;;  %3652 = vmatpush.bf16.msra.mxu1 %v16763_v34  ;;  %v16787_v44 = vld [vmem:[#allocation152_spill] sm:$0xff]  ;;  %v16788_v34 = vld [vmem:[#allocation153_spill] sm:$0xff] }
 0xde7   :  { %3665 = vmatpush.bf16.msrb.mxu2 %v16764_v53  ;;  %3678 = vmatpush.bf16.msrb.mxu3 %v16765_v46  ;;  %v16789_v53 = vld [vmem:[#allocation123_spill] sm:$0xff]  ;;  %v16790_v46 = vld [vmem:[#allocation141_spill] sm:$0xff] }
 0xde9   :  { %3640 = vmatmul.bf16.vlgmr.msra.gmra.mxu0 %v3457_v30  ;;  %3653 = vmatmul.bf16.vlgmr.msra.gmra.mxu1 %v3457_v30 }
 0xdea   :  { %3699 = vmatpush.xpose.msrb.mxu0 %v16766_v58  ;;  %3748 = vmatpush.msrb.mxu1 %v16767_v51  ;;  %v16791_v58 = vld [vmem:[#allocation154_spill] sm:$0xff]  ;;  %v16792_v51 = vld [vmem:[#allocation155_spill] sm:$0xff] }
 0xdeb   :  { %3666 = vmatmul.bf16.vlgmr.msrb.gmra.mxu2 %v3457_v30  ;;  %3679 = vmatmul.bf16.vlgmr.msrb.gmra.mxu3 %v3457_v30  ;;  %v16778_v30 = vld [vmem:[#allocation148_spill] sm:$0xff] }
 0xdec   :  { %3793 = vmatpush.bf16.msra.mxu1 %v16769_v28  ;;  %3754 = vmatpush.bf16.msra.mxu2 %v16770_v29  ;;  %v16794_v28 = vld [vmem:[#allocation142_spill] sm:$0xff]  ;;  %v16795_v29 = vld [vmem:[#allocation125_spill] sm:$0xff] }
 0xded   :  { %3767 = vmatpush.bf16.msra.mxu3 %v16771_v49  ;;  %v16796_v49 = vld [vmem:[#allocation143_spill] sm:$0xff] }
 0xdee   :  { %3780 = vmatpush.bf16.msra.mxu0 %v16768_v6  ;;  %v16793_v6 = vld [vmem:[#allocation124_spill] sm:$0xff] }
 0xdf0   :  { %3794 = vmatpush.bf16.msra.mxu1 %v16773_v41  ;;  %3755 = vmatpush.bf16.msra.mxu2 %v16774_v59  ;;  %v16798_v41 = vld [vmem:[#allocation156_spill] sm:$0xff]  ;;  %v16801_v59 = vld [vmem:[#allocation159_spill] sm:$0xff] }
 0xdf1   :  { %3768 = vmatpush.bf16.msra.mxu3 %v16775_v42  ;;  %v16802_v42 = vld [vmem:[#allocation160_spill] sm:$0xff] }
 0xdf2   :  { %3781 = vmatpush.bf16.msra.mxu0 %v16772_v39  ;;  %v16797_v39 = vld [vmem:[#allocation39_spill] sm:$0xff] }
 0xdf4   :  { %3795 = vmatpush.bf16.msra.mxu1 %v16777_v15  ;;  %3756 = vmatpush.bf16.msra.mxu2 %v16778_v30  ;;  %v16809_v15 = vld [vmem:[#allocation167_spill] sm:$0xff]  ;;  %v16810_v30 = vld [vmem:[#allocation168_spill] sm:$0xff] }
 0xdf5   :  { %3769 = vmatpush.bf16.msra.mxu3 %v16779_v47 }
 0xdf6   :  { %3782 = vmatpush.bf16.msra.mxu0 %v16776_v11  ;;  %v16803_v11 = vld [vmem:[#allocation161_spill] sm:$0xff] }
 0xdf8   :  { %3796 = vmatpush.bf16.msra.mxu1 %v16781_v52  ;;  %3757 = vmatpush.bf16.msra.mxu2 %v16782_v4 }
 0xdf9   :  { %3770 = vmatpush.bf16.msra.mxu3 %v16783_v13  ;;  %3700 = vmatmul.f32.vlgmr.msrb.gmra.mxu0 %v16784_v35 }
 0xdfa   :  { %3783 = vmatpush.bf16.msra.mxu0 %v16780_v32 }
 0xdfc   :  { %3797 = vmatpush.bf16.msra.mxu1 %v16786_v0  ;;  %3758 = vmatpush.bf16.msra.mxu2 %v16787_v44 }
 0xdfd   :  { %3771 = vmatpush.bf16.msra.mxu3 %v16788_v34 }
 0xdfe   :  { %3784 = vmatpush.bf16.msra.mxu0 %v16785_v55 }
 0xe00   :  { %3798 = vmatpush.bf16.msra.mxu1 %v16790_v46  ;;  %3759 = vmatpush.bf16.msra.mxu2 %v16791_v58 }
 0xe01   :  { %3772 = vmatpush.bf16.msra.mxu3 %v16792_v51 }
 0xe02   :  { %3785 = vmatpush.bf16.msra.mxu0 %v16789_v53 }
 0xe04   :  { %3799 = vmatpush.bf16.msra.mxu1 %v16794_v28  ;;  %3760 = vmatpush.bf16.msra.mxu2 %v14719_v10  ;;  %v16799_v10 = vld [vmem:[#allocation157_spill] sm:$0xff] }
 0xe05   :  { %3773 = vmatpush.bf16.msra.mxu3 %v14722_v9  ;;  %v16800_v9 = vld [vmem:[#allocation158_spill] sm:$0xff] }
 0xe06   :  { %3786 = vmatpush.bf16.msra.mxu0 %v16793_v6 }
 0xe08   :  { %3800 = vmatpush.bf16.msra.mxu1 %v16796_v49  ;;  %3761 = vmatpush.bf16.msra.mxu2 %v14725_v3  ;;  %v16804_v3 = vld [vmem:[#allocation162_spill] sm:$0xff] }
 0xe09   :  { %3774 = vmatpush.bf16.msra.mxu3 %v14728_v25  ;;  %v16805_v25 = vld [vmem:[#allocation163_spill] sm:$0xff] }
 0xe0a   :  { %3787 = vmatpush.bf16.msra.mxu0 %v16795_v29 }
 0xe0c   :  { %3806 = vmatpush.bf16.msrb.mxu2 %v14731_v18  ;;  %v16806_v18 = vld [vmem:[#allocation164_spill] sm:$0xff] }
 0xe0d   :  { %3819 = vmatpush.bf16.msrb.mxu3 %v14733_v23  ;;  %v16807_v23 = vld [vmem:[#allocation165_spill] sm:$0xff] }
 0xe0e   :  { %3853 = vmatpush.xpose.msrb.mxu0 %v16797_v39 }
 0xe10   :  { %3807 = vmatpush.bf16.msrb.mxu2 %v14741_v20  ;;  %v16808_v20 = vld [vmem:[#allocation166_spill] sm:$0xff] }
 0xe11   :  { %3820 = vmatpush.bf16.msrb.mxu3 %v16798_v41 }
 0xe14   :  { %3808 = vmatpush.bf16.msrb.mxu2 %v16799_v10 }
 0xe15   :  { %3821 = vmatpush.bf16.msrb.mxu3 %v16800_v9 }
 0xe18   :  { %3809 = vmatpush.bf16.msrb.mxu2 %v16801_v59 }
 0xe19   :  { %3822 = vmatpush.bf16.msrb.mxu3 %v16802_v42 }
 0xe1c   :  { %3810 = vmatpush.bf16.msrb.mxu2 %v16803_v11 }
 0xe1d   :  { %3823 = vmatpush.bf16.msrb.mxu3 %v16804_v3 }
 0xe20   :  { %3811 = vmatpush.bf16.msrb.mxu2 %v16805_v25 }
 0xe21   :  { %3824 = vmatpush.bf16.msrb.mxu3 %v16806_v18 }
 0xe24   :  { %3812 = vmatpush.bf16.msrb.mxu2 %v16807_v23 }
 0xe25   :  { %3825 = vmatpush.bf16.msrb.mxu3 %v16808_v20 }
 0xe28   :  { %3813 = vmatpush.bf16.msrb.mxu2 %v16809_v15 }
 0xe29   :  { %3826 = vmatpush.bf16.msrb.mxu3 %v16810_v30 }
 0xe45   :  { %v15475_v47 = vpop.f32.mrf.mxu0  ;;  %v15477_v32 = vpop.f32.mrf.mxu1 }
 0xe4c   :  { %v15479_v52 = vpop.f32.mrf.mxu2  ;;  %v15481_v4 = vpop.f32.mrf.mxu3 }
 0xe4d   :  { %v3539_v13 = vpop.f32.mrf.mxu0  ;;  %v3552_v35 = vpop.f32.mrf.mxu1 }
 0xe54   :  { %v3565_v55 = vpop.f32.mrf.mxu2  ;;  %v3578_v0 = vpop.f32.mrf.mxu3 }
 0xe55   :  { %v15483_v44 = vpop.f32.mrf.mxu0  ;;  %v15485_v34 = vpop.f32.mrf.mxu1 }
 0xe5c   :  { %v15487_v53 = vpop.f32.mrf.mxu2  ;;  %v15489_v46 = vpop.f32.mrf.mxu3 }
 0xe5d   :  { %v3591_v58 = vpop.f32.mrf.mxu0  ;;  %v3604_v51 = vpop.f32.mrf.mxu1 }
 0xe64   :  { %v3617_v6 = vpop.f32.mrf.mxu2  ;;  %v3630_v28 = vpop.f32.mrf.mxu3 }
 0xe66   :  { %v15491_v29 = vpop.f32.mrf.mxu0  ;;  %v15493_v49 = vpop.f32.mrf.mxu1 }
 0xe6e   :  { %v15495_v39 = vpop.f32.mrf.mxu2  ;;  %v15497_v41 = vpop.f32.mrf.mxu3 }
 0xe6f   :  { %v3643_v10 = vpop.f32.mrf.mxu0  ;;  %v3656_v9 = vpop.f32.mrf.mxu1 }
 0xe76   :  { %v3669_v59 = vpop.f32.mrf.mxu2  ;;  %v3682_v42 = vpop.f32.mrf.mxu3 }
 0xe77   :  { %v3701_v11 = vpop.f32.mrf.mxu0 }
 0xe78   :  { %v3704_v3 = vmul.f32 0.088388346, %v3701_v11 }
 0xe7a   :  { %v3705_v25 = vsel %vm3387_vm12, %v3704_v3, -1000000.0  ;;  %v16811_v3 = vld [vmem:[#allocation85_spill] sm:$0xff] }
 0xe7b   :  { %v3706_v18 = vsel %vm766_vm2, %v3705_v25, -inf }
 0xe7c   :  { %3707 = vmax.xlane.f32.xlu1 %v3706_v18 }
 0xeef   :  { %v3708_v23 = vpop.xlane.xlu1 %3707 }
 0xef0   :  { %v3709_v20 = vsub.f32 %v3705_v25, %v3708_v23  ;;  %v16812_v23 = vld [vmem:[#allocation169_spill] sm:$0xff] }
 0xef2   :  { %v3710_v15 = vmul.f32 1.442695, %v3709_v20  ;;  %v16813_v20 = vld [vmem:[#allocation170_spill] sm:$0xff] }
 0xef4   :  { %13613 = vpow2.f32 %v3710_v15  ;;  %v16814_v15 = vld [vmem:[#allocation189_spill] sm:$0xff] }
 0xefa   :  { %v13614_v30 = vpop.eup %13613 }
 0xefb   :  { %v3712_v13 = vsel %vm766_vm2, %v13614_v30, 0.0 }
 0xefc   :  { %3713 = vadd.xlane.f32.xlu2 %v3712_v13  ;;  %v16815_v13 = vld [vmem:[#allocation190_spill] sm:$0xff] }
 0xf6f   :  { %v3714_v35 = vpop.xlane.xlu2 %3713 }
 0xf70   :  { %13615 = vrcp.f32 %v3714_v35  ;;  %v3726_v51 = vand.u32 2147483648, %v3714_v35  ;;  %v3724_v28 = vand.u32 2147483647, %v3714_v35  ;;  %vm3720_vm8 = vweird.f32 %v3714_v35 }
 0xf72   :  { %v3727_v9 = vor.u32 1.1754944e-38, %v3726_v51  ;;  %vm3725_vm9 = vcmp.eq.f32.partialorder %v3724_v28, 8.507059e+37  ;;  %v16821_v51 = vld [vmem:[#allocation174_spill] sm:$0xff] }
 0xf73   :  { %v16823_v28 = vld [vmem:[#allocation194_spill] sm:$0xff] }
 0xf76   :  { %v13616_v55 = vpop.eup %13615 }
 0xf77   :  { %v3716_v0 = vmul.f32 %v13616_v55, %v3714_v35  ;;  %vm3721_vm7 = vweird.f32 %v13616_v55  ;;  %v16816_v35 = vld [vmem:[#allocation171_spill] sm:$0xff] }
 0xf78   :  { %vm3722_vm1 = vmor %vm3720_vm8, %vm3721_vm7 }
 0xf79   :  { %v3717_v58 = vsub.f32 1.0, %v3716_v0  ;;  %v16819_v0 = vld [vmem:[#allocation192_spill] sm:$0xff] }
 0xf7b   :  { %v3718_v6 = vmul.f32 %v13616_v55, %v3717_v58  ;;  %v16820_v58 = vld [vmem:[#allocation173_spill] sm:$0xff] }
 0xf7d   :  { %v3719_v10 = vadd.f32 %v13616_v55, %v3718_v6  ;;  %v16822_v6 = vld [vmem:[#allocation193_spill] sm:$0xff] }
 0xf7f   :  { %v3723_v59 = vsel %vm3722_vm1, %v13616_v55, %v3719_v10  ;;  %v16818_v55 = vld [vmem:[#allocation191_spill] sm:$0xff] }
 0xf80   :  { %v3728_v42 = vsel %vm3725_vm9, %v3727_v9, %v3723_v59  ;;  %v16824_v10 = vld [vmem:[#allocation175_spill] sm:$0xff]  ;;  %v16825_v9 = vld [vmem:[#allocation176_spill] sm:$0xff] }
 0xf81   :  { %v3729_v11 = vmul.f32 %v13614_v30, %v3728_v42  ;;  %v16817_v30 = vld [vmem:[#allocation172_spill] sm:$0xff]  ;;  %v16826_v59 = vld [vmem:[#allocation195_spill] sm:$0xff] }
 0xf82   :  { %v16827_v42 = vld [vmem:[#allocation196_spill] sm:$0xff] }
 0xf83   :  { %10349 = vmatmul.msk.f32.vlgmr.msrb.gmra.mxu1 %vm766_vm2, %v3729_v11  ;;  %v16828_v11 = vld [vmem:[#allocation33_spill] sm:$0xff] }
 0xf84   :  { %3902 = vmatpush.msrb.mxu1 %v16811_v3  ;;  %v16829_v3 = vld [vmem:[#allocation177_spill] sm:$0xff] }
0x1000   :  { %v3750_v25 = vpop.f32.mrf.mxu1 }
0x1001   :  { %v3753_v18 = vpack.c.bf16 %v3750_v25, %v3750_v25  ;;  %v16830_v25 = vld [vmem:[#allocation178_spill] sm:$0xff] }
0x1003   :  { %3762 = vmatmul.bf16.vlgmr.msra.gmra.mxu2 %v3753_v18  ;;  %3775 = vmatmul.bf16.vlgmr.msra.gmra.mxu3 %v3753_v18 }
0x1004   :  { %3788 = vmatmul.bf16.vlgmr.msra.gmra.mxu0 %v3753_v18  ;;  %3801 = vmatmul.bf16.vlgmr.msra.gmra.mxu1 %v3753_v18 }
0x1005   :  { %3934 = vmatpush.bf16.msra.mxu2 %v16812_v23  ;;  %3947 = vmatpush.bf16.msra.mxu3 %v16813_v20  ;;  %v16831_v23 = vld [vmem:[#allocation197_spill] sm:$0xff]  ;;  %v16832_v20 = vld [vmem:[#allocation198_spill] sm:$0xff] }
0x1006   :  { %3908 = vmatpush.bf16.msra.mxu0 %v16814_v15  ;;  %3921 = vmatpush.bf16.msra.mxu1 %v16815_v13  ;;  %v16833_v15 = vld [vmem:[#allocation179_spill] sm:$0xff]  ;;  %v16834_v13 = vld [vmem:[#allocation180_spill] sm:$0xff] }
0x1009   :  { %3935 = vmatpush.bf16.msra.mxu2 %v16816_v35  ;;  %3948 = vmatpush.bf16.msra.mxu3 %v16817_v30  ;;  %v16835_v35 = vld [vmem:[#allocation199_spill] sm:$0xff]  ;;  %v16836_v30 = vld [vmem:[#allocation200_spill] sm:$0xff] }
0x100a   :  { %3909 = vmatpush.bf16.msra.mxu0 %v16818_v55  ;;  %3922 = vmatpush.bf16.msra.mxu1 %v16819_v0  ;;  %v16837_v55 = vld [vmem:[#allocation181_spill] sm:$0xff]  ;;  %v16839_v0 = vld [vmem:[#allocation183_spill] sm:$0xff] }
0x100d   :  { %3936 = vmatpush.bf16.msra.mxu2 %v16820_v58  ;;  %3949 = vmatpush.bf16.msra.mxu3 %v16821_v51  ;;  %v16840_v58 = vld [vmem:[#allocation184_spill] sm:$0xff]  ;;  %v16841_v51 = vld [vmem:[#allocation34_spill] sm:$0xff] }
0x100e   :  { %3910 = vmatpush.bf16.msra.mxu0 %v16822_v6  ;;  %3923 = vmatpush.bf16.msra.mxu1 %v16823_v28  ;;  %v16842_v6 = vld [vmem:[#allocation127_spill] sm:$0xff]  ;;  %v16843_v28 = vld [vmem:[#allocation202_spill] sm:$0xff] }
0x1011   :  { %3937 = vmatpush.bf16.msra.mxu2 %v16824_v10  ;;  %3950 = vmatpush.bf16.msra.mxu3 %v16825_v9  ;;  %v16844_v10 = vld [vmem:[#allocation201_spill] sm:$0xff]  ;;  %v16845_v9 = vld [vmem:[#allocation204_spill] sm:$0xff] }
0x1012   :  { %3911 = vmatpush.bf16.msra.mxu0 %v16826_v59  ;;  %3924 = vmatpush.bf16.msra.mxu1 %v16827_v42  ;;  %v16846_v59 = vld [vmem:[#allocation206_spill] sm:$0xff]  ;;  %v16849_v42 = vld [vmem:[#allocation212_spill] sm:$0xff] }
0x1013   :  { %3814 = vmatmul.bf16.vlgmr.msrb.gmra.mxu2 %v3753_v18  ;;  %3827 = vmatmul.bf16.vlgmr.msrb.gmra.mxu3 %v3753_v18  ;;  %v16838_v18 = vld [vmem:[#allocation182_spill] sm:$0xff] }
0x1014   :  { %3854 = vmatmul.f32.vlgmr.msrb.gmra.mxu0 %v16828_v11  ;;  %v16850_v11 = vld [vmem:[#allocation214_spill] sm:$0xff] }
0x1015   :  { %3938 = vmatpush.bf16.msra.mxu2 %v16829_v3  ;;  %3951 = vmatpush.bf16.msra.mxu3 %v16830_v25  ;;  %v16851_v3 = vld [vmem:[#allocation216_spill] sm:$0xff] }
0x1016   :  { %3912 = vmatpush.bf16.msra.mxu0 %v16831_v23  ;;  %3925 = vmatpush.bf16.msra.mxu1 %v16832_v20 }
0x1019   :  { %3939 = vmatpush.bf16.msra.mxu2 %v16833_v15  ;;  %3952 = vmatpush.bf16.msra.mxu3 %v16834_v13 }
0x101a   :  { %3913 = vmatpush.bf16.msra.mxu0 %v16835_v35  ;;  %3926 = vmatpush.bf16.msra.mxu1 %v16836_v30 }
0x101d   :  { %3940 = vmatpush.bf16.msra.mxu2 %v16837_v55  ;;  %3953 = vmatpush.bf16.msra.mxu3 %v16838_v18 }
0x101e   :  { %3914 = vmatpush.bf16.msra.mxu0 %v14892_v1  ;;  %3927 = vmatpush.bf16.msra.mxu1 %v14895_v63  ;;  %v16847_v1 = vld [vmem:[#allocation208_spill] sm:$0xff]  ;;  %v16848_v63 = vld [vmem:[#allocation210_spill] sm:$0xff] }
0x1021   :  { %3941 = vmatpush.bf16.msra.mxu2 %v16839_v0  ;;  %3954 = vmatpush.bf16.msra.mxu3 %v16840_v58 }
0x1022   :  { %3915 = vmatpush.bf16.msra.mxu0 %v14898_v21  ;;  %3928 = vmatpush.bf16.msra.mxu1 %v16843_v28 }
0x1025   :  { %4007 = vmatpush.xpose.msrb.mxu2 %v16841_v51  ;;  %4056 = vmatpush.msrb.mxu3 %v16842_v6 }
0x1026   :  { %3960 = vmatpush.bf16.msrb.mxu0 %v16844_v10 }
0x102a   :  { %3961 = vmatpush.bf16.msrb.mxu0 %v16845_v9 }
0x102e   :  { %3962 = vmatpush.bf16.msrb.mxu0 %v16846_v59 }
0x1032   :  { %3963 = vmatpush.bf16.msrb.mxu0 %v16847_v1 }
0x1036   :  { %3964 = vmatpush.bf16.msrb.mxu0 %v16848_v63 }
0x103a   :  { %3965 = vmatpush.bf16.msrb.mxu0 %v16849_v42 }
0x103e   :  { %3966 = vmatpush.bf16.msrb.mxu0 %v16850_v11 }
0x1042   :  { %3967 = vmatpush.bf16.msrb.mxu0 %v16851_v3 }
0x1081   :  { %v15548_v25 = vpop.f32.mrf.mxu0  ;;  %v15550_v21 = vpop.f32.mrf.mxu1 }
0x1086   :  { %v15552_v23 = vpop.f32.mrf.mxu2  ;;  %v15554_v20 = vpop.f32.mrf.mxu3 }
0x1089   :  { %v3791_v15 = vpop.f32.mrf.mxu0  ;;  %v3804_v13 = vpop.f32.mrf.mxu1 }
0x108e   :  { %v3765_v35 = vpop.f32.mrf.mxu2  ;;  %v3778_v30 = vpop.f32.mrf.mxu3 }
0x1091   :  { %v3855_v55 = vpop.f32.mrf.mxu0 }
0x1092   :  { %v3858_v18 = vmul.f32 0.088388346, %v3855_v55 }
0x1094   :  { %v3859_v0 = vsel %vm3387_vm12, %v3858_v18, -1000000.0 }
0x1095   :  { %v3860_v58 = vsel %vm766_vm2, %v3859_v0, -inf }
0x1096   :  { %3861 = vmax.xlane.f32.xlu0 %v3860_v58  ;;  %v15559_v51 = vpop.f32.mrf.mxu2  ;;  %v15561_v6 = vpop.f32.mrf.mxu3 }
0x109e   :  { %v3817_v28 = vpop.f32.mrf.mxu2  ;;  %v3830_v10 = vpop.f32.mrf.mxu3 }
0x1109   :  { %v3862_v9 = vpop.xlane.xlu0 %3861 }
0x110a   :  { %v3863_v59 = vsub.f32 %v3859_v0, %v3862_v9  ;;  %v16852_v9 = vld [vmem:[#allocation203_spill] sm:$0xff] }
0x110c   :  { %v3864_v1 = vmul.f32 1.442695, %v3863_v59  ;;  %v16853_v59 = vld [vmem:[#allocation205_spill] sm:$0xff] }
0x110e   :  { %13617 = vpow2.f32 %v3864_v1  ;;  %v16854_v1 = vld [vmem:[#allocation207_spill] sm:$0xff] }
0x1114   :  { %v13618_v63 = vpop.eup %13617 }
0x1115   :  { %v3866_v42 = vsel %vm766_vm2, %v13618_v63, 0.0 }
0x1116   :  { %3867 = vadd.xlane.f32.xlu1 %v3866_v42  ;;  %v16855_v42 = vld [vmem:[#allocation209_spill] sm:$0xff] }
0x1189   :  { %v3868_v11 = vpop.xlane.xlu1 %3867 }
0x118a   :  { %13619 = vrcp.f32 %v3868_v11  ;;  %v3880_v35 = vand.u32 2147483648, %v3868_v11  ;;  %v3878_v55 = vand.u32 2147483647, %v3868_v11  ;;  %vm3874_vm11 = vweird.f32 %v3868_v11 }
0x118c   :  { %v3881_v58 = vor.u32 1.1754944e-38, %v3880_v35  ;;  %vm3879_vm14 = vcmp.eq.f32.partialorder %v3878_v55, 8.507059e+37  ;;  %v16861_v55 = vld [vmem:[#allocation219_spill] sm:$0xff] }
0x1190   :  { %v13620_v3 = vpop.eup %13619 }
0x1191   :  { %v3870_v15 = vmul.f32 %v13620_v3, %v3868_v11  ;;  %vm3875_vm10 = vweird.f32 %v13620_v3  ;;  %v16858_v11 = vld [vmem:[#allocation215_spill] sm:$0xff] }
0x1192   :  { %vm3876_vm13 = vmor %vm3874_vm11, %vm3875_vm10 }
0x1193   :  { %v3871_v13 = vsub.f32 1.0, %v3870_v15  ;;  %v16856_v15 = vld [vmem:[#allocation211_spill] sm:$0xff] }
0x1195   :  { %v3872_v30 = vmul.f32 %v13620_v3, %v3871_v13  ;;  %v16857_v13 = vld [vmem:[#allocation213_spill] sm:$0xff] }
0x1197   :  { %v3873_v18 = vadd.f32 %v13620_v3, %v3872_v30  ;;  %v16860_v30 = vld [vmem:[#allocation218_spill] sm:$0xff] }
0x1199   :  { %v3877_v0 = vsel %vm3876_vm13, %v13620_v3, %v3873_v18  ;;  %v16859_v3 = vld [vmem:[#allocation217_spill] sm:$0xff]  ;;  %v16862_v18 = vld [vmem:[#allocation238_spill] sm:$0xff] }
0x119a   :  { %v3882_v28 = vsel %vm3879_vm14, %v3881_v58, %v3877_v0  ;;  %v16863_v58 = vld [vmem:[#allocation239_spill] sm:$0xff]  ;;  %v16864_v0 = vld [vmem:[#allocation220_spill] sm:$0xff] }
0x119b   :  { %v3883_v10 = vmul.f32 %v13618_v63, %v3882_v28  ;;  %v16865_v28 = vld [vmem:[#allocation221_spill] sm:$0xff] }
0x119d   :  { %10350 = vmatmul.msk.f32.vlgmr.msrb.gmra.mxu1 %vm766_vm2, %v3883_v10  ;;  %v16866_v10 = vld [vmem:[#allocation240_spill] sm:$0xff] }
0x119e   :  { %3973 = vmatpush.bf16.msrb.mxu1 %v16852_v9  ;;  %v16867_v9 = vld [vmem:[#allocation241_spill] sm:$0xff] }
0x11a2   :  { %3974 = vmatpush.bf16.msrb.mxu1 %v16853_v59  ;;  %v16868_v59 = vld [vmem:[#allocation222_spill] sm:$0xff] }
0x11a6   :  { %3975 = vmatpush.bf16.msrb.mxu1 %v16854_v1  ;;  %v16869_v1 = vld [vmem:[#allocation223_spill] sm:$0xff] }
0x11aa   :  { %3976 = vmatpush.bf16.msrb.mxu1 %v16855_v42  ;;  %v16870_v42 = vld [vmem:[#allocation242_spill] sm:$0xff] }
0x11ae   :  { %3977 = vmatpush.bf16.msrb.mxu1 %v16856_v15  ;;  %v16871_v15 = vld [vmem:[#allocation243_spill] sm:$0xff] }
0x11b2   :  { %3978 = vmatpush.bf16.msrb.mxu1 %v16857_v13  ;;  %v16872_v13 = vld [vmem:[#allocation224_spill] sm:$0xff] }
0x11b6   :  { %3979 = vmatpush.bf16.msrb.mxu1 %v16858_v11  ;;  %v16873_v11 = vld [vmem:[#allocation225_spill] sm:$0xff] }
0x11ba   :  { %3980 = vmatpush.bf16.msrb.mxu1 %v16859_v3  ;;  %v16874_v3 = vld [vmem:[#allocation244_spill] sm:$0xff] }
0x121a   :  { %v3904_v35 = vpop.f32.mrf.mxu1 }
0x121b   :  { %v3907_v63 = vpack.c.bf16 %v3904_v35, %v3904_v35  ;;  %v16875_v35 = vld [vmem:[#allocation245_spill] sm:$0xff] }
0x121d   :  { %3916 = vmatmul.bf16.vlgmr.msra.gmra.mxu0 %v3907_v63  ;;  %3929 = vmatmul.bf16.vlgmr.msra.gmra.mxu1 %v3907_v63 }
0x121e   :  { %3942 = vmatmul.bf16.vlgmr.msra.gmra.mxu2 %v3907_v63  ;;  %3955 = vmatmul.bf16.vlgmr.msra.gmra.mxu3 %v3907_v63 }
0x121f   :  { %4088 = vmatpush.bf16.msra.mxu0 %v16860_v30  ;;  %4101 = vmatpush.bf16.msra.mxu1 %v16861_v55  ;;  %v16876_v30 = vld [vmem:[#allocation36_spill] sm:$0xff]  ;;  %v16877_v55 = vld [vmem:[#allocation226_spill] sm:$0xff] }
0x1220   :  { %4062 = vmatpush.bf16.msra.mxu2 %v16862_v18  ;;  %4075 = vmatpush.bf16.msra.mxu3 %v16863_v58  ;;  %v16878_v18 = vld [vmem:[#allocation227_spill] sm:$0xff]  ;;  %v16879_v58 = vld [vmem:[#allocation246_spill] sm:$0xff] }
0x1223   :  { %4089 = vmatpush.bf16.msra.mxu0 %v16864_v0  ;;  %4102 = vmatpush.bf16.msra.mxu1 %v16865_v28  ;;  %v16880_v0 = vld [vmem:[#allocation247_spill] sm:$0xff]  ;;  %v16881_v28 = vld [vmem:[#allocation228_spill] sm:$0xff] }
0x1224   :  { %4063 = vmatpush.bf16.msra.mxu2 %v16866_v10  ;;  %4076 = vmatpush.bf16.msra.mxu3 %v16867_v9  ;;  %v16882_v10 = vld [vmem:[#allocation229_spill] sm:$0xff]  ;;  %v16883_v9 = vld [vmem:[#allocation248_spill] sm:$0xff] }
0x1227   :  { %4090 = vmatpush.bf16.msra.mxu0 %v16868_v59  ;;  %4103 = vmatpush.bf16.msra.mxu1 %v16869_v1  ;;  %v16884_v59 = vld [vmem:[#allocation249_spill] sm:$0xff]  ;;  %v16885_v1 = vld [vmem:[#allocation230_spill] sm:$0xff] }
0x1228   :  { %4064 = vmatpush.bf16.msra.mxu2 %v16870_v42  ;;  %4077 = vmatpush.bf16.msra.mxu3 %v16871_v15  ;;  %v16887_v42 = vld [vmem:[#allocation232_spill] sm:$0xff]  ;;  %v16888_v15 = vld [vmem:[#allocation233_spill] sm:$0xff] }
0x122b   :  { %4091 = vmatpush.bf16.msra.mxu0 %v16872_v13  ;;  %4104 = vmatpush.bf16.msra.mxu1 %v16873_v11  ;;  %v16889_v13 = vld [vmem:[#allocation76_spill] sm:$0xff]  ;;  %v16890_v11 = vld [vmem:[#allocation126_spill] sm:$0xff] }
0x122c   :  { %4065 = vmatpush.bf16.msra.mxu2 %v16874_v3  ;;  %4078 = vmatpush.bf16.msra.mxu3 %v16875_v35  ;;  %v16891_v3 = vld [vmem:[#allocation252_spill] sm:$0xff]  ;;  %v16894_v35 = vld [vmem:[#allocation258_spill] sm:$0xff] }
0x122d   :  { %3968 = vmatmul.bf16.vlgmr.msrb.gmra.mxu0 %v3907_v63  ;;  %3981 = vmatmul.bf16.vlgmr.msrb.gmra.mxu1 %v3907_v63  ;;  %v16886_v63 = vld [vmem:[#allocation231_spill] sm:$0xff] }
0x122e   :  { %4008 = vmatmul.f32.vlgmr.msrb.gmra.mxu2 %v16876_v30  ;;  %v16895_v30 = vld [vmem:[#allocation260_spill] sm:$0xff] }
0x122f   :  { %4092 = vmatpush.bf16.msra.mxu0 %v16877_v55  ;;  %4105 = vmatpush.bf16.msra.mxu1 %v16878_v18  ;;  %v16896_v55 = vld [vmem:[#allocation262_spill] sm:$0xff] }
0x1230   :  { %4066 = vmatpush.bf16.msra.mxu2 %v16879_v58  ;;  %4079 = vmatpush.bf16.msra.mxu3 %v16880_v0 }
0x1233   :  { %4093 = vmatpush.bf16.msra.mxu0 %v16881_v28  ;;  %4106 = vmatpush.bf16.msra.mxu1 %v16882_v10 }
0x1234   :  { %4067 = vmatpush.bf16.msra.mxu2 %v16883_v9  ;;  %4080 = vmatpush.bf16.msra.mxu3 %v16884_v59 }
0x1237   :  { %4094 = vmatpush.bf16.msra.mxu0 %v16885_v1  ;;  %4107 = vmatpush.bf16.msra.mxu1 %v16886_v63 }
0x1238   :  { %4068 = vmatpush.bf16.msra.mxu2 %v15062_v43  ;;  %4081 = vmatpush.bf16.msra.mxu3 %v15065_v60  ;;  %v16892_v43 = vld [vmem:[#allocation254_spill] sm:$0xff]  ;;  %v16893_v60 = vld [vmem:[#allocation256_spill] sm:$0xff] }
0x123b   :  { %4095 = vmatpush.bf16.msra.mxu0 %v16887_v42  ;;  %4108 = vmatpush.bf16.msra.mxu1 %v16888_v15 }
0x123c   :  { %4069 = vmatpush.bf16.msra.mxu2 %v15068_v50  ;;  %4082 = vmatpush.bf16.msra.mxu3 %v15073_v27 }
0x123f   :  { %4161 = vmatpush.xpose.msrb.mxu0 %v16889_v13  ;;  %4210 = vmatpush.msrb.mxu1 %v16890_v11 }
0x1240   :  { %4114 = vmatpush.bf16.msrb.mxu2 %v15071_v57 }
0x1244   :  { %4115 = vmatpush.bf16.msrb.mxu2 %v15081_v45 }
0x1248   :  { %4116 = vmatpush.bf16.msrb.mxu2 %v16891_v3 }
0x124c   :  { %4117 = vmatpush.bf16.msrb.mxu2 %v16892_v43 }
0x1250   :  { %4118 = vmatpush.bf16.msrb.mxu2 %v16893_v60 }
0x1254   :  { %4119 = vmatpush.bf16.msrb.mxu2 %v16894_v35 }
0x1258   :  { %4120 = vmatpush.bf16.msrb.mxu2 %v16895_v30 }
0x125c   :  { %4121 = vmatpush.bf16.msrb.mxu2 %v16896_v55 }
0x129a   :  { %v15616_v18 = vpop.f32.mrf.mxu0  ;;  %v15618_v50 = vpop.f32.mrf.mxu1 }
0x12a1   :  { %v15620_v27 = vpop.f32.mrf.mxu2  ;;  %v15622_v57 = vpop.f32.mrf.mxu3 }
0x12a2   :  { %v3919_v45 = vpop.f32.mrf.mxu0  ;;  %v3932_v58 = vpop.f32.mrf.mxu1 }
0x12a9   :  { %v3945_v0 = vpop.f32.mrf.mxu2  ;;  %v3958_v28 = vpop.f32.mrf.mxu3 }
0x12aa   :  { %v15624_v10 = vpop.f32.mrf.mxu0  ;;  %v15626_v9 = vpop.f32.mrf.mxu1 }
0x12b1   :  { %v4009_v59 = vpop.f32.mrf.mxu2 }
0x12b2   :  { %v4012_v1 = vmul.f32 0.088388346, %v4009_v59  ;;  %v3971_v63 = vpop.f32.mrf.mxu0  ;;  %v3984_v42 = vpop.f32.mrf.mxu1 }
0x12b4   :  { %v4013_v15 = vsel %vm3387_vm12, %v4012_v1, -1000000.0 }
0x12b5   :  { %v4014_v13 = vsel %vm766_vm2, %v4013_v15, -inf }
0x12b6   :  { %4015 = vmax.xlane.f32.xlu2 %v4014_v13 }
0x1329   :  { %v4016_v11 = vpop.xlane.xlu2 %4015 }
0x132a   :  { %v4017_v3 = vsub.f32 %v4013_v15, %v4016_v11  ;;  %v16897_v11 = vld [vmem:[#allocation250_spill] sm:$0xff] }
0x132c   :  { %v4018_v43 = vmul.f32 1.442695, %v4017_v3  ;;  %v16898_v3 = vld [vmem:[#allocation251_spill] sm:$0xff] }
0x132e   :  { %13621 = vpow2.f32 %v4018_v43  ;;  %v16899_v43 = vld [vmem:[#allocation253_spill] sm:$0xff] }
0x1334   :  { %v13622_v60 = vpop.eup %13621 }
0x1335   :  { %v4020_v35 = vsel %vm766_vm2, %v13622_v60, 0.0 }
0x1336   :  { %4021 = vadd.xlane.f32.xlu0 %v4020_v35  ;;  %v16900_v35 = vld [vmem:[#allocation255_spill] sm:$0xff] }
0x13a9   :  { %v4022_v30 = vpop.xlane.xlu0 %4021 }
0x13aa   :  { %13623 = vrcp.f32 %v4022_v30  ;;  %v4034_v0 = vand.u32 2147483648, %v4022_v30  ;;  %v4032_v59 = vand.u32 2147483647, %v4022_v30  ;;  %vm4028_vm0 = vweird.f32 %v4022_v30 }
0x13ac   :  { %v4035_v63 = vor.u32 1.1754944e-38, %v4034_v0  ;;  %vm4033_vm4 = vcmp.eq.f32.partialorder %v4032_v59, 8.507059e+37  ;;  %v16906_v59 = vld [vmem:[#allocation287_spill] sm:$0xff] }
0x13b0   :  { %v13624_v55 = vpop.eup %13623 }
0x13b1   :  { %v4024_v45 = vmul.f32 %v13624_v55, %v4022_v30  ;;  %vm4029_vm15 = vweird.f32 %v13624_v55  ;;  %v16903_v30 = vld [vmem:[#allocation261_spill] sm:$0xff] }
0x13b2   :  { %vm4030_vm3 = vmor %vm4028_vm0, %vm4029_vm15 }
0x13b3   :  { %v4025_v58 = vsub.f32 1.0, %v4024_v45  ;;  %v16901_v45 = vld [vmem:[#allocation257_spill] sm:$0xff] }
0x13b5   :  { %v4026_v28 = vmul.f32 %v13624_v55, %v4025_v58  ;;  %v16902_v58 = vld [vmem:[#allocation259_spill] sm:$0xff] }
0x13b7   :  { %v4027_v1 = vadd.f32 %v13624_v55, %v4026_v28  ;;  %v16905_v28 = vld [vmem:[#allocation286_spill] sm:$0xff] }
0x13b9   :  { %v4031_v42 = vsel %vm4030_vm3, %v13624_v55, %v4027_v1  ;;  %v16904_v55 = vld [vmem:[#allocation263_spill] sm:$0xff]  ;;  %v16907_v1 = vld [vmem:[#allocation264_spill] sm:$0xff] }
0x13ba   :  { %v4036_v15 = vsel %vm4033_vm4, %v4035_v63, %v4031_v42  ;;  %v16908_v63 = vld [vmem:[#allocation265_spill] sm:$0xff]  ;;  %v16909_v42 = vld [vmem:[#allocation288_spill] sm:$0xff] }
0x13bb   :  { %v4037_v13 = vmul.f32 %v13622_v60, %v4036_v15  ;;  %v16910_v15 = vld [vmem:[#allocation289_spill] sm:$0xff] }
0x13bd   :  { %10351 = vmatmul.msk.f32.vlgmr.msrb.gmra.mxu3 %vm766_vm2, %v4037_v13  ;;  %v16911_v13 = vld [vmem:[#allocation266_spill] sm:$0xff] }
0x13be   :  { %4127 = vmatpush.bf16.msrb.mxu3 %v16897_v11  ;;  %v16912_v11 = vld [vmem:[#allocation267_spill] sm:$0xff] }
0x13c2   :  { %4128 = vmatpush.bf16.msrb.mxu3 %v16898_v3  ;;  %v16913_v3 = vld [vmem:[#allocation290_spill] sm:$0xff] }
0x13c6   :  { %4129 = vmatpush.bf16.msrb.mxu3 %v16899_v43  ;;  %v16914_v43 = vld [vmem:[#allocation291_spill] sm:$0xff] }
0x13ca   :  { %4130 = vmatpush.bf16.msrb.mxu3 %v16900_v35  ;;  %v16915_v35 = vld [vmem:[#allocation268_spill] sm:$0xff] }
0x13ce   :  { %4131 = vmatpush.bf16.msrb.mxu3 %v16901_v45  ;;  %v16916_v45 = vld [vmem:[#allocation269_spill] sm:$0xff] }
0x13d2   :  { %4132 = vmatpush.bf16.msrb.mxu3 %v16902_v58  ;;  %v16917_v58 = vld [vmem:[#allocation292_spill] sm:$0xff] }
0x13d6   :  { %4133 = vmatpush.bf16.msrb.mxu3 %v16903_v30  ;;  %v16918_v30 = vld [vmem:[#allocation293_spill] sm:$0xff] }
0x13da   :  { %4134 = vmatpush.bf16.msrb.mxu3 %v16904_v55  ;;  %v16919_v55 = vld [vmem:[#allocation270_spill] sm:$0xff] }
0x1440   :  { %v4058_v0 = vpop.f32.mrf.mxu3 }
0x1441   :  { %v4061_v60 = vpack.c.bf16 %v4058_v0, %v4058_v0  ;;  %v16920_v0 = vld [vmem:[#allocation271_spill] sm:$0xff] }
0x1443   :  { %4070 = vmatmul.bf16.vlgmr.msra.gmra.mxu2 %v4061_v60  ;;  %4083 = vmatmul.bf16.vlgmr.msra.gmra.mxu3 %v4061_v60 }
0x1444   :  { %4096 = vmatmul.bf16.vlgmr.msra.gmra.mxu0 %v4061_v60  ;;  %4109 = vmatmul.bf16.vlgmr.msra.gmra.mxu1 %v4061_v60 }
0x1445   :  { %4216 = vmatpush.bf16.msra.mxu0 %v16905_v28  ;;  %4229 = vmatpush.bf16.msra.mxu1 %v16906_v59  ;;  %v16921_v28 = vld [vmem:[#allocation37_spill] sm:$0xff]  ;;  %v16922_v59 = vld [vmem:[#allocation294_spill] sm:$0xff] }
0x1446   :  { %4242 = vmatpush.bf16.msra.mxu2 %v16907_v1  ;;  %4255 = vmatpush.bf16.msra.mxu3 %v16908_v63  ;;  %v16923_v1 = vld [vmem:[#allocation295_spill] sm:$0xff]  ;;  %v16924_v63 = vld [vmem:[#allocation272_spill] sm:$0xff] }
0x1449   :  { %4217 = vmatpush.bf16.msra.mxu0 %v16909_v42  ;;  %4230 = vmatpush.bf16.msra.mxu1 %v16910_v15  ;;  %v16925_v42 = vld [vmem:[#allocation273_spill] sm:$0xff]  ;;  %v16926_v15 = vld [vmem:[#allocation296_spill] sm:$0xff] }
0x144a   :  { %4243 = vmatpush.bf16.msra.mxu2 %v16911_v13  ;;  %4256 = vmatpush.bf16.msra.mxu3 %v16912_v11  ;;  %v16927_v13 = vld [vmem:[#allocation297_spill] sm:$0xff]  ;;  %v16928_v11 = vld [vmem:[#allocation274_spill] sm:$0xff] }
0x144d   :  { %4218 = vmatpush.bf16.msra.mxu0 %v16913_v3  ;;  %4231 = vmatpush.bf16.msra.mxu1 %v16914_v43  ;;  %v16929_v3 = vld [vmem:[#allocation275_spill] sm:$0xff]  ;;  %v16931_v43 = vld [vmem:[#allocation277_spill] sm:$0xff] }
0x144e   :  { %4244 = vmatpush.bf16.msra.mxu2 %v16915_v35  ;;  %4257 = vmatpush.bf16.msra.mxu3 %v16916_v45  ;;  %v16932_v35 = vld [vmem:[#allocation278_spill] sm:$0xff]  ;;  %v16933_v45 = vld [vmem:[#allocation279_spill] sm:$0xff] }
0x1451   :  { %4219 = vmatpush.bf16.msra.mxu0 %v16917_v58  ;;  %4232 = vmatpush.bf16.msra.mxu1 %v16918_v30 }
0x1452   :  { %4245 = vmatpush.bf16.msra.mxu2 %v16919_v55  ;;  %4258 = vmatpush.bf16.msra.mxu3 %v16920_v0 }
0x1453   :  { %4122 = vmatmul.bf16.vlgmr.msrb.gmra.mxu2 %v4061_v60  ;;  %4135 = vmatmul.bf16.vlgmr.msrb.gmra.mxu3 %v4061_v60  ;;  %v16930_v60 = vld [vmem:[#allocation276_spill] sm:$0xff] }
0x1454   :  { %4162 = vmatmul.f32.vlgmr.msrb.gmra.mxu0 %v16921_v28 }
0x1455   :  { %4220 = vmatpush.bf16.msra.mxu0 %v16922_v59  ;;  %4233 = vmatpush.bf16.msra.mxu1 %v16923_v1 }
0x1456   :  { %4246 = vmatpush.bf16.msra.mxu2 %v16924_v63  ;;  %4259 = vmatpush.bf16.msra.mxu3 %v16925_v42 }
0x1459   :  { %4221 = vmatpush.bf16.msra.mxu0 %v16926_v15  ;;  %4234 = vmatpush.bf16.msra.mxu1 %v16927_v13 }
0x145a   :  { %4247 = vmatpush.bf16.msra.mxu2 %v16928_v11  ;;  %4260 = vmatpush.bf16.msra.mxu3 %v16929_v3 }
0x145d   :  { %4222 = vmatpush.bf16.msra.mxu0 %v15232_v19  ;;  %4235 = vmatpush.bf16.msra.mxu1 %v15235_v12 }
0x145e   :  { %4248 = vmatpush.bf16.msra.mxu2 %v16930_v60  ;;  %4261 = vmatpush.bf16.msra.mxu3 %v16931_v43 }
0x1461   :  { %4223 = vmatpush.bf16.msra.mxu0 %v15238_v16  ;;  %4236 = vmatpush.bf16.msra.mxu1 %v15243_v31 }
0x1462   :  { %4249 = vmatpush.bf16.msra.mxu2 %v16932_v35  ;;  %4262 = vmatpush.bf16.msra.mxu3 %v16933_v45 }
0x1465   :  { %4268 = vmatpush.bf16.msrb.mxu0 %v15241_v14 }
0x1469   :  { %4269 = vmatpush.bf16.msrb.mxu0 %v15251_v33 }
0x146d   :  { %4270 = vmatpush.bf16.msrb.mxu0 %v15258_v24 }
0x1471   :  { %4271 = vmatpush.bf16.msrb.mxu0 %v15265_v56 }
0x1475   :  { %4272 = vmatpush.bf16.msrb.mxu0 %v15271_v48 }
0x1479   :  { %4273 = vmatpush.bf16.msrb.mxu0 %v15276_v62 }
0x147d   :  { %4274 = vmatpush.bf16.msrb.mxu0 %v15282_v26 }
0x1481   :  { %4275 = vmatpush.bf16.msrb.mxu0 %v15288_v17 }
0x14c1   :  { %v15682_v19 = vpop.f32.mrf.mxu0  ;;  %v15684_v31 = vpop.f32.mrf.mxu1 }
0x14c6   :  { %v15686_v12 = vpop.f32.mrf.mxu2  ;;  %v15688_v16 = vpop.f32.mrf.mxu3 }
0x14c9   :  { %v4099_v14 = vpop.f32.mrf.mxu0  ;;  %v4112_v33 = vpop.f32.mrf.mxu1 }
0x14ce   :  { %v4073_v24 = vpop.f32.mrf.mxu2  ;;  %v4086_v56 = vpop.f32.mrf.mxu3 }
0x14cf   :  { %v16934_v56 = vld [vmem:[#allocation298_spill] sm:$0xff] }
0x14d1   :  { %v4163_v58 = vpop.f32.mrf.mxu0 }
0x14d2   :  { %v4166_v48 = vmul.f32 0.088388346, %v4163_v58  ;;  %v16935_v58 = vld [vmem:[#allocation299_spill] sm:$0xff] }
0x14d4   :  { %v4167_v62 = vsel %vm3387_vm12, %v4166_v48, -1000000.0  ;;  %v16936_v48 = vld [vmem:[#allocation300_spill] sm:$0xff] }
0x14d5   :  { %v4168_v26 = vsel %vm766_vm2, %v4167_v62, -inf }
0x14d6   :  { %4169 = vmax.xlane.f32.xlu1 %v4168_v26  ;;  %v15693_v17 = vpop.f32.mrf.mxu2  ;;  %v15695_v30 = vpop.f32.mrf.mxu3  ;;  %v10523_v26 = vld [vmem:[#allocation14 + $0x150] sm:$0xf] }
0x14de   :  { %v4125_v55 = vpop.f32.mrf.mxu2  ;;  %v4138_v0 = vpop.f32.mrf.mxu3 }
0x14df   :  { %v13029_v55 = vld [vmem:[#allocation14 + $0x164] sm:$0xf0]  ;;  %v10715_v0 = vld [vmem:[#allocation14 + $0x2d0] sm:$0xf] }
0x1549   :  { %v4170_v28 = vpop.xlane.xlu1 %4169 }
0x154a   :  { %v4171_v59 = vsub.f32 %v4167_v62, %v4170_v28  ;;  %v16937_v62 = vld [vmem:[#allocation301_spill] sm:$0xff]  ;;  %v10524_v28 = vor.u32 %v13029_v55, %v10523_v26  ;;  %v13005_v26 = vld [vmem:[#allocation14 + $0xa4] sm:$0xf0] }
0x154c   :  { %v4172_v1 = vmul.f32 1.442695, %v4171_v59  ;;  %v13077_v59 = vld [vmem:[#allocation14 + $0x2e4] sm:$0xf0]  ;;  %6048 = vmatpush.bf16.msrb.mxu2 %v10524_v28 }
0x154e   :  { %13625 = vpow2.f32 %v4172_v1  ;;  %v10499_v1 = vld [vmem:[#allocation14 + $0x120] sm:$0xf] }
0x1554   :  { %v13626_v63 = vpop.eup %13625 }
0x1555   :  { %v4174_v42 = vsel %vm766_vm2, %v13626_v63, 0.0 }
0x1556   :  { %4175 = vadd.xlane.f32.xlu2 %v4174_v42  ;;  %v10716_v42 = vor.u32 %v13077_v59, %v10715_v0 }
0x1558   :  { %6062 = vmatpush.bf16.msrb.mxu3 %v10716_v42  ;;  %v11075_v42 = vld [vmem:[#allocation14 + $0x5a0] sm:$0xf] }
0x15c9   :  { %v4176_v15 = vpop.xlane.xlu2 %4175 }
0x15ca   :  { %13627 = vrcp.f32 %v4176_v15  ;;  %v4188_v3 = vand.u32 2147483648, %v4176_v15  ;;  %v4186_v43 = vand.u32 2147483647, %v4176_v15  ;;  %vm4182_vm5 = vweird.f32 %v4176_v15 }
0x15cc   :  { %v4189_v45 = vor.u32 1.1754944e-38, %v4188_v3  ;;  %vm4187_vm7 = vcmp.eq.f32.partialorder %v4186_v43, 8.507059e+37  ;;  %v10667_v3 = vld [vmem:[#allocation14 + $0x270] sm:$0xf]  ;;  %v10451_v43 = vld [vmem:[#allocation14 + $0xc0] sm:$0xf] }
0x15d0   :  { %v13628_v5 = vpop.eup %13627 }
0x15d1   :  { %v4178_v13 = vmul.f32 %v13628_v5, %v4176_v15  ;;  %vm4183_vm12 = vweird.f32 %v13628_v5  ;;  %v10691_v15 = vld [vmem:[#allocation14 + $0x2a0] sm:$0xf] }
0x15d2   :  { %vm4184_vm6 = vmor %vm4182_vm5, %vm4183_vm12 }
0x15d3   :  { %v4179_v11 = vsub.f32 1.0, %v4178_v13 }
0x15d5   :  { %v4180_v60 = vmul.f32 %v13628_v5, %v4179_v11  ;;  %v10475_v11 = vld [vmem:[#allocation14 + $0xf0] sm:$0xf] }
0x15d7   :  { %v4181_v35 = vadd.f32 %v13628_v5, %v4180_v60 }
0x15d9   :  { %v4185_v14 = vsel %vm4184_vm6, %v13628_v5, %v4181_v35  ;;  %v13071_v5 = vld [vmem:[#allocation14 + $0x2b4] sm:$0xf0] }
0x15da   :  { %v4190_v33 = vsel %vm4187_vm7, %v4189_v45, %v4185_v14  ;;  %v13011_v35 = vld [vmem:[#allocation14 + $0xd4] sm:$0xf0]  ;;  %v10907_v45 = vld [vmem:[#allocation14 + $0x450] sm:$0xf]  ;;  %v13125_v14 = vld [vmem:[#allocation14 + $0x464] sm:$0xf0] }
0x15db   :  { %v4191_v24 = vmul.f32 %v13626_v63, %v4190_v33  ;;  %v13023_v63 = vld [vmem:[#allocation14 + $0x134] sm:$0xf0]  ;;  %v11099_v33 = vld [vmem:[#allocation14 + $0x5d0] sm:$0xf]  ;;  %v10908_v28 = vor.u32 %v13125_v14, %v10907_v45  ;;  %v13161_v45 = vld [vmem:[#allocation14 + $0x584] sm:$0xf0] }
0x15dc   :  { %v10500_v13 = vor.u32 %v13023_v63, %v10499_v1  ;;  %v10883_v1 = vld [vmem:[#allocation14 + $0x420] sm:$0xf]  ;;  %v13119_v63 = vld [vmem:[#allocation14 + $0x434] sm:$0xf0] }
0x15dd   :  { %10352 = vmatmul.msk.f32.vlgmr.msrb.gmra.mxu1 %vm766_vm2, %v4191_v24  ;;  %v13173_v24 = vld [vmem:[#allocation14 + $0x5e4] sm:$0xf0] }
0x15de   :  { %4281 = vmatpush.bf16.msrb.mxu1 %v16934_v56  ;;  %6049 = vmatpush.bf16.msrb.mxu2 %v10500_v13  ;;  %v10452_v56 = vor.u32 %v13011_v35, %v10451_v43  ;;  %v11100_v59 = vor.u32 %v13173_v24, %v11099_v33  ;;  %v13113_v43 = vld [vmem:[#allocation14 + $0x404] sm:$0xf0]  ;;  %v11051_v35 = vld [vmem:[#allocation14 + $0x570] sm:$0xf]  ;;  %v10595_v24 = vld [vmem:[#allocation14 + $0x1e0] sm:$0xf] }
0x15e2   :  { %4282 = vmatpush.bf16.msrb.mxu1 %v16935_v58  ;;  %v10643_v58 = vld [vmem:[#allocation14 + $0x240] sm:$0xf] }
0x15e6   :  { %4283 = vmatpush.bf16.msrb.mxu1 %v16936_v48  ;;  %v13059_v48 = vld [vmem:[#allocation14 + $0x254] sm:$0xf0] }
0x15ea   :  { %4284 = vmatpush.bf16.msrb.mxu1 %v16937_v62  ;;  %v10427_v62 = vld [vmem:[#allocation14 + $0x90] sm:$0xf] }
0x15eb   :  { %v10428_v13 = vor.u32 %v13005_v26, %v10427_v62  ;;  %v11052_v26 = vor.u32 %v13161_v45, %v11051_v35  ;;  %v13149_v35 = vld [vmem:[#allocation14 + $0x524] sm:$0xf0] }
0x15ee   :  { %4285 = vmatpush.bf16.msrb.mxu1 %v15273_v38  ;;  %v10692_v38 = vor.u32 %v13071_v5, %v10691_v15  ;;  %v13167_v15 = vld [vmem:[#allocation14 + $0x5b4] sm:$0xf0]  ;;  %v10644_v5 = vor.u32 %v13059_v48, %v10643_v58  ;;  %v10379_v58 = vld [vmem:[#allocation14 + $0x30] sm:$0xf]  ;;  %v12993_v48 = vld [vmem:[#allocation14 + $0x44] sm:$0xf0] }
0x15f0   :  { %6063 = vmatpush.bf16.msrb.mxu3 %v10692_v38  ;;  %v10619_v38 = vld [vmem:[#allocation14 + $0x210] sm:$0xf] }
0x15f2   :  { %4286 = vmatpush.bf16.msrb.mxu1 %v15279_v37  ;;  %v13017_v37 = vld [vmem:[#allocation14 + $0x104] sm:$0xf0] }
0x15f6   :  { %4287 = vmatpush.bf16.msrb.mxu1 %v15285_v61  ;;  %v13065_v61 = vld [vmem:[#allocation14 + $0x284] sm:$0xf0] }
0x15f7   :  { %v10668_v60 = vor.u32 %v13065_v61, %v10667_v3  ;;  %v12999_v3 = vld [vmem:[#allocation14 + $0x74] sm:$0xf0]  ;;  %v10884_v61 = vor.u32 %v13119_v63, %v10883_v1 }
0x15f8   :  { %v13155_v1 = vld [vmem:[#allocation14 + $0x554] sm:$0xf0] }
0x15f9   :  { %6064 = vmatpush.bf16.msrb.mxu3 %v10668_v60  ;;  %v10859_v60 = vld [vmem:[#allocation14 + $0x3f0] sm:$0xf] }
0x15fa   :  { %4288 = vmatpush.bf16.msrb.mxu1 %v15291_v40  ;;  %v10476_v40 = vor.u32 %v13017_v37, %v10475_v11  ;;  %v13053_v11 = vld [vmem:[#allocation14 + $0x224] sm:$0xf0]  ;;  %v10403_v37 = vld [vmem:[#allocation14 + $0x60] sm:$0xf]  ;;  %v10860_v62 = vor.u32 %v13113_v43, %v10859_v60  ;;  %v11003_v43 = vld [vmem:[#allocation14 + $0x510] sm:$0xf] }
0x15fb   :  { %v10620_v14 = vor.u32 %v13053_v11, %v10619_v38  ;;  %v10404_v33 = vor.u32 %v12999_v3, %v10403_v37  ;;  %v12987_v38 = vld [vmem:[#allocation14 + $0x14] sm:$0xf0]  ;;  %v10811_v3 = vld [vmem:[#allocation14 + $0x390] sm:$0xf]  ;;  %v13101_v60 = vld [vmem:[#allocation14 + $0x3a4] sm:$0xf0] }
0x15fc   :  { %6050 = vmatpush.bf16.msrb.mxu2 %v10476_v40  ;;  %v11076_v40 = vor.u32 %v13167_v15, %v11075_v42  ;;  %v10380_v42 = vor.u32 %v12993_v48, %v10379_v58  ;;  %v10571_v15 = vld [vmem:[#allocation14 + $0x1b0] sm:$0xf]  ;;  %v13269_v48 = vld [vmem:[#allocation14 + $0x8e4] sm:$0xf0] }
0x15fd   :  { %6065 = vmatpush.bf16.msrb.mxu3 %v10644_v5  ;;  %v13041_v5 = vld [vmem:[#allocation14 + $0x1c4] sm:$0xf0]  ;;  %v11483_v58 = vld [vmem:[#allocation14 + $0x8d0] sm:$0xf] }
0x15fe   :  { %v10572_v45 = vor.u32 %v13041_v5, %v10571_v15  ;;  %v11484_v15 = vor.u32 %v13269_v48, %v11483_v58  ;;  %v13083_v48 = vld [vmem:[#allocation14 + $0x314] sm:$0xf0] }
0x1600   :  { %6051 = vmatpush.bf16.msrb.mxu2 %v10452_v56  ;;  %v13047_v56 = vld [vmem:[#allocation14 + $0x1f4] sm:$0xf0] }
0x1601   :  { %6066 = vmatpush.bf16.msrb.mxu3 %v10620_v14  ;;  %v10596_v63 = vor.u32 %v13047_v56, %v10595_v24  ;;  %v13035_v24 = vld [vmem:[#allocation14 + $0x194] sm:$0xf0] }
0x1604   :  { %6052 = vmatpush.bf16.msrb.mxu2 %v10428_v13  ;;  %v10355_v13 = vld [vmem:[#allocation14] sm:$0xf] }
0x1605   :  { %6067 = vmatpush.bf16.msrb.mxu3 %v10596_v63  ;;  %v10356_v14 = vor.u32 %v12987_v38, %v10355_v13  ;;  %v10979_v63 = vld [vmem:[#allocation14 + $0x4e0] sm:$0xf]  ;;  %v13263_v38 = vld [vmem:[#allocation14 + $0x8b4] sm:$0xf0] }
0x1606   :  { %v11459_v13 = vld [vmem:[#allocation14 + $0x8a0] sm:$0xf] }
0x1608   :  { %6053 = vmatpush.bf16.msrb.mxu2 %v10404_v33  ;;  %v10547_v33 = vld [vmem:[#allocation14 + $0x180] sm:$0xf] }
0x1609   :  { %6068 = vmatpush.bf16.msrb.mxu3 %v10572_v45  ;;  %v11460_v45 = vor.u32 %v13263_v38, %v11459_v13  ;;  %v13251_v13 = vld [vmem:[#allocation14 + $0x854] sm:$0xf0] }
0x160c   :  { %6054 = vmatpush.bf16.msrb.mxu2 %v10380_v42  ;;  %v10548_v42 = vor.u32 %v13035_v24, %v10547_v33  ;;  %v11435_v33 = vld [vmem:[#allocation14 + $0x870] sm:$0xf]  ;;  %v13257_v24 = vld [vmem:[#allocation14 + $0x884] sm:$0xf0] }
0x160e   :  { %6069 = vmatpush.bf16.msrb.mxu3 %v10548_v42  ;;  %v11436_v42 = vor.u32 %v13257_v24, %v11435_v33  ;;  %v13245_v24 = vld [vmem:[#allocation14 + $0x824] sm:$0xf0] }
0x1610   :  { %6055 = vmatpush.bf16.msrb.mxu2 %v10356_v14 }
0x165a   :  { %v4212_v55 = vpop.f32.mrf.mxu1 }
0x165b   :  { %v15707_v0 = vpack.c.bf16 %v4212_v55, %v4212_v55  ;;  %v10835_v55 = vld [vmem:[#allocation14 + $0x3c0] sm:$0xf] }
0x165d   :  { %4224 = vmatmul.bf16.vlgmr.msra.gmra.mxu0 %v15707_v0  ;;  %4237 = vmatmul.bf16.vlgmr.msra.gmra.mxu1 %v15707_v0 }
0x165e   :  { %4250 = vmatmul.bf16.vlgmr.msra.gmra.mxu2 %v15707_v0  ;;  %4263 = vmatmul.bf16.vlgmr.msra.gmra.mxu3 %v15707_v0 }
0x165f   :  { %6076 = vmatpush.bf16.msra.mxu0 %v10908_v28  ;;  %6090 = vmatpush.bf16.msra.mxu1 %v11100_v59  ;;  %v13107_v28 = vld [vmem:[#allocation14 + $0x3d4] sm:$0xf0]  ;;  %v11027_v59 = vld [vmem:[#allocation14 + $0x540] sm:$0xf] }
0x1660   :  { %v10836_v11 = vor.u32 %v13107_v28, %v10835_v55  ;;  %v11028_v37 = vor.u32 %v13155_v1, %v11027_v59  ;;  %v10787_v55 = vld [vmem:[#allocation14 + $0x360] sm:$0xf]  ;;  %v13215_v59 = vld [vmem:[#allocation14 + $0x734] sm:$0xf0]  ;;  %6118 = vmatpush.bf16.msra.mxu3 %v11484_v15 }
0x1661   :  { %v11267_v28 = vld [vmem:[#allocation14 + $0x720] sm:$0xf]  ;;  %v13095_v1 = vld [vmem:[#allocation14 + $0x374] sm:$0xf0] }
0x1662   :  { %v11268_v5 = vor.u32 %v13215_v59, %v11267_v28  ;;  %v13026_v28 = vld [vmem:[#allocation14 + $0x154] sm:$0xf]  ;;  %v10525_v59 = vld [vmem:[#allocation14 + $0x168] sm:$0xf0] }
0x1663   :  { %6077 = vmatpush.bf16.msra.mxu0 %v10884_v61  ;;  %6091 = vmatpush.bf16.msra.mxu1 %v11076_v40  ;;  %v11291_v61 = vld [vmem:[#allocation14 + $0x750] sm:$0xf]  ;;  %v13221_v40 = vld [vmem:[#allocation14 + $0x764] sm:$0xf0] }
0x1664   :  { %v11292_v56 = vor.u32 %v13221_v40, %v11291_v61  ;;  %v11243_v61 = vld [vmem:[#allocation14 + $0x6f0] sm:$0xf]  ;;  %v13209_v40 = vld [vmem:[#allocation14 + $0x704] sm:$0xf0]  ;;  %6119 = vmatpush.bf16.msra.mxu3 %v11460_v45  ;;  %v10693_v45 = vld [vmem:[#allocation14 + $0x2b8] sm:$0xf0] }
0x1665   :  { %v11244_v14 = vor.u32 %v13209_v40, %v11243_v61  ;;  %v10528_v61 = vor.u32 %v13026_v28, %v10525_v59 }
0x1666   :  { %6104 = vmatpush.bf16.msra.mxu2 %v11292_v56 }
0x1667   :  { %6078 = vmatpush.bf16.msra.mxu0 %v10860_v62  ;;  %6092 = vmatpush.bf16.msra.mxu1 %v11052_v26  ;;  %v10812_v62 = vor.u32 %v13101_v60, %v10811_v3  ;;  %v11004_v26 = vor.u32 %v13149_v35, %v11003_v43  ;;  %v10763_v3 = vld [vmem:[#allocation14 + $0x330] sm:$0xf]  ;;  %v13089_v60 = vld [vmem:[#allocation14 + $0x344] sm:$0xf0] }
0x1668   :  { %v10955_v43 = vld [vmem:[#allocation14 + $0x4b0] sm:$0xf]  ;;  %v13137_v35 = vld [vmem:[#allocation14 + $0x4c4] sm:$0xf0]  ;;  %v10764_v56 = vor.u32 %v13089_v60, %v10763_v3  ;;  %v13020_v60 = vld [vmem:[#allocation14 + $0x124] sm:$0xf]  ;;  %6120 = vmatpush.bf16.msra.mxu3 %v11436_v42 }
0x1669   :  { %v10956_v58 = vor.u32 %v13137_v35, %v10955_v43  ;;  %v13197_v3 = vld [vmem:[#allocation14 + $0x6a4] sm:$0xf0]  ;;  %v10501_v43 = vld [vmem:[#allocation14 + $0x138] sm:$0xf0]  ;;  %v13068_v35 = vld [vmem:[#allocation14 + $0x2a4] sm:$0xf] }
0x166a   :  { %6105 = vmatpush.bf16.msra.mxu2 %v11268_v5  ;;  %v11411_v5 = vld [vmem:[#allocation14 + $0x840] sm:$0xf] }
0x166b   :  { %6079 = vmatpush.bf16.msra.mxu0 %v10836_v11  ;;  %6093 = vmatpush.bf16.msra.mxu1 %v11028_v37  ;;  %v10788_v11 = vor.u32 %v13095_v1, %v10787_v55  ;;  %v10980_v37 = vor.u32 %v13143_v2, %v10979_v63  ;;  %v11219_v2 = vld [vmem:[#allocation14 + $0x6c0] sm:$0xf]  ;;  %v13131_v55 = vld [vmem:[#allocation14 + $0x494] sm:$0xf0]  ;;  %v13074_v1 = vld [vmem:[#allocation14 + $0x2d4] sm:$0xf]  ;;  %v11412_v54 = vor.u32 %v13251_v13, %v11411_v5 }
0x166c   :  { %v10717_v63 = vld [vmem:[#allocation14 + $0x2e8] sm:$0xf0]  ;;  %v13008_v5 = vld [vmem:[#allocation14 + $0xc4] sm:$0xf]  ;;  %v10453_v13 = vld [vmem:[#allocation14 + $0xd8] sm:$0xf0] }
0x166d   :  { %4276 = vmatmul.bf16.vlgmr.msrb.gmra.mxu0 %v15707_v0  ;;  %4289 = vmatmul.bf16.vlgmr.msrb.gmra.mxu1 %v15707_v0  ;;  %v10739_v0 = vld [vmem:[#allocation14 + $0x300] sm:$0xf]  ;;  %v10720_v40 = vor.u32 %v13074_v1, %v10717_v63  ;;  %v13239_v63 = vld [vmem:[#allocation14 + $0x7f4] sm:$0xf0] }
0x166e   :  { %6106 = vmatpush.bf16.msra.mxu2 %v11244_v14  ;;  %v10740_v38 = vor.u32 %v13083_v48, %v10739_v0  ;;  %v11387_v14 = vld [vmem:[#allocation14 + $0x810] sm:$0xf]  ;;  %v10504_v0 = vor.u32 %v13020_v60, %v10501_v43  ;;  %v10696_v48 = vor.u32 %v13068_v35, %v10693_v45  ;;  %6121 = vmatpush.bf16.msra.mxu3 %v11412_v54  ;;  %v11363_v1 = vld [vmem:[#allocation14 + $0x7e0] sm:$0xf]  ;;  %v13050_v60 = vld [vmem:[#allocation14 + $0x214] sm:$0xf] }
0x166f   :  { %6080 = vmatpush.bf16.msra.mxu0 %v10812_v62  ;;  %6094 = vmatpush.bf16.msra.mxu1 %v11004_v26  ;;  %v13203_v62 = vld [vmem:[#allocation14 + $0x6d4] sm:$0xf0]  ;;  %v10931_v26 = vld [vmem:[#allocation14 + $0x480] sm:$0xf]  ;;  %v11388_v28 = vor.u32 %v13245_v24, %v11387_v14  ;;  %v10456_v54 = vor.u32 %v13008_v5, %v10453_v13  ;;  %v10621_v43 = vld [vmem:[#allocation14 + $0x228] sm:$0xf0] }
0x1670   :  { %v11220_v15 = vor.u32 %v13203_v62, %v11219_v2  ;;  %v13014_v2 = vld [vmem:[#allocation14 + $0xf4] sm:$0xf]  ;;  %v10477_v62 = vld [vmem:[#allocation14 + $0x108] sm:$0xf0]  ;;  %v10624_v45 = vor.u32 %v13050_v60, %v10621_v43  ;;  %v13185_v14 = vld [vmem:[#allocation14 + $0x644] sm:$0xf0] }
0x1671   :  { %v10480_v42 = vor.u32 %v13014_v2, %v10477_v62  ;;  %v11339_v24 = vld [vmem:[#allocation14 + $0x7b0] sm:$0xf]  ;;  %v10405_v2 = vld [vmem:[#allocation14 + $0x78] sm:$0xf0]  ;;  %v13044_v62 = vld [vmem:[#allocation14 + $0x1e4] sm:$0xf] }
0x1672   :  { %6107 = vmatpush.bf16.msra.mxu2 %v11220_v15  ;;  %6122 = vmatpush.bf16.msra.mxu3 %v11388_v28  ;;  %v12990_v13 = vld [vmem:[#allocation14 + $0x34] sm:$0xf]  ;;  %v13032_v43 = vld [vmem:[#allocation14 + $0x184] sm:$0xf] }
0x1673   :  { %6081 = vmatpush.bf16.msra.mxu0 %v10788_v11  ;;  %6095 = vmatpush.bf16.msra.mxu1 %v10980_v37  ;;  %v10932_v11 = vor.u32 %v13131_v55, %v10931_v26  ;;  %v11195_v37 = vld [vmem:[#allocation14 + $0x690] sm:$0xf]  ;;  %v13062_v26 = vld [vmem:[#allocation14 + $0x274] sm:$0xf]  ;;  %v10669_v55 = vld [vmem:[#allocation14 + $0x288] sm:$0xf0] }
0x1674   :  { %v11196_v33 = vor.u32 %v13197_v3, %v11195_v37  ;;  %v10672_v15 = vor.u32 %v13062_v26, %v10669_v55  ;;  %v11364_v37 = vor.u32 %v13239_v63, %v11363_v1  ;;  %v10597_v55 = vld [vmem:[#allocation14 + $0x1f8] sm:$0xf0]  ;;  %v13179_v1 = vld [vmem:[#allocation14 + $0x614] sm:$0xf0]  ;;  %v11315_v63 = vld [vmem:[#allocation14 + $0x780] sm:$0xf] }
0x1675   :  { %v10600_v28 = vor.u32 %v13044_v62, %v10597_v55  ;;  %v16942_v62 = vld [vmem:[#allocation185_spill] sm:$0xff]  ;;  %v16943_v55 = vld [vmem:[#allocation186_spill] sm:$0xff] }
0x1676   :  { %6108 = vmatpush.bf16.msra.mxu2 %v11196_v33  ;;  %6123 = vmatpush.bf16.msra.mxu3 %v11364_v37  ;;  %v11147_v33 = vld [vmem:[#allocation14 + $0x630] sm:$0xf]  ;;  %v10573_v37 = vld [vmem:[#allocation14 + $0x1c8] sm:$0xf0] }
0x1677   :  { %6082 = vmatpush.bf16.msra.mxu0 %v10764_v56  ;;  %6096 = vmatpush.bf16.msra.mxu1 %v10956_v58  ;;  %v11171_v56 = vld [vmem:[#allocation14 + $0x660] sm:$0xf]  ;;  %v13191_v58 = vld [vmem:[#allocation14 + $0x674] sm:$0xf0] }
0x1678   :  { %v11172_v59 = vor.u32 %v13191_v58, %v11171_v56  ;;  %v11148_v56 = vor.u32 %v13185_v14, %v11147_v33  ;;  %v13233_v58 = vld [vmem:[#allocation14 + $0x7c4] sm:$0xf0]  ;;  %v16938_v33 = vld [vmem:[#allocation128_spill] sm:$0xff] }
0x1679   :  { %v16939_v14 = vld [vmem:[#allocation132_spill] sm:$0xff] }
0x167a   :  { %6109 = vmatpush.bf16.msra.mxu2 %v11172_v59  ;;  %v11123_v59 = vld [vmem:[#allocation14 + $0x600] sm:$0xf] }
0x167b   :  { %6083 = vmatpush.bf16.msra.mxu0 %v10740_v38  ;;  %6097 = vmatpush.bf16.msra.mxu1 %v10932_v11  ;;  %v13056_v38 = vld [vmem:[#allocation14 + $0x244] sm:$0xf]  ;;  %v10645_v11 = vld [vmem:[#allocation14 + $0x258] sm:$0xf0] }
0x167c   :  { %v10648_v3 = vor.u32 %v13056_v38, %v10645_v11  ;;  %v10381_v38 = vld [vmem:[#allocation14 + $0x48] sm:$0xf0]  ;;  %v13038_v11 = vld [vmem:[#allocation14 + $0x1b4] sm:$0xf] }
0x167e   :  { %6110 = vmatpush.bf16.msra.mxu2 %v11148_v56  ;;  %v16940_v56 = vld [vmem:[#allocation129_spill] sm:$0xff] }
0x167f   :  { %6132 = vmatpush.bf16.msrb.mxu0 %v10528_v61  ;;  %6146 = vmatpush.bf16.msrb.mxu1 %v10720_v40  ;;  %v13002_v61 = vld [vmem:[#allocation14 + $0x94] sm:$0xf]  ;;  %v10429_v40 = vld [vmem:[#allocation14 + $0xa8] sm:$0xf0] }
0x1680   :  { %v10432_v35 = vor.u32 %v13002_v61, %v10429_v40  ;;  %v12984_v61 = vld [vmem:[#allocation14 + $0x4] sm:$0xf]  ;;  %v10357_v40 = vld [vmem:[#allocation14 + $0x18] sm:$0xf0] }
0x1681   :  { %v10360_v60 = vor.u32 %v12984_v61, %v10357_v40  ;;  %v11101_v61 = vld [vmem:[#allocation14 + $0x5e8] sm:$0xf0] }
0x1683   :  { %6133 = vmatpush.bf16.msrb.mxu0 %v10504_v0  ;;  %6147 = vmatpush.bf16.msrb.mxu1 %v10696_v48  ;;  %v11340_v0 = vor.u32 %v13233_v58, %v11339_v24  ;;  %v12996_v48 = vld [vmem:[#allocation14 + $0x64] sm:$0xf]  ;;  %v1549_v24 = vadd.f32 %v16939_v14, %v16938_v33  ;;  %v16950_v33 = vld [vmem:[#allocation130_spill] sm:$0xff] }
0x1684   :  { %v10408_v26 = vor.u32 %v12996_v48, %v10405_v2  ;;  %v16941_v58 = vld [vmem:[#allocation133_spill] sm:$0xff]  ;;  %v3616_v48 = vadd.f32 %v15487_v53, %v15475_v47  ;;  %v3629_v2 = vadd.f32 %v15489_v46, %v15477_v32  ;;  %v16946_v47 = vld [vmem:[#allocation282_spill] sm:$0xff]  ;;  %v16947_v32 = vld [vmem:[#allocation283_spill] sm:$0xff] }
0x1685   :  { %6124 = vmatpush.bf16.msra.mxu3 %v11340_v0  ;;  %v1562_v0 = vadd.f32 %v16941_v58, %v16940_v56  ;;  %v16951_v14 = vld [vmem:[#allocation134_spill] sm:$0xff]  ;;  %v13164_v56 = vld [vmem:[#allocation14 + $0x5a4] sm:$0xf]  ;;  %v11077_v58 = vld [vmem:[#allocation14 + $0x5b8] sm:$0xf0] }
0x1687   :  { %6134 = vmatpush.bf16.msrb.mxu0 %v10480_v42  ;;  %6148 = vmatpush.bf16.msrb.mxu1 %v10672_v15  ;;  %v11124_v42 = vor.u32 %v13179_v1, %v11123_v59  ;;  %v13227_v15 = vld [vmem:[#allocation14 + $0x794] sm:$0xf0]  ;;  %v3832_v59 = vadd.f32 %v15552_v23, %v3616_v48  ;;  %v3833_v1 = vadd.f32 %v15554_v20, %v3629_v2  ;;  %v16953_v48 = vld [vmem:[#allocation135_spill] sm:$0xff] }
0x1688   :  { %v11316_v5 = vor.u32 %v13227_v15, %v11315_v63  ;;  %v16944_v63 = vld [vmem:[#allocation234_spill] sm:$0xff]  ;;  %v16945_v15 = vld [vmem:[#allocation235_spill] sm:$0xff] }
0x1689   :  { %6111 = vmatpush.bf16.msra.mxu2 %v11124_v42 }
0x168a   :  { %6125 = vmatpush.bf16.msra.mxu3 %v11316_v5 }
0x168b   :  { %6135 = vmatpush.bf16.msrb.mxu0 %v10456_v54  ;;  %6149 = vmatpush.bf16.msrb.mxu1 %v10648_v3  ;;  %v10384_v54 = vor.u32 %v12990_v13, %v10381_v38  ;;  %v10576_v3 = vor.u32 %v13038_v11, %v10573_v37  ;;  %v3986_v13 = vadd.f32 %v15616_v18, %v3832_v59  ;;  %v13122_v11 = vld [vmem:[#allocation14 + $0x454] sm:$0xf] }
0x168c   :  { %v3987_v38 = vadd.f32 %v15618_v50, %v3833_v1  ;;  %v3642_v37 = vadd.f32 %v15491_v29, %v15479_v52  ;;  %v3655_v18 = vadd.f32 %v15493_v49, %v15481_v4  ;;  %v13266_v59 = vld [vmem:[#allocation14 + $0x8d4] sm:$0xf] }
0x168d   :  { %v4140_v23 = vadd.f32 %v15686_v12, %v3986_v13  ;;  %v16955_v13 = vld [vmem:[#allocation188_spill] sm:$0xff] }
0x168e   :  { %v4141_v20 = vadd.f32 %v15688_v16, %v3987_v38  ;;  %v3834_v52 = vadd.f32 %v15548_v25, %v3642_v37  ;;  %v3835_v16 = vadd.f32 %v15550_v21, %v3655_v18  ;;  %v10885_v25 = vld [vmem:[#allocation14 + $0x438] sm:$0xf0]  ;;  %v13158_v37 = vld [vmem:[#allocation14 + $0x574] sm:$0xf] }
0x168f   :  { %6136 = vmatpush.bf16.msrb.mxu0 %v10432_v35  ;;  %6150 = vmatpush.bf16.msrb.mxu1 %v10624_v45  ;;  %v10549_v35 = vld [vmem:[#allocation14 + $0x198] sm:$0xf0] }
0x1690   :  { %v10552_v45 = vor.u32 %v13032_v43, %v10549_v35  ;;  %v3988_v4 = vadd.f32 %v15620_v27, %v3834_v52  ;;  %v3989_v21 = vadd.f32 %v15622_v57, %v3835_v16  ;;  %v11080_v57 = vor.u32 %v13164_v56, %v11077_v58  ;;  %v13212_v16 = vld [vmem:[#allocation14 + $0x724] sm:$0xf]  ;;  %v16962_v58 = vld [vmem:[#allocation284_spill] sm:$0xff] }
0x1692   :  { %v4142_v27 = vadd.f32 %v15682_v19, %v3988_v4  ;;  %v4143_v1 = vadd.f32 %v15684_v31, %v3989_v21  ;;  %v11029_v4 = vld [vmem:[#allocation14 + $0x558] sm:$0xf0] }
0x1693   :  { %6137 = vmatpush.bf16.msrb.mxu0 %v10408_v26  ;;  %6151 = vmatpush.bf16.msrb.mxu1 %v10600_v28  ;;  %v2053_v26 = vadd.f32 %v16942_v62, %v1549_v24  ;;  %v2054_v28 = vadd.f32 %v16943_v55, %v1562_v0  ;;  %v1601_v24 = vadd.f32 %v16951_v14, %v16950_v33  ;;  %v16952_v0 = vld [vmem:[#allocation131_spill] sm:$0xff]  ;;  %v13104_v33 = vld [vmem:[#allocation14 + $0x3c4] sm:$0xf]  ;;  %v10837_v14 = vld [vmem:[#allocation14 + $0x3d8] sm:$0xf0] }
0x1694   :  { %v1614_v2 = vadd.f32 %v16953_v48, %v16952_v0  ;;  %v16954_v62 = vld [vmem:[#allocation187_spill] sm:$0xff] }
0x1695   :  { %v2495_v42 = vadd.f32 %v16944_v63, %v2053_v26  ;;  %v2496_v5 = vadd.f32 %v16945_v15, %v2054_v28  ;;  %v2057_v26 = vadd.f32 %v16954_v62, %v1601_v24  ;;  %v13218_v55 = vld [vmem:[#allocation14 + $0x754] sm:$0xf]  ;;  %v11293_v28 = vld [vmem:[#allocation14 + $0x768] sm:$0xf0]  ;;  %v13152_v24 = vld [vmem:[#allocation14 + $0x544] sm:$0xf] }
0x1696   :  { %v13110_v15 = vld [vmem:[#allocation14 + $0x3f4] sm:$0xf]  ;;  %v2058_v38 = vadd.f32 %v16955_v13, %v1614_v2 }
0x1697   :  { %6138 = vmatpush.bf16.msrb.mxu0 %v10384_v54  ;;  %6152 = vmatpush.bf16.msrb.mxu1 %v10576_v3  ;;  %v2937_v53 = vadd.f32 %v16946_v47, %v2495_v42  ;;  %v2938_v46 = vadd.f32 %v16947_v32, %v2496_v5  ;;  %v10909_v54 = vld [vmem:[#allocation14 + $0x468] sm:$0xf0]  ;;  %v13170_v3 = vld [vmem:[#allocation14 + $0x5d4] sm:$0xf]  ;;  %v16956_v47 = vld [vmem:[#allocation236_spill] sm:$0xff]  ;;  %v3668_v32 = vadd.f32 %v15495_v39, %v15483_v44 }
0x1698   :  { %v10912_v35 = vor.u32 %v13122_v11, %v10909_v54  ;;  %v11485_v42 = vld [vmem:[#allocation14 + $0x8e8] sm:$0xf0]  ;;  %v2499_v19 = vadd.f32 %v16956_v47, %v2057_v26  ;;  %v11296_v44 = vor.u32 %v13218_v55, %v11293_v28  ;;  %v10840_v28 = vor.u32 %v13104_v33, %v10837_v14 }
0x1699   :  { %v15738_v40 = vadd.f32 %v15347_v22, %v2937_v53  ;;  %v15743_v43 = vadd.f32 %v15349_v7, %v2938_v46  ;;  %v13116_v22 = vld [vmem:[#allocation14 + $0x424] sm:$0xf]  ;;  %v10861_v5 = vld [vmem:[#allocation14 + $0x408] sm:$0xf0]  ;;  %v16957_v53 = vld [vmem:[#allocation280_spill] sm:$0xff]  ;;  %v11488_v39 = vor.u32 %v13266_v59, %v11485_v42  ;;  %v11032_v59 = vor.u32 %v13152_v24, %v11029_v4 }
0x169a   :  { %v10888_v63 = vor.u32 %v13116_v22, %v10885_v25  ;;  %v15774_v11 = vadd.f32 %v15351_v36, %v16957_v53  ;;  %v10864_v52 = vor.u32 %v13110_v15, %v10861_v5  ;;  %v11461_v22 = vld [vmem:[#allocation14 + $0x8b8] sm:$0xf0]  ;;  %v16961_v25 = vld [vmem:[#allocation237_spill] sm:$0xff]  ;;  %v2941_v21 = vadd.f32 %v16962_v58, %v2499_v19  ;;  %v11245_v26 = vld [vmem:[#allocation14 + $0x708] sm:$0xf0] }
0x169b   :  { %6139 = vmatpush.bf16.msrb.mxu0 %v10360_v60  ;;  %6153 = vmatpush.bf16.msrb.mxu1 %v10552_v45  ;;  %v11104_v45 = vor.u32 %v13170_v3, %v11101_v61  ;;  %v3681_v3 = vadd.f32 %v15497_v41, %v15485_v34  ;;  %v2500_v56 = vadd.f32 %v16961_v25, %v2058_v38  ;;  %v13098_v15 = vld [vmem:[#allocation14 + $0x394] sm:$0xf]  ;;  %v16964_v5 = vld [vmem:[#allocation48_spill] sm:$0xff]  ;;  %v16965_v38 = vld [vmem:[#allocation49_spill] sm:$0xff] }
0x169c   :  { %v15808_v13 = vadd.f32 %v16964_v5, %v2941_v21  ;;  %v11197_v14 = vld [vmem:[#allocation14 + $0x6a8] sm:$0xf0]  ;;  %v13242_v24 = vld [vmem:[#allocation14 + $0x814] sm:$0xf]  ;;  %v13030_v5 = vld [vmem:[#allocation14 + $0x16c] sm:$0xf0] }
0x169d   :  { %v11389_v4 = vld [vmem:[#allocation14 + $0x828] sm:$0xf0]  ;;  %v13086_v58 = vld [vmem:[#allocation14 + $0x334] sm:$0xf] }
0x16da   :  { %v4225_v50 = vpop.f32.mrf.mxu0  ;;  %v4238_v60 = vpop.f32.mrf.mxu1 }
0x16db   :  { %v15746_v29 = vadd.f32 %v4225_v50, %v4140_v23  ;;  %v15748_v12 = vadd.f32 %v4238_v60, %v4141_v20  ;;  %v11053_v23 = vld [vmem:[#allocation14 + $0x588] sm:$0xf0]  ;;  %v16958_v20 = vld [vmem:[#allocation281_spill] sm:$0xff]  ;;  %v3836_v60 = vadd.f32 %v15559_v51, %v3668_v32  ;;  %v3837_v51 = vadd.f32 %v15561_v6, %v3681_v3  ;;  %v13206_v6 = vld [vmem:[#allocation14 + $0x6f4] sm:$0xf] }
0x16dc   :  { %v15780_v54 = vadd.f32 %v15353_v8, %v16958_v20  ;;  %v11056_v41 = vor.u32 %v13158_v37, %v11053_v23  ;;  %v11248_v32 = vor.u32 %v13206_v6, %v11245_v26  ;;  %v11005_v37 = vld [vmem:[#allocation14 + $0x528] sm:$0xf0]  ;;  %v13200_v20 = vld [vmem:[#allocation14 + $0x6c4] sm:$0xf]  ;;  %v11221_v3 = vld [vmem:[#allocation14 + $0x6d8] sm:$0xf0]  ;;  %v11392_v26 = vor.u32 %v13242_v24, %v11389_v4 }
0x16dd   :  { %16948 = vst [vmem:[#allocation41_spill] sm:$0xff] %v15746_v29  ;;  %v15756_v7 = vpack.c.bf16 %v15746_v29, %v15738_v40  ;;  %v15760_v49 = vpack.c.bf16 %v15748_v12, %v15743_v43  ;;  %v3990_v0 = vadd.f32 %v15624_v10, %v3836_v60  ;;  %v3991_v48 = vadd.f32 %v15626_v9, %v3837_v51  ;;  %v11437_v10 = vld [vmem:[#allocation14 + $0x888] sm:$0xf0]  ;;  %v13194_v51 = vld [vmem:[#allocation14 + $0x694] sm:$0xf] }
0x16de   :  { %16949 = vst [vmem:[#allocation52_spill] sm:$0xff] %v15748_v12  ;;  %v11200_v6 = vor.u32 %v13194_v51, %v11197_v14  ;;  %v13224_v51 = vld [vmem:[#allocation14 + $0x784] sm:$0xf]  ;;  %v11317_v14 = vld [vmem:[#allocation14 + $0x798] sm:$0xf0] }
0x16df   :  { %6056 = vmatmul.bf16.vlgmr.msrb.gmra.mxu2 %v15756_v7  ;;  %6070 = vmatmul.bf16.vlgmr.msrb.gmra.mxu3 %v15760_v49  ;;  %v10915_v24 = vld [vmem:[#allocation14 + $0x458] sm:$0xf]  ;;  %v13126_v4 = vld [vmem:[#allocation14 + $0x46c] sm:$0xf0] }
0x16e0   :  { %6160 = vmatpush.bf16.msrb.mxu2 %v10912_v35  ;;  %6174 = vmatpush.bf16.msrb.mxu3 %v11104_v45  ;;  %v11269_v35 = vld [vmem:[#allocation14 + $0x738] sm:$0xf0]  ;;  %v13260_v45 = vld [vmem:[#allocation14 + $0x8a4] sm:$0xf] }
0x16e1   :  { %v4251_v46 = vpop.f32.mrf.mxu2  ;;  %v4264_v31 = vpop.f32.mrf.mxu3  ;;  %v11272_v2 = vor.u32 %v13212_v16, %v11269_v35  ;;  %v11464_v62 = vor.u32 %v13260_v45, %v11461_v22  ;;  %v13092_v16 = vld [vmem:[#allocation14 + $0x364] sm:$0xf]  ;;  %v10789_v35 = vld [vmem:[#allocation14 + $0x378] sm:$0xf0]  ;;  %v11224_v22 = vor.u32 %v13200_v20, %v11221_v3 }
0x16e2   :  { %v15784_v61 = vadd.f32 %v4251_v46, %v4142_v27  ;;  %v15786_v18 = vadd.f32 %v4264_v31, %v4143_v1  ;;  %v4227_v36 = vpop.f32.mrf.mxu0  ;;  %v4240_v50 = vpop.f32.mrf.mxu1  ;;  %v16963_v27 = vld [vmem:[#allocation285_spill] sm:$0xff]  ;;  %v13254_v1 = vld [vmem:[#allocation14 + $0x874] sm:$0xf]  ;;  %v10813_v46 = vld [vmem:[#allocation14 + $0x3a8] sm:$0xf0]  ;;  %v10792_v25 = vor.u32 %v13092_v16, %v10789_v35 }
0x16e3   :  { %v2942_v55 = vadd.f32 %v16963_v27, %v2500_v56  ;;  %v13146_v31 = vld [vmem:[#allocation14 + $0x514] sm:$0xf]  ;;  %v11440_v23 = vor.u32 %v13254_v1, %v11437_v10  ;;  %v13248_v36 = vld [vmem:[#allocation14 + $0x844] sm:$0xf]  ;;  %v11413_v50 = vld [vmem:[#allocation14 + $0x858] sm:$0xf0] }
0x16e4   :  { %16959 = vst [vmem:[#allocation53_spill] sm:$0xff] %v15784_v61  ;;  %v15791_v8 = vpack.c.bf16 %v15784_v61, %v15774_v11  ;;  %v15795_v34 = vpack.c.bf16 %v15786_v18, %v15780_v54  ;;  %6161 = vmatpush.bf16.msrb.mxu2 %v10888_v63  ;;  %6175 = vmatpush.bf16.msrb.mxu3 %v11080_v57  ;;  %v10981_v45 = vld [vmem:[#allocation14 + $0x4f8] sm:$0xf0]  ;;  %v13188_v27 = vld [vmem:[#allocation14 + $0x664] sm:$0xf] }
0x16e5   :  { %16960 = vst [vmem:[#allocation43_spill] sm:$0xff] %v15786_v18  ;;  %v4144_v63 = vadd.f32 %v15693_v17, %v3990_v0  ;;  %v4145_v57 = vadd.f32 %v15695_v30, %v3991_v48  ;;  %v15811_v47 = vadd.f32 %v16965_v38, %v2942_v55  ;;  %v11416_v33 = vor.u32 %v13248_v36, %v11413_v50  ;;  %v10765_v48 = vld [vmem:[#allocation14 + $0x348] sm:$0xf0]  ;;  %v11173_v55 = vld [vmem:[#allocation14 + $0x678] sm:$0xf0] }
0x16e6   :  { %6084 = vmatmul.bf16.vlgmr.msra.gmra.mxu0 %v15791_v8  ;;  %6098 = vmatmul.bf16.vlgmr.msra.gmra.mxu1 %v15795_v34  ;;  %v10768_v1 = vor.u32 %v13086_v58, %v10765_v48  ;;  %v11176_v38 = vor.u32 %v13188_v27, %v11173_v55  ;;  %v10699_v16 = vld [vmem:[#allocation14 + $0x2a8] sm:$0xf]  ;;  %v10916_v27 = vor.u32 %v13126_v4, %v10915_v24  ;;  %v13048_v4 = vld [vmem:[#allocation14 + $0x1fc] sm:$0xf0]  ;;  %v11141_v61 = vld [vmem:[#allocation14 + $0x628] sm:$0xf0] }
0x16e7   :  { %6188 = vmatpush.bf16.msra.mxu0 %v11296_v44  ;;  %6202 = vmatpush.bf16.msra.mxu1 %v11488_v39  ;;  %16966 = vst [vmem:[#allocation56_spill] sm:$0xff] %v15811_v47  ;;  %v10816_v39 = vor.u32 %v13098_v15, %v10813_v46  ;;  %v10531_v15 = vld [vmem:[#allocation14 + $0x158] sm:$0xf]  ;;  %v13182_v46 = vld [vmem:[#allocation14 + $0x634] sm:$0xf] }
0x16e8   :  { %6162 = vmatpush.bf16.msrb.mxu2 %v10864_v52  ;;  %6176 = vmatpush.bf16.msrb.mxu3 %v11056_v41  ;;  %v11008_v52 = vor.u32 %v13146_v31, %v11005_v37  ;;  %v13140_v41 = vld [vmem:[#allocation14 + $0x4e4] sm:$0xf]  ;;  %v11149_v31 = vld [vmem:[#allocation14 + $0x648] sm:$0xf0]  ;;  %v13230_v37 = vld [vmem:[#allocation14 + $0x7b4] sm:$0xf]  ;;  %v10532_v36 = vor.u32 %v13030_v5, %v10531_v15 }
0x16e9   :  { %v4253_v42 = vpop.f32.mrf.mxu2  ;;  %v4266_v9 = vpop.f32.mrf.mxu3  ;;  %v10984_v56 = vor.u32 %v13140_v41, %v10981_v45  ;;  %v11152_v35 = vor.u32 %v13182_v46, %v11149_v31  ;;  %v13072_v45 = vld [vmem:[#allocation14 + $0x2bc] sm:$0xf0]  ;;  %v10651_v15 = vld [vmem:[#allocation14 + $0x248] sm:$0xf]  ;;  %v11059_v46 = vld [vmem:[#allocation14 + $0x578] sm:$0xf] }
0x16ea   :  { %v4277_v19 = vpop.f32.mrf.mxu0  ;;  %v4290_v53 = vpop.f32.mrf.mxu1  ;;  %v13128_v42 = vld [vmem:[#allocation14 + $0x484] sm:$0xf]  ;;  %v10933_v9 = vld [vmem:[#allocation14 + $0x498] sm:$0xf0]  ;;  %v13060_v5 = vld [vmem:[#allocation14 + $0x25c] sm:$0xf0] }
0x16eb   :  { %6189 = vmatpush.bf16.msra.mxu0 %v11272_v2  ;;  %6203 = vmatpush.bf16.msra.mxu1 %v11464_v62  ;;  %v15813_v17 = vadd.f32 %v4277_v19, %v4144_v63  ;;  %v15815_v30 = vadd.f32 %v4290_v53, %v4145_v57  ;;  %v13134_v2 = vld [vmem:[#allocation14 + $0x4b4] sm:$0xf]  ;;  %v10957_v62 = vld [vmem:[#allocation14 + $0x4c8] sm:$0xf0]  ;;  %v13080_v63 = vld [vmem:[#allocation14 + $0x304] sm:$0xf]  ;;  %v10936_v3 = vor.u32 %v13128_v42, %v10933_v9 }
0x16ec   :  { %6163 = vmatpush.bf16.msrb.mxu2 %v10840_v28  ;;  %6177 = vmatpush.bf16.msrb.mxu3 %v11032_v59  ;;  %v13236_v28 = vld [vmem:[#allocation14 + $0x7e4] sm:$0xf]  ;;  %v11365_v59 = vld [vmem:[#allocation14 + $0x7f8] sm:$0xf0]  ;;  %v10960_v10 = vor.u32 %v13134_v2, %v10957_v62  ;;  %v10723_v53 = vld [vmem:[#allocation14 + $0x2d8] sm:$0xf]  ;;  %v11320_v2 = vor.u32 %v13224_v51, %v11317_v14 }
0x16ed   :  { %16967 = vst [vmem:[#allocation57_spill] sm:$0xff] %v15813_v17  ;;  %v15819_v60 = vpack.c.bf16 %v15813_v17, %v15808_v13  ;;  %v15823_v44 = vpack.c.bf16 %v15815_v30, %v15811_v47  ;;  %v10741_v57 = vld [vmem:[#allocation14 + $0x318] sm:$0xf0]  ;;  %v11368_v19 = vor.u32 %v13236_v28, %v11365_v59  ;;  %v13018_v62 = vld [vmem:[#allocation14 + $0x10c] sm:$0xf0] }
0x16ee   :  { %16968 = vst [vmem:[#allocation45_spill] sm:$0xff] %v15815_v30  ;;  %v10744_v20 = vor.u32 %v13080_v63, %v10741_v57  ;;  %v10891_v28 = vld [vmem:[#allocation14 + $0x428] sm:$0xf]  ;;  %v13120_v59 = vld [vmem:[#allocation14 + $0x43c] sm:$0xf0] }
0x16ef   :  { %6190 = vmatpush.bf16.msra.mxu0 %v11248_v32  ;;  %6204 = vmatpush.bf16.msra.mxu1 %v11440_v23  ;;  %v13078_v32 = vld [vmem:[#allocation14 + $0x2ec] sm:$0xf0]  ;;  %v11341_v23 = vld [vmem:[#allocation14 + $0x7c8] sm:$0xf0]  ;;  %v10459_v42 = vld [vmem:[#allocation14 + $0xc8] sm:$0xf] }
0x16f0   :  { %6112 = vmatmul.bf16.vlgmr.msra.gmra.mxu2 %v15819_v60  ;;  %6126 = vmatmul.bf16.vlgmr.msra.gmra.mxu3 %v15823_v44  ;;  %v10724_v50 = vor.u32 %v13078_v32, %v10723_v53  ;;  %v11344_v41 = vor.u32 %v13230_v37, %v11341_v23  ;;  %v13012_v9 = vld [vmem:[#allocation14 + $0xdc] sm:$0xf0]  ;;  %v10867_v53 = vld [vmem:[#allocation14 + $0x3f8] sm:$0xf]  ;;  %v13114_v32 = vld [vmem:[#allocation14 + $0x40c] sm:$0xf0]  ;;  %v10652_v23 = vor.u32 %v13060_v5, %v10651_v15 }
0x16f1   :  { %6164 = vmatpush.bf16.msrb.mxu2 %v10816_v39  ;;  %6178 = vmatpush.bf16.msrb.mxu3 %v11008_v52  ;;  %v10507_v39 = vld [vmem:[#allocation14 + $0x128] sm:$0xf]  ;;  %v13024_v52 = vld [vmem:[#allocation14 + $0x13c] sm:$0xf0]  ;;  %v13162_v31 = vld [vmem:[#allocation14 + $0x58c] sm:$0xf0]  ;;  %v10460_v37 = vor.u32 %v13012_v9, %v10459_v42 }
0x16f2   :  { %v4279_v21 = vpop.f32.mrf.mxu0  ;;  %v4292_v0 = vpop.f32.mrf.mxu1  ;;  %v10508_v58 = vor.u32 %v13024_v52, %v10507_v39  ;;  %v10868_v39 = vor.u32 %v13114_v32, %v10867_v53  ;;  %v11060_v52 = vor.u32 %v13162_v31, %v11059_v46  ;;  %v10411_v51 = vld [vmem:[#allocation14 + $0x68] sm:$0xf]  ;;  %v13000_v14 = vld [vmem:[#allocation14 + $0x7c] sm:$0xf0]  ;;  %v11299_v53 = vld [vmem:[#allocation14 + $0x758] sm:$0xf] }
0x16f3   :  { %6191 = vmatpush.bf16.msra.mxu0 %v11224_v22  ;;  %6205 = vmatpush.bf16.msra.mxu1 %v11416_v33  ;;  %v13176_v22 = vld [vmem:[#allocation14 + $0x604] sm:$0xf]  ;;  %v11125_v33 = vld [vmem:[#allocation14 + $0x618] sm:$0xf0]  ;;  %v10700_v21 = vor.u32 %v13072_v45, %v10699_v16  ;;  %v10483_v0 = vld [vmem:[#allocation14 + $0xf8] sm:$0xf] }
0x16f4   :  { %v11128_v48 = vor.u32 %v13176_v22, %v11125_v33  ;;  %v10484_v63 = vor.u32 %v13018_v62, %v10483_v0  ;;  %v10843_v16 = vld [vmem:[#allocation14 + $0x3c8] sm:$0xf]  ;;  %v13156_v45 = vld [vmem:[#allocation14 + $0x55c] sm:$0xf0]  ;;  %v11011_v0 = vld [vmem:[#allocation14 + $0x518] sm:$0xf] }
0x16f5   :  { %6165 = vmatpush.bf16.msrb.mxu2 %v10792_v25  ;;  %6179 = vmatpush.bf16.msrb.mxu3 %v10984_v56  ;;  %v11107_v25 = vld [vmem:[#allocation14 + $0x5d8] sm:$0xf]  ;;  %v13174_v56 = vld [vmem:[#allocation14 + $0x5ec] sm:$0xf0]  ;;  %v10603_v24 = vld [vmem:[#allocation14 + $0x1e8] sm:$0xf] }
0x16f6   :  { %6140 = vmatmul.bf16.vlgmr.msrb.gmra.mxu0 %v15756_v7  ;;  %6154 = vmatmul.bf16.vlgmr.msrb.gmra.mxu1 %v15760_v49  ;;  %v11108_v55 = vor.u32 %v13174_v56, %v11107_v25  ;;  %v10604_v62 = vor.u32 %v13048_v4, %v10603_v24  ;;  %v10363_v15 = vld [vmem:[#allocation14 + $0x8] sm:$0xf]  ;;  %v12988_v5 = vld [vmem:[#allocation14 + $0x1c] sm:$0xf0]  ;;  %v13222_v32 = vld [vmem:[#allocation14 + $0x76c] sm:$0xf0] }
0x16f7   :  { %6192 = vmatpush.bf16.msra.mxu0 %v11200_v6  ;;  %6206 = vmatpush.bf16.msra.mxu1 %v11392_v26  ;;  %v10675_v6 = vld [vmem:[#allocation14 + $0x278] sm:$0xf]  ;;  %v13066_v26 = vld [vmem:[#allocation14 + $0x28c] sm:$0xf0]  ;;  %v10747_v24 = vld [vmem:[#allocation14 + $0x308] sm:$0xf] }
0x16f8   :  { %v10676_v57 = vor.u32 %v13066_v26, %v10675_v6  ;;  %v10387_v6 = vld [vmem:[#allocation14 + $0x38] sm:$0xf]  ;;  %v12994_v26 = vld [vmem:[#allocation14 + $0x4c] sm:$0xf0]  ;;  %v13084_v4 = vld [vmem:[#allocation14 + $0x31c] sm:$0xf0] }
0x16f9   :  { %6166 = vmatpush.bf16.msrb.mxu2 %v10768_v1  ;;  %6180 = vmatpush.bf16.msrb.mxu3 %v10960_v10  ;;  %v11083_v1 = vld [vmem:[#allocation14 + $0x5a8] sm:$0xf]  ;;  %v13168_v10 = vld [vmem:[#allocation14 + $0x5bc] sm:$0xf0]  ;;  %v10388_v42 = vor.u32 %v12994_v26, %v10387_v6  ;;  %v10748_v6 = vor.u32 %v13084_v4, %v10747_v24  ;;  %v11165_v30 = vld [vmem:[#allocation14 + $0x658] sm:$0xf0] }
0x16fa   :  { %v13359_v18 = vld [vmem:[#allocation17 + $0x2b4] sm:$0xf0]  ;;  %v13178_v47 = vld [vmem:[#allocation14 + $0x614] sm:$0xf] }
0x16fb   :  { %6193 = vmatpush.bf16.msra.mxu0 %v11176_v38  ;;  %6207 = vmatpush.bf16.msra.mxu1 %v11368_v19  ;;  %v10892_v38 = vor.u32 %v13120_v59, %v10891_v28  ;;  %v11084_v19 = vor.u32 %v13168_v10, %v11083_v1  ;;  %v10795_v1 = vld [vmem:[#allocation14 + $0x368] sm:$0xf]  ;;  %v13096_v10 = vld [vmem:[#allocation14 + $0x37c] sm:$0xf0] }
0x16fc   :  { %v10796_v46 = vor.u32 %v13096_v10, %v10795_v1  ;;  %v11443_v1 = vld [vmem:[#allocation14 + $0x878] sm:$0xf]  ;;  %v13258_v10 = vld [vmem:[#allocation14 + $0x88c] sm:$0xf0] }
0x16fd   :  { %6167 = vmatpush.bf16.msrb.mxu2 %v10744_v20  ;;  %6181 = vmatpush.bf16.msrb.mxu3 %v10936_v3  ;;  %v10435_v20 = vld [vmem:[#allocation14 + $0x98] sm:$0xf]  ;;  %v13006_v3 = vld [vmem:[#allocation14 + $0xac] sm:$0xf0] }
0x16fe   :  { %v10436_v22 = vor.u32 %v13006_v3, %v10435_v20  ;;  %v10771_v20 = vld [vmem:[#allocation14 + $0x338] sm:$0xf]  ;;  %v13090_v3 = vld [vmem:[#allocation14 + $0x34c] sm:$0xf0] }
0x16ff   :  { %6194 = vmatpush.bf16.msra.mxu0 %v11152_v35  ;;  %6208 = vmatpush.bf16.msra.mxu1 %v11344_v41  ;;  %v13108_v35 = vld [vmem:[#allocation14 + $0x3dc] sm:$0xf0]  ;;  %v11035_v41 = vld [vmem:[#allocation14 + $0x548] sm:$0xf] }
0x1700   :  { %6168 = vmatmul.bf16.vlgmr.msrb.gmra.mxu2 %v15791_v8  ;;  %6182 = vmatmul.bf16.vlgmr.msrb.gmra.mxu3 %v15795_v34  ;;  %v10844_v25 = vor.u32 %v13108_v35, %v10843_v16  ;;  %v11036_v56 = vor.u32 %v13156_v45, %v11035_v41  ;;  %v11300_v16 = vor.u32 %v13222_v32, %v11299_v53  ;;  %v11275_v41 = vld [vmem:[#allocation14 + $0x728] sm:$0xf]  ;;  %v13216_v45 = vld [vmem:[#allocation14 + $0x73c] sm:$0xf0] }
0x1701   :  { %6216 = vmatpush.bf16.msra.mxu2 %v10532_v36  ;;  %6230 = vmatpush.bf16.msra.mxu3 %v10724_v50  ;;  %v10627_v36 = vld [vmem:[#allocation14 + $0x218] sm:$0xf]  ;;  %v13054_v50 = vld [vmem:[#allocation14 + $0x22c] sm:$0xf0] }
0x1702   :  { %v10628_v33 = vor.u32 %v13054_v50, %v10627_v36  ;;  %v10963_v36 = vld [vmem:[#allocation14 + $0x4b8] sm:$0xf]  ;;  %v13138_v50 = vld [vmem:[#allocation14 + $0x4cc] sm:$0xf0] }
0x1703   :  { %6195 = vmatpush.bf16.msra.mxu0 %v11128_v48  ;;  %6209 = vmatpush.bf16.msra.mxu1 %v11320_v2  ;;  %v13150_v48 = vld [vmem:[#allocation14 + $0x52c] sm:$0xf0]  ;;  %v10412_v2 = vor.u32 %v13000_v14, %v10411_v51  ;;  %v10964_v51 = vor.u32 %v13138_v50, %v10963_v36  ;;  %v13264_v14 = vld [vmem:[#allocation14 + $0x8bc] sm:$0xf0] }
0x1704   :  { %v11012_v59 = vor.u32 %v13150_v48, %v11011_v0  ;;  %v13075_v0 = vld [vmem:[#allocation14 + $0x2dc] sm:$0xf]  ;;  %v10725_v48 = vld [vmem:[#allocation14 + $0x2f0] sm:$0xf0] }
0x1705   :  { %6217 = vmatpush.bf16.msra.mxu2 %v10508_v58  ;;  %6231 = vmatpush.bf16.msra.mxu3 %v10700_v21  ;;  %v10819_v58 = vld [vmem:[#allocation14 + $0x398] sm:$0xf]  ;;  %v13102_v21 = vld [vmem:[#allocation14 + $0x3ac] sm:$0xf0] }
0x1706   :  { %6196 = vmatmul.bf16.vlgmr.msra.gmra.mxu0 %v15819_v60  ;;  %6210 = vmatmul.bf16.vlgmr.msra.gmra.mxu1 %v15823_v44  ;;  %v10820_v28 = vor.u32 %v13102_v21, %v10819_v58  ;;  %v13027_v58 = vld [vmem:[#allocation14 + $0x15c] sm:$0xf]  ;;  %v10533_v21 = vld [vmem:[#allocation14 + $0x170] sm:$0xf0] }
0x1707   :  { %6244 = vmatpush.bf16.msrb.mxu0 %v10916_v27  ;;  %6258 = vmatpush.bf16.msrb.mxu1 %v11108_v55  ;;  %v10579_v27 = vld [vmem:[#allocation14 + $0x1b8] sm:$0xf]  ;;  %v13042_v55 = vld [vmem:[#allocation14 + $0x1cc] sm:$0xf0] }
0x1708   :  { %v10580_v9 = vor.u32 %v13042_v55, %v10579_v27  ;;  %v11251_v27 = vld [vmem:[#allocation14 + $0x6f8] sm:$0xf]  ;;  %v13210_v55 = vld [vmem:[#allocation14 + $0x70c] sm:$0xf0] }
0x1709   :  { %6218 = vmatpush.bf16.msra.mxu2 %v10484_v63  ;;  %6232 = vmatpush.bf16.msra.mxu3 %v10676_v57  ;;  %v10987_v63 = vld [vmem:[#allocation14 + $0x4e8] sm:$0xf]  ;;  %v13144_v57 = vld [vmem:[#allocation14 + $0x4fc] sm:$0xf0] }
0x170a   :  { %v10988_v31 = vor.u32 %v13144_v57, %v10987_v63  ;;  %v13021_v63 = vld [vmem:[#allocation14 + $0x12c] sm:$0xf]  ;;  %v10509_v57 = vld [vmem:[#allocation14 + $0x140] sm:$0xf0] }
0x170b   :  { %6245 = vmatpush.bf16.msrb.mxu0 %v10892_v38  ;;  %6259 = vmatpush.bf16.msrb.mxu1 %v11084_v19  ;;  %v10555_v38 = vld [vmem:[#allocation14 + $0x188] sm:$0xf]  ;;  %v13036_v19 = vld [vmem:[#allocation14 + $0x19c] sm:$0xf0]  ;;  %v10512_v53 = vor.u32 %v13021_v63, %v10509_v57  ;;  %v11347_v63 = vld [vmem:[#allocation14 + $0x7b8] sm:$0xf] }
0x170c   :  { %v13234_v57 = vld [vmem:[#allocation14 + $0x7cc] sm:$0xf0] }
0x170d   :  { %6219 = vmatpush.bf16.msra.mxu2 %v10460_v37  ;;  %6233 = vmatpush.bf16.msra.mxu3 %v10652_v23  ;;  %v11491_v37 = vld [vmem:[#allocation14 + $0x8d8] sm:$0xf]  ;;  %v13270_v23 = vld [vmem:[#allocation14 + $0x8ec] sm:$0xf0] }
0x170e   :  { %v11492_v35 = vor.u32 %v13270_v23, %v11491_v37  ;;  %v13015_v37 = vld [vmem:[#allocation14 + $0xfc] sm:$0xf]  ;;  %v10485_v23 = vld [vmem:[#allocation14 + $0x110] sm:$0xf0] }
0x170f   :  { %6246 = vmatpush.bf16.msrb.mxu0 %v10868_v39  ;;  %6260 = vmatpush.bf16.msrb.mxu1 %v11060_v52  ;;  %v10364_v39 = vor.u32 %v12988_v5, %v10363_v15  ;;  %v10556_v52 = vor.u32 %v13036_v19, %v10555_v38  ;;  %v11252_v15 = vor.u32 %v13210_v55, %v11251_v27  ;;  %v11227_v38 = vld [vmem:[#allocation14 + $0x6c8] sm:$0xf]  ;;  %v13204_v19 = vld [vmem:[#allocation14 + $0x6dc] sm:$0xf0] }
0x1710   :  { %v11444_v5 = vor.u32 %v13258_v10, %v11443_v1  ;;  %v11228_v36 = vor.u32 %v13204_v19, %v11227_v38  ;;  %v11348_v19 = vor.u32 %v13234_v57, %v11347_v63 }
0x1711   :  { %6220 = vmatpush.bf16.msra.mxu2 %v10436_v22  ;;  %6234 = vmatpush.bf16.msra.mxu3 %v10628_v33  ;;  %v11467_v22 = vld [vmem:[#allocation14 + $0x8a8] sm:$0xf]  ;;  %v10772_v33 = vor.u32 %v13090_v3, %v10771_v20  ;;  %v13063_v20 = vld [vmem:[#allocation14 + $0x27c] sm:$0xf]  ;;  %v10677_v3 = vld [vmem:[#allocation14 + $0x290] sm:$0xf0] }
0x1713   :  { %6247 = vmatpush.bf16.msrb.mxu0 %v10844_v25  ;;  %6261 = vmatpush.bf16.msrb.mxu1 %v11036_v56  ;;  %v10939_v25 = vld [vmem:[#allocation14 + $0x488] sm:$0xf]  ;;  %v13132_v56 = vld [vmem:[#allocation14 + $0x49c] sm:$0xf0] }
0x1714   :  { %v10940_v26 = vor.u32 %v13132_v56, %v10939_v25  ;;  %v11179_v25 = vld [vmem:[#allocation14 + $0x668] sm:$0xf]  ;;  %v13192_v56 = vld [vmem:[#allocation14 + $0x67c] sm:$0xf0] }
0x1715   :  { %6221 = vmatpush.bf16.msra.mxu2 %v10412_v2  ;;  %6235 = vmatpush.bf16.msra.mxu3 %v10604_v62  ;;  %v11276_v2 = vor.u32 %v13216_v45, %v11275_v41  ;;  %v11468_v62 = vor.u32 %v13264_v14, %v11467_v22  ;;  %v11395_v41 = vld [vmem:[#allocation14 + $0x818] sm:$0xf]  ;;  %v13246_v45 = vld [vmem:[#allocation14 + $0x82c] sm:$0xf0]  ;;  %v13009_v22 = vld [vmem:[#allocation14 + $0xcc] sm:$0xf]  ;;  %v11180_v27 = vor.u32 %v13192_v56, %v11179_v25 }
0x1716   :  { %v10653_v14 = vld [vmem:[#allocation14 + $0x260] sm:$0xf0]  ;;  %v11396_v4 = vor.u32 %v13246_v45, %v11395_v41 }
0x1717   :  { %6248 = vmatpush.bf16.msrb.mxu0 %v10820_v28  ;;  %6262 = vmatpush.bf16.msrb.mxu1 %v11012_v59  ;;  %v10536_v28 = vor.u32 %v13027_v58, %v10533_v21  ;;  %v10728_v59 = vor.u32 %v13075_v0, %v10725_v48  ;;  %v11371_v0 = vld [vmem:[#allocation14 + $0x7e8] sm:$0xf]  ;;  %v13240_v48 = vld [vmem:[#allocation14 + $0x7fc] sm:$0xf0]  ;;  %v11085_v56 = vld [vmem:[#allocation14 + $0x5c0] sm:$0xf0] }
0x1718   :  { %v11372_v55 = vor.u32 %v13240_v48, %v11371_v0  ;;  %v13033_v0 = vld [vmem:[#allocation14 + $0x18c] sm:$0xf]  ;;  %v10557_v48 = vld [vmem:[#allocation14 + $0x1a0] sm:$0xf0] }
0x1719   :  { %6222 = vmatpush.bf16.msra.mxu2 %v10388_v42  ;;  %6236 = vmatpush.bf16.msra.mxu3 %v10580_v9  ;;  %v13069_v42 = vld [vmem:[#allocation14 + $0x2ac] sm:$0xf]  ;;  %v10701_v9 = vld [vmem:[#allocation14 + $0x2c0] sm:$0xf0] }
0x171a   :  { %v10704_v32 = vor.u32 %v13069_v42, %v10701_v9  ;;  %v12997_v42 = vld [vmem:[#allocation14 + $0x6c] sm:$0xf]  ;;  %v10413_v9 = vld [vmem:[#allocation14 + $0x80] sm:$0xf0] }
0x171b   :  { %6249 = vmatpush.bf16.msrb.mxu0 %v10796_v46  ;;  %6263 = vmatpush.bf16.msrb.mxu1 %v10988_v31  ;;  %v11419_v46 = vld [vmem:[#allocation14 + $0x848] sm:$0xf]  ;;  %v13252_v31 = vld [vmem:[#allocation14 + $0x85c] sm:$0xf0] }
0x171c   :  { %v11420_v50 = vor.u32 %v13252_v31, %v11419_v46  ;;  %v11323_v46 = vld [vmem:[#allocation14 + $0x788] sm:$0xf]  ;;  %v10416_v31 = vor.u32 %v12997_v42, %v10413_v9  ;;  %v13159_v42 = vld [vmem:[#allocation14 + $0x57c] sm:$0xf]  ;;  %v11061_v9 = vld [vmem:[#allocation14 + $0x590] sm:$0xf0] }
0x171d   :  { %6223 = vmatpush.bf16.msra.mxu2 %v10364_v39  ;;  %6237 = vmatpush.bf16.msra.mxu3 %v10556_v52  ;;  %v11203_v39 = vld [vmem:[#allocation14 + $0x698] sm:$0xf]  ;;  %v13198_v52 = vld [vmem:[#allocation14 + $0x6ac] sm:$0xf0] }
0x171e   :  { %v11204_v24 = vor.u32 %v13198_v52, %v11203_v39  ;;  %v12991_v39 = vld [vmem:[#allocation14 + $0x3c] sm:$0xf]  ;;  %v10389_v52 = vld [vmem:[#allocation14 + $0x50] sm:$0xf0] }
0x171f   :  { %6250 = vmatpush.bf16.msrb.mxu0 %v10772_v33  ;;  %6264 = vmatpush.bf16.msrb.mxu1 %v10964_v51  ;;  %v10461_v33 = vld [vmem:[#allocation14 + $0xe0] sm:$0xf0]  ;;  %v13057_v51 = vld [vmem:[#allocation14 + $0x24c] sm:$0xf] }
0x1720   :  { %6224 = vmatmul.bf16.vlgmr.msra.gmra.mxu2 %v15756_v7  ;;  %6238 = vmatmul.bf16.vlgmr.msra.gmra.mxu3 %v15760_v49  ;;  %v10464_v58 = vor.u32 %v13009_v22, %v10461_v33  ;;  %v10656_v21 = vor.u32 %v13057_v51, %v10653_v14  ;;  %v13117_v51 = vld [vmem:[#allocation14 + $0x42c] sm:$0xf]  ;;  %v10893_v14 = vld [vmem:[#allocation14 + $0x440] sm:$0xf0] }
0x1721   :  { %6272 = vmatpush.bf16.msrb.mxu2 %v11300_v16  ;;  %6286 = vmatpush.bf16.msrb.mxu3 %v11492_v35  ;;  %v10488_v16 = vor.u32 %v13015_v37, %v10485_v23  ;;  %v10680_v35 = vor.u32 %v13063_v20, %v10677_v3  ;;  %v13228_v23 = vld [vmem:[#allocation14 + $0x79c] sm:$0xf0]  ;;  %v13123_v20 = vld [vmem:[#allocation14 + $0x45c] sm:$0xf]  ;;  %v10917_v3 = vld [vmem:[#allocation14 + $0x470] sm:$0xf0] }
0x1722   :  { %v11324_v45 = vor.u32 %v13228_v23, %v11323_v46  ;;  %v10920_v22 = vor.u32 %v13123_v20, %v10917_v3  ;;  %v13105_v46 = vld [vmem:[#allocation14 + $0x3cc] sm:$0xf]  ;;  %v11037_v3 = vld [vmem:[#allocation14 + $0x560] sm:$0xf0] }
0x1723   :  { %6251 = vmatpush.bf16.msrb.mxu0 %v10748_v6  ;;  %6265 = vmatpush.bf16.msrb.mxu1 %v10940_v26  ;;  %v13051_v6 = vld [vmem:[#allocation14 + $0x21c] sm:$0xf]  ;;  %v10629_v26 = vld [vmem:[#allocation14 + $0x230] sm:$0xf0]  ;;  %v13153_v20 = vld [vmem:[#allocation14 + $0x54c] sm:$0xf] }
0x1724   :  { %v10632_v10 = vor.u32 %v13051_v6, %v10629_v26  ;;  %v13267_v6 = vld [vmem:[#allocation14 + $0x8dc] sm:$0xf]  ;;  %v11493_v26 = vld [vmem:[#allocation14 + $0x8f0] sm:$0xf0] }
0x1725   :  { %6273 = vmatpush.bf16.msrb.mxu2 %v11276_v2  ;;  %6287 = vmatpush.bf16.msrb.mxu3 %v11468_v62  ;;  %v13003_v2 = vld [vmem:[#allocation14 + $0x9c] sm:$0xf]  ;;  %v10437_v62 = vld [vmem:[#allocation14 + $0xb0] sm:$0xf0]  ;;  %v11496_v57 = vor.u32 %v13267_v6, %v11493_v26  ;;  %v13141_v6 = vld [vmem:[#allocation14 + $0x4ec] sm:$0xf] }
0x1726   :  { %6252 = vmatmul.bf16.vlgmr.msrb.gmra.mxu0 %v15791_v8  ;;  %6266 = vmatmul.bf16.vlgmr.msrb.gmra.mxu1 %v15795_v34  ;;  %v10440_v1 = vor.u32 %v13003_v2, %v10437_v62  ;;  %v13219_v2 = vld [vmem:[#allocation14 + $0x75c] sm:$0xf]  ;;  %v11301_v62 = vld [vmem:[#allocation14 + $0x770] sm:$0xf0]  ;;  %v10989_v26 = vld [vmem:[#allocation14 + $0x500] sm:$0xf0] }
0x1727   :  { %6300 = vmatpush.bf16.msra.mxu0 %v10536_v28  ;;  %6314 = vmatpush.bf16.msra.mxu1 %v10728_v59  ;;  %v11155_v28 = vld [vmem:[#allocation14 + $0x638] sm:$0xf]  ;;  %v13186_v59 = vld [vmem:[#allocation14 + $0x64c] sm:$0xf0]  ;;  %v11304_v63 = vor.u32 %v13219_v2, %v11301_v62 }
0x1728   :  { %v11156_v38 = vor.u32 %v13186_v59, %v11155_v28  ;;  %v10560_v59 = vor.u32 %v13033_v0, %v10557_v48  ;;  %v13093_v0 = vld [vmem:[#allocation14 + $0x36c] sm:$0xf]  ;;  %v10797_v48 = vld [vmem:[#allocation14 + $0x380] sm:$0xf0] }
0x1729   :  { %6274 = vmatpush.bf16.msrb.mxu2 %v11252_v15  ;;  %6288 = vmatpush.bf16.msrb.mxu3 %v11444_v5  ;;  %v13045_v15 = vld [vmem:[#allocation14 + $0x1ec] sm:$0xf]  ;;  %v10605_v5 = vld [vmem:[#allocation14 + $0x200] sm:$0xf0] }
0x172a   :  { %v10608_v37 = vor.u32 %v13045_v15, %v10605_v5  ;;  %v13213_v15 = vld [vmem:[#allocation14 + $0x72c] sm:$0xf]  ;;  %v11277_v5 = vld [vmem:[#allocation14 + $0x740] sm:$0xf0] }
0x172b   :  { %6301 = vmatpush.bf16.msra.mxu0 %v10512_v53  ;;  %6315 = vmatpush.bf16.msra.mxu1 %v10704_v32  ;;  %v11131_v53 = vld [vmem:[#allocation14 + $0x608] sm:$0xf]  ;;  %v13180_v32 = vld [vmem:[#allocation14 + $0x61c] sm:$0xf0] }
0x172c   :  { %v11132_v41 = vor.u32 %v13180_v32, %v11131_v53  ;;  %v11064_v32 = vor.u32 %v13159_v42, %v11061_v9 }
0x172d   :  { %6275 = vmatpush.bf16.msrb.mxu2 %v11228_v36  ;;  %6289 = vmatpush.bf16.msrb.mxu3 %v11420_v50  ;;  %v13171_v36 = vld [vmem:[#allocation14 + $0x5dc] sm:$0xf]  ;;  %v11109_v50 = vld [vmem:[#allocation14 + $0x5f0] sm:$0xf0] }
0x172e   :  { %v11112_v33 = vor.u32 %v13171_v36, %v11109_v50  ;;  %v13207_v36 = vld [vmem:[#allocation14 + $0x6fc] sm:$0xf]  ;;  %v11253_v50 = vld [vmem:[#allocation14 + $0x710] sm:$0xf0] }
0x172f   :  { %6302 = vmatpush.bf16.msra.mxu0 %v10488_v16  ;;  %6316 = vmatpush.bf16.msra.mxu1 %v10680_v35  ;;  %v13039_v16 = vld [vmem:[#allocation14 + $0x1bc] sm:$0xf]  ;;  %v10581_v35 = vld [vmem:[#allocation14 + $0x1d0] sm:$0xf0] }
0x1730   :  { %v10584_v25 = vor.u32 %v13039_v16, %v10581_v35  ;;  %v11040_v35 = vor.u32 %v13153_v20, %v11037_v3  ;;  %v13129_v20 = vld [vmem:[#allocation14 + $0x48c] sm:$0xf] }
0x1731   :  { %6276 = vmatpush.bf16.msrb.mxu2 %v11204_v24  ;;  %6290 = vmatpush.bf16.msrb.mxu3 %v11396_v4  ;;  %v13165_v24 = vld [vmem:[#allocation14 + $0x5ac] sm:$0xf]  ;;  %v10392_v4 = vor.u32 %v12991_v39, %v10389_v52  ;;  %v13255_v39 = vld [vmem:[#allocation14 + $0x87c] sm:$0xf]  ;;  %v11445_v52 = vld [vmem:[#allocation14 + $0x890] sm:$0xf0] }
0x1733   :  { %6303 = vmatpush.bf16.msra.mxu0 %v10464_v58  ;;  %6317 = vmatpush.bf16.msra.mxu1 %v10656_v21  ;;  %v12985_v58 = vld [vmem:[#allocation14 + $0xc] sm:$0xf]  ;;  %v10365_v21 = vld [vmem:[#allocation14 + $0x20] sm:$0xf0] }
0x1734   :  { %v10368_v28 = vor.u32 %v12985_v58, %v10365_v21 }
0x1735   :  { %6277 = vmatpush.bf16.msrb.mxu2 %v11180_v27  ;;  %6291 = vmatpush.bf16.msrb.mxu3 %v11372_v55  ;;  %v10896_v27 = vor.u32 %v13117_v51, %v10893_v14  ;;  %v11088_v55 = vor.u32 %v13165_v24, %v11085_v56  ;;  %v13147_v51 = vld [vmem:[#allocation14 + $0x51c] sm:$0xf]  ;;  %v11013_v14 = vld [vmem:[#allocation14 + $0x530] sm:$0xf0]  ;;  %v13201_v24 = vld [vmem:[#allocation14 + $0x6cc] sm:$0xf] }
0x1736   :  { %v11421_v56 = vld [vmem:[#allocation14 + $0x860] sm:$0xf0]  ;;  %v11016_v21 = vor.u32 %v13147_v51, %v11013_v14 }
0x1737   :  { %6304 = vmatpush.bf16.msra.mxu0 %v10440_v1  ;;  %6318 = vmatpush.bf16.msra.mxu1 %v10632_v10  ;;  %v13111_v1 = vld [vmem:[#allocation14 + $0x3fc] sm:$0xf]  ;;  %v10869_v10 = vld [vmem:[#allocation14 + $0x410] sm:$0xf0] }
0x1738   :  { %v10872_v53 = vor.u32 %v13111_v1, %v10869_v10  ;;  %v10800_v1 = vor.u32 %v13093_v0, %v10797_v48  ;;  %v10992_v10 = vor.u32 %v13141_v6, %v10989_v26  ;;  %v13073_v48 = vld [vmem:[#allocation14 + $0x2c4] sm:$0xf0]  ;;  %v13225_v6 = vld [vmem:[#allocation14 + $0x78c] sm:$0xf]  ;;  %v11325_v26 = vld [vmem:[#allocation14 + $0x7a0] sm:$0xf0] }
0x1739   :  { %6278 = vmatpush.bf16.msrb.mxu2 %v11156_v38  ;;  %6292 = vmatpush.bf16.msrb.mxu3 %v11348_v19  ;;  %v13261_v38 = vld [vmem:[#allocation14 + $0x8ac] sm:$0xf]  ;;  %v11469_v19 = vld [vmem:[#allocation14 + $0x8c0] sm:$0xf0] }
0x173a   :  { %v11472_v23 = vor.u32 %v13261_v38, %v11469_v19  ;;  %v13189_v38 = vld [vmem:[#allocation14 + $0x66c] sm:$0xf]  ;;  %v11181_v19 = vld [vmem:[#allocation14 + $0x680] sm:$0xf0] }
0x173b   :  { %6305 = vmatpush.bf16.msra.mxu0 %v10416_v31  ;;  %6319 = vmatpush.bf16.msra.mxu1 %v10608_v37  ;;  %v10845_v31 = vld [vmem:[#allocation14 + $0x3e0] sm:$0xf0]  ;;  %v11280_v37 = vor.u32 %v13213_v15, %v11277_v5  ;;  %v13135_v15 = vld [vmem:[#allocation14 + $0x4bc] sm:$0xf]  ;;  %v10965_v5 = vld [vmem:[#allocation14 + $0x4d0] sm:$0xf0]  ;;  %v11184_v3 = vor.u32 %v13189_v38, %v11181_v19 }
0x173c   :  { %v10848_v16 = vor.u32 %v13105_v46, %v10845_v31  ;;  %v10968_v31 = vor.u32 %v13135_v15, %v10965_v5  ;;  %v10683_v38 = vld [vmem:[#allocation14 + $0x280] sm:$0xf]  ;;  %v13067_v19 = vld [vmem:[#allocation14 + $0x294] sm:$0xf0] }
0x173d   :  { %6279 = vmatpush.bf16.msrb.mxu2 %v11132_v41  ;;  %6293 = vmatpush.bf16.msrb.mxu3 %v11324_v45  ;;  %v13099_v41 = vld [vmem:[#allocation14 + $0x39c] sm:$0xf]  ;;  %v10821_v45 = vld [vmem:[#allocation14 + $0x3b0] sm:$0xf0] }
0x173e   :  { %v10824_v58 = vor.u32 %v13099_v41, %v10821_v45  ;;  %v13183_v41 = vld [vmem:[#allocation14 + $0x63c] sm:$0xf]  ;;  %v11157_v45 = vld [vmem:[#allocation14 + $0x650] sm:$0xf0] }
0x173f   :  { %6306 = vmatpush.bf16.msra.mxu0 %v10392_v4  ;;  %6320 = vmatpush.bf16.msra.mxu1 %v10584_v25  ;;  %v11229_v4 = vld [vmem:[#allocation14 + $0x6e0] sm:$0xf0]  ;;  %v13249_v25 = vld [vmem:[#allocation14 + $0x84c] sm:$0xf] }
0x1740   :  { %6280 = vmatmul.bf16.vlgmr.msrb.gmra.mxu2 %v15819_v60  ;;  %6294 = vmatmul.bf16.vlgmr.msrb.gmra.mxu3 %v15823_v44  ;;  %v11232_v2 = vor.u32 %v13201_v24, %v11229_v4  ;;  %v11424_v62 = vor.u32 %v13249_v25, %v11421_v56  ;;  %v10515_v25 = vld [vmem:[#allocation14 + $0x130] sm:$0xf]  ;;  %v13025_v56 = vld [vmem:[#allocation14 + $0x144] sm:$0xf0] }
0x1741   :  { %6328 = vmatpush.bf16.msra.mxu2 %v10920_v22  ;;  %6342 = vmatpush.bf16.msra.mxu3 %v11112_v33  ;;  %v11256_v22 = vor.u32 %v13207_v36, %v11253_v50  ;;  %v11448_v33 = vor.u32 %v13255_v39, %v11445_v52  ;;  %v10941_v50 = vld [vmem:[#allocation14 + $0x4a0] sm:$0xf0]  ;;  %v10539_v39 = vld [vmem:[#allocation14 + $0x160] sm:$0xf]  ;;  %v13031_v52 = vld [vmem:[#allocation14 + $0x174] sm:$0xf0] }
0x1742   :  { %v10944_v14 = vor.u32 %v13129_v20, %v10941_v50  ;;  %v10540_v24 = vor.u32 %v13031_v52, %v10539_v39  ;;  %v10467_v20 = vld [vmem:[#allocation14 + $0xd0] sm:$0xf]  ;;  %v13061_v52 = vld [vmem:[#allocation14 + $0x264] sm:$0xf0] }
0x1743   :  { %6307 = vmatpush.bf16.msra.mxu0 %v10368_v28  ;;  %6321 = vmatpush.bf16.msra.mxu1 %v10560_v59  ;;  %v13243_v28 = vld [vmem:[#allocation14 + $0x81c] sm:$0xf]  ;;  %v11397_v59 = vld [vmem:[#allocation14 + $0x830] sm:$0xf0]  ;;  %v10659_v39 = vld [vmem:[#allocation14 + $0x250] sm:$0xf] }
0x1744   :  { %v11400_v9 = vor.u32 %v13243_v28, %v11397_v59  ;;  %v11115_v28 = vld [vmem:[#allocation14 + $0x5e0] sm:$0xf]  ;;  %v13175_v59 = vld [vmem:[#allocation14 + $0x5f4] sm:$0xf0] }
0x1745   :  { %6329 = vmatpush.bf16.msra.mxu2 %v10896_v27  ;;  %6343 = vmatpush.bf16.msra.mxu3 %v11088_v55  ;;  %v13195_v27 = vld [vmem:[#allocation14 + $0x69c] sm:$0xf]  ;;  %v11205_v55 = vld [vmem:[#allocation14 + $0x6b0] sm:$0xf0]  ;;  %v11116_v5 = vor.u32 %v13175_v59, %v11115_v28  ;;  %v10611_v28 = vld [vmem:[#allocation14 + $0x1f0] sm:$0xf] }
0x1746   :  { %6308 = vmatmul.bf16.vlgmr.msra.gmra.mxu0 %v15756_v7  ;;  %6322 = vmatmul.bf16.vlgmr.msra.gmra.mxu1 %v15760_v49  ;;  %v11208_v42 = vor.u32 %v13195_v27, %v11205_v55  ;;  %v10923_v27 = vld [vmem:[#allocation14 + $0x460] sm:$0xf]  ;;  %v13127_v55 = vld [vmem:[#allocation14 + $0x474] sm:$0xf0]  ;;  %v13049_v59 = vld [vmem:[#allocation14 + $0x204] sm:$0xf0] }
0x1747   :  { %6356 = vmatpush.bf16.msrb.mxu0 %v11304_v63  ;;  %6370 = vmatpush.bf16.msrb.mxu1 %v11496_v57  ;;  %v13087_v63 = vld [vmem:[#allocation14 + $0x33c] sm:$0xf]  ;;  %v10773_v57 = vld [vmem:[#allocation14 + $0x350] sm:$0xf0]  ;;  %v10924_v15 = vor.u32 %v13127_v55, %v10923_v27 }
0x1748   :  { %v10776_v46 = vor.u32 %v13087_v63, %v10773_v57  ;;  %v11328_v57 = vor.u32 %v13225_v6, %v11325_v26  ;;  %v10419_v6 = vld [vmem:[#allocation14 + $0x70] sm:$0xf]  ;;  %v13001_v26 = vld [vmem:[#allocation14 + $0x84] sm:$0xf0] }
0x1749   :  { %6330 = vmatpush.bf16.msra.mxu2 %v10872_v53  ;;  %6344 = vmatpush.bf16.msra.mxu3 %v11064_v32  ;;  %v13237_v53 = vld [vmem:[#allocation14 + $0x7ec] sm:$0xf]  ;;  %v11373_v32 = vld [vmem:[#allocation14 + $0x800] sm:$0xf0] }
0x174a   :  { %v11376_v36 = vor.u32 %v13237_v53, %v11373_v32  ;;  %v10899_v53 = vld [vmem:[#allocation14 + $0x430] sm:$0xf]  ;;  %v13121_v32 = vld [vmem:[#allocation14 + $0x444] sm:$0xf0] }
0x174b   :  { %6357 = vmatpush.bf16.msrb.mxu0 %v11280_v37  ;;  %6371 = vmatpush.bf16.msrb.mxu1 %v11472_v23  ;;  %v13081_v37 = vld [vmem:[#allocation14 + $0x30c] sm:$0xf]  ;;  %v10749_v23 = vld [vmem:[#allocation14 + $0x320] sm:$0xf0] }
0x174c   :  { %v10752_v51 = vor.u32 %v13081_v37, %v10749_v23  ;;  %v10684_v23 = vor.u32 %v13067_v19, %v10683_v38 }
0x174d   :  { %6331 = vmatpush.bf16.msra.mxu2 %v10848_v16  ;;  %6345 = vmatpush.bf16.msra.mxu3 %v11040_v35  ;;  %v10731_v16 = vld [vmem:[#allocation14 + $0x2e0] sm:$0xf]  ;;  %v13079_v35 = vld [vmem:[#allocation14 + $0x2f4] sm:$0xf0] }
0x174e   :  { %v10732_v4 = vor.u32 %v13079_v35, %v10731_v16  ;;  %v10875_v16 = vld [vmem:[#allocation14 + $0x400] sm:$0xf]  ;;  %v13115_v35 = vld [vmem:[#allocation14 + $0x414] sm:$0xf0] }
0x174f   :  { %6358 = vmatpush.bf16.msrb.mxu0 %v11256_v22  ;;  %6372 = vmatpush.bf16.msrb.mxu1 %v11448_v33  ;;  %v13231_v22 = vld [vmem:[#allocation14 + $0x7bc] sm:$0xf]  ;;  %v11349_v33 = vld [vmem:[#allocation14 + $0x7d0] sm:$0xf0] }
0x1750   :  { %v11352_v0 = vor.u32 %v13231_v22, %v11349_v33  ;;  %v10660_v33 = vor.u32 %v13061_v52, %v10659_v39  ;;  %v10563_v39 = vld [vmem:[#allocation14 + $0x190] sm:$0xf] }
0x1751   :  { %6332 = vmatpush.bf16.msra.mxu2 %v10824_v58  ;;  %6346 = vmatpush.bf16.msra.mxu3 %v11016_v21  ;;  %v10707_v58 = vld [vmem:[#allocation14 + $0x2b0] sm:$0xf]  ;;  %v11160_v21 = vor.u32 %v13183_v41, %v11157_v45  ;;  %v11067_v41 = vld [vmem:[#allocation14 + $0x580] sm:$0xf]  ;;  %v13163_v45 = vld [vmem:[#allocation14 + $0x594] sm:$0xf0] }
0x1753   :  { %6359 = vmatpush.bf16.msrb.mxu0 %v11232_v2  ;;  %6373 = vmatpush.bf16.msrb.mxu1 %v11424_v62  ;;  %v13177_v2 = vld [vmem:[#allocation14 + $0x60c] sm:$0xf]  ;;  %v11133_v62 = vld [vmem:[#allocation14 + $0x620] sm:$0xf0] }
0x1754   :  { %v11136_v63 = vor.u32 %v13177_v2, %v11133_v62 }
0x1755   :  { %6333 = vmatpush.bf16.msra.mxu2 %v10800_v1  ;;  %6347 = vmatpush.bf16.msra.mxu3 %v10992_v10  ;;  %v10516_v1 = vor.u32 %v13025_v56, %v10515_v25  ;;  %v10708_v10 = vor.u32 %v13073_v48, %v10707_v58  ;;  %v10635_v25 = vld [vmem:[#allocation14 + $0x220] sm:$0xf]  ;;  %v13055_v56 = vld [vmem:[#allocation14 + $0x234] sm:$0xf0]  ;;  %v10851_v58 = vld [vmem:[#allocation14 + $0x3d0] sm:$0xf] }
0x1756   :  { %v13157_v48 = vld [vmem:[#allocation14 + $0x564] sm:$0xf0]  ;;  %v10636_v62 = vor.u32 %v13055_v56, %v10635_v25 }
0x1757   :  { %6360 = vmatpush.bf16.msrb.mxu0 %v11208_v42  ;;  %6374 = vmatpush.bf16.msrb.mxu1 %v11400_v9  ;;  %v10491_v42 = vld [vmem:[#allocation14 + $0x100] sm:$0xf]  ;;  %v13019_v9 = vld [vmem:[#allocation14 + $0x114] sm:$0xf0] }
0x1758   :  { %v10492_v37 = vor.u32 %v13019_v9, %v10491_v42  ;;  %v10420_v42 = vor.u32 %v13001_v26, %v10419_v6  ;;  %v10612_v9 = vor.u32 %v13049_v59, %v10611_v28  ;;  %v13085_v28 = vld [vmem:[#allocation14 + $0x324] sm:$0xf0]  ;;  %v10947_v59 = vld [vmem:[#allocation14 + $0x490] sm:$0xf] }
0x1759   :  { %6334 = vmatpush.bf16.msra.mxu2 %v10776_v46  ;;  %6348 = vmatpush.bf16.msra.mxu3 %v10968_v31  ;;  %v11091_v46 = vld [vmem:[#allocation14 + $0x5b0] sm:$0xf]  ;;  %v13169_v31 = vld [vmem:[#allocation14 + $0x5c4] sm:$0xf0] }
0x175a   :  { %v11092_v50 = vor.u32 %v13169_v31, %v11091_v46  ;;  %v10803_v46 = vld [vmem:[#allocation14 + $0x370] sm:$0xf]  ;;  %v13097_v31 = vld [vmem:[#allocation14 + $0x384] sm:$0xf0] }
0x175b   :  { %6361 = vmatpush.bf16.msrb.mxu0 %v11184_v3  ;;  %6375 = vmatpush.bf16.msrb.mxu1 %v11376_v36  ;;  %v13013_v3 = vld [vmem:[#allocation14 + $0xe4] sm:$0xf0]  ;;  %v10900_v36 = vor.u32 %v13121_v32, %v10899_v53  ;;  %v10587_v53 = vld [vmem:[#allocation14 + $0x1c0] sm:$0xf]  ;;  %v13043_v32 = vld [vmem:[#allocation14 + $0x1d4] sm:$0xf0]  ;;  %v10804_v52 = vor.u32 %v13097_v31, %v10803_v46 }
0x175c   :  { %v10468_v22 = vor.u32 %v13013_v3, %v10467_v20  ;;  %v10588_v3 = vor.u32 %v13043_v32, %v10587_v53  ;;  %v11259_v53 = vld [vmem:[#allocation14 + $0x700] sm:$0xf]  ;;  %v13211_v32 = vld [vmem:[#allocation14 + $0x714] sm:$0xf0] }
0x175d   :  { %6335 = vmatpush.bf16.msra.mxu2 %v10752_v51  ;;  %6349 = vmatpush.bf16.msra.mxu3 %v10944_v14  ;;  %v10443_v51 = vld [vmem:[#allocation14 + $0xa0] sm:$0xf]  ;;  %v13007_v14 = vld [vmem:[#allocation14 + $0xb4] sm:$0xf0] }
0x175e   :  { %v10444_v2 = vor.u32 %v13007_v14, %v10443_v51  ;;  %v10779_v51 = vld [vmem:[#allocation14 + $0x340] sm:$0xf]  ;;  %v13091_v14 = vld [vmem:[#allocation14 + $0x354] sm:$0xf0] }
0x175f   :  { %6362 = vmatpush.bf16.msrb.mxu0 %v11160_v21  ;;  %6376 = vmatpush.bf16.msrb.mxu1 %v11352_v0  ;;  %v13109_v21 = vld [vmem:[#allocation14 + $0x3e4] sm:$0xf0]  ;;  %v11043_v0 = vld [vmem:[#allocation14 + $0x550] sm:$0xf]  ;;  %v10780_v6 = vor.u32 %v13091_v14, %v10779_v51  ;;  %v13016_v51 = vld [vmem:[#allocation14 + $0x104] sm:$0xf] }
0x1760   :  { %6336 = vmatmul.bf16.vlgmr.msra.gmra.mxu2 %v15791_v8  ;;  %6350 = vmatmul.bf16.vlgmr.msra.gmra.mxu3 %v15795_v34  ;;  %v10852_v27 = vor.u32 %v13109_v21, %v10851_v58  ;;  %v11044_v55 = vor.u32 %v13157_v48, %v11043_v0  ;;  %v11283_v0 = vld [vmem:[#allocation14 + $0x730] sm:$0xf]  ;;  %v13217_v48 = vld [vmem:[#allocation14 + $0x744] sm:$0xf0] }
0x1761   :  { %6384 = vmatpush.bf16.msrb.mxu2 %v10540_v24  ;;  %6398 = vmatpush.bf16.msrb.mxu3 %v10732_v4  ;;  %v10876_v24 = vor.u32 %v13115_v35, %v10875_v16  ;;  %v11068_v4 = vor.u32 %v13163_v45, %v11067_v41  ;;  %v13037_v35 = vld [vmem:[#allocation14 + $0x1a4] sm:$0xf0]  ;;  %v11307_v41 = vld [vmem:[#allocation14 + $0x760] sm:$0xf]  ;;  %v13223_v45 = vld [vmem:[#allocation14 + $0x774] sm:$0xf0] }
0x1762   :  { %v10564_v56 = vor.u32 %v13037_v35, %v10563_v39  ;;  %v11308_v58 = vor.u32 %v13223_v45, %v11307_v41  ;;  %v11260_v39 = vor.u32 %v13211_v32, %v11259_v53  ;;  %v13205_v35 = vld [vmem:[#allocation14 + $0x6e4] sm:$0xf0]  ;;  %v11379_v53 = vld [vmem:[#allocation14 + $0x7f0] sm:$0xf] }
0x1763   :  { %6363 = vmatpush.bf16.msrb.mxu0 %v11136_v63  ;;  %6377 = vmatpush.bf16.msrb.mxu1 %v11328_v57  ;;  %v11019_v63 = vld [vmem:[#allocation14 + $0x520] sm:$0xf]  ;;  %v13151_v57 = vld [vmem:[#allocation14 + $0x534] sm:$0xf0]  ;;  %v13241_v32 = vld [vmem:[#allocation14 + $0x804] sm:$0xf0] }
0x1764   :  { %v11020_v19 = vor.u32 %v13151_v57, %v11019_v63  ;;  %v10541_v63 = vld [vmem:[#allocation14 + $0x178] sm:$0xf0]  ;;  %v13076_v57 = vld [vmem:[#allocation14 + $0x2e4] sm:$0xf] }
0x1765   :  { %6385 = vmatpush.bf16.msrb.mxu2 %v10516_v1  ;;  %6399 = vmatpush.bf16.msrb.mxu3 %v10708_v10  ;;  %v10827_v1 = vld [vmem:[#allocation14 + $0x3a0] sm:$0xf]  ;;  %v13103_v10 = vld [vmem:[#allocation14 + $0x3b4] sm:$0xf0] }
0x1766   :  { %6364 = vmatmul.bf16.vlgmr.msrb.gmra.mxu0 %v15819_v60  ;;  %6378 = vmatmul.bf16.vlgmr.msrb.gmra.mxu1 %v15823_v44  ;;  %v10828_v38 = vor.u32 %v13103_v10, %v10827_v1  ;;  %v13133_v1 = vld [vmem:[#allocation14 + $0x4a4] sm:$0xf0]  ;;  %v13028_v10 = vld [vmem:[#allocation14 + $0x164] sm:$0xf] }
0x1767   :  { %6412 = vmatpush.bf16.msra.mxu0 %v10924_v15  ;;  %6426 = vmatpush.bf16.msra.mxu1 %v11116_v5  ;;  %v10395_v15 = vld [vmem:[#allocation14 + $0x40] sm:$0xf]  ;;  %v12995_v5 = vld [vmem:[#allocation14 + $0x54] sm:$0xf0]  ;;  %v10544_v46 = vor.u32 %v13028_v10, %v10541_v63  ;;  %v10661_v10 = vld [vmem:[#allocation14 + $0x268] sm:$0xf0]  ;;  %v15859_v63 = vpop.f32.mrf.mxu1 }
0x1768   :  { %v10396_v20 = vor.u32 %v12995_v5, %v10395_v15  ;;  %v11284_v15 = vor.u32 %v13217_v48, %v11283_v0  ;;  %v11211_v0 = vld [vmem:[#allocation14 + $0x6a0] sm:$0xf]  ;;  %v13199_v48 = vld [vmem:[#allocation14 + $0x6b4] sm:$0xf0] }
0x1769   :  { %6386 = vmatpush.bf16.msrb.mxu2 %v10492_v37  ;;  %6400 = vmatpush.bf16.msrb.mxu3 %v10684_v23  ;;  %v10995_v37 = vld [vmem:[#allocation14 + $0x4f0] sm:$0xf]  ;;  %v13145_v23 = vld [vmem:[#allocation14 + $0x504] sm:$0xf0] }
0x176a   :  { %v10996_v16 = vor.u32 %v13145_v23, %v10995_v37  ;;  %v11451_v37 = vld [vmem:[#allocation14 + $0x880] sm:$0xf]  ;;  %v13259_v23 = vld [vmem:[#allocation14 + $0x894] sm:$0xf0] }
0x176b   :  { %6413 = vmatpush.bf16.msra.mxu0 %v10900_v36  ;;  %6427 = vmatpush.bf16.msra.mxu1 %v11092_v50  ;;  %v10371_v36 = vld [vmem:[#allocation14 + $0x10] sm:$0xf]  ;;  %v12989_v50 = vld [vmem:[#allocation14 + $0x24] sm:$0xf0] }
0x176c   :  { %v10372_v25 = vor.u32 %v12989_v50, %v10371_v36  ;;  %v13070_v36 = vld [vmem:[#allocation14 + $0x2b4] sm:$0xf]  ;;  %v10709_v50 = vld [vmem:[#allocation14 + $0x2c8] sm:$0xf0] }
0x176d   :  { %6387 = vmatpush.bf16.msrb.mxu2 %v10468_v22  ;;  %6401 = vmatpush.bf16.msrb.mxu3 %v10660_v33  ;;  %v11499_v22 = vld [vmem:[#allocation14 + $0x8e0] sm:$0xf]  ;;  %v13271_v33 = vld [vmem:[#allocation14 + $0x8f4] sm:$0xf0]  ;;  %v10712_v45 = vor.u32 %v13070_v36, %v10709_v50  ;;  %v11380_v36 = vor.u32 %v13241_v32, %v11379_v53 }
0x176e   :  { %v11500_v21 = vor.u32 %v13271_v33, %v11499_v22  ;;  %v11427_v22 = vld [vmem:[#allocation14 + $0x850] sm:$0xf]  ;;  %v13253_v33 = vld [vmem:[#allocation14 + $0x864] sm:$0xf0]  ;;  %v11163_v50 = vld [vmem:[#allocation14 + $0x640] sm:$0xf] }
0x176f   :  { %6414 = vmatpush.bf16.msra.mxu0 %v10876_v24  ;;  %6428 = vmatpush.bf16.msra.mxu1 %v11068_v4  ;;  %v10971_v24 = vld [vmem:[#allocation14 + $0x4c0] sm:$0xf]  ;;  %v13139_v4 = vld [vmem:[#allocation14 + $0x4d4] sm:$0xf0] }
0x1770   :  { %v10972_v26 = vor.u32 %v13139_v4, %v10971_v24  ;;  %v10493_v24 = vld [vmem:[#allocation14 + $0x118] sm:$0xf0]  ;;  %v13064_v4 = vld [vmem:[#allocation14 + $0x284] sm:$0xf] }
0x1771   :  { %6388 = vmatpush.bf16.msrb.mxu2 %v10444_v2  ;;  %6402 = vmatpush.bf16.msrb.mxu3 %v10636_v62  ;;  %v11475_v2 = vld [vmem:[#allocation14 + $0x8b0] sm:$0xf]  ;;  %v15845_v62 = vpop.f32.mrf.mxu2 }
0x1773   :  { %6415 = vmatpush.bf16.msra.mxu0 %v10852_v27  ;;  %6429 = vmatpush.bf16.msra.mxu1 %v11044_v55  ;;  %v13265_v27 = vld [vmem:[#allocation14 + $0x8c4] sm:$0xf0]  ;;  %v10755_v55 = vld [vmem:[#allocation14 + $0x310] sm:$0xf] }
0x1774   :  { %v11476_v5 = vor.u32 %v13265_v27, %v11475_v2  ;;  %v11403_v27 = vld [vmem:[#allocation14 + $0x820] sm:$0xf] }
0x1775   :  { %6389 = vmatpush.bf16.msrb.mxu2 %v10420_v42  ;;  %6403 = vmatpush.bf16.msrb.mxu3 %v10612_v9  ;;  %v10733_v42 = vld [vmem:[#allocation14 + $0x2f8] sm:$0xf0]  ;;  %v15847_v9 = vpop.f32.mrf.mxu3 }
0x1776   :  { %v10736_v31 = vor.u32 %v13076_v57, %v10733_v42  ;;  %v11212_v57 = vor.u32 %v13199_v48, %v11211_v0  ;;  %v13181_v0 = vld [vmem:[#allocation14 + $0x624] sm:$0xf0]  ;;  %v11331_v48 = vld [vmem:[#allocation14 + $0x790] sm:$0xf] }
0x1777   :  { %6416 = vmatpush.bf16.msra.mxu0 %v10828_v38  ;;  %6430 = vmatpush.bf16.msra.mxu1 %v11020_v19  ;;  %v10756_v38 = vor.u32 %v13085_v28, %v10755_v55  ;;  %v10948_v19 = vor.u32 %v13133_v1, %v10947_v59  ;;  %v13247_v55 = vld [vmem:[#allocation14 + $0x834] sm:$0xf0]  ;;  %v13010_v28 = vld [vmem:[#allocation14 + $0xd4] sm:$0xf]  ;;  %v10469_v59 = vld [vmem:[#allocation14 + $0xe8] sm:$0xf0] }
0x1778   :  { %v13058_v1 = vld [vmem:[#allocation14 + $0x254] sm:$0xf]  ;;  %v11404_v42 = vor.u32 %v13247_v55, %v11403_v27  ;;  %v13229_v55 = vld [vmem:[#allocation14 + $0x7a4] sm:$0xf0] }
0x1779   :  { %6390 = vmatpush.bf16.msrb.mxu2 %v10396_v20  ;;  %6404 = vmatpush.bf16.msrb.mxu3 %v10588_v3  ;;  %v13022_v20 = vld [vmem:[#allocation14 + $0x134] sm:$0xf]  ;;  %v10517_v3 = vld [vmem:[#allocation14 + $0x148] sm:$0xf0]  ;;  %v15851_v14 = vpop.f32.mrf.mxu2 }
0x177a   :  { %v10520_v41 = vor.u32 %v13022_v20, %v10517_v3 }
0x177b   :  { %6417 = vmatpush.bf16.msra.mxu0 %v10804_v52  ;;  %6431 = vmatpush.bf16.msra.mxu1 %v10996_v16  ;;  %v11452_v52 = vor.u32 %v13259_v23, %v11451_v37  ;;  %v11235_v16 = vld [vmem:[#allocation14 + $0x6d0] sm:$0xf]  ;;  %v13052_v37 = vld [vmem:[#allocation14 + $0x224] sm:$0xf]  ;;  %v10637_v23 = vld [vmem:[#allocation14 + $0x238] sm:$0xf0] }
0x177d   :  { %6391 = vmatpush.bf16.msrb.mxu2 %v10372_v25  ;;  %6405 = vmatpush.bf16.msrb.mxu3 %v10564_v56  ;;  %v10685_v25 = vld [vmem:[#allocation14 + $0x298] sm:$0xf0]  ;;  %v15853_v56 = vpop.f32.mrf.mxu0  ;;  %v15857_v2 = vpop.f32.mrf.mxu3 }
0x177f   :  { %6418 = vmatpush.bf16.msra.mxu0 %v10780_v6  ;;  %6432 = vmatpush.bf16.msra.mxu1 %v10972_v26  ;;  %v10496_v6 = vor.u32 %v13016_v51, %v10493_v24  ;;  %v10688_v26 = vor.u32 %v13064_v4, %v10685_v25  ;;  %v13046_v51 = vld [vmem:[#allocation14 + $0x1f4] sm:$0xf]  ;;  %v10613_v24 = vld [vmem:[#allocation14 + $0x208] sm:$0xf0] }
0x1780   :  { %6392 = vmatmul.bf16.vlgmr.msrb.gmra.mxu2 %v15756_v7  ;;  %6406 = vmatmul.bf16.vlgmr.msrb.gmra.mxu3 %v15760_v49  ;;  %v10616_v27 = vor.u32 %v13046_v51, %v10613_v24  ;;  %v13268_v51 = vld [vmem:[#allocation14 + $0x8e4] sm:$0xf]  ;;  %v11501_v24 = vld [vmem:[#allocation14 + $0x8f8] sm:$0xf0] }
0x1781   :  { %6440 = vmatpush.bf16.msra.mxu2 %v11308_v58  ;;  %6454 = vmatpush.bf16.msra.mxu3 %v11500_v21  ;;  %v11236_v58 = vor.u32 %v13205_v35, %v11235_v16  ;;  %v11428_v21 = vor.u32 %v13253_v33, %v11427_v22  ;;  %v15861_v20 = vpop.f32.mrf.mxu2  ;;  %v10640_v35 = vor.u32 %v13052_v37, %v10637_v23  ;;  %v12998_v22 = vld [vmem:[#allocation14 + $0x74] sm:$0xf]  ;;  %v10421_v33 = vld [vmem:[#allocation14 + $0x88] sm:$0xf0] }
0x1782   :  { %v13166_v37 = vld [vmem:[#allocation14 + $0x5b4] sm:$0xf] }
0x1783   :  { %6419 = vmatpush.bf16.msra.mxu0 %v10756_v38  ;;  %6433 = vmatpush.bf16.msra.mxu1 %v10948_v19  ;;  %v10472_v38 = vor.u32 %v13010_v28, %v10469_v59  ;;  %v10664_v19 = vor.u32 %v13058_v1, %v10661_v10  ;;  %v13124_v28 = vld [vmem:[#allocation14 + $0x464] sm:$0xf]  ;;  %v10925_v59 = vld [vmem:[#allocation14 + $0x478] sm:$0xf0] }
0x1784   :  { %v13172_v1 = vld [vmem:[#allocation14 + $0x5e4] sm:$0xf]  ;;  %v11117_v10 = vld [vmem:[#allocation14 + $0x5f8] sm:$0xf0]  ;;  %v10928_v53 = vor.u32 %v13124_v28, %v10925_v59  ;;  %v11504_v59 = vor.u32 %v13268_v51, %v11501_v24 }
0x1785   :  { %6441 = vmatpush.bf16.msra.mxu2 %v11284_v15  ;;  %6455 = vmatpush.bf16.msra.mxu3 %v11476_v5  ;;  %v11187_v15 = vld [vmem:[#allocation14 + $0x670] sm:$0xf]  ;;  %v13193_v5 = vld [vmem:[#allocation14 + $0x684] sm:$0xf0]  ;;  %v15865_v4 = vpop.f32.mrf.mxu3  ;;  %v11120_v32 = vor.u32 %v13172_v1, %v11117_v10  ;;  %v13160_v1 = vld [vmem:[#allocation14 + $0x584] sm:$0xf] }
0x1786   :  { %6420 = vmatmul.bf16.vlgmr.msra.gmra.mxu0 %v15791_v8  ;;  %6434 = vmatmul.bf16.vlgmr.msra.gmra.mxu1 %v15795_v34  ;;  %v11188_v3 = vor.u32 %v13193_v5, %v11187_v15  ;;  %v13040_v15 = vld [vmem:[#allocation14 + $0x1c4] sm:$0xf]  ;;  %v10589_v5 = vld [vmem:[#allocation14 + $0x1d8] sm:$0xf0] }
0x1787   :  { %6468 = vmatpush.bf16.msrb.mxu0 %v10544_v46  ;;  %6482 = vmatpush.bf16.msrb.mxu1 %v10736_v31  ;;  %v13004_v46 = vld [vmem:[#allocation14 + $0xa4] sm:$0xf]  ;;  %v10445_v31 = vld [vmem:[#allocation14 + $0xb8] sm:$0xf0] }
0x1788   :  { %v10448_v16 = vor.u32 %v13004_v46, %v10445_v31  ;;  %v13118_v46 = vld [vmem:[#allocation14 + $0x434] sm:$0xf]  ;;  %v10901_v31 = vld [vmem:[#allocation14 + $0x448] sm:$0xf0]  ;;  %v11069_v10 = vld [vmem:[#allocation14 + $0x598] sm:$0xf0] }
0x1789   :  { %6442 = vmatpush.bf16.msra.mxu2 %v11260_v39  ;;  %6456 = vmatpush.bf16.msra.mxu3 %v11452_v52  ;;  %v13187_v39 = vld [vmem:[#allocation14 + $0x654] sm:$0xf0]  ;;  %v15863_v52 = vpop.f32.mrf.mxu0  ;;  %v15869_v23 = vpop.f32.mrf.mxu2  ;;  %v13100_v51 = vld [vmem:[#allocation14 + $0x3a4] sm:$0xf]  ;;  %v10829_v24 = vld [vmem:[#allocation14 + $0x3b8] sm:$0xf0] }
0x178a   :  { %v11164_v25 = vor.u32 %v13187_v39, %v11163_v50  ;;  %v11093_v50 = vld [vmem:[#allocation14 + $0x5c8] sm:$0xf0]  ;;  %v12986_v39 = vld [vmem:[#allocation14 + $0x14] sm:$0xf] }
0x178b   :  { %6469 = vmatpush.bf16.msrb.mxu0 %v10520_v41  ;;  %6483 = vmatpush.bf16.msrb.mxu1 %v10712_v45  ;;  %v11355_v41 = vld [vmem:[#allocation14 + $0x7c0] sm:$0xf]  ;;  %v13235_v45 = vld [vmem:[#allocation14 + $0x7d4] sm:$0xf0] }
0x178d   :  { %6443 = vmatpush.bf16.msra.mxu2 %v11236_v58  ;;  %6457 = vmatpush.bf16.msra.mxu3 %v11428_v21  ;;  %v11356_v58 = vor.u32 %v13235_v45, %v11355_v41  ;;  %v11139_v21 = vld [vmem:[#allocation14 + $0x610] sm:$0xf]  ;;  %v13034_v41 = vld [vmem:[#allocation14 + $0x194] sm:$0xf]  ;;  %v10565_v45 = vld [vmem:[#allocation14 + $0x1a8] sm:$0xf0] }
0x178f   :  { %6470 = vmatpush.bf16.msrb.mxu0 %v10496_v6  ;;  %6484 = vmatpush.bf16.msrb.mxu1 %v10688_v26  ;;  %v15867_v6 = vpop.f32.mrf.mxu1  ;;  %v10424_v26 = vor.u32 %v12998_v22, %v10421_v33  ;;  %v13220_v22 = vld [vmem:[#allocation14 + $0x764] sm:$0xf]  ;;  %v11309_v33 = vld [vmem:[#allocation14 + $0x778] sm:$0xf0] }
0x1790   :  { %v11312_v28 = vor.u32 %v13220_v22, %v11309_v33 }
0x1791   :  { %6444 = vmatpush.bf16.msra.mxu2 %v11212_v57  ;;  %6458 = vmatpush.bf16.msra.mxu3 %v11404_v42  ;;  %v12992_v57 = vld [vmem:[#allocation14 + $0x44] sm:$0xf]  ;;  %v10397_v42 = vld [vmem:[#allocation14 + $0x58] sm:$0xf0] }
0x1793   :  { %6471 = vmatpush.bf16.msrb.mxu0 %v10472_v38  ;;  %6485 = vmatpush.bf16.msrb.mxu1 %v10664_v19  ;;  %v11140_v38 = vor.u32 %v13181_v0, %v11139_v21  ;;  %v11332_v19 = vor.u32 %v13229_v55, %v11331_v48  ;;  %v11096_v21 = vor.u32 %v13166_v37, %v11093_v50  ;;  %v13154_v37 = vld [vmem:[#allocation14 + $0x554] sm:$0xf]  ;;  %v15879_v50 = vpop.f32.mrf.mxu2 }
0x1794   :  { %v10568_v48 = vor.u32 %v13034_v41, %v10565_v45  ;;  %v11453_v41 = vld [vmem:[#allocation14 + $0x898] sm:$0xf0] }
0x1795   :  { %6445 = vmatpush.bf16.msra.mxu2 %v11188_v3  ;;  %6459 = vmatpush.bf16.msra.mxu3 %v11380_v36  ;;  %v10400_v3 = vor.u32 %v12992_v57, %v10397_v42  ;;  %v10592_v36 = vor.u32 %v13040_v15, %v10589_v5  ;;  %v13214_v57 = vld [vmem:[#allocation14 + $0x734] sm:$0xf]  ;;  %v11285_v42 = vld [vmem:[#allocation14 + $0x748] sm:$0xf0] }
0x1796   :  { %v13262_v15 = vld [vmem:[#allocation14 + $0x8b4] sm:$0xf]  ;;  %v11477_v5 = vld [vmem:[#allocation14 + $0x8c8] sm:$0xf0] }
0x1797   :  { %6472 = vmatpush.bf16.msrb.mxu0 %v10448_v16  ;;  %6486 = vmatpush.bf16.msrb.mxu1 %v10640_v35  ;;  %v10373_v16 = vld [vmem:[#allocation14 + $0x28] sm:$0xf0]  ;;  %v15871_v35 = vpop.f32.mrf.mxu0  ;;  %v15875_v55 = vpop.f32.mrf.mxu1 }
0x1798   :  { %v10376_v0 = vor.u32 %v12986_v39, %v10373_v16  ;;  %v11261_v39 = vld [vmem:[#allocation14 + $0x718] sm:$0xf0]  ;;  %v13256_v16 = vld [vmem:[#allocation14 + $0x884] sm:$0xf] }
0x1799   :  { %6446 = vmatpush.bf16.msra.mxu2 %v11164_v25  ;;  %6460 = vmatpush.bf16.msra.mxu3 %v11356_v58  ;;  %v15873_v25 = vpop.f32.mrf.mxu3  ;;  %v10904_v58 = vor.u32 %v13118_v46, %v10901_v31  ;;  %v11288_v46 = vor.u32 %v13214_v57, %v11285_v42  ;;  %v11480_v31 = vor.u32 %v13262_v15, %v11477_v5  ;;  %v13094_v57 = vld [vmem:[#allocation14 + $0x374] sm:$0xf]  ;;  %v10805_v42 = vld [vmem:[#allocation14 + $0x388] sm:$0xf0] }
0x179b   :  { %6473 = vmatpush.bf16.msrb.mxu0 %v10424_v26  ;;  %6487 = vmatpush.bf16.msrb.mxu1 %v10616_v27  ;;  %v13112_v26 = vld [vmem:[#allocation14 + $0x404] sm:$0xf]  ;;  %v10877_v27 = vld [vmem:[#allocation14 + $0x418] sm:$0xf0] }
0x179d   :  { %6447 = vmatpush.bf16.msra.mxu2 %v11140_v38  ;;  %6461 = vmatpush.bf16.msra.mxu3 %v11332_v19  ;;  %v10880_v38 = vor.u32 %v13112_v26, %v10877_v27  ;;  %v11072_v19 = vor.u32 %v13160_v1, %v11069_v10  ;;  %v11021_v26 = vld [vmem:[#allocation14 + $0x538] sm:$0xf0]  ;;  %v13202_v27 = vld [vmem:[#allocation14 + $0x6d4] sm:$0xf] }
0x179f   :  { %6474 = vmatpush.bf16.msrb.mxu0 %v10400_v3  ;;  %6488 = vmatpush.bf16.msrb.mxu1 %v10592_v36  ;;  %v11045_v3 = vld [vmem:[#allocation14 + $0x568] sm:$0xf0]  ;;  %v13208_v36 = vld [vmem:[#allocation14 + $0x704] sm:$0xf]  ;;  %v15881_v45 = vpop.f32.mrf.mxu0  ;;  %v15887_v1 = vpop.f32.mrf.mxu1 }
0x17a0   :  { %6448 = vmatmul.bf16.vlgmr.msra.gmra.mxu2 %v15819_v60  ;;  %6462 = vmatmul.bf16.vlgmr.msra.gmra.mxu3 %v15823_v44  ;;  %v11048_v33 = vor.u32 %v13154_v37, %v11045_v3  ;;  %v15889_v37 = vpop.f32.mrf.mxu2  ;;  %v10808_v3 = vor.u32 %v13094_v57, %v10805_v42  ;;  %v13130_v57 = vld [vmem:[#allocation14 + $0x494] sm:$0xf] }
0x17a1   :  { %6496 = vmatpush.bf16.msrb.mxu2 %v10928_v53  ;;  %6510 = vmatpush.bf16.msrb.mxu3 %v11120_v32  ;;  %v13106_v53 = vld [vmem:[#allocation14 + $0x3d4] sm:$0xf]  ;;  %v10853_v32 = vld [vmem:[#allocation14 + $0x3e8] sm:$0xf0] }
0x17a2   :  { %v10856_v22 = vor.u32 %v13106_v53, %v10853_v32  ;;  %v13196_v53 = vld [vmem:[#allocation14 + $0x6a4] sm:$0xf]  ;;  %v11213_v32 = vld [vmem:[#allocation14 + $0x6b8] sm:$0xf0] }
0x17a3   :  { %6475 = vmatpush.bf16.msrb.mxu0 %v10376_v0  ;;  %6489 = vmatpush.bf16.msrb.mxu1 %v10568_v48  ;;  %v11456_v0 = vor.u32 %v13256_v16, %v11453_v41  ;;  %v13148_v48 = vld [vmem:[#allocation14 + $0x524] sm:$0xf]  ;;  %v10781_v16 = vld [vmem:[#allocation14 + $0x358] sm:$0xf0] }
0x17a4   :  { %v11024_v10 = vor.u32 %v13148_v48, %v11021_v26  ;;  %v13238_v48 = vld [vmem:[#allocation14 + $0x7f4] sm:$0xf]  ;;  %v11381_v26 = vld [vmem:[#allocation14 + $0x808] sm:$0xf0] }
0x17a5   :  { %6497 = vmatpush.bf16.msrb.mxu2 %v10904_v58  ;;  %6511 = vmatpush.bf16.msrb.mxu3 %v11096_v21  ;;  %v15885_v58 = vpop.f32.mrf.mxu3  ;;  %v11264_v21 = vor.u32 %v13208_v36, %v11261_v39  ;;  %v13088_v39 = vld [vmem:[#allocation14 + $0x344] sm:$0xf] }
0x17a6   :  { %6476 = vmatmul.bf16.vlgmr.msrb.gmra.mxu0 %v15756_v7  ;;  %6490 = vmatmul.bf16.vlgmr.msrb.gmra.mxu1 %v15760_v49  ;;  %v11429_v7 = vld [vmem:[#allocation14 + $0x868] sm:$0xf0]  ;;  %v10832_v49 = vor.u32 %v13100_v51, %v10829_v24  ;;  %v13136_v51 = vld [vmem:[#allocation14 + $0x4c4] sm:$0xf]  ;;  %v10973_v24 = vld [vmem:[#allocation14 + $0x4d8] sm:$0xf0] }
0x17a7   :  { %6524 = vmatpush.bf16.msra.mxu0 %v11312_v28  ;;  %6538 = vmatpush.bf16.msra.mxu1 %v11504_v59  ;;  %v11237_v28 = vld [vmem:[#allocation14 + $0x6e8] sm:$0xf0]  ;;  %v13250_v59 = vld [vmem:[#allocation14 + $0x854] sm:$0xf]  ;;  %v15891_v41 = vpop.f32.mrf.mxu0  ;;  %v15897_v42 = vpop.f32.mrf.mxu1 }
0x17a8   :  { %v11240_v15 = vor.u32 %v13202_v27, %v11237_v28  ;;  %v11432_v5 = vor.u32 %v13250_v59, %v11429_v7  ;;  %v15893_v27 = vld [vmem:[#allocation16] sm:$0x3f]  ;;  %v10784_v59 = vor.u32 %v13088_v39, %v10781_v16  ;;  %v10976_v7 = vor.u32 %v13136_v51, %v10973_v24  ;;  %v15900_v16 = vpop.f32.mrf.mxu2 }
0x17a9   :  { %6498 = vmatpush.bf16.msrb.mxu2 %v10880_v38  ;;  %6512 = vmatpush.bf16.msrb.mxu3 %v11072_v19  ;;  %v13142_v38 = vld [vmem:[#allocation14 + $0x4f4] sm:$0xf]  ;;  %v10997_v19 = vld [vmem:[#allocation14 + $0x508] sm:$0xf0]  ;;  %v4596_v39 = vperm.slane %v15893_v27, 0 }
0x17aa   :  { %v11000_v36 = vor.u32 %v13142_v38, %v10997_v19  ;;  %v10949_v38 = vld [vmem:[#allocation14 + $0x4a8] sm:$0xf0]  ;;  %v11675_v19 = vld [vmem:[#allocation17 + $0x150] sm:$0xf] }
0x17ab   :  { %6525 = vmatpush.bf16.msra.mxu0 %v11288_v46  ;;  %6539 = vmatpush.bf16.msra.mxu1 %v11480_v31  ;;  %v13244_v46 = vld [vmem:[#allocation14 + $0x824] sm:$0xf]  ;;  %v11405_v31 = vld [vmem:[#allocation14 + $0x838] sm:$0xf0] }
0x17ad   :  { %6499 = vmatpush.bf16.msrb.mxu2 %v10856_v22  ;;  %6513 = vmatpush.bf16.msrb.mxu3 %v11048_v33  ;;  %v11216_v22 = vor.u32 %v13196_v53, %v11213_v32  ;;  %v11408_v33 = vor.u32 %v13244_v46, %v11405_v31  ;;  %v15895_v28 = vpop.f32.mrf.mxu3  ;;  %v13317_v53 = vld [vmem:[#allocation17 + $0x164] sm:$0xf0]  ;;  %v11867_v32 = vld [vmem:[#allocation17 + $0x2d0] sm:$0xf]  ;;  %v13184_v31 = vld [vmem:[#allocation14 + $0x644] sm:$0xf] }
0x17ae   :  { %v13365_v46 = vld [vmem:[#allocation17 + $0x2e4] sm:$0xf0] }
0x17af   :  { %6526 = vmatpush.bf16.msra.mxu0 %v11264_v21  ;;  %6540 = vmatpush.bf16.msra.mxu1 %v11456_v0  ;;  %v13190_v21 = vld [vmem:[#allocation14 + $0x674] sm:$0xf]  ;;  %v11189_v0 = vld [vmem:[#allocation14 + $0x688] sm:$0xf0]  ;;  %v11868_v24 = vor.u32 %v13365_v46, %v11867_v32  ;;  %v15902_v29 = vpop.f32.mrf.mxu0  ;;  %v11144_v32 = vor.u32 %v13178_v47, %v11141_v61  ;;  %v12227_v61 = vld [vmem:[#allocation17 + $0x5a0] sm:$0xf] }
0x17b0   :  { %v13455_v47 = vld [vmem:[#allocation17 + $0x5b4] sm:$0xf0] }
0x17b1   :  { %6500 = vmatpush.bf16.msrb.mxu2 %v10832_v49  ;;  %6514 = vmatpush.bf16.msrb.mxu3 %v11024_v10  ;;  %v13082_v49 = vld [vmem:[#allocation14 + $0x314] sm:$0xf]  ;;  %v10757_v10 = vld [vmem:[#allocation14 + $0x328] sm:$0xf0] }
0x17b2   :  { %v10760_v51 = vor.u32 %v13082_v49, %v10757_v10  ;;  %v12059_v49 = vld [vmem:[#allocation17 + $0x450] sm:$0xf]  ;;  %v6058_v10 = vadd.f32 %v15845_v62, %v4596_v39 }
0x17b3   :  { %6527 = vmatpush.bf16.msra.mxu0 %v11240_v15  ;;  %6541 = vmatpush.bf16.msra.mxu1 %v11432_v5  ;;  %v11192_v15 = vor.u32 %v13190_v21, %v11189_v0  ;;  %v11384_v5 = vor.u32 %v13238_v48, %v11381_v26  ;;  %v11651_v21 = vld [vmem:[#allocation17 + $0x120] sm:$0xf]  ;;  %v13311_v0 = vld [vmem:[#allocation17 + $0x134] sm:$0xf0]  ;;  %v11168_v26 = vor.u32 %v13184_v31, %v11165_v30  ;;  %v11627_v31 = vld [vmem:[#allocation17 + $0xf0] sm:$0xf] }
0x17b4   :  { %v11843_v48 = vld [vmem:[#allocation17 + $0x2a0] sm:$0xf]  ;;  %v6060_v30 = vadd.f32 %v15851_v14, %v4596_v39  ;;  %v11819_v39 = vld [vmem:[#allocation17 + $0x270] sm:$0xf] }
0x17b5   :  { %6501 = vmatpush.bf16.msrb.mxu2 %v10808_v3  ;;  %6515 = vmatpush.bf16.msrb.mxu3 %v11000_v36  ;;  %v13232_v3 = vld [vmem:[#allocation14 + $0x7c4] sm:$0xf]  ;;  %v11357_v36 = vld [vmem:[#allocation14 + $0x7d8] sm:$0xf0]  ;;  %v15904_v12 = vpop.f32.mrf.mxu3 }
0x17b6   :  { %v11360_v17 = vor.u32 %v13232_v3, %v11357_v36  ;;  %v13305_v3 = vld [vmem:[#allocation17 + $0x104] sm:$0xf0]  ;;  %v15910_v36 = vpop.f32.mrf.mxu1 }
0x17b7   :  { %6528 = vmatpush.bf16.msra.mxu0 %v11216_v22  ;;  %6542 = vmatpush.bf16.msra.mxu1 %v11408_v33  ;;  %v10952_v22 = vor.u32 %v13130_v57, %v10949_v38  ;;  %v11676_v33 = vor.u32 %v13317_v53, %v11675_v19  ;;  %v13413_v57 = vld [vmem:[#allocation17 + $0x464] sm:$0xf0]  ;;  %v4597_v38 = vperm.slane %v15893_v27, 1  ;;  %v11652_v19 = vor.u32 %v13311_v0, %v11651_v21  ;;  %v6227_v21 = vpop.f32.mrf.mxu2 }
0x17b8   :  { %v11844_v53 = vor.u32 %v13359_v18, %v11843_v48  ;;  %v12060_v14 = vor.u32 %v13413_v57, %v12059_v49  ;;  %v6072_v18 = vadd.f32 %v15847_v9, %v6058_v10  ;;  %v11603_v48 = vld [vmem:[#allocation17 + $0xc0] sm:$0xf]  ;;  %v13347_v49 = vld [vmem:[#allocation17 + $0x254] sm:$0xf0]  ;;  %v12228_v10 = vor.u32 %v13455_v47, %v12227_v61 }
0x17b9   :  { %6502 = vmatpush.bf16.msrb.mxu2 %v10784_v59  ;;  %6516 = vmatpush.bf16.msrb.mxu3 %v10976_v7  ;;  %v13226_v59 = vld [vmem:[#allocation14 + $0x794] sm:$0xf]  ;;  %v11333_v7 = vld [vmem:[#allocation14 + $0x7a8] sm:$0xf0]  ;;  %v6144_v62 = vadd.f32 %v15881_v45, %v4597_v38  ;;  %v6142_v45 = vadd.f32 %v15871_v35, %v4597_v38 }
0x17ba   :  { %v11336_v46 = vor.u32 %v13226_v59, %v11333_v7  ;;  %v15919_v59 = vpop.f32.mrf.mxu0  ;;  %v12011_v35 = vld [vmem:[#allocation17 + $0x3f0] sm:$0xf]  ;;  %v6086_v57 = vadd.f32 %v15853_v56, %v6072_v18 }
0x17bb   :  { %6529 = vmatpush.bf16.msra.mxu0 %v11192_v15  ;;  %6543 = vmatpush.bf16.msra.mxu1 %v11384_v5  ;;  %v12251_v15 = vld [vmem:[#allocation17 + $0x5d0] sm:$0xf]  ;;  %v13461_v5 = vld [vmem:[#allocation17 + $0x5e4] sm:$0xf0]  ;;  %v6158_v9 = vadd.f32 %v15887_v1, %v6144_v62 }
0x17bc   :  { %v11579_v56 = vld [vmem:[#allocation17 + $0x90] sm:$0xf]  ;;  %v6100_v18 = vadd.f32 %v15859_v63, %v6086_v57 }
0x17bd   :  { %6503 = vmatpush.bf16.msrb.mxu2 %v10760_v51  ;;  %6517 = vmatpush.bf16.msrb.mxu3 %v10952_v22  ;;  %v13353_v51 = vld [vmem:[#allocation17 + $0x284] sm:$0xf0]  ;;  %v12035_v22 = vld [vmem:[#allocation17 + $0x420] sm:$0xf]  ;;  %v6172_v1 = vadd.f32 %v15889_v37, %v6158_v9  ;;  %v11963_v63 = vld [vmem:[#allocation17 + $0x390] sm:$0xf] }
0x17be   :  { %v11820_v0 = vor.u32 %v13353_v51, %v11819_v39  ;;  %v13341_v37 = vld [vmem:[#allocation17 + $0x224] sm:$0xf0]  ;;  %v11987_v39 = vld [vmem:[#allocation17 + $0x3c0] sm:$0xf]  ;;  %v13395_v51 = vld [vmem:[#allocation17 + $0x3d4] sm:$0xf0] }
0x17bf   :  { %6530 = vmatpush.bf16.msra.mxu0 %v11168_v26  ;;  %6544 = vmatpush.bf16.msra.mxu1 %v11360_v17  ;;  %v13407_v17 = vld [vmem:[#allocation17 + $0x434] sm:$0xf0]  ;;  %v12155_v9 = vld [vmem:[#allocation17 + $0x510] sm:$0xf] }
0x17c0   :  { %6504 = vmatmul.bf16.vlgmr.msrb.gmra.mxu2 %v15791_v8  ;;  %6518 = vmatmul.bf16.vlgmr.msrb.gmra.mxu3 %v15795_v34  ;;  %v4598_v8 = vperm.slane %v15893_v27, 2  ;;  %v11628_v34 = vor.u32 %v13305_v3, %v11627_v31  ;;  %v13299_v26 = vld [vmem:[#allocation17 + $0xd4] sm:$0xf0]  ;;  %v12036_v7 = vor.u32 %v13407_v17, %v12035_v22  ;;  %v13293_v3 = vld [vmem:[#allocation17 + $0xa4] sm:$0xf0] }
0x17c1   :  { %8312 = vmatpush.bf16.msra.mxu2 %v11676_v33  ;;  %8326 = vmatpush.bf16.msra.mxu3 %v11868_v24  ;;  %v12252_v33 = vor.u32 %v13461_v5, %v12251_v15  ;;  %v6074_v24 = vadd.f32 %v15857_v2, %v6060_v30  ;;  %v11795_v2 = vld [vmem:[#allocation17 + $0x240] sm:$0xf]  ;;  %v13401_v15 = vld [vmem:[#allocation17 + $0x404] sm:$0xf0]  ;;  %v12203_v5 = vld [vmem:[#allocation17 + $0x570] sm:$0xf]  ;;  %v11580_v47 = vor.u32 %v13293_v3, %v11579_v56 }
0x17c2   :  { %v13449_v30 = vld [vmem:[#allocation17 + $0x584] sm:$0xf0]  ;;  %v11796_v31 = vor.u32 %v13347_v49, %v11795_v2  ;;  %v12179_v22 = vld [vmem:[#allocation17 + $0x540] sm:$0xf]  ;;  %v6114_v2 = vadd.f32 %v15861_v20, %v6100_v18 }
0x17c3   :  { %6531 = vmatpush.bf16.msra.mxu0 %v11144_v32  ;;  %6545 = vmatpush.bf16.msra.mxu1 %v11336_v46  ;;  %v6088_v38 = vadd.f32 %v15863_v52, %v6074_v24  ;;  %v6228_v32 = vadd.f32 %v6227_v21, %v4598_v8  ;;  %v11604_v46 = vor.u32 %v13299_v26, %v11603_v48  ;;  %v11555_v21 = vld [vmem:[#allocation17 + $0x60] sm:$0xf]  ;;  %v13335_v48 = vld [vmem:[#allocation17 + $0x1f4] sm:$0xf0]  ;;  %v13389_v26 = vld [vmem:[#allocation17 + $0x3a4] sm:$0xf0] }
0x17c4   :  { %v12012_v52 = vor.u32 %v13401_v15, %v12011_v35  ;;  %v13329_v20 = vld [vmem:[#allocation17 + $0x1c4] sm:$0xf0]  ;;  %v6128_v56 = vadd.f32 %v15865_v4, %v6114_v2  ;;  %v11915_v4 = vld [vmem:[#allocation17 + $0x330] sm:$0xf]  ;;  %v13419_v2 = vld [vmem:[#allocation17 + $0x494] sm:$0xf0] }
0x17c5   :  { %8313 = vmatpush.bf16.msra.mxu2 %v11652_v19  ;;  %8327 = vmatpush.bf16.msra.mxu3 %v11844_v53  ;;  %v6156_v19 = vadd.f32 %v15875_v55, %v6142_v45  ;;  %v6241_v53 = vpop.f32.mrf.mxu3  ;;  %v11771_v55 = vld [vmem:[#allocation17 + $0x210] sm:$0xf]  ;;  %v6102_v17 = vadd.f32 %v15867_v6, %v6088_v38  ;;  %v15934_v45 = vpop.f32.mrf.mxu2  ;;  %v13281_v38 = vld [vmem:[#allocation17 + $0x44] sm:$0xf0] }
0x17c6   :  { %6532 = vmatmul.bf16.vlgmr.msra.gmra.mxu0 %v15819_v60  ;;  %6546 = vmatmul.bf16.vlgmr.msra.gmra.mxu1 %v15823_v44  ;;  %v12204_v60 = vor.u32 %v13449_v30, %v12203_v5  ;;  %v6226_v44 = vadd.f32 %v15900_v16, %v4598_v8  ;;  %v6242_v61 = vadd.f32 %v6241_v53, %v6228_v32  ;;  %v11531_v30 = vld [vmem:[#allocation17 + $0x30] sm:$0xf]  ;;  %v11939_v53 = vld [vmem:[#allocation17 + $0x360] sm:$0xf]  ;;  %v13383_v32 = vld [vmem:[#allocation17 + $0x374] sm:$0xf0] }
0x17c7   :  { %8340 = vmatpush.bf16.msrb.mxu0 %v12060_v14  ;;  %8354 = vmatpush.bf16.msrb.mxu1 %v12252_v33  ;;  %v6170_v62 = vadd.f32 %v15879_v50, %v6156_v19  ;;  %v15928_v14 = vpop.f32.mrf.mxu1  ;;  %v13443_v33 = vld [vmem:[#allocation17 + $0x554] sm:$0xf0]  ;;  %v6186_v50 = vadd.f32 %v15895_v28, %v6172_v1  ;;  %v11772_v24 = vor.u32 %v13341_v37, %v11771_v55  ;;  %v11723_v1 = vld [vmem:[#allocation17 + $0x1b0] sm:$0xf] }
0x17c8   :  { %v11988_v8 = vor.u32 %v13395_v51, %v11987_v39  ;;  %v12180_v6 = vor.u32 %v13443_v33, %v12179_v22  ;;  %v6240_v28 = vadd.f32 %v15904_v12, %v6226_v44  ;;  %v6116_v49 = vadd.f32 %v15869_v23, %v6102_v17  ;;  %v13275_v44 = vld [vmem:[#allocation17 + $0x14] sm:$0xf0]  ;;  %v11699_v22 = vld [vmem:[#allocation17 + $0x180] sm:$0xf]  ;;  %v13377_v17 = vld [vmem:[#allocation17 + $0x344] sm:$0xf0] }
0x17c9   :  { %8314 = vmatpush.bf16.msra.mxu2 %v11628_v34  ;;  %8328 = vmatpush.bf16.msra.mxu3 %v11820_v0  ;;  %v13287_v34 = vld [vmem:[#allocation17 + $0x74] sm:$0xf0]  ;;  %v6184_v16 = vadd.f32 %v15885_v58, %v6170_v62  ;;  %v11747_v0 = vld [vmem:[#allocation17 + $0x1e0] sm:$0xf]  ;;  %v6200_v35 = vadd.f32 %v15902_v29, %v6186_v50  ;;  %v11964_v19 = vor.u32 %v13389_v26, %v11963_v63  ;;  %v12107_v50 = vld [vmem:[#allocation17 + $0x4b0] sm:$0xf] }
0x17ca   :  { %v11556_v15 = vor.u32 %v13287_v34, %v11555_v21  ;;  %v11748_v5 = vor.u32 %v13335_v48, %v11747_v0  ;;  %v6254_v29 = vadd.f32 %v15919_v59, %v6240_v28  ;;  %v6130_v3 = vadd.f32 %v15873_v25, %v6116_v49  ;;  %v13323_v33 = vld [vmem:[#allocation17 + $0x194] sm:$0xf0]  ;;  %v11891_v63 = vld [vmem:[#allocation17 + $0x300] sm:$0xf]  ;;  %v11677_v49 = vld [vmem:[#allocation17 + $0x168] sm:$0xf0] }
0x17cb   :  { %8341 = vmatpush.bf16.msrb.mxu0 %v12036_v7  ;;  %8355 = vmatpush.bf16.msrb.mxu1 %v12228_v10  ;;  %v13437_v7 = vld [vmem:[#allocation17 + $0x524] sm:$0xf0]  ;;  %v6255_v10 = vpop.f32.mrf.mxu0  ;;  %v6198_v12 = vadd.f32 %v15891_v41, %v6184_v16  ;;  %v6214_v62 = vadd.f32 %v15910_v36, %v6200_v35  ;;  %v11532_v55 = vor.u32 %v13281_v38, %v11531_v30  ;;  %v6552_v16 = vmax.f32 %v6128_v56, 0.0  ;;  %v11869_v35 = vld [vmem:[#allocation17 + $0x2e8] sm:$0xf0] }
0x17cc   :  { %v6256_v57 = vadd.f32 %v6255_v10, %v6242_v61  ;;  %v12156_v23 = vor.u32 %v13437_v7, %v12155_v9  ;;  %v11724_v37 = vor.u32 %v13329_v20, %v11723_v1  ;;  %v11940_v51 = vor.u32 %v13383_v32, %v11939_v53  ;;  %v13425_v61 = vld [vmem:[#allocation17 + $0x4c4] sm:$0xf0]  ;;  %v13314_v9 = vld [vmem:[#allocation17 + $0x154] sm:$0xf]  ;;  %v12083_v7 = vld [vmem:[#allocation17 + $0x480] sm:$0xf] }
0x17cd   :  { %8315 = vmatpush.bf16.msra.mxu2 %v11604_v46  ;;  %8329 = vmatpush.bf16.msra.mxu3 %v11796_v31  ;;  %v15941_v58 = vpop.f32.mrf.mxu3  ;;  %v12131_v46 = vld [vmem:[#allocation17 + $0x4e0] sm:$0xf]  ;;  %v13431_v31 = vld [vmem:[#allocation17 + $0x4f4] sm:$0xf0]  ;;  %v6283_v39 = vpop.f32.mrf.mxu2  ;;  %v6212_v59 = vadd.f32 %v15897_v42, %v6198_v12  ;;  %v6268_v36 = vadd.f32 %v15928_v14, %v6254_v29  ;;  %v11700_v34 = vor.u32 %v13323_v33, %v11699_v22  ;;  %v12443_v30 = vld [vmem:[#allocation17 + $0x750] sm:$0xf] }
0x17ce   :  { %v12132_v25 = vor.u32 %v13431_v31, %v12131_v46  ;;  %v11916_v48 = vor.u32 %v13377_v17, %v11915_v4  ;;  %v12108_v14 = vor.u32 %v13425_v61, %v12107_v50  ;;  %v13509_v38 = vld [vmem:[#allocation17 + $0x764] sm:$0xf0]  ;;  %v11680_v53 = vor.u32 %v13314_v9, %v11677_v49  ;;  %v11653_v32 = vld [vmem:[#allocation17 + $0x138] sm:$0xf0]  ;;  %v12419_v56 = vld [vmem:[#allocation17 + $0x720] sm:$0xf] }
0x17cf   :  { %8342 = vmatpush.bf16.msrb.mxu0 %v12012_v52  ;;  %8356 = vmatpush.bf16.msrb.mxu1 %v12204_v60  ;;  %v6269_v52 = vpop.f32.mrf.mxu1  ;;  %v11507_v60 = vld [vmem:[#allocation17] sm:$0xf]  ;;  %v6282_v21 = vadd.f32 %v15934_v45, %v6268_v36  ;;  %v13362_v45 = vld [vmem:[#allocation17 + $0x2d4] sm:$0xf]  ;;  %v12444_v1 = vor.u32 %v13509_v38, %v12443_v30  ;;  %v11845_v46 = vld [vmem:[#allocation17 + $0x2b8] sm:$0xf0] }
0x17d0   :  { %v6270_v41 = vadd.f32 %v6269_v52, %v6256_v57  ;;  %v11508_v42 = vor.u32 %v13275_v44, %v11507_v60  ;;  %v11872_v29 = vor.u32 %v13362_v45, %v11869_v35  ;;  %v13350_v44 = vld [vmem:[#allocation17 + $0x274] sm:$0xf]  ;;  %v13497_v22 = vld [vmem:[#allocation17 + $0x704] sm:$0xf0]  ;;  %v13296_v17 = vld [vmem:[#allocation17 + $0xc4] sm:$0xf] }
0x17d1   :  { %8316 = vmatpush.bf16.msra.mxu2 %v11580_v47  ;;  %8330 = vmatpush.bf16.msra.mxu3 %v11772_v24  ;;  %v6558_v47 = vmax.f32 %v6130_v3, 0.0  ;;  %v6559_v24 = vmax.f32 %v6214_v62, 0.0  ;;  %v13503_v3 = vld [vmem:[#allocation17 + $0x734] sm:$0xf0]  ;;  %v4599_v62 = vperm.slane %v15893_v27, 3 }
0x17d2   :  { %v6284_v18 = vadd.f32 %v6283_v39, %v6270_v41  ;;  %v12420_v52 = vor.u32 %v13503_v3, %v12419_v56  ;;  %v11629_v39 = vld [vmem:[#allocation17 + $0x108] sm:$0xf0]  ;;  %v11605_v61 = vld [vmem:[#allocation17 + $0xd8] sm:$0xf0]  ;;  %v13485_v49 = vld [vmem:[#allocation17 + $0x6a4] sm:$0xf0] }
0x17d3   :  { %8343 = vmatpush.bf16.msrb.mxu0 %v11988_v8  ;;  %8357 = vmatpush.bf16.msrb.mxu1 %v12180_v6  ;;  %v6553_v8 = vmax.f32 %v6212_v59, 0.0  ;;  %v13371_v6 = vld [vmem:[#allocation17 + $0x314] sm:$0xf0]  ;;  %v6309_v28 = vpop.f32.mrf.mxu0  ;;  %v15951_v10 = vpack.c.bf16 %v6558_v47, %v6552_v16  ;;  %v11821_v59 = vld [vmem:[#allocation17 + $0x288] sm:$0xf0] }
0x17d4   :  { %v11892_v12 = vor.u32 %v13371_v6, %v11891_v63  ;;  %v11824_v50 = vor.u32 %v13350_v44, %v11821_v59  ;;  %v13344_v47 = vld [vmem:[#allocation17 + $0x244] sm:$0xf]  ;;  %v13290_v63 = vld [vmem:[#allocation17 + $0x94] sm:$0xf]  ;;  %v11773_v9 = vld [vmem:[#allocation17 + $0x228] sm:$0xf0] }
0x17d5   :  { %8317 = vmatpush.bf16.msra.mxu2 %v11556_v15  ;;  %8331 = vmatpush.bf16.msra.mxu3 %v11748_v5  ;;  %v6297_v0 = vpop.f32.mrf.mxu3  ;;  %v15953_v57 = vpack.c.bf16 %v6559_v24, %v6553_v8  ;;  %v6296_v15 = vadd.f32 %v15941_v58, %v6282_v21  ;;  %v13356_v58 = vld [vmem:[#allocation17 + $0x2a4] sm:$0xf]  ;;  %v11797_v24 = vld [vmem:[#allocation17 + $0x258] sm:$0xf0]  ;;  %v12371_v21 = vld [vmem:[#allocation17 + $0x6c0] sm:$0xf] }
0x17d6   :  { %v6298_v26 = vadd.f32 %v6297_v0, %v6284_v18  ;;  %v11848_v60 = vor.u32 %v13356_v58, %v11845_v46  ;;  %v11800_v6 = vor.u32 %v13344_v47, %v11797_v24  ;;  %v13284_v30 = vld [vmem:[#allocation17 + $0x64] sm:$0xf]  ;;  %v13473_v44 = vld [vmem:[#allocation17 + $0x644] sm:$0xf0]  ;;  %v12275_v47 = vld [vmem:[#allocation17 + $0x600] sm:$0xf] }
0x17d7   :  { %8344 = vmatpush.bf16.msrb.mxu0 %v11964_v19  ;;  %8358 = vmatpush.bf16.msrb.mxu1 %v12156_v23  ;;  %v6323_v5 = vpop.f32.mrf.mxu1  ;;  %v12084_v19 = vor.u32 %v13419_v2, %v12083_v7  ;;  %v13308_v23 = vld [vmem:[#allocation17 + $0x124] sm:$0xf]  ;;  %v6554_v31 = vmax.f32 %v6296_v15, 0.0  ;;  %v12347_v2 = vld [vmem:[#allocation17 + $0x690] sm:$0xf] }
0x17d8   :  { %v6560_v20 = vmax.f32 %v6298_v26, 0.0  ;;  %v13338_v26 = vld [vmem:[#allocation17 + $0x214] sm:$0xf]  ;;  %v12348_v35 = vor.u32 %v13485_v49, %v12347_v2  ;;  %v13467_v24 = vld [vmem:[#allocation17 + $0x614] sm:$0xf0] }
0x17d9   :  { %8318 = vmatpush.bf16.msra.mxu2 %v11532_v55  ;;  %8332 = vmatpush.bf16.msra.mxu3 %v11724_v37  ;;  %v11656_v55 = vor.u32 %v13308_v23, %v11653_v32  ;;  %v13302_v37 = vld [vmem:[#allocation17 + $0xf4] sm:$0xf]  ;;  %v11776_v38 = vor.u32 %v13338_v26, %v11773_v9  ;;  %v13479_v23 = vld [vmem:[#allocation17 + $0x674] sm:$0xf0]  ;;  %v12421_v2 = vld [vmem:[#allocation17 + $0x738] sm:$0xf0] }
0x17da   :  { %v15959_v41 = vpack.c.bf16 %v6560_v20, %v6554_v31  ;;  %v11632_v18 = vor.u32 %v13302_v37, %v11629_v39  ;;  %v11749_v20 = vld [vmem:[#allocation17 + $0x1f8] sm:$0xf0]  ;;  %v13278_v31 = vld [vmem:[#allocation17 + $0x34] sm:$0xf]  ;;  %v11725_v37 = vld [vmem:[#allocation17 + $0x1c8] sm:$0xf0] }
0x17db   :  { %8345 = vmatpush.bf16.msrb.mxu0 %v11940_v51  ;;  %8359 = vmatpush.bf16.msrb.mxu1 %v12132_v25  ;;  %v12395_v51 = vld [vmem:[#allocation17 + $0x6f0] sm:$0xf]  ;;  %v6311_v33 = vpop.f32.mrf.mxu0  ;;  %v6310_v25 = vadd.f32 %v6309_v28, %v4599_v62  ;;  %v11581_v28 = vld [vmem:[#allocation17 + $0xa8] sm:$0xf0] }
0x17dc   :  { %v12396_v4 = vor.u32 %v13497_v22, %v12395_v51  ;;  %v6312_v45 = vadd.f32 %v6311_v33, %v4599_v62  ;;  %v13272_v51 = vld [vmem:[#allocation17 + $0x4] sm:$0xf]  ;;  %v12635_v49 = vld [vmem:[#allocation17 + $0x8d0] sm:$0xf] }
0x17dd   :  { %8319 = vmatpush.bf16.msra.mxu2 %v11508_v42  ;;  %8333 = vmatpush.bf16.msra.mxu3 %v11700_v34  ;;  %v13491_v42 = vld [vmem:[#allocation17 + $0x6d4] sm:$0xf0]  ;;  %v6324_v34 = vadd.f32 %v6323_v5, %v6310_v25  ;;  %v11584_v5 = vor.u32 %v13290_v63, %v11581_v28  ;;  %v11509_v25 = vld [vmem:[#allocation17 + $0x18] sm:$0xf0] }
0x17de   :  { %v12372_v16 = vor.u32 %v13491_v42, %v12371_v21  ;;  %v13410_v21 = vld [vmem:[#allocation17 + $0x454] sm:$0xf] }
0x17df   :  { %8346 = vmatpush.bf16.msrb.mxu0 %v11916_v48  ;;  %8360 = vmatpush.bf16.msrb.mxu1 %v12108_v14  ;;  %v6325_v36 = vpop.f32.mrf.mxu1  ;;  %v11608_v48 = vor.u32 %v13296_v17, %v11605_v61  ;;  %v11701_v17 = vld [vmem:[#allocation17 + $0x198] sm:$0xf0] }
0x17e0   :  { %8320 = vmatmul.bf16.vlgmr.msra.gmra.mxu2 %v15951_v10  ;;  %8334 = vmatmul.bf16.vlgmr.msra.gmra.mxu3 %v15953_v57 }
0x17e1   :  { %8368 = vmatpush.bf16.msrb.mxu2 %v12444_v1  ;;  %v13332_v1 = vld [vmem:[#allocation17 + $0x1e4] sm:$0xf] }
0x17e2   :  { %v11752_v56 = vor.u32 %v13332_v1, %v11749_v20 }
0x17e3   :  { %8347 = vmatpush.bf16.msrb.mxu0 %v11892_v12  ;;  %8361 = vmatpush.bf16.msrb.mxu1 %v12084_v19  ;;  %v6337_v8 = vpop.f32.mrf.mxu2  ;;  %v6351_v0 = vpop.f32.mrf.mxu3  ;;  %v11557_v19 = vld [vmem:[#allocation17 + $0x78] sm:$0xf0] }
0x17e4   :  { %v6338_v14 = vadd.f32 %v6337_v8, %v6324_v34  ;;  %v6365_v7 = vpop.f32.mrf.mxu0  ;;  %v11560_v46 = vor.u32 %v13284_v30, %v11557_v19  ;;  %v13506_v34 = vld [vmem:[#allocation17 + $0x754] sm:$0xf]  ;;  %v12276_v8 = vor.u32 %v13467_v24, %v12275_v47  ;;  %v12037_v30 = vld [vmem:[#allocation17 + $0x438] sm:$0xf0]  ;;  %v13539_v47 = vld [vmem:[#allocation17 + $0x854] sm:$0xf0] }
0x17e5   :  { %8369 = vmatpush.bf16.msrb.mxu2 %v12420_v52  ;;  %v11533_v52 = vld [vmem:[#allocation17 + $0x48] sm:$0xf0]  ;;  %v13386_v24 = vld [vmem:[#allocation17 + $0x394] sm:$0xf] }
0x17e6   :  { %8348 = vmatmul.bf16.vlgmr.msrb.gmra.mxu0 %v15959_v41  ;;  %v6352_v12 = vadd.f32 %v6351_v0, %v6338_v14  ;;  %v12061_v0 = vld [vmem:[#allocation17 + $0x468] sm:$0xf0] }
0x17e7   :  { %8396 = vmatpush.bf16.msra.mxu0 %v11680_v53  ;;  %8410 = vmatpush.bf16.msra.mxu1 %v11872_v29  ;;  %v6379_v15 = vpop.f32.mrf.mxu1  ;;  %v12323_v53 = vld [vmem:[#allocation17 + $0x660] sm:$0xf]  ;;  %v6326_v29 = vadd.f32 %v6325_v36, %v6312_v45  ;;  %v12064_v63 = vor.u32 %v13410_v21, %v12061_v0  ;;  %v13557_v45 = vld [vmem:[#allocation17 + $0x8e4] sm:$0xf0] }
0x17e8   :  { %v12324_v32 = vor.u32 %v13479_v23, %v12323_v53  ;;  %v6366_v3 = vadd.f32 %v6365_v7, %v6352_v12  ;;  %v13500_v7 = vld [vmem:[#allocation17 + $0x724] sm:$0xf]  ;;  %v12637_v12 = vld [vmem:[#allocation17 + $0x8e8] sm:$0xf0]  ;;  %v13494_v53 = vld [vmem:[#allocation17 + $0x6f4] sm:$0xf] }
0x17e9   :  { %8370 = vmatpush.bf16.msrb.mxu2 %v12396_v4  ;;  %v11536_v4 = vor.u32 %v13278_v31, %v11533_v52  ;;  %v12424_v20 = vor.u32 %v13500_v7, %v12421_v2  ;;  %v12397_v23 = vld [vmem:[#allocation17 + $0x708] sm:$0xf0]  ;;  %v11941_v7 = vld [vmem:[#allocation17 + $0x378] sm:$0xf0]  ;;  %v13530_v2 = vld [vmem:[#allocation17 + $0x814] sm:$0xf] }
0x17ea   :  { %v12013_v31 = vld [vmem:[#allocation17 + $0x408] sm:$0xf0] }
0x17eb   :  { %8397 = vmatpush.bf16.msra.mxu0 %v11656_v55  ;;  %8411 = vmatpush.bf16.msra.mxu1 %v11848_v60  ;;  %v6339_v58 = vpop.f32.mrf.mxu2  ;;  %v13326_v55 = vld [vmem:[#allocation17 + $0x1b4] sm:$0xf]  ;;  %v6353_v39 = vpop.f32.mrf.mxu3  ;;  %v12299_v60 = vld [vmem:[#allocation17 + $0x630] sm:$0xf] }
0x17ec   :  { %v6340_v62 = vadd.f32 %v6339_v58, %v6326_v29  ;;  %v12300_v22 = vor.u32 %v13473_v44, %v12299_v60  ;;  %v6367_v33 = vpop.f32.mrf.mxu0  ;;  %v11728_v36 = vor.u32 %v13326_v55, %v11725_v37  ;;  %v12611_v29 = vld [vmem:[#allocation17 + $0x8a0] sm:$0xf]  ;;  %v13398_v58 = vld [vmem:[#allocation17 + $0x3f4] sm:$0xf]  ;;  %v12400_v55 = vor.u32 %v13494_v53, %v12397_v23  ;;  %v13488_v37 = vld [vmem:[#allocation17 + $0x6c4] sm:$0xf] }
0x17ed   :  { %8371 = vmatpush.bf16.msrb.mxu2 %v12372_v16  ;;  %v12445_v16 = vld [vmem:[#allocation17 + $0x768] sm:$0xf0]  ;;  %v12587_v60 = vld [vmem:[#allocation17 + $0x870] sm:$0xf]  ;;  %v13545_v44 = vld [vmem:[#allocation17 + $0x884] sm:$0xf0] }
0x17ee   :  { %v6354_v59 = vadd.f32 %v6353_v39, %v6340_v62  ;;  %v12448_v9 = vor.u32 %v13506_v34, %v12445_v16  ;;  %v12016_v62 = vor.u32 %v13398_v58, %v12013_v31  ;;  %v12373_v39 = vld [vmem:[#allocation17 + $0x6d8] sm:$0xf0]  ;;  %v13536_v34 = vld [vmem:[#allocation17 + $0x844] sm:$0xf]  ;;  %v11917_v53 = vld [vmem:[#allocation17 + $0x348] sm:$0xf0] }
0x17ef   :  { %8398 = vmatpush.bf16.msra.mxu0 %v11632_v18  ;;  %8412 = vmatpush.bf16.msra.mxu1 %v11824_v50  ;;  %v13320_v18 = vld [vmem:[#allocation17 + $0x184] sm:$0xf]  ;;  %v6380_v50 = vadd.f32 %v6379_v15, %v6366_v3  ;;  %v6381_v42 = vpop.f32.mrf.mxu1  ;;  %v12613_v3 = vld [vmem:[#allocation17 + $0x8b8] sm:$0xf0] }
0x17f0   :  { %v6368_v61 = vadd.f32 %v6367_v33, %v6354_v59  ;;  %v11704_v14 = vor.u32 %v13320_v18, %v11701_v17  ;;  %v13392_v59 = vld [vmem:[#allocation17 + $0x3c4] sm:$0xf]  ;;  %v13542_v33 = vld [vmem:[#allocation17 + $0x874] sm:$0xf]  ;;  %v12565_v16 = vld [vmem:[#allocation17 + $0x858] sm:$0xf0] }
0x17f1   :  { %8372 = vmatpush.bf16.msrb.mxu2 %v12348_v35  ;;  %v6555_v28 = vmax.f32 %v6380_v50, 0.0  ;;  %v13404_v35 = vld [vmem:[#allocation17 + $0x424] sm:$0xf]  ;;  %v13482_v17 = vld [vmem:[#allocation17 + $0x694] sm:$0xf] }
0x17f2   :  { %v12040_v19 = vor.u32 %v13404_v35, %v12037_v30  ;;  %v12349_v50 = vld [vmem:[#allocation17 + $0x6a8] sm:$0xf0]  ;;  %v13470_v30 = vld [vmem:[#allocation17 + $0x634] sm:$0xf]  ;;  %v13524_v23 = vld [vmem:[#allocation17 + $0x7e4] sm:$0xf] }
0x17f3   :  { %8399 = vmatpush.bf16.msra.mxu0 %v11608_v48  ;;  %8413 = vmatpush.bf16.msra.mxu1 %v11800_v6  ;;  %v6382_v48 = vadd.f32 %v6381_v42, %v6368_v61  ;;  %v11512_v6 = vor.u32 %v13272_v51, %v11509_v25  ;;  %v12588_v51 = vor.u32 %v13545_v44, %v12587_v60  ;;  %v12563_v61 = vld [vmem:[#allocation17 + $0x840] sm:$0xf]  ;;  %v11965_v42 = vld [vmem:[#allocation17 + $0x3a8] sm:$0xf0]  ;;  %v13464_v58 = vld [vmem:[#allocation17 + $0x604] sm:$0xf] }
0x17f4   :  { %v12376_v25 = vor.u32 %v13488_v37, %v12373_v39  ;;  %v12564_v21 = vor.u32 %v13539_v47, %v12563_v61  ;;  %v11968_v0 = vor.u32 %v13386_v24, %v11965_v42  ;;  %v12491_v37 = vld [vmem:[#allocation17 + $0x7b0] sm:$0xf]  ;;  %v13521_v39 = vld [vmem:[#allocation17 + $0x7c4] sm:$0xf0]  ;;  %v13368_v60 = vld [vmem:[#allocation17 + $0x304] sm:$0xf] }
0x17f5   :  { %8373 = vmatpush.bf16.msrb.mxu2 %v12324_v32  ;;  %v6561_v26 = vmax.f32 %v6382_v48, 0.0  ;;  %v13551_v32 = vld [vmem:[#allocation17 + $0x8b4] sm:$0xf0]  ;;  %v12568_v48 = vor.u32 %v13536_v34, %v12565_v16  ;;  %v12492_v44 = vor.u32 %v13521_v39, %v12491_v37  ;;  %v12467_v61 = vld [vmem:[#allocation17 + $0x780] sm:$0xf] }
0x17f6   :  { %v13515_v47 = vld [vmem:[#allocation17 + $0x794] sm:$0xf0]  ;;  %v13512_v24 = vld [vmem:[#allocation17 + $0x784] sm:$0xf]  ;;  %v12469_v42 = vld [vmem:[#allocation17 + $0x798] sm:$0xf0] }
0x17f7   :  { %8400 = vmatpush.bf16.msra.mxu0 %v11584_v5  ;;  %8414 = vmatpush.bf16.msra.mxu1 %v11776_v38  ;;  %v15962_v15 = vpack.c.bf16 %v6561_v26, %v6555_v28  ;;  %v12636_v5 = vor.u32 %v13557_v45, %v12635_v49  ;;  %v13554_v38 = vld [vmem:[#allocation17 + $0x8d4] sm:$0xf]  ;;  %v13533_v28 = vld [vmem:[#allocation17 + $0x824] sm:$0xf0]  ;;  %v13380_v26 = vld [vmem:[#allocation17 + $0x364] sm:$0xf] }
0x17f8   :  { %v12640_v1 = vor.u32 %v13554_v38, %v12637_v12  ;;  %v12541_v49 = vld [vmem:[#allocation17 + $0x828] sm:$0xf0]  ;;  %v11944_v35 = vor.u32 %v13380_v26, %v11941_v7  ;;  %v12515_v12 = vld [vmem:[#allocation17 + $0x7e0] sm:$0xf]  ;;  %v13458_v34 = vld [vmem:[#allocation17 + $0x5d4] sm:$0xf] }
0x17f9   :  { %8374 = vmatpush.bf16.msrb.mxu2 %v12300_v22  ;;  %8362 = vmatmul.bf16.vlgmr.msrb.gmra.mxu1 %v15962_v15  ;;  %v11989_v22 = vld [vmem:[#allocation17 + $0x3d8] sm:$0xf0]  ;;  %v12301_v38 = vld [vmem:[#allocation17 + $0x648] sm:$0xf0]  ;;  %v13402_v26 = vld [vmem:[#allocation17 + $0x40c] sm:$0xf0] }
0x17fa   :  { %8382 = vmatpush.bf16.msrb.mxu3 %v12636_v5  ;;  %v12544_v5 = vor.u32 %v13530_v2, %v12541_v49  ;;  %v12253_v16 = vld [vmem:[#allocation17 + $0x5e8] sm:$0xf0]  ;;  %v13452_v7 = vld [vmem:[#allocation17 + $0x5a4] sm:$0xf]  ;;  %v12229_v2 = vld [vmem:[#allocation17 + $0x5b8] sm:$0xf0] }
0x17fb   :  { %8401 = vmatpush.bf16.msra.mxu0 %v11560_v46  ;;  %8415 = vmatpush.bf16.msra.mxu1 %v11752_v56  ;;  %v12612_v46 = vor.u32 %v13551_v32, %v12611_v29  ;;  %v13548_v56 = vld [vmem:[#allocation17 + $0x8a4] sm:$0xf]  ;;  %v12517_v29 = vld [vmem:[#allocation17 + $0x7f8] sm:$0xf0]  ;;  %v12304_v32 = vor.u32 %v13470_v30, %v12301_v38  ;;  %v13456_v30 = vld [vmem:[#allocation17 + $0x5bc] sm:$0xf0] }
0x17fc   :  { %v12616_v52 = vor.u32 %v13548_v56, %v12613_v3  ;;  %v12520_v31 = vor.u32 %v13524_v23, %v12517_v29  ;;  %v13446_v29 = vld [vmem:[#allocation17 + $0x574] sm:$0xf]  ;;  %v11971_v37 = vld [vmem:[#allocation17 + $0x398] sm:$0xf]  ;;  %v13390_v39 = vld [vmem:[#allocation17 + $0x3ac] sm:$0xf0] }
0x17fd   :  { %8375 = vmatpush.bf16.msrb.mxu2 %v12276_v8  ;;  %v12352_v8 = vor.u32 %v13482_v17, %v12349_v50  ;;  %v12043_v17 = vld [vmem:[#allocation17 + $0x428] sm:$0xf]  ;;  %v13408_v50 = vld [vmem:[#allocation17 + $0x43c] sm:$0xf0] }
0x17fe   :  { %8383 = vmatpush.bf16.msrb.mxu3 %v12612_v46 }
0x17ff   :  { %8402 = vmatpush.bf16.msra.mxu0 %v11536_v4  ;;  %8416 = vmatpush.bf16.msra.mxu1 %v11728_v36  ;;  %v12589_v4 = vld [vmem:[#allocation17 + $0x888] sm:$0xf0]  ;;  %v11992_v36 = vor.u32 %v13392_v59, %v11989_v22  ;;  %v11893_v59 = vld [vmem:[#allocation17 + $0x318] sm:$0xf0] }
0x1800   :  { %v12592_v18 = vor.u32 %v13542_v33, %v12589_v4  ;;  %v12493_v22 = vld [vmem:[#allocation17 + $0x7c8] sm:$0xf0]  ;;  %v11896_v4 = vor.u32 %v13368_v60, %v11893_v59  ;;  %v12181_v59 = vld [vmem:[#allocation17 + $0x558] sm:$0xf0] }
0x1801   :  { %8424 = vmatpush.bf16.msra.mxu2 %v12064_v63  ;;  %v13476_v63 = vld [vmem:[#allocation17 + $0x664] sm:$0xf] }
0x1802   :  { %8384 = vmatpush.bf16.msrb.mxu3 %v12588_v51  ;;  %v13518_v51 = vld [vmem:[#allocation17 + $0x7b4] sm:$0xf] }
0x1803   :  { %8403 = vmatpush.bf16.msra.mxu0 %v11512_v6  ;;  %8417 = vmatpush.bf16.msra.mxu1 %v11704_v14  ;;  %v12325_v6 = vld [vmem:[#allocation17 + $0x678] sm:$0xf0]  ;;  %v12539_v14 = vld [vmem:[#allocation17 + $0x810] sm:$0xf]  ;;  %v6393_v56 = vpop.f32.mrf.mxu2  ;;  %v6407_v3 = vpop.f32.mrf.mxu3 }
0x1804   :  { %v12328_v45 = vor.u32 %v13476_v63, %v12325_v6  ;;  %v12044_v63 = vor.u32 %v13408_v50, %v12043_v17  ;;  %v13462_v6 = vld [vmem:[#allocation17 + $0x5ec] sm:$0xf0]  ;;  %v6435_v23 = vpop.f32.mrf.mxu1  ;;  %v11947_v50 = vld [vmem:[#allocation17 + $0x368] sm:$0xf] }
0x1805   :  { %8425 = vmatpush.bf16.msra.mxu2 %v12040_v19  ;;  %v13527_v19 = vld [vmem:[#allocation17 + $0x7f4] sm:$0xf0] }
0x1806   :  { %8404 = vmatmul.bf16.vlgmr.msra.gmra.mxu0 %v15951_v10  ;;  %8385 = vmatpush.bf16.msrb.mxu3 %v12564_v21  ;;  %v12468_v21 = vor.u32 %v13515_v47, %v12467_v61  ;;  %v13384_v61 = vld [vmem:[#allocation17 + $0x37c] sm:$0xf0]  ;;  %v13434_v47 = vld [vmem:[#allocation17 + $0x514] sm:$0xf] }
0x1807   :  { %8452 = vmatpush.bf16.msrb.mxu0 %v12448_v9  ;;  %8466 = vmatpush.bf16.msrb.mxu1 %v12640_v1  ;;  %v12540_v9 = vor.u32 %v13533_v28, %v12539_v14  ;;  %v13374_v1 = vld [vmem:[#allocation17 + $0x334] sm:$0xf]  ;;  %v6421_v28 = vpop.f32.mrf.mxu0 }
0x1808   :  { %v11920_v46 = vor.u32 %v13374_v1, %v11917_v53  ;;  %v13396_v53 = vld [vmem:[#allocation17 + $0x3dc] sm:$0xf0] }
0x1809   :  { %8426 = vmatpush.bf16.msra.mxu2 %v12016_v62  ;;  %8418 = vmatmul.bf16.vlgmr.msra.gmra.mxu1 %v15953_v57  ;;  %v12277_v62 = vld [vmem:[#allocation17 + $0x618] sm:$0xf0] }
0x180a   :  { %8386 = vmatpush.bf16.msrb.mxu3 %v12540_v9  ;;  %v12280_v33 = vor.u32 %v13464_v58, %v12277_v62 }
0x180b   :  { %8453 = vmatpush.bf16.msrb.mxu0 %v12424_v20  ;;  %8467 = vmatpush.bf16.msrb.mxu1 %v12616_v52  ;;  %v12516_v20 = vor.u32 %v13527_v19, %v12515_v12  ;;  %v12067_v52 = vld [vmem:[#allocation17 + $0x458] sm:$0xf]  ;;  %v6395_v49 = vpop.f32.mrf.mxu2 }
0x180d   :  { %8427 = vmatpush.bf16.msra.mxu2 %v11992_v36  ;;  %v4600_v36 = vperm.slane %v15893_v27, 4  ;;  %v12019_v27 = vld [vmem:[#allocation17 + $0x3f8] sm:$0xf] }
0x180e   :  { %8387 = vmatpush.bf16.msrb.mxu3 %v12516_v20  ;;  %v12020_v12 = vor.u32 %v13402_v26, %v12019_v27  ;;  %v11995_v20 = vld [vmem:[#allocation17 + $0x3c8] sm:$0xf]  ;;  %v13378_v27 = vld [vmem:[#allocation17 + $0x34c] sm:$0xf0]  ;;  %v12133_v26 = vld [vmem:[#allocation17 + $0x4f8] sm:$0xf0] }
0x180f   :  { %8454 = vmatpush.bf16.msrb.mxu0 %v12400_v55  ;;  %8468 = vmatpush.bf16.msrb.mxu1 %v12592_v18  ;;  %v13414_v55 = vld [vmem:[#allocation17 + $0x46c] sm:$0xf0]  ;;  %v6394_v14 = vadd.f32 %v6393_v56, %v4600_v36  ;;  %v6396_v1 = vadd.f32 %v6395_v49, %v4600_v36  ;;  %v11996_v56 = vor.u32 %v13396_v53, %v11995_v20  ;;  %v12139_v49 = vld [vmem:[#allocation17 + $0x4e8] sm:$0xf]  ;;  %v13372_v20 = vld [vmem:[#allocation17 + $0x31c] sm:$0xf0] }
0x1810   :  { %v12068_v18 = vor.u32 %v13414_v55, %v12067_v52  ;;  %v13315_v53 = vld [vmem:[#allocation17 + $0x15c] sm:$0xf] }
0x1811   :  { %8428 = vmatpush.bf16.msra.mxu2 %v11968_v0  ;;  %v12256_v0 = vor.u32 %v13458_v34, %v12253_v16  ;;  %v6408_v19 = vadd.f32 %v6407_v3, %v6394_v14  ;;  %v12163_v34 = vld [vmem:[#allocation17 + $0x518] sm:$0xf]  ;;  %v6437_v16 = vpop.f32.mrf.mxu1 }
0x1812   :  { %8388 = vmatpush.bf16.msrb.mxu3 %v12492_v44  ;;  %v13440_v44 = vld [vmem:[#allocation17 + $0x544] sm:$0xf] }
0x1813   :  { %8455 = vmatpush.bf16.msrb.mxu0 %v12376_v25  ;;  %8469 = vmatpush.bf16.msrb.mxu1 %v12568_v48  ;;  %v12496_v25 = vor.u32 %v13518_v51, %v12493_v22  ;;  %v12259_v48 = vld [vmem:[#allocation17 + $0x5d8] sm:$0xf]  ;;  %v6422_v52 = vadd.f32 %v6421_v28, %v6408_v19  ;;  %v12184_v51 = vor.u32 %v13440_v44, %v12181_v59  ;;  %v12187_v22 = vld [vmem:[#allocation17 + $0x548] sm:$0xf]  ;;  %v13428_v28 = vld [vmem:[#allocation17 + $0x4e4] sm:$0xf] }
0x1814   :  { %v12260_v9 = vor.u32 %v13462_v6, %v12259_v48  ;;  %v13312_v44 = vld [vmem:[#allocation17 + $0x13c] sm:$0xf0]  ;;  %v13309_v59 = vld [vmem:[#allocation17 + $0x12c] sm:$0xf] }
0x1815   :  { %8429 = vmatpush.bf16.msra.mxu2 %v11944_v35  ;;  %v12232_v35 = vor.u32 %v13452_v7, %v12229_v2  ;;  %v12136_v2 = vor.u32 %v13428_v28, %v12133_v26  ;;  %v11613_v28 = vld [vmem:[#allocation17 + $0xe0] sm:$0xf0] }
0x1816   :  { %8389 = vmatpush.bf16.msrb.mxu3 %v12468_v21 }
0x1817   :  { %8456 = vmatpush.bf16.msrb.mxu0 %v12352_v8  ;;  %8470 = vmatpush.bf16.msrb.mxu1 %v12544_v5  ;;  %v12472_v8 = vor.u32 %v13512_v24, %v12469_v42  ;;  %v12235_v5 = vld [vmem:[#allocation17 + $0x5a8] sm:$0xf]  ;;  %v12157_v24 = vld [vmem:[#allocation17 + $0x528] sm:$0xf0] }
0x1818   :  { %v12236_v38 = vor.u32 %v13456_v30, %v12235_v5  ;;  %v12160_v42 = vor.u32 %v13434_v47, %v12157_v24  ;;  %v11683_v30 = vld [vmem:[#allocation17 + $0x158] sm:$0xf]  ;;  %v13306_v24 = vld [vmem:[#allocation17 + $0x10c] sm:$0xf0] }
0x1819   :  { %8430 = vmatpush.bf16.msra.mxu2 %v11920_v46  ;;  %v12211_v46 = vld [vmem:[#allocation17 + $0x578] sm:$0xf] }
0x181a   :  { %8438 = vmatpush.bf16.msra.mxu3 %v12256_v0  ;;  %v13438_v0 = vld [vmem:[#allocation17 + $0x52c] sm:$0xf0]  ;;  %v11635_v47 = vld [vmem:[#allocation17 + $0xf8] sm:$0xf] }
0x181b   :  { %8457 = vmatpush.bf16.msrb.mxu0 %v12328_v45  ;;  %8471 = vmatpush.bf16.msrb.mxu1 %v12520_v31  ;;  %v6409_v45 = vpop.f32.mrf.mxu3  ;;  %v13450_v31 = vld [vmem:[#allocation17 + $0x58c] sm:$0xf0]  ;;  %v12164_v6 = vor.u32 %v13438_v0, %v12163_v34  ;;  %v11637_v34 = vld [vmem:[#allocation17 + $0x110] sm:$0xf0]  ;;  %v11636_v0 = vor.u32 %v13306_v24, %v11635_v47  ;;  %v11517_v47 = vld [vmem:[#allocation17 + $0x20] sm:$0xf0] }
0x181c   :  { %v12212_v62 = vor.u32 %v13450_v31, %v12211_v46  ;;  %v6410_v55 = vadd.f32 %v6409_v45, %v6396_v1  ;;  %v13432_v45 = vld [vmem:[#allocation17 + $0x4fc] sm:$0xf0]  ;;  %v11899_v1 = vld [vmem:[#allocation17 + $0x308] sm:$0xf] }
0x181d   :  { %8431 = vmatpush.bf16.msra.mxu2 %v11896_v4  ;;  %v6423_v4 = vpop.f32.mrf.mxu0 }
0x181e   :  { %8439 = vmatpush.bf16.msra.mxu3 %v12232_v35  ;;  %v6424_v17 = vadd.f32 %v6423_v4, %v6410_v55  ;;  %v11900_v55 = vor.u32 %v13372_v20, %v11899_v1  ;;  %v13416_v4 = vld [vmem:[#allocation17 + $0x484] sm:$0xf] }
0x181f   :  { %8458 = vmatpush.bf16.msrb.mxu0 %v12304_v32  ;;  %8472 = vmatpush.bf16.msrb.mxu1 %v12496_v25  ;;  %v12205_v32 = vld [vmem:[#allocation17 + $0x588] sm:$0xf0]  ;;  %v11972_v25 = vor.u32 %v13390_v39, %v11971_v37  ;;  %v13426_v37 = vld [vmem:[#allocation17 + $0x4cc] sm:$0xf0] }
0x1820   :  { %v12208_v58 = vor.u32 %v13446_v29, %v12205_v32  ;;  %v6438_v48 = vadd.f32 %v6437_v16, %v6424_v17  ;;  %v13422_v29 = vld [vmem:[#allocation17 + $0x4b4] sm:$0xf]  ;;  %v12109_v32 = vld [vmem:[#allocation17 + $0x4c8] sm:$0xf0]  ;;  %v13420_v17 = vld [vmem:[#allocation17 + $0x49c] sm:$0xf0] }
0x1821   :  { %v12112_v31 = vor.u32 %v13422_v29, %v12109_v32  ;;  %v13635_v16 = vld [vmem:[#allocation16] sm:$0x3f]  ;;  %v13285_v32 = vld [vmem:[#allocation17 + $0x6c] sm:$0xf] }
0x1822   :  { %8440 = vmatpush.bf16.msra.mxu3 %v12208_v58 }
0x1823   :  { %8459 = vmatpush.bf16.msrb.mxu0 %v12280_v33  ;;  %8473 = vmatpush.bf16.msrb.mxu1 %v12472_v8  ;;  %v6449_v3 = vpop.f32.mrf.mxu2  ;;  %v6463_v60 = vpop.f32.mrf.mxu3  ;;  %v13444_v33 = vld [vmem:[#allocation17 + $0x55c] sm:$0xf0]  ;;  %v11948_v8 = vor.u32 %v13384_v61, %v11947_v50 }
0x1824   :  { %v12188_v36 = vor.u32 %v13444_v33, %v12187_v22  ;;  %v6491_v22 = vpop.f32.mrf.mxu1  ;;  %v11661_v33 = vld [vmem:[#allocation17 + $0x140] sm:$0xf0] }
0x1825   :  { %v11664_v61 = vor.u32 %v13309_v59, %v11661_v33 }
0x1826   :  { %8441 = vmatpush.bf16.msra.mxu3 %v12184_v51 }
0x1827   :  { %8508 = vmatpush.bf16.msra.mxu0 %v12068_v18  ;;  %8522 = vmatpush.bf16.msra.mxu1 %v12260_v9  ;;  %v6436_v18 = vadd.f32 %v6435_v23, %v6422_v52  ;;  %v11685_v23 = vld [vmem:[#allocation17 + $0x170] sm:$0xf0] }
0x1829   :  { %v6450_v21 = vadd.f32 %v6449_v3, %v6436_v18  ;;  %v11688_v3 = vor.u32 %v13315_v53, %v11685_v23  ;;  %v12091_v18 = vld [vmem:[#allocation17 + $0x488] sm:$0xf]  ;;  %v13288_v23 = vld [vmem:[#allocation17 + $0x7c] sm:$0xf0] }
0x182a   :  { %8442 = vmatpush.bf16.msra.mxu3 %v12160_v42  ;;  %v13303_v42 = vld [vmem:[#allocation17 + $0xfc] sm:$0xf]  ;;  %v11563_v53 = vld [vmem:[#allocation17 + $0x68] sm:$0xf] }
0x182b   :  { %8509 = vmatpush.bf16.msra.mxu0 %v12044_v63  ;;  %8523 = vmatpush.bf16.msra.mxu1 %v12236_v38  ;;  %v11923_v63 = vld [vmem:[#allocation17 + $0x338] sm:$0xf]  ;;  %v6451_v14 = vpop.f32.mrf.mxu2  ;;  %v6464_v9 = vadd.f32 %v6463_v60, %v6450_v21  ;;  %v6465_v35 = vpop.f32.mrf.mxu3  ;;  %v13318_v38 = vld [vmem:[#allocation17 + $0x16c] sm:$0xf0]  ;;  %v11659_v60 = vld [vmem:[#allocation17 + $0x128] sm:$0xf]  ;;  %v12092_v21 = vor.u32 %v13420_v17, %v12091_v18 }
0x182c   :  { %v6452_v7 = vadd.f32 %v6451_v14, %v6438_v48  ;;  %v11924_v5 = vor.u32 %v13378_v27, %v11923_v63  ;;  %v11684_v52 = vor.u32 %v13318_v38, %v11683_v30  ;;  %v11660_v50 = vor.u32 %v13312_v44, %v11659_v60  ;;  %v11611_v63 = vld [vmem:[#allocation17 + $0xc8] sm:$0xf]  ;;  %v13300_v27 = vld [vmem:[#allocation17 + $0xdc] sm:$0xf0]  ;;  %v13297_v14 = vld [vmem:[#allocation17 + $0xcc] sm:$0xf] }
0x182d   :  { %v6556_v58 = vmax.f32 %v6464_v9, 0.0  ;;  %v11640_v48 = vor.u32 %v13303_v42, %v11637_v34  ;;  %v6493_v9 = vpop.f32.mrf.mxu1  ;;  %v11541_v60 = vld [vmem:[#allocation17 + $0x50] sm:$0xf0]  ;;  %v12451_v18 = vld [vmem:[#allocation17 + $0x758] sm:$0xf] }
0x182e   :  { %v6466_v19 = vadd.f32 %v6465_v35, %v6452_v7  ;;  %8443 = vmatpush.bf16.msra.mxu3 %v12136_v2  ;;  %v11612_v7 = vor.u32 %v13300_v27, %v11611_v63  ;;  %v11616_v2 = vor.u32 %v13297_v14, %v11613_v28  ;;  %v13291_v35 = vld [vmem:[#allocation17 + $0x9c] sm:$0xf]  ;;  %v12453_v42 = vld [vmem:[#allocation17 + $0x770] sm:$0xf0]  ;;  %v11875_v14 = vld [vmem:[#allocation17 + $0x2d8] sm:$0xf] }
0x182f   :  { %8510 = vmatpush.bf16.msra.mxu0 %v12020_v12  ;;  %8524 = vmatpush.bf16.msra.mxu1 %v12212_v62  ;;  %v12140_v12 = vor.u32 %v13432_v45, %v12139_v49  ;;  %v6477_v62 = vpop.f32.mrf.mxu0  ;;  %v11587_v49 = vld [vmem:[#allocation17 + $0x98] sm:$0xf]  ;;  %v13294_v45 = vld [vmem:[#allocation17 + $0xac] sm:$0xf0] }
0x1830   :  { %v6562_v46 = vmax.f32 %v6466_v19, 0.0  ;;  %v11588_v19 = vor.u32 %v13294_v45, %v11587_v49  ;;  %v13366_v28 = vld [vmem:[#allocation17 + $0x2ec] sm:$0xf0]  ;;  %v11877_v49 = vld [vmem:[#allocation17 + $0x2f0] sm:$0xf0] }
0x1831   :  { %v13501_v45 = vld [vmem:[#allocation17 + $0x72c] sm:$0xf] }
0x1832   :  { %v15968_v39 = vpack.c.bf16 %v6562_v46, %v6556_v58  ;;  %8444 = vmatpush.bf16.msra.mxu3 %v12112_v31  ;;  %v11565_v58 = vld [vmem:[#allocation17 + $0x80] sm:$0xf0] }
0x1833   :  { %8511 = vmatpush.bf16.msra.mxu0 %v11996_v56  ;;  %8525 = vmatpush.bf16.msra.mxu1 %v12188_v36  ;;  %v12115_v56 = vld [vmem:[#allocation17 + $0x4b8] sm:$0xf] }
0x1834   :  { %v12116_v51 = vor.u32 %v13426_v37, %v12115_v56  ;;  %8376 = vmatmul.bf16.vlgmr.msrb.gmra.mxu2 %v15968_v39  ;;  %8460 = vmatmul.bf16.vlgmr.msrb.gmra.mxu0 %v15968_v39  ;;  %v11564_v56 = vor.u32 %v13288_v23, %v11563_v53  ;;  %v13282_v37 = vld [vmem:[#allocation17 + $0x4c] sm:$0xf0] }
0x1835   :  { %8480 = vmatpush.bf16.msrb.mxu2 %v11684_v52  ;;  %v11568_v52 = vor.u32 %v13285_v32, %v11565_v58  ;;  %v13498_v32 = vld [vmem:[#allocation17 + $0x70c] sm:$0xf0]  ;;  %v13357_v58 = vld [vmem:[#allocation17 + $0x2ac] sm:$0xf] }
0x1837   :  { %8512 = vmatpush.bf16.msra.mxu0 %v11972_v25  ;;  %8526 = vmatpush.bf16.msra.mxu1 %v12164_v6  ;;  %v12085_v25 = vld [vmem:[#allocation17 + $0x498] sm:$0xf0]  ;;  %v6479_v6 = vpop.f32.mrf.mxu0 }
0x1838   :  { %v12088_v36 = vor.u32 %v13416_v4, %v12085_v25  ;;  %v11515_v25 = vld [vmem:[#allocation17 + $0x8] sm:$0xf] }
0x1839   :  { %8481 = vmatpush.bf16.msrb.mxu2 %v11660_v50  ;;  %v13510_v50 = vld [vmem:[#allocation17 + $0x76c] sm:$0xf0] }
0x183a   :  { %8445 = vmatpush.bf16.msra.mxu3 %v12088_v36  ;;  %v13276_v36 = vld [vmem:[#allocation17 + $0x1c] sm:$0xf0] }
0x183b   :  { %8513 = vmatpush.bf16.msra.mxu0 %v11948_v8  ;;  %8527 = vmatpush.bf16.msra.mxu1 %v12140_v12  ;;  %v4601_v8 = vperm.slane %v13635_v16, 5  ;;  %v11516_v16 = vor.u32 %v13276_v36, %v11515_v25  ;;  %v12381_v25 = vld [vmem:[#allocation17 + $0x6e0] sm:$0xf0] }
0x183d   :  { %v6478_v26 = vadd.f32 %v6477_v62, %v4601_v8  ;;  %8482 = vmatpush.bf16.msrb.mxu2 %v11636_v0  ;;  %v6480_v46 = vadd.f32 %v6479_v6, %v4601_v8 }
0x183f   :  { %8514 = vmatpush.bf16.msra.mxu0 %v11924_v5  ;;  %8528 = vmatpush.bf16.msra.mxu1 %v12116_v51  ;;  %v11589_v5 = vld [vmem:[#allocation17 + $0xb0] sm:$0xf0]  ;;  %v6492_v30 = vadd.f32 %v6491_v22, %v6478_v26  ;;  %v6494_v44 = vadd.f32 %v6493_v9, %v6480_v46  ;;  %v12427_v9 = vld [vmem:[#allocation17 + $0x728] sm:$0xf]  ;;  %v11853_v46 = vld [vmem:[#allocation17 + $0x2c0] sm:$0xf0] }
0x1840   :  { %v11592_v20 = vor.u32 %v13291_v35, %v11589_v5  ;;  %v12429_v35 = vld [vmem:[#allocation17 + $0x740] sm:$0xf0] }
0x1841   :  { %8483 = vmatpush.bf16.msrb.mxu2 %v11612_v7  ;;  %v13504_v7 = vld [vmem:[#allocation17 + $0x73c] sm:$0xf0]  ;;  %v12432_v23 = vor.u32 %v13501_v45, %v12429_v35  ;;  %v11781_v35 = vld [vmem:[#allocation17 + $0x230] sm:$0xf0] }
0x1843   :  { %8515 = vmatpush.bf16.msra.mxu0 %v11900_v55  ;;  %8529 = vmatpush.bf16.msra.mxu1 %v12092_v21  ;;  %v6505_v38 = vpop.f32.mrf.mxu2  ;;  %v6519_v12 = vpop.f32.mrf.mxu3  ;;  %v11539_v55 = vld [vmem:[#allocation17 + $0x38] sm:$0xf]  ;;  %v13507_v21 = vld [vmem:[#allocation17 + $0x75c] sm:$0xf] }
0x1844   :  { %v6506_v1 = vadd.f32 %v6505_v38, %v6492_v30  ;;  %v6533_v29 = vpop.f32.mrf.mxu0  ;;  %8432 = vmatmul.bf16.vlgmr.msra.gmra.mxu2 %v15959_v41  ;;  %v6547_v31 = vpop.f32.mrf.mxu1  ;;  %v11540_v51 = vor.u32 %v13282_v37, %v11539_v55  ;;  %v12456_v6 = vor.u32 %v13507_v21, %v12453_v42  ;;  %v11876_v38 = vor.u32 %v13366_v28, %v11875_v14  ;;  %v15980_v55 = vld [vmem:[#allocation19] sm:$0x3f]  ;;  %v11827_v37 = vld [vmem:[#allocation17 + $0x278] sm:$0xf]  ;;  %v13486_v42 = vld [vmem:[#allocation17 + $0x6ac] sm:$0xf0] }
0x1845   :  { %8484 = vmatpush.bf16.msrb.mxu2 %v11588_v19  ;;  %v11851_v19 = vld [vmem:[#allocation17 + $0x2a8] sm:$0xf]  ;;  %v6860_v36 = vperm.slane %v15980_v55, 0  ;;  %v12355_v21 = vld [vmem:[#allocation17 + $0x698] sm:$0xf] }
0x1846   :  { %8516 = vmatmul.bf16.vlgmr.msra.gmra.mxu0 %v15959_v41  ;;  %v6520_v62 = vadd.f32 %v6519_v12, %v6506_v1  ;;  %v12428_v12 = vor.u32 %v13504_v7, %v12427_v9  ;;  %v13360_v1 = vld [vmem:[#allocation17 + $0x2bc] sm:$0xf0]  ;;  %v13342_v14 = vld [vmem:[#allocation17 + $0x22c] sm:$0xf0]  ;;  %v12331_v7 = vld [vmem:[#allocation17 + $0x668] sm:$0xf] }
0x1847   :  { %8564 = vmatpush.bf16.msrb.mxu0 %v11688_v3  ;;  %v13279_v3 = vld [vmem:[#allocation17 + $0x3c] sm:$0xf] }
0x1848   :  { %v6534_v22 = vadd.f32 %v6533_v29, %v6520_v62  ;;  %v11544_v4 = vor.u32 %v13279_v3, %v11541_v60  ;;  %v12403_v29 = vld [vmem:[#allocation17 + $0x6f8] sm:$0xf]  ;;  %v11852_v62 = vor.u32 %v13360_v1, %v11851_v19  ;;  %v13354_v3 = vld [vmem:[#allocation17 + $0x28c] sm:$0xf0]  ;;  %v11856_v60 = vor.u32 %v13357_v58, %v11853_v46 }
0x1849   :  { %8485 = vmatpush.bf16.msrb.mxu2 %v11564_v56  ;;  %v12405_v56 = vld [vmem:[#allocation17 + $0x710] sm:$0xf0]  ;;  %v12307_v46 = vld [vmem:[#allocation17 + $0x638] sm:$0xf] }
0x184a   :  { %v6548_v8 = vadd.f32 %v6547_v31, %v6534_v22  ;;  %v13495_v31 = vld [vmem:[#allocation17 + $0x6fc] sm:$0xf] }
0x184b   :  { %8565 = vmatpush.bf16.msrb.mxu0 %v11664_v61  ;;  %v6507_v59 = vpop.f32.mrf.mxu2  ;;  %v6521_v17 = vpop.f32.mrf.mxu3  ;;  %v13273_v61 = vld [vmem:[#allocation17 + $0xc] sm:$0xf]  ;;  %v13351_v22 = vld [vmem:[#allocation17 + $0x27c] sm:$0xf] }
0x184c   :  { %v6508_v33 = vadd.f32 %v6507_v59, %v6494_v44  ;;  %v6535_v34 = vpop.f32.mrf.mxu0  ;;  %v11520_v63 = vor.u32 %v13273_v61, %v11517_v47  ;;  %v6549_v27 = vpop.f32.mrf.mxu1  ;;  %v6557_v5 = vmax.f32 %v6548_v8, 0.0  ;;  %v12408_v44 = vor.u32 %v13495_v31, %v12405_v56  ;;  %v12379_v59 = vld [vmem:[#allocation17 + $0x6c8] sm:$0xf]  ;;  %v13348_v61 = vld [vmem:[#allocation17 + $0x25c] sm:$0xf0] }
0x184d   :  { %8486 = vmatpush.bf16.msrb.mxu2 %v11540_v51  ;;  %v13492_v51 = vld [vmem:[#allocation17 + $0x6dc] sm:$0xf0]  ;;  %v13483_v8 = vld [vmem:[#allocation17 + $0x69c] sm:$0xf]  ;;  %v13474_v31 = vld [vmem:[#allocation17 + $0x64c] sm:$0xf0] }
0x184e   :  { %v6522_v24 = vadd.f32 %v6521_v17, %v6508_v33  ;;  %v11829_v33 = vld [vmem:[#allocation17 + $0x290] sm:$0xf0]  ;;  %v12380_v17 = vor.u32 %v13492_v51, %v12379_v59  ;;  %v13333_v56 = vld [vmem:[#allocation17 + $0x1ec] sm:$0xf]  ;;  %v13330_v59 = vld [vmem:[#allocation17 + $0x1cc] sm:$0xf0] }
0x184f   :  { %8566 = vmatpush.bf16.msrb.mxu0 %v11640_v48  ;;  %v12452_v48 = vor.u32 %v13510_v50, %v12451_v18  ;;  %v11828_v18 = vor.u32 %v13354_v3, %v11827_v37  ;;  %v11803_v50 = vld [vmem:[#allocation17 + $0x248] sm:$0xf]  ;;  %v11832_v47 = vor.u32 %v13351_v22, %v11829_v33  ;;  %v12309_v37 = vld [vmem:[#allocation17 + $0x650] sm:$0xf0] }
0x1850   :  { %v6536_v0 = vadd.f32 %v6535_v34, %v6522_v24  ;;  %v13345_v34 = vld [vmem:[#allocation17 + $0x24c] sm:$0xf]  ;;  %v12283_v33 = vld [vmem:[#allocation17 + $0x608] sm:$0xf] }
0x1851   :  { %8487 = vmatpush.bf16.msrb.mxu2 %v11516_v16  ;;  %v11805_v16 = vld [vmem:[#allocation17 + $0x260] sm:$0xf0] }
0x1852   :  { %v6550_v26 = vadd.f32 %v6549_v27, %v6536_v0  ;;  %v12357_v0 = vld [vmem:[#allocation17 + $0x6b0] sm:$0xf0]  ;;  %v12356_v27 = vor.u32 %v13486_v42, %v12355_v21  ;;  %v12075_v42 = vld [vmem:[#allocation17 + $0x460] sm:$0xf] }
0x1853   :  { %8567 = vmatpush.bf16.msrb.mxu0 %v11616_v2  ;;  %v13363_v2 = vld [vmem:[#allocation17 + $0x2dc] sm:$0xf]  ;;  %v12360_v9 = vor.u32 %v13483_v8, %v12357_v0  ;;  %v11707_v0 = vld [vmem:[#allocation17 + $0x188] sm:$0xf] }
0x1854   :  { %v6563_v30 = vmax.f32 %v6550_v26, 0.0  ;;  %8488 = vmatmul.bf16.vlgmr.msrb.gmra.mxu2 %v15951_v10  ;;  %v11880_v53 = vor.u32 %v13363_v2, %v11877_v49  ;;  %v11808_v26 = vor.u32 %v13345_v34, %v11805_v16  ;;  %v13480_v2 = vld [vmem:[#allocation17 + $0x67c] sm:$0xf0]  ;;  %v13339_v49 = vld [vmem:[#allocation17 + $0x21c] sm:$0xf] }
0x1855   :  { %8536 = vmatpush.bf16.msra.mxu2 %v12452_v48  ;;  %v12332_v1 = vor.u32 %v13480_v2, %v12331_v7  ;;  %v13415_v34 = vld [vmem:[#allocation17 + $0x474] sm:$0xf0]  ;;  %v12045_v7 = vld [vmem:[#allocation17 + $0x440] sm:$0xf0]  ;;  %v13555_v2 = vld [vmem:[#allocation17 + $0x8dc] sm:$0xf] }
0x1857   :  { %8568 = vmatpush.bf16.msrb.mxu0 %v11592_v20  ;;  %v15974_v20 = vpack.c.bf16 %v6563_v30, %v6557_v5  ;;  %v13477_v5 = vld [vmem:[#allocation17 + $0x66c] sm:$0xf]  ;;  %v12333_v30 = vld [vmem:[#allocation17 + $0x680] sm:$0xf0] }
0x1858   :  { %v12336_v58 = vor.u32 %v13477_v5, %v12333_v30  ;;  %v13409_v5 = vld [vmem:[#allocation17 + $0x444] sm:$0xf0] }
0x1859   :  { %8390 = vmatmul.bf16.vlgmr.msrb.gmra.mxu3 %v15974_v20  ;;  %8474 = vmatmul.bf16.vlgmr.msrb.gmra.mxu1 %v15974_v20 }
0x185a   :  { %8494 = vmatpush.bf16.msrb.mxu3 %v11876_v38  ;;  %8537 = vmatpush.bf16.msra.mxu2 %v12428_v12 }
0x185b   :  { %8569 = vmatpush.bf16.msrb.mxu0 %v11568_v52  ;;  %v12404_v52 = vor.u32 %v13498_v32, %v12403_v29  ;;  %8578 = vmatpush.bf16.msrb.mxu1 %v11880_v53  ;;  %v11755_v53 = vld [vmem:[#allocation17 + $0x1e8] sm:$0xf]  ;;  %v11784_v32 = vor.u32 %v13339_v49, %v11781_v35  ;;  %v12051_v35 = vld [vmem:[#allocation17 + $0x430] sm:$0xf] }
0x185e   :  { %8495 = vmatpush.bf16.msrb.mxu3 %v11852_v62  ;;  %8538 = vmatpush.bf16.msra.mxu2 %v12404_v52  ;;  %v11757_v62 = vld [vmem:[#allocation17 + $0x200] sm:$0xf0]  ;;  %v13471_v52 = vld [vmem:[#allocation17 + $0x63c] sm:$0xf] }
0x185f   :  { %8570 = vmatpush.bf16.msrb.mxu0 %v11544_v4  ;;  %v13489_v4 = vld [vmem:[#allocation17 + $0x6cc] sm:$0xf]  ;;  %8579 = vmatpush.bf16.msrb.mxu1 %v11856_v60  ;;  %v12308_v60 = vor.u32 %v13474_v31, %v12307_v46  ;;  %v11760_v51 = vor.u32 %v13333_v56, %v11757_v62  ;;  %v12312_v22 = vor.u32 %v13471_v52, %v12309_v37  ;;  %v12621_v31 = vld [vmem:[#allocation17 + $0x8c0] sm:$0xf0]  ;;  %v12027_v56 = vld [vmem:[#allocation17 + $0x400] sm:$0xf] }
0x1860   :  { %v12384_v24 = vor.u32 %v13489_v4, %v12381_v25  ;;  %v13468_v4 = vld [vmem:[#allocation17 + $0x61c] sm:$0xf0]  ;;  %v13327_v25 = vld [vmem:[#allocation17 + $0x1bc] sm:$0xf]  ;;  %v13549_v46 = vld [vmem:[#allocation17 + $0x8ac] sm:$0xf] }
0x1861   :  { %v12284_v21 = vor.u32 %v13468_v4, %v12283_v33  ;;  %v13403_v62 = vld [vmem:[#allocation17 + $0x414] sm:$0xf0]  ;;  %v11997_v33 = vld [vmem:[#allocation17 + $0x3e0] sm:$0xf0]  ;;  %v13543_v4 = vld [vmem:[#allocation17 + $0x87c] sm:$0xf] }
0x1862   :  { %8496 = vmatpush.bf16.msrb.mxu3 %v11828_v18  ;;  %8539 = vmatpush.bf16.msra.mxu2 %v12380_v17  ;;  %v11733_v18 = vld [vmem:[#allocation17 + $0x1d0] sm:$0xf0]  ;;  %v13411_v17 = vld [vmem:[#allocation17 + $0x45c] sm:$0xf] }
0x1863   :  { %8571 = vmatpush.bf16.msrb.mxu0 %v11520_v63  ;;  %v8321_v48 = vpop.f32.mrf.mxu2  ;;  %v11804_v63 = vor.u32 %v13348_v61, %v11803_v50  ;;  %8580 = vmatpush.bf16.msrb.mxu1 %v11832_v47  ;;  %v8335_v45 = vpop.f32.mrf.mxu3  ;;  %v12069_v50 = vld [vmem:[#allocation17 + $0x470] sm:$0xf0]  ;;  %v13465_v61 = vld [vmem:[#allocation17 + $0x60c] sm:$0xf]  ;;  %v12285_v47 = vld [vmem:[#allocation17 + $0x620] sm:$0xf0]  ;;  %v11736_v16 = vor.u32 %v13327_v25, %v11733_v18 }
0x1864   :  { %v8322_v28 = vadd.f32 %v8321_v48, %v6860_v36  ;;  %v8349_v12 = vpop.f32.mrf.mxu0  ;;  %v12072_v8 = vor.u32 %v13411_v17, %v12069_v50  ;;  %v13324_v48 = vld [vmem:[#allocation17 + $0x19c] sm:$0xf0]  ;;  %v12597_v25 = vld [vmem:[#allocation17 + $0x890] sm:$0xf0]  ;;  %v12003_v18 = vld [vmem:[#allocation17 + $0x3d0] sm:$0xf] }
0x1865   :  { %v11708_v49 = vor.u32 %v13324_v48, %v11707_v0  ;;  %v13397_v17 = vld [vmem:[#allocation17 + $0x3e4] sm:$0xf0]  ;;  %v13387_v0 = vld [vmem:[#allocation17 + $0x39c] sm:$0xf]  ;;  %v11973_v48 = vld [vmem:[#allocation17 + $0x3b0] sm:$0xf0] }
0x1866   :  { %8572 = vmatmul.bf16.vlgmr.msrb.gmra.mxu0 %v15951_v10  ;;  %v8336_v38 = vadd.f32 %v8335_v45, %v8322_v28  ;;  %8497 = vmatpush.bf16.msrb.mxu3 %v11804_v63  ;;  %v13321_v63 = vld [vmem:[#allocation17 + $0x18c] sm:$0xf]  ;;  %v13558_v28 = vld [vmem:[#allocation17 + $0x8ec] sm:$0xf0]  ;;  %v12645_v45 = vld [vmem:[#allocation17 + $0x8f0] sm:$0xf0] }
0x1867   :  { %8620 = vmatpush.bf16.msra.mxu0 %v12456_v6  ;;  %v11779_v6 = vld [vmem:[#allocation17 + $0x218] sm:$0xf]  ;;  %8540 = vmatpush.bf16.msra.mxu2 %v12356_v27  ;;  %v12288_v27 = vor.u32 %v13465_v61, %v12285_v47 }
0x1868   :  { %v11780_v19 = vor.u32 %v13342_v14, %v11779_v6  ;;  %v15985_v29 = vadd.f32 %v8349_v12, %v8336_v38  ;;  %8581 = vmatpush.bf16.msrb.mxu1 %v11808_v26  ;;  %v11709_v6 = vld [vmem:[#allocation17 + $0x1a0] sm:$0xf0]  ;;  %v12643_v14 = vld [vmem:[#allocation17 + $0x8d8] sm:$0xf]  ;;  %v12076_v26 = vor.u32 %v13415_v34, %v12075_v42  ;;  %v13540_v42 = vld [vmem:[#allocation17 + $0x85c] sm:$0xf0]  ;;  %v12600_v34 = vor.u32 %v13543_v4, %v12597_v25 }
0x1869   :  { %8446 = vmatmul.bf16.vlgmr.msra.gmra.mxu3 %v15962_v15  ;;  %8530 = vmatmul.bf16.vlgmr.msra.gmra.mxu1 %v15962_v15  ;;  %v11712_v30 = vor.u32 %v13321_v63, %v11709_v6  ;;  %v12644_v38 = vor.u32 %v13558_v28, %v12643_v14  ;;  %v13537_v63 = vld [vmem:[#allocation17 + $0x84c] sm:$0xf]  ;;  %v12573_v6 = vld [vmem:[#allocation17 + $0x860] sm:$0xf0]  ;;  %v13391_v14 = vld [vmem:[#allocation17 + $0x3b4] sm:$0xf0] }
0x186a   :  { %8498 = vmatpush.bf16.msrb.mxu3 %v11780_v19  ;;  %v12619_v19 = vld [vmem:[#allocation17 + $0x8a8] sm:$0xf]  ;;  %v12499_v25 = vld [vmem:[#allocation17 + $0x7b8] sm:$0xf] }
0x186b   :  { %8621 = vmatpush.bf16.msra.mxu0 %v12432_v23  ;;  %v13336_v23 = vld [vmem:[#allocation17 + $0x1fc] sm:$0xf0]  ;;  %8541 = vmatpush.bf16.msra.mxu2 %v12332_v1  ;;  %v8323_v52 = vpop.f32.mrf.mxu2 }
0x186c   :  { %v11756_v3 = vor.u32 %v13336_v23, %v11755_v53  ;;  %8582 = vmatpush.bf16.msrb.mxu1 %v11784_v32  ;;  %v13552_v1 = vld [vmem:[#allocation17 + $0x8bc] sm:$0xf0]  ;;  %v12648_v53 = vor.u32 %v13555_v2, %v12645_v45  ;;  %v12052_v23 = vor.u32 %v13409_v5, %v12051_v35  ;;  %v13399_v32 = vld [vmem:[#allocation17 + $0x3fc] sm:$0xf]  ;;  %v8324_v50 = vadd.f32 %v8323_v52, %v6860_v36  ;;  %v12547_v2 = vld [vmem:[#allocation17 + $0x818] sm:$0xf] }
0x186d   :  { %v12620_v37 = vor.u32 %v13552_v1, %v12619_v19  ;;  %v11979_v36 = vld [vmem:[#allocation17 + $0x3a0] sm:$0xf]  ;;  %v13381_v35 = vld [vmem:[#allocation17 + $0x36c] sm:$0xf]  ;;  %v11949_v5 = vld [vmem:[#allocation17 + $0x380] sm:$0xf0] }
0x186e   :  { %8499 = vmatpush.bf16.msrb.mxu3 %v11756_v3  ;;  %v11980_v45 = vor.u32 %v13391_v14, %v11979_v36  ;;  %v13385_v19 = vld [vmem:[#allocation17 + $0x384] sm:$0xf0]  ;;  %v13375_v52 = vld [vmem:[#allocation17 + $0x33c] sm:$0xf]  ;;  %v13316_v36 = vld [vmem:[#allocation17 + $0x164] sm:$0xf] }
0x186f   :  { %8622 = vmatpush.bf16.msra.mxu0 %v12408_v44  ;;  %v11731_v44 = vld [vmem:[#allocation17 + $0x1b8] sm:$0xf]  ;;  %8542 = vmatpush.bf16.msra.mxu2 %v12308_v60  ;;  %v11693_v14 = vld [vmem:[#allocation17 + $0x178] sm:$0xf0] }
0x1870   :  { %8583 = vmatpush.bf16.msrb.mxu1 %v11760_v51  ;;  %v12595_v60 = vld [vmem:[#allocation17 + $0x878] sm:$0xf]  ;;  %v12028_v51 = vor.u32 %v13403_v62, %v12027_v56 }
0x1873   :  { %8623 = vmatpush.bf16.msra.mxu0 %v12384_v24  ;;  %v11732_v24 = vor.u32 %v13330_v59, %v11731_v44  ;;  %8543 = vmatpush.bf16.msra.mxu2 %v12284_v21  ;;  %v13546_v44 = vld [vmem:[#allocation17 + $0x88c] sm:$0xf0]  ;;  %v12624_v59 = vor.u32 %v13549_v46, %v12621_v31  ;;  %v12571_v21 = vld [vmem:[#allocation17 + $0x848] sm:$0xf]  ;;  %v13528_v46 = vld [vmem:[#allocation17 + $0x7fc] sm:$0xf0] }
0x1874   :  { %8584 = vmatpush.bf16.msrb.mxu1 %v11736_v16  ;;  %v12596_v61 = vor.u32 %v13546_v44, %v12595_v60  ;;  %v12525_v60 = vld [vmem:[#allocation17 + $0x800] sm:$0xf0]  ;;  %v11931_v44 = vld [vmem:[#allocation17 + $0x340] sm:$0xf] }
0x1875   :  { %8500 = vmatpush.bf16.msrb.mxu3 %v11732_v24 }
0x1876   :  { %8544 = vmatmul.bf16.vlgmr.msra.gmra.mxu2 %v15968_v39  ;;  %v8363_v24 = vpop.f32.mrf.mxu1 }
0x1877   :  { %8624 = vmatpush.bf16.msra.mxu0 %v12360_v9  ;;  %v13405_v9 = vld [vmem:[#allocation17 + $0x42c] sm:$0xf]  ;;  %8592 = vmatpush.bf16.msrb.mxu2 %v12072_v8  ;;  %v15996_v16 = vadd.f32 %v8363_v24, %v15985_v29  ;;  %v12004_v8 = vor.u32 %v13397_v17, %v12003_v18  ;;  %v12576_v29 = vor.u32 %v13537_v63, %v12573_v6  ;;  %v13522_v18 = vld [vmem:[#allocation17 + $0x7cc] sm:$0xf0]  ;;  %v13519_v24 = vld [vmem:[#allocation17 + $0x7bc] sm:$0xf] }
0x1878   :  { %v12048_v12 = vor.u32 %v13405_v9, %v12045_v7  ;;  %8585 = vmatpush.bf16.msrb.mxu1 %v11712_v30  ;;  %v12572_v9 = vor.u32 %v13540_v42, %v12571_v21  ;;  %v11976_v7 = vor.u32 %v13387_v0, %v11973_v48  ;;  %v13531_v30 = vld [vmem:[#allocation17 + $0x81c] sm:$0xf]  ;;  %v12501_v21 = vld [vmem:[#allocation17 + $0x7d0] sm:$0xf0]  ;;  %v11691_v42 = vld [vmem:[#allocation17 + $0x160] sm:$0xf]  ;;  %v12500_v63 = vor.u32 %v13522_v18, %v12499_v25 }
0x1879   :  { %8501 = vmatpush.bf16.msrb.mxu3 %v11708_v49  ;;  %v13534_v49 = vld [vmem:[#allocation17 + $0x82c] sm:$0xf0]  ;;  %v13373_v48 = vld [vmem:[#allocation17 + $0x324] sm:$0xf0] }
0x187a   :  { %v11907_v0 = vld [vmem:[#allocation17 + $0x310] sm:$0xf] }
0x187b   :  { %8625 = vmatpush.bf16.msra.mxu0 %v12336_v58  ;;  %v12021_v58 = vld [vmem:[#allocation17 + $0x410] sm:$0xf0]  ;;  %8593 = vmatpush.bf16.msrb.mxu2 %v12048_v12  ;;  %v11955_v12 = vld [vmem:[#allocation17 + $0x370] sm:$0xf] }
0x187c   :  { %v12024_v3 = vor.u32 %v13399_v32, %v12021_v58  ;;  %8634 = vmatpush.bf16.msra.mxu1 %v12648_v53  ;;  %8502 = vmatmul.bf16.vlgmr.msrb.gmra.mxu3 %v15953_v57  ;;  %v12548_v53 = vor.u32 %v13534_v49, %v12547_v2  ;;  %v12523_v58 = vld [vmem:[#allocation17 + $0x7e8] sm:$0xf]  ;;  %v11956_v62 = vor.u32 %v13385_v19, %v11955_v12  ;;  %v13516_v2 = vld [vmem:[#allocation17 + $0x79c] sm:$0xf0]  ;;  %v13513_v49 = vld [vmem:[#allocation17 + $0x78c] sm:$0xf] }
0x187d   :  { %8550 = vmatpush.bf16.msra.mxu3 %v12644_v38  ;;  %8586 = vmatmul.bf16.vlgmr.msrb.gmra.mxu1 %v15953_v57  ;;  %v12549_v38 = vld [vmem:[#allocation17 + $0x830] sm:$0xf0]  ;;  %v13313_v12 = vld [vmem:[#allocation17 + $0x144] sm:$0xf0]  ;;  %v12267_v19 = vld [vmem:[#allocation17 + $0x5e0] sm:$0xf] }
0x187e   :  { %v8365_v32 = vpop.f32.mrf.mxu1  ;;  %v12552_v31 = vor.u32 %v13531_v30, %v12549_v38  ;;  %v11696_v30 = vor.u32 %v13316_v36, %v11693_v14  ;;  %v11667_v38 = vld [vmem:[#allocation17 + $0x130] sm:$0xf] }
0x187f   :  { %8626 = vmatpush.bf16.msra.mxu0 %v12312_v22  ;;  %v13393_v22 = vld [vmem:[#allocation17 + $0x3cc] sm:$0xf]  ;;  %8594 = vmatpush.bf16.msrb.mxu2 %v12024_v3 }
0x1880   :  { %v12000_v47 = vor.u32 %v13393_v22, %v11997_v33  ;;  %8635 = vmatpush.bf16.msra.mxu1 %v12624_v59  ;;  %v13525_v3 = vld [vmem:[#allocation17 + $0x7ec] sm:$0xf]  ;;  %v13379_v59 = vld [vmem:[#allocation17 + $0x354] sm:$0xf0]  ;;  %v12524_v33 = vor.u32 %v13528_v46, %v12523_v58 }
0x1881   :  { %8551 = vmatpush.bf16.msra.mxu3 %v12620_v37  ;;  %v11925_v37 = vld [vmem:[#allocation17 + $0x350] sm:$0xf0]  ;;  %v12528_v17 = vor.u32 %v13525_v3, %v12525_v60  ;;  %v11643_v60 = vld [vmem:[#allocation17 + $0x100] sm:$0xf] }
0x1882   :  { %v11928_v4 = vor.u32 %v13375_v52, %v11925_v37  ;;  %v12237_v52 = vld [vmem:[#allocation17 + $0x5c0] sm:$0xf0] }
0x1883   :  { %8627 = vmatpush.bf16.msra.mxu0 %v12288_v27  ;;  %v8337_v27 = vpop.f32.mrf.mxu3  ;;  %8595 = vmatpush.bf16.msrb.mxu2 %v12000_v47  ;;  %v11901_v47 = vld [vmem:[#allocation17 + $0x320] sm:$0xf0] }
0x1884   :  { %v8338_v28 = vadd.f32 %v8337_v27, %v8324_v50  ;;  %8636 = vmatpush.bf16.msra.mxu1 %v12600_v34  ;;  %v11932_v50 = vor.u32 %v13379_v59, %v11931_v44  ;;  %v13319_v34 = vld [vmem:[#allocation17 + $0x174] sm:$0xf0]  ;;  %v12243_v59 = vld [vmem:[#allocation17 + $0x5b0] sm:$0xf] }
0x1885   :  { %8552 = vmatpush.bf16.msra.mxu3 %v12596_v61  ;;  %v13369_v61 = vld [vmem:[#allocation17 + $0x30c] sm:$0xf]  ;;  %v13307_v44 = vld [vmem:[#allocation17 + $0x114] sm:$0xf0] }
0x1886   :  { %8628 = vmatmul.bf16.vlgmr.msra.gmra.mxu0 %v15968_v39  ;;  %v11904_v27 = vor.u32 %v13369_v61, %v11901_v47  ;;  %v8419_v6 = vpop.f32.mrf.mxu1  ;;  %v11644_v18 = vor.u32 %v13307_v44, %v11643_v60  ;;  %v11547_v60 = vld [vmem:[#allocation17 + $0x40] sm:$0xf]  ;;  %v13283_v44 = vld [vmem:[#allocation17 + $0x54] sm:$0xf0] }
0x1887   :  { %8676 = vmatpush.bf16.msrb.mxu0 %v12076_v26  ;;  %v8351_v26 = vpop.f32.mrf.mxu0  ;;  %8596 = vmatpush.bf16.msrb.mxu2 %v11976_v7  ;;  %v12475_v7 = vld [vmem:[#allocation17 + $0x788] sm:$0xf] }
0x1888   :  { %v8352_v1 = vadd.f32 %v8351_v26, %v8338_v28  ;;  %8637 = vmatpush.bf16.msra.mxu1 %v12576_v29  ;;  %v12504_v28 = vor.u32 %v13519_v24, %v12501_v21  ;;  %v11908_v29 = vor.u32 %v13373_v48, %v11907_v0  ;;  %v11619_v24 = vld [vmem:[#allocation17 + $0xd0] sm:$0xf]  ;;  %v13301_v21 = vld [vmem:[#allocation17 + $0xe4] sm:$0xf0]  ;;  %v11621_v0 = vld [vmem:[#allocation17 + $0xe8] sm:$0xf0] }
0x1889   :  { %8553 = vmatpush.bf16.msra.mxu3 %v12572_v9  ;;  %v11692_v9 = vor.u32 %v13319_v34, %v11691_v42  ;;  %v12219_v42 = vld [vmem:[#allocation17 + $0x580] sm:$0xf]  ;;  %v13451_v34 = vld [vmem:[#allocation17 + $0x594] sm:$0xf0] }
0x188a   :  { %v15998_v56 = vadd.f32 %v8365_v32, %v8352_v1  ;;  %v12476_v1 = vor.u32 %v13516_v2, %v12475_v7  ;;  %v11669_v32 = vld [vmem:[#allocation17 + $0x148] sm:$0xf0]  ;;  %v12220_v36 = vor.u32 %v13451_v34, %v12219_v42  ;;  %v12195_v7 = vld [vmem:[#allocation17 + $0x550] sm:$0xf]  ;;  %v13445_v2 = vld [vmem:[#allocation17 + $0x564] sm:$0xf0] }
0x188b   :  { %8677 = vmatpush.bf16.msrb.mxu0 %v12052_v23  ;;  %v11952_v23 = vor.u32 %v13381_v35, %v11949_v5  ;;  %v13459_v35 = vld [vmem:[#allocation17 + $0x5dc] sm:$0xf]  ;;  %v12261_v5 = vld [vmem:[#allocation17 + $0x5f0] sm:$0xf0]  ;;  %v12123_v42 = vld [vmem:[#allocation17 + $0x4c0] sm:$0xf] }
0x188c   :  { %8638 = vmatpush.bf16.msra.mxu1 %v12552_v31  ;;  %v12264_v46 = vor.u32 %v13459_v35, %v12261_v5  ;;  %v11668_v31 = vor.u32 %v13313_v12, %v11667_v38  ;;  %v13435_v5 = vld [vmem:[#allocation17 + $0x51c] sm:$0xf]  ;;  %v12196_v38 = vor.u32 %v13445_v2, %v12195_v7  ;;  %v13427_v34 = vld [vmem:[#allocation17 + $0x4d4] sm:$0xf0]  ;;  %v13417_v7 = vld [vmem:[#allocation17 + $0x48c] sm:$0xf] }
0x188d   :  { %8554 = vmatpush.bf16.msra.mxu3 %v12548_v53  ;;  %8597 = vmatpush.bf16.msrb.mxu2 %v11952_v23  ;;  %v13463_v53 = vld [vmem:[#allocation17 + $0x5f4] sm:$0xf0]  ;;  %v13310_v23 = vld [vmem:[#allocation17 + $0x134] sm:$0xf]  ;;  %v12093_v2 = vld [vmem:[#allocation17 + $0x4a0] sm:$0xf0] }
0x188e   :  { %v12268_v37 = vor.u32 %v13463_v53, %v12267_v19  ;;  %v11672_v3 = vor.u32 %v13310_v23, %v11669_v32  ;;  %v11571_v19 = vld [vmem:[#allocation17 + $0x70] sm:$0xf]  ;;  %v12171_v53 = vld [vmem:[#allocation17 + $0x520] sm:$0xf]  ;;  %v13439_v23 = vld [vmem:[#allocation17 + $0x534] sm:$0xf0] }
0x188f   :  { %8678 = vmatpush.bf16.msrb.mxu0 %v12028_v51  ;;  %v6861_v51 = vperm.slane %v15980_v55, 1  ;;  %v8405_v22 = vpop.f32.mrf.mxu0  ;;  %v13286_v32 = vld [vmem:[#allocation17 + $0x74] sm:$0xf]  ;;  %v12603_v55 = vld [vmem:[#allocation17 + $0x880] sm:$0xf] }
0x1890   :  { %8639 = vmatpush.bf16.msra.mxu1 %v12528_v17  ;;  %v13447_v17 = vld [vmem:[#allocation17 + $0x57c] sm:$0xf] }
0x1891   :  { %8555 = vmatpush.bf16.msra.mxu3 %v12524_v33  ;;  %8598 = vmatpush.bf16.msrb.mxu2 %v11928_v4  ;;  %v13304_v33 = vld [vmem:[#allocation17 + $0x104] sm:$0xf]  ;;  %v11645_v4 = vld [vmem:[#allocation17 + $0x118] sm:$0xf0] }
0x1892   :  { %v11648_v47 = vor.u32 %v13304_v33, %v11645_v4  ;;  %v13280_v33 = vld [vmem:[#allocation17 + $0x44] sm:$0xf]  ;;  %v11549_v4 = vld [vmem:[#allocation17 + $0x58] sm:$0xf0] }
0x1893   :  { %8679 = vmatpush.bf16.msrb.mxu0 %v12004_v8  ;;  %v8406_v8 = vadd.f32 %v8405_v22, %v6861_v51  ;;  %v13457_v22 = vld [vmem:[#allocation17 + $0x5c4] sm:$0xf0] }
0x1894   :  { %8640 = vmatpush.bf16.msra.mxu1 %v12504_v28  ;;  %v12244_v61 = vor.u32 %v13457_v22, %v12243_v59  ;;  %v11595_v28 = vld [vmem:[#allocation17 + $0xa0] sm:$0xf]  ;;  %v12147_v59 = vld [vmem:[#allocation17 + $0x4f0] sm:$0xf]  ;;  %v13433_v22 = vld [vmem:[#allocation17 + $0x504] sm:$0xf0] }
0x1895   :  { %v16003_v26 = vadd.f32 %v8419_v6, %v8406_v8  ;;  %8556 = vmatpush.bf16.msra.mxu3 %v12500_v63  ;;  %8599 = vmatpush.bf16.msrb.mxu2 %v11904_v27  ;;  %v13298_v8 = vld [vmem:[#allocation17 + $0xd4] sm:$0xf]  ;;  %v11620_v63 = vor.u32 %v13301_v21, %v11619_v24  ;;  %v13441_v27 = vld [vmem:[#allocation17 + $0x54c] sm:$0xf]  ;;  %v12189_v6 = vld [vmem:[#allocation17 + $0x560] sm:$0xf0] }
0x1896   :  { %v11624_v14 = vor.u32 %v13298_v8, %v11621_v0  ;;  %v11523_v24 = vld [vmem:[#allocation17 + $0x10] sm:$0xf]  ;;  %v13277_v21 = vld [vmem:[#allocation17 + $0x24] sm:$0xf0]  ;;  %v12459_v8 = vld [vmem:[#allocation17 + $0x760] sm:$0xf] }
0x1897   :  { %8680 = vmatpush.bf16.msrb.mxu0 %v11980_v45  ;;  %v12477_v45 = vld [vmem:[#allocation17 + $0x7a0] sm:$0xf0]  ;;  %v13511_v0 = vld [vmem:[#allocation17 + $0x774] sm:$0xf0] }
0x1898   :  { %v12480_v58 = vor.u32 %v13513_v49, %v12477_v45  ;;  %8600 = vmatmul.bf16.vlgmr.msrb.gmra.mxu2 %v15959_v41  ;;  %v13292_v49 = vld [vmem:[#allocation17 + $0xa4] sm:$0xf]  ;;  %v12192_v45 = vor.u32 %v13441_v27, %v12189_v6  ;;  %v11524_v6 = vor.u32 %v13277_v21, %v11523_v24  ;;  %v12387_v24 = vld [vmem:[#allocation17 + $0x6d0] sm:$0xf]  ;;  %v13493_v21 = vld [vmem:[#allocation17 + $0x6e4] sm:$0xf0] }
0x1899   :  { %8648 = vmatpush.bf16.msra.mxu2 %v11692_v9  ;;  %8557 = vmatpush.bf16.msra.mxu3 %v12476_v1  ;;  %v13295_v9 = vld [vmem:[#allocation17 + $0xb4] sm:$0xf0]  ;;  %v13289_v1 = vld [vmem:[#allocation17 + $0x84] sm:$0xf0] }
0x189a   :  { %8641 = vmatpush.bf16.msra.mxu1 %v12480_v58  ;;  %v11596_v35 = vor.u32 %v13295_v9, %v11595_v28  ;;  %v11573_v58 = vld [vmem:[#allocation17 + $0x88] sm:$0xf0]  ;;  %v12124_v28 = vor.u32 %v13427_v34, %v12123_v42  ;;  %v12460_v9 = vor.u32 %v13511_v0, %v12459_v8  ;;  %v13352_v42 = vld [vmem:[#allocation17 + $0x284] sm:$0xf]  ;;  %v11837_v34 = vld [vmem:[#allocation17 + $0x298] sm:$0xf0] }
0x189b   :  { %8681 = vmatpush.bf16.msrb.mxu0 %v11956_v62  ;;  %v13453_v62 = vld [vmem:[#allocation17 + $0x5ac] sm:$0xf]  ;;  %v13490_v8 = vld [vmem:[#allocation17 + $0x6d4] sm:$0xf] }
0x189c   :  { %v12240_v25 = vor.u32 %v13453_v62, %v12237_v52  ;;  %8558 = vmatmul.bf16.vlgmr.msra.gmra.mxu3 %v15974_v20  ;;  %v13429_v62 = vld [vmem:[#allocation17 + $0x4ec] sm:$0xf]  ;;  %v12141_v52 = vld [vmem:[#allocation17 + $0x500] sm:$0xf0] }
0x189d   :  { %8606 = vmatpush.bf16.msrb.mxu3 %v12264_v46  ;;  %8649 = vmatpush.bf16.msra.mxu2 %v11668_v31  ;;  %v11572_v31 = vor.u32 %v13289_v1, %v11571_v19  ;;  %v13364_v19 = vld [vmem:[#allocation17 + $0x2e4] sm:$0xf]  ;;  %v12096_v1 = vor.u32 %v13417_v7, %v12093_v2  ;;  %v11813_v2 = vld [vmem:[#allocation17 + $0x268] sm:$0xf0] }
0x189e   :  { %8690 = vmatpush.bf16.msrb.mxu1 %v12268_v37  ;;  %v12172_v37 = vor.u32 %v13439_v23, %v12171_v53  ;;  %v11885_v53 = vld [vmem:[#allocation17 + $0x2f8] sm:$0xf0]  ;;  %v13502_v23 = vld [vmem:[#allocation17 + $0x734] sm:$0xf] }
0x189f   :  { %8682 = vmatpush.bf16.msrb.mxu0 %v11932_v50  ;;  %v12213_v50 = vld [vmem:[#allocation17 + $0x590] sm:$0xf0]  ;;  %8642 = vmatmul.bf16.vlgmr.msra.gmra.mxu1 %v15974_v20 }
0x18a0   :  { %v12216_v48 = vor.u32 %v13447_v17, %v12213_v50  ;;  %v13423_v17 = vld [vmem:[#allocation17 + $0x4bc] sm:$0xf]  ;;  %v12117_v50 = vld [vmem:[#allocation17 + $0x4d0] sm:$0xf0] }
0x18a1   :  { %8607 = vmatpush.bf16.msrb.mxu3 %v12240_v25  ;;  %8650 = vmatpush.bf16.msra.mxu2 %v11644_v18  ;;  %v12144_v25 = vor.u32 %v13429_v62, %v12141_v52  ;;  %v11548_v18 = vor.u32 %v13283_v44, %v11547_v60  ;;  %v12120_v27 = vor.u32 %v13423_v17, %v12117_v50  ;;  %v11859_v62 = vld [vmem:[#allocation17 + $0x2b0] sm:$0xf]  ;;  %v13361_v52 = vld [vmem:[#allocation17 + $0x2c4] sm:$0xf0]  ;;  %v12411_v60 = vld [vmem:[#allocation17 + $0x700] sm:$0xf] }
0x18a2   :  { %8691 = vmatpush.bf16.msrb.mxu1 %v12244_v61  ;;  %v12148_v61 = vor.u32 %v13433_v22, %v12147_v59  ;;  %v13499_v44 = vld [vmem:[#allocation17 + $0x714] sm:$0xf0]  ;;  %v13358_v59 = vld [vmem:[#allocation17 + $0x2b4] sm:$0xf]  ;;  %v11861_v22 = vld [vmem:[#allocation17 + $0x2c8] sm:$0xf0] }
0x18a3   :  { %8683 = vmatpush.bf16.msrb.mxu0 %v11908_v29  ;;  %v11597_v29 = vld [vmem:[#allocation17 + $0xb8] sm:$0xf0]  ;;  %v11835_v17 = vld [vmem:[#allocation17 + $0x280] sm:$0xf]  ;;  %v13355_v50 = vld [vmem:[#allocation17 + $0x294] sm:$0xf0] }
0x18a4   :  { %v11600_v12 = vor.u32 %v13292_v49, %v11597_v29  ;;  %v12099_v49 = vld [vmem:[#allocation17 + $0x490] sm:$0xf]  ;;  %v11836_v0 = vor.u32 %v13355_v50, %v11835_v17 }
0x18a5   :  { %8608 = vmatpush.bf16.msrb.mxu3 %v12216_v48  ;;  %8651 = vmatpush.bf16.msra.mxu2 %v11620_v63  ;;  %v13274_v48 = vld [vmem:[#allocation17 + $0x14] sm:$0xf]  ;;  %v11525_v63 = vld [vmem:[#allocation17 + $0x28] sm:$0xf0] }
0x18a6   :  { %8684 = vmatmul.bf16.vlgmr.msrb.gmra.mxu0 %v15959_v41  ;;  %8692 = vmatpush.bf16.msrb.mxu1 %v12220_v36  ;;  %v13508_v36 = vld [vmem:[#allocation17 + $0x764] sm:$0xf]  ;;  %v11528_v29 = vor.u32 %v13274_v48, %v11525_v63  ;;  %v12388_v48 = vor.u32 %v13493_v21, %v12387_v24  ;;  %v11811_v63 = vld [vmem:[#allocation17 + $0x250] sm:$0xf] }
0x18a7   :  { %8732 = vmatpush.bf16.msra.mxu0 %v11696_v30  ;;  %v12165_v30 = vld [vmem:[#allocation17 + $0x530] sm:$0xf0] }
0x18a8   :  { %v12168_v46 = vor.u32 %v13435_v5, %v12165_v30  ;;  %v13367_v5 = vld [vmem:[#allocation17 + $0x2f4] sm:$0xf0] }
0x18a9   :  { %8609 = vmatpush.bf16.msrb.mxu3 %v12192_v45  ;;  %8652 = vmatpush.bf16.msra.mxu2 %v11596_v35  ;;  %v13421_v45 = vld [vmem:[#allocation17 + $0x4a4] sm:$0xf0]  ;;  %v11883_v35 = vld [vmem:[#allocation17 + $0x2e0] sm:$0xf] }
0x18aa   :  { %8693 = vmatpush.bf16.msrb.mxu1 %v12196_v38  ;;  %v12435_v38 = vld [vmem:[#allocation17 + $0x730] sm:$0xf] }
0x18ab   :  { %8733 = vmatpush.bf16.msra.mxu0 %v11672_v3  ;;  %v11576_v3 = vor.u32 %v13286_v32, %v11573_v58  ;;  %v12437_v32 = vld [vmem:[#allocation17 + $0x748] sm:$0xf0]  ;;  %v12100_v58 = vor.u32 %v13421_v45, %v12099_v49  ;;  %v13484_v49 = vld [vmem:[#allocation17 + $0x6a4] sm:$0xf] }
0x18ad   :  { %8610 = vmatpush.bf16.msrb.mxu3 %v12168_v46  ;;  %8653 = vmatpush.bf16.msra.mxu2 %v11572_v31  ;;  %v11884_v46 = vor.u32 %v13367_v5, %v11883_v35 }
0x18ae   :  { %8694 = vmatpush.bf16.msrb.mxu1 %v12172_v37  ;;  %v11888_v37 = vor.u32 %v13364_v19, %v11885_v53  ;;  %v13481_v53 = vld [vmem:[#allocation17 + $0x684] sm:$0xf0] }
0x18af   :  { %8734 = vmatpush.bf16.msra.mxu0 %v11648_v47  ;;  %v11552_v47 = vor.u32 %v13280_v33, %v11549_v4  ;;  %v13496_v33 = vld [vmem:[#allocation17 + $0x704] sm:$0xf]  ;;  %v12413_v4 = vld [vmem:[#allocation17 + $0x718] sm:$0xf0] }
0x18b1   :  { %8611 = vmatpush.bf16.msrb.mxu3 %v12144_v25  ;;  %8654 = vmatpush.bf16.msra.mxu2 %v11548_v18  ;;  %v11860_v25 = vor.u32 %v13361_v52, %v11859_v62  ;;  %v12412_v18 = vor.u32 %v13499_v44, %v12411_v60  ;;  %v11763_v62 = vld [vmem:[#allocation17 + $0x1f0] sm:$0xf]  ;;  %v13337_v52 = vld [vmem:[#allocation17 + $0x204] sm:$0xf0]  ;;  %v12315_v60 = vld [vmem:[#allocation17 + $0x640] sm:$0xf] }
0x18b2   :  { %8695 = vmatpush.bf16.msrb.mxu1 %v12148_v61  ;;  %v11864_v61 = vor.u32 %v13358_v59, %v11861_v22  ;;  %v13475_v44 = vld [vmem:[#allocation17 + $0x654] sm:$0xf0]  ;;  %v13334_v59 = vld [vmem:[#allocation17 + $0x1f4] sm:$0xf]  ;;  %v11764_v17 = vor.u32 %v13337_v52, %v11763_v62  ;;  %v13553_v52 = vld [vmem:[#allocation17 + $0x8c4] sm:$0xf0] }
0x18b3   :  { %8735 = vmatpush.bf16.msra.mxu0 %v11624_v14  ;;  %v12461_v14 = vld [vmem:[#allocation17 + $0x778] sm:$0xf0]  ;;  %v12316_v50 = vor.u32 %v13475_v44, %v12315_v60  ;;  %v13550_v60 = vld [vmem:[#allocation17 + $0x8b4] sm:$0xf]  ;;  %v12629_v44 = vld [vmem:[#allocation17 + $0x8c8] sm:$0xf0] }
0x18b4   :  { %v12464_v30 = vor.u32 %v13508_v36, %v12461_v14  ;;  %v12363_v14 = vld [vmem:[#allocation17 + $0x6a0] sm:$0xf] }
0x18b5   :  { %8612 = vmatpush.bf16.msrb.mxu3 %v12120_v27  ;;  %8655 = vmatpush.bf16.msra.mxu2 %v11524_v6  ;;  %v13349_v27 = vld [vmem:[#allocation17 + $0x264] sm:$0xf0]  ;;  %v11840_v6 = vor.u32 %v13352_v42, %v11837_v34  ;;  %v12291_v42 = vld [vmem:[#allocation17 + $0x610] sm:$0xf] }
0x18b6   :  { %8696 = vmatpush.bf16.msrb.mxu1 %v12124_v28  ;;  %v13487_v28 = vld [vmem:[#allocation17 + $0x6b4] sm:$0xf0]  ;;  %v11812_v35 = vor.u32 %v13349_v27, %v11811_v63  ;;  %v13469_v34 = vld [vmem:[#allocation17 + $0x624] sm:$0xf0]  ;;  %v13466_v63 = vld [vmem:[#allocation17 + $0x614] sm:$0xf] }
0x18b7   :  { %8736 = vmatpush.bf16.msra.mxu0 %v11600_v12  ;;  %v13505_v12 = vld [vmem:[#allocation17 + $0x744] sm:$0xf0]  ;;  %v8377_v7 = vpop.f32.mrf.mxu2  ;;  %v12364_v5 = vor.u32 %v13487_v28, %v12363_v14  ;;  %v12293_v27 = vld [vmem:[#allocation17 + $0x628] sm:$0xf0]  ;;  %v11715_v28 = vld [vmem:[#allocation17 + $0x190] sm:$0xf] }
0x18b8   :  { %v12436_v31 = vor.u32 %v13505_v12, %v12435_v38  ;;  %8656 = vmatmul.bf16.vlgmr.msra.gmra.mxu2 %v15951_v10  ;;  %v16014_v45 = vadd.f32 %v8377_v7, %v15996_v16  ;;  %v13343_v38 = vld [vmem:[#allocation17 + $0x234] sm:$0xf0]  ;;  %v12296_v7 = vor.u32 %v13466_v63, %v12293_v27  ;;  %v12581_v63 = vld [vmem:[#allocation17 + $0x868] sm:$0xf0] }
0x18b9   :  { %8704 = vmatpush.bf16.msrb.mxu2 %v12460_v9  ;;  %8613 = vmatpush.bf16.msrb.mxu3 %v12096_v1  ;;  %v13346_v9 = vld [vmem:[#allocation17 + $0x254] sm:$0xf]  ;;  %v12339_v1 = vld [vmem:[#allocation17 + $0x670] sm:$0xf] }
0x18ba   :  { %8697 = vmatpush.bf16.msrb.mxu1 %v12100_v58  ;;  %v11816_v12 = vor.u32 %v13346_v9, %v11813_v2  ;;  %v13478_v58 = vld [vmem:[#allocation17 + $0x674] sm:$0xf]  ;;  %v13325_v9 = vld [vmem:[#allocation17 + $0x1a4] sm:$0xf0] }
0x18bb   :  { %8737 = vmatpush.bf16.msra.mxu0 %v11576_v3  ;;  %v12440_v3 = vor.u32 %v13502_v23, %v12437_v32  ;;  %v13340_v23 = vld [vmem:[#allocation17 + $0x224] sm:$0xf]  ;;  %v11789_v32 = vld [vmem:[#allocation17 + $0x238] sm:$0xf0] }
0x18bc   :  { %8614 = vmatmul.bf16.vlgmr.msrb.gmra.mxu3 %v15962_v15 }
0x18bd   :  { %8662 = vmatpush.bf16.msra.mxu3 %v11884_v46  ;;  %8705 = vmatpush.bf16.msrb.mxu2 %v12436_v31  ;;  %v12341_v46 = vld [vmem:[#allocation17 + $0x688] sm:$0xf0]  ;;  %v12340_v31 = vor.u32 %v13481_v53, %v12339_v1  ;;  %v11716_v1 = vor.u32 %v13325_v9, %v11715_v28  ;;  %v13556_v53 = vld [vmem:[#allocation17 + $0x8e4] sm:$0xf] }
0x18be   :  { %8746 = vmatpush.bf16.msra.mxu1 %v11888_v37  ;;  %v11792_v37 = vor.u32 %v13340_v23, %v11789_v32  ;;  %v12653_v23 = vld [vmem:[#allocation17 + $0x8f8] sm:$0xf0]  ;;  %v11957_v28 = vld [vmem:[#allocation17 + $0x388] sm:$0xf0] }
0x18bf   :  { %8738 = vmatpush.bf16.msra.mxu0 %v11552_v47  ;;  %v12416_v47 = vor.u32 %v13496_v33, %v12413_v4  ;;  %8698 = vmatmul.bf16.vlgmr.msrb.gmra.mxu1 %v15962_v15  ;;  %v8379_v22 = vpop.f32.mrf.mxu2  ;;  %v11765_v33 = vld [vmem:[#allocation17 + $0x208] sm:$0xf0]  ;;  %v13472_v4 = vld [vmem:[#allocation17 + $0x644] sm:$0xf]  ;;  %v12656_v62 = vor.u32 %v13556_v53, %v12653_v23  ;;  %v13526_v53 = vld [vmem:[#allocation17 + $0x7f4] sm:$0xf] }
0x18c0   :  { %v11768_v24 = vor.u32 %v13334_v59, %v11765_v33  ;;  %v12533_v23 = vld [vmem:[#allocation17 + $0x808] sm:$0xf0] }
0x18c1   :  { %8663 = vmatpush.bf16.msra.mxu3 %v11860_v25  ;;  %8706 = vmatpush.bf16.msrb.mxu2 %v12412_v18  ;;  %v12317_v25 = vld [vmem:[#allocation17 + $0x658] sm:$0xf0]  ;;  %v16017_v18 = vadd.f32 %v8379_v22, %v15998_v56 }
0x18c2   :  { %8747 = vmatpush.bf16.msra.mxu1 %v11864_v61  ;;  %v11739_v61 = vld [vmem:[#allocation17 + $0x1c0] sm:$0xf]  ;;  %v12320_v21 = vor.u32 %v13472_v4, %v12317_v25 }
0x18c3   :  { %8739 = vmatpush.bf16.msra.mxu0 %v11528_v29  ;;  %v12365_v29 = vld [vmem:[#allocation17 + $0x6b8] sm:$0xf0] }
0x18c4   :  { %v12368_v19 = vor.u32 %v13484_v49, %v12365_v29  ;;  %v13322_v49 = vld [vmem:[#allocation17 + $0x194] sm:$0xf]  ;;  %v11717_v29 = vld [vmem:[#allocation17 + $0x1a8] sm:$0xf0] }
0x18c5   :  { %8664 = vmatpush.bf16.msra.mxu3 %v11836_v0  ;;  %8707 = vmatpush.bf16.msrb.mxu2 %v12388_v48  ;;  %v13412_v0 = vld [vmem:[#allocation17 + $0x464] sm:$0xf]  ;;  %v12077_v48 = vld [vmem:[#allocation17 + $0x478] sm:$0xf0]  ;;  %v11720_v32 = vor.u32 %v13322_v49, %v11717_v29 }
0x18c6   :  { %8740 = vmatmul.bf16.vlgmr.msra.gmra.mxu0 %v15951_v10  ;;  %v12389_v10 = vld [vmem:[#allocation17 + $0x6e8] sm:$0xf0]  ;;  %8748 = vmatpush.bf16.msra.mxu1 %v11840_v6  ;;  %v12292_v6 = vor.u32 %v13469_v34, %v12291_v42  ;;  %v12080_v14 = vor.u32 %v13412_v0, %v12077_v48  ;;  %v12579_v42 = vld [vmem:[#allocation17 + $0x850] sm:$0xf]  ;;  %v11981_v0 = vld [vmem:[#allocation17 + $0x3b8] sm:$0xf0] }
0x18c7   :  { %8788 = vmatpush.bf16.msrb.mxu0 %v12464_v30  ;;  %v12392_v36 = vor.u32 %v13490_v8, %v12389_v10  ;;  %v11787_v30 = vld [vmem:[#allocation17 + $0x220] sm:$0xf]  ;;  %v13328_v8 = vld [vmem:[#allocation17 + $0x1c4] sm:$0xf]  ;;  %v11741_v10 = vld [vmem:[#allocation17 + $0x1d8] sm:$0xf0]  ;;  %v8433_v2 = vpop.f32.mrf.mxu2 }
0x18c8   :  { %v11788_v16 = vor.u32 %v13343_v38, %v11787_v30  ;;  %v13559_v30 = vld [vmem:[#allocation17 + $0x8f4] sm:$0xf0]  ;;  %v13406_v38 = vld [vmem:[#allocation17 + $0x434] sm:$0xf] }
0x18c9   :  { %8665 = vmatpush.bf16.msra.mxu3 %v11812_v35  ;;  %8708 = vmatpush.bf16.msrb.mxu2 %v12364_v5  ;;  %v12651_v35 = vld [vmem:[#allocation17 + $0x8e0] sm:$0xf]  ;;  %v16020_v5 = vadd.f32 %v8433_v2, %v16003_v26  ;;  %v13538_v48 = vld [vmem:[#allocation17 + $0x854] sm:$0xf]  ;;  %v12557_v2 = vld [vmem:[#allocation17 + $0x838] sm:$0xf0] }
0x18ca   :  { %8749 = vmatpush.bf16.msra.mxu1 %v11816_v12  ;;  %v12053_v12 = vld [vmem:[#allocation17 + $0x448] sm:$0xf0] }
0x18cb   :  { %8789 = vmatpush.bf16.msrb.mxu0 %v12440_v3  ;;  %v12344_v3 = vor.u32 %v13478_v58, %v12341_v46  ;;  %v8421_v58 = vpop.f32.mrf.mxu1  ;;  %v12652_v46 = vor.u32 %v13559_v30, %v12651_v35  ;;  %v12531_v30 = vld [vmem:[#allocation17 + $0x7f0] sm:$0xf] }
0x18cd   :  { %8666 = vmatpush.bf16.msra.mxu3 %v11788_v16  ;;  %8709 = vmatpush.bf16.msrb.mxu2 %v12340_v31  ;;  %v12056_v16 = vor.u32 %v13406_v38, %v12053_v12  ;;  %v12627_v31 = vld [vmem:[#allocation17 + $0x8b0] sm:$0xf]  ;;  %v13529_v12 = vld [vmem:[#allocation17 + $0x804] sm:$0xf0] }
0x18ce   :  { %8750 = vmatpush.bf16.msra.mxu1 %v11792_v37  ;;  %v13400_v37 = vld [vmem:[#allocation17 + $0x404] sm:$0xf]  ;;  %v12628_v22 = vor.u32 %v13553_v52, %v12627_v31  ;;  %v13370_v31 = vld [vmem:[#allocation17 + $0x314] sm:$0xf] }
0x18cf   :  { %8790 = vmatpush.bf16.msrb.mxu0 %v12416_v47  ;;  %v13331_v47 = vld [vmem:[#allocation17 + $0x1d4] sm:$0xf0]  ;;  %v8435_v4 = vpop.f32.mrf.mxu2  ;;  %v13520_v52 = vld [vmem:[#allocation17 + $0x7c4] sm:$0xf] }
0x18d0   :  { %v11740_v56 = vor.u32 %v13331_v47, %v11739_v61  ;;  %v12005_v61 = vld [vmem:[#allocation17 + $0x3e8] sm:$0xf0]  ;;  %v13544_v47 = vld [vmem:[#allocation17 + $0x884] sm:$0xf] }
0x18d1   :  { %8667 = vmatpush.bf16.msra.mxu3 %v11764_v17  ;;  %8710 = vmatpush.bf16.msrb.mxu2 %v12316_v50  ;;  %v13547_v17 = vld [vmem:[#allocation17 + $0x894] sm:$0xf0]  ;;  %v13394_v50 = vld [vmem:[#allocation17 + $0x3d4] sm:$0xf] }
0x18d2   :  { %8751 = vmatpush.bf16.msra.mxu1 %v11768_v24  ;;  %v12605_v24 = vld [vmem:[#allocation17 + $0x898] sm:$0xf0] }
0x18d3   :  { %8791 = vmatpush.bf16.msrb.mxu0 %v12392_v36  ;;  %v11744_v36 = vor.u32 %v13328_v8, %v11741_v10  ;;  %v12608_v34 = vor.u32 %v13544_v47, %v12605_v24  ;;  %v13541_v8 = vld [vmem:[#allocation17 + $0x864] sm:$0xf0]  ;;  %v13388_v10 = vld [vmem:[#allocation17 + $0x3a4] sm:$0xf] }
0x18d4   :  { %v12580_v27 = vor.u32 %v13541_v8, %v12579_v42  ;;  %v12245_v42 = vld [vmem:[#allocation17 + $0x5c8] sm:$0xf0] }
0x18d5   :  { %8668 = vmatpush.bf16.msra.mxu3 %v11740_v56  ;;  %8711 = vmatpush.bf16.msrb.mxu2 %v12292_v6  ;;  %v11984_v56 = vor.u32 %v13388_v10, %v11981_v0  ;;  %v12555_v6 = vld [vmem:[#allocation17 + $0x820] sm:$0xf]  ;;  %v13448_v0 = vld [vmem:[#allocation17 + $0x584] sm:$0xf] }
0x18d6   :  { %8752 = vmatpush.bf16.msra.mxu1 %v11744_v36  ;;  %v13535_v36 = vld [vmem:[#allocation17 + $0x834] sm:$0xf0]  ;;  %v8475_v47 = vpop.f32.mrf.mxu1 }
0x18d7   :  { %8792 = vmatpush.bf16.msrb.mxu0 %v12368_v19  ;;  %v8407_v19 = vpop.f32.mrf.mxu0  ;;  %v12556_v29 = vor.u32 %v13535_v36, %v12555_v6 }
0x18d8   :  { %v8408_v26 = vadd.f32 %v8407_v19, %v6861_v51  ;;  %8712 = vmatmul.bf16.vlgmr.msrb.gmra.mxu2 %v15968_v39  ;;  %v12632_v51 = vor.u32 %v13550_v60, %v12629_v44  ;;  %v13376_v19 = vld [vmem:[#allocation17 + $0x344] sm:$0xf] }
0x18d9   :  { %8760 = vmatpush.bf16.msra.mxu2 %v12080_v14  ;;  %8669 = vmatpush.bf16.msra.mxu3 %v11716_v1  ;;  %v13382_v14 = vld [vmem:[#allocation17 + $0x374] sm:$0xf]  ;;  %v11933_v1 = vld [vmem:[#allocation17 + $0x358] sm:$0xf0] }
0x18da   :  { %v8422_v59 = vadd.f32 %v8421_v58, %v8408_v26  ;;  %8753 = vmatpush.bf16.msra.mxu1 %v11720_v32  ;;  %v11960_v35 = vor.u32 %v13382_v14, %v11957_v28  ;;  %v12532_v32 = vor.u32 %v13529_v12, %v12531_v30  ;;  %v11936_v58 = vor.u32 %v13376_v19, %v11933_v1  ;;  %v11909_v26 = vld [vmem:[#allocation17 + $0x328] sm:$0xf0]  ;;  %v8489_v14 = vpop.f32.mrf.mxu2  ;;  %v13430_v12 = vld [vmem:[#allocation17 + $0x4f4] sm:$0xf] }
0x18db   :  { %8793 = vmatpush.bf16.msrb.mxu0 %v12344_v3  ;;  %v12029_v3 = vld [vmem:[#allocation17 + $0x418] sm:$0xf0]  ;;  %v11912_v44 = vor.u32 %v13370_v31, %v11909_v26  ;;  %v12149_v19 = vld [vmem:[#allocation17 + $0x508] sm:$0xf0] }
0x18dc   :  { %v12032_v33 = vor.u32 %v13400_v37, %v12029_v3  ;;  %8670 = vmatmul.bf16.vlgmr.msra.gmra.mxu3 %v15953_v57  ;;  %v16027_v25 = vadd.f32 %v8435_v4, %v8422_v59  ;;  %v8391_v9 = vpop.f32.mrf.mxu3  ;;  %v12509_v37 = vld [vmem:[#allocation17 + $0x7d8] sm:$0xf0]  ;;  %v13514_v4 = vld [vmem:[#allocation17 + $0x794] sm:$0xf] }
0x18dd   :  { %8718 = vmatpush.bf16.msrb.mxu3 %v12652_v46  ;;  %8761 = vmatpush.bf16.msra.mxu2 %v12056_v16  ;;  %v16031_v49 = vadd.f32 %v8391_v9, %v16014_v45  ;;  %v12507_v46 = vld [vmem:[#allocation17 + $0x7c0] sm:$0xf]  ;;  %v12536_v45 = vor.u32 %v13526_v53, %v12533_v23  ;;  %v13523_v16 = vld [vmem:[#allocation17 + $0x7d4] sm:$0xf0]  ;;  %v12512_v59 = vor.u32 %v13520_v52, %v12509_v37  ;;  %v13418_v52 = vld [vmem:[#allocation17 + $0x494] sm:$0xf] }
0x18de   :  { %8802 = vmatpush.bf16.msrb.mxu1 %v12656_v62  ;;  %v12508_v60 = vor.u32 %v13523_v16, %v12507_v46  ;;  %v13424_v46 = vld [vmem:[#allocation17 + $0x4c4] sm:$0xf]  ;;  %v12101_v37 = vld [vmem:[#allocation17 + $0x4a8] sm:$0xf0] }
0x18df   :  { %8794 = vmatpush.bf16.msrb.mxu0 %v12320_v21  ;;  %8754 = vmatmul.bf16.vlgmr.msra.gmra.mxu1 %v15953_v57  ;;  %v12008_v21 = vor.u32 %v13394_v50, %v12005_v61  ;;  %v12584_v57 = vor.u32 %v13538_v48, %v12581_v63  ;;  %v8461_v50 = vpop.f32.mrf.mxu0  ;;  %v12221_v48 = vld [vmem:[#allocation17 + $0x598] sm:$0xf0] }
0x18e1   :  { %8719 = vmatpush.bf16.msrb.mxu3 %v12628_v22  ;;  %8762 = vmatpush.bf16.msra.mxu2 %v12032_v33  ;;  %v12483_v22 = vld [vmem:[#allocation17 + $0x790] sm:$0xf]  ;;  %v13517_v33 = vld [vmem:[#allocation17 + $0x7a4] sm:$0xf0] }
0x18e2   :  { %8803 = vmatpush.bf16.msrb.mxu1 %v12632_v51  ;;  %v13460_v51 = vld [vmem:[#allocation17 + $0x5e4] sm:$0xf]  ;;  %v12484_v61 = vor.u32 %v13517_v33, %v12483_v22  ;;  %v8491_v16 = vpop.f32.mrf.mxu2  ;;  %v12104_v22 = vor.u32 %v13418_v52, %v12101_v37 }
0x18e3   :  { %8795 = vmatpush.bf16.msrb.mxu0 %v12296_v7  ;;  %v13532_v7 = vld [vmem:[#allocation17 + $0x824] sm:$0xf] }
0x18e4   :  { %v12560_v38 = vor.u32 %v13532_v7, %v12557_v2  ;;  %v8393_v62 = vpop.f32.mrf.mxu3  ;;  %v16043_v7 = vld [vmem:[#allocation19] sm:$0x3f] }
0x18e5   :  { %8763 = vmatpush.bf16.msra.mxu2 %v12008_v21  ;;  %v16034_v3 = vadd.f32 %v8393_v62, %v16017_v18  ;;  %v13454_v21 = vld [vmem:[#allocation17 + $0x5b4] sm:$0xf]  ;;  %v6862_v2 = vperm.slane %v16043_v7, 2 }
0x18e6   :  { %8796 = vmatmul.bf16.vlgmr.msrb.gmra.mxu0 %v15968_v39  ;;  %v12604_v39 = vor.u32 %v13547_v17, %v12603_v55  ;;  %8804 = vmatpush.bf16.msrb.mxu1 %v12608_v34  ;;  %v12485_v55 = vld [vmem:[#allocation17 + $0x7a8] sm:$0xf0]  ;;  %v12269_v17 = vld [vmem:[#allocation17 + $0x5f8] sm:$0xf0]  ;;  %v12248_v10 = vor.u32 %v13454_v21, %v12245_v42 }
0x18e7   :  { %v12488_v18 = vor.u32 %v13514_v4, %v12485_v55  ;;  %v12272_v24 = vor.u32 %v13460_v51, %v12269_v17  ;;  %v8492_v62 = vadd.f32 %v8491_v16, %v6862_v2 }
0x18e8   :  { %8720 = vmatpush.bf16.msrb.mxu3 %v12604_v39 }
0x18e9   :  { %8764 = vmatpush.bf16.msra.mxu2 %v11984_v56  ;;  %v12224_v56 = vor.u32 %v13448_v0, %v12221_v48 }
0x18ea   :  { %8805 = vmatpush.bf16.msrb.mxu1 %v12584_v57  ;;  %v12197_v57 = vld [vmem:[#allocation17 + $0x568] sm:$0xf0] }
0x18ec   :  { %8721 = vmatpush.bf16.msrb.mxu3 %v12580_v27  ;;  %v8447_v39 = vpop.f32.mrf.mxu3  ;;  %v8463_v27 = vpop.f32.mrf.mxu0 }
0x18ed   :  { %8765 = vmatpush.bf16.msra.mxu2 %v11960_v35  ;;  %v8448_v34 = vadd.f32 %v8447_v39, %v16020_v5  ;;  %v8477_v5 = vpop.f32.mrf.mxu1  ;;  %v12173_v35 = vld [vmem:[#allocation17 + $0x538] sm:$0xf0] }
0x18ee   :  { %8806 = vmatpush.bf16.msrb.mxu1 %v12560_v38  ;;  %v8490_v38 = vadd.f32 %v8489_v14, %v6862_v2  ;;  %v6864_v2 = vperm.slane %v16043_v7, 4 }
0x18ef   :  { %v8462_v8 = vadd.f32 %v8461_v50, %v8448_v34 }
0x18f0   :  { %8722 = vmatpush.bf16.msrb.mxu3 %v12556_v29  ;;  %v13436_v29 = vld [vmem:[#allocation17 + $0x524] sm:$0xf] }
0x18f1   :  { %8766 = vmatpush.bf16.msra.mxu2 %v11936_v58  ;;  %v16038_v63 = vadd.f32 %v8475_v47, %v8462_v8  ;;  %v12176_v30 = vor.u32 %v13436_v29, %v12173_v35 }
0x18f2   :  { %8807 = vmatpush.bf16.msrb.mxu1 %v12536_v45  ;;  %v12125_v45 = vld [vmem:[#allocation17 + $0x4d8] sm:$0xf0] }
0x18f3   :  { %v12128_v26 = vor.u32 %v13424_v46, %v12125_v45  ;;  %v6865_v46 = vperm.slane %v16043_v7, 5 }
0x18f4   :  { %8723 = vmatpush.bf16.msrb.mxu3 %v12532_v32  ;;  %v8449_v6 = vpop.f32.mrf.mxu3  ;;  %v8517_v1 = vpop.f32.mrf.mxu0  ;;  %v12152_v32 = vor.u32 %v13430_v12, %v12149_v19 }
0x18f5   :  { %8767 = vmatpush.bf16.msra.mxu2 %v11912_v44  ;;  %v8450_v36 = vadd.f32 %v8449_v6, %v16027_v25  ;;  %v8531_v23 = vpop.f32.mrf.mxu1 }
0x18f6   :  { %8808 = vmatpush.bf16.msrb.mxu1 %v12512_v59 }
0x18f7   :  { %v8464_v28 = vadd.f32 %v8463_v27, %v8450_v36 }
0x18f8   :  { %8724 = vmatpush.bf16.msrb.mxu3 %v12508_v60  ;;  %8768 = vmatmul.bf16.vlgmr.msra.gmra.mxu2 %v15959_v41  ;;  %v13442_v41 = vld [vmem:[#allocation17 + $0x554] sm:$0xf] }
0x18f9   :  { %v12200_v9 = vor.u32 %v13442_v41, %v12197_v57  ;;  %v8545_v51 = vpop.f32.mrf.mxu2 }
0x18fa   :  { %8809 = vmatpush.bf16.msrb.mxu1 %v12488_v18 }
0x18fc   :  { %8725 = vmatpush.bf16.msrb.mxu3 %v12484_v61  ;;  %v8519_v59 = vpop.f32.mrf.mxu0 }
0x18fd   :  { %8810 = vmatmul.bf16.vlgmr.msrb.gmra.mxu1 %v15974_v20  ;;  %v8533_v4 = vpop.f32.mrf.mxu1 }
0x18ff   :  { %8726 = vmatmul.bf16.vlgmr.msrb.gmra.mxu3 %v15974_v20  ;;  %v16046_v20 = vadd.f32 %v8477_v5, %v8464_v28  ;;  %v8503_v53 = vpop.f32.mrf.mxu3 }
0x1900   :  { %8774 = vmatpush.bf16.msra.mxu3 %v12272_v24  ;;  %v8504_v25 = vadd.f32 %v8503_v53, %v8490_v38 }
0x1901   :  { %v8547_v47 = vpop.f32.mrf.mxu2 }
0x1902   :  { %v8518_v58 = vadd.f32 %v8517_v1, %v8504_v25 }
0x1904   :  { %8775 = vmatpush.bf16.msra.mxu3 %v12248_v10  ;;  %v8532_v31 = vadd.f32 %v8531_v23, %v8518_v58  ;;  %v8573_v17 = vpop.f32.mrf.mxu0 }
0x1905   :  { %v8587_v61 = vpop.f32.mrf.mxu1 }
0x1906   :  { %v8546_v16 = vadd.f32 %v8545_v51, %v8532_v31  ;;  %v8816_v51 = vadd.f32 %v16031_v49, %v15738_v40 }
0x1907   :  { %v8505_v60 = vpop.f32.mrf.mxu3 }
0x1908   :  { %8776 = vmatpush.bf16.msra.mxu3 %v12224_v56  ;;  %v8506_v44 = vadd.f32 %v8505_v60, %v8492_v62 }
0x190a   :  { %v8520_v33 = vadd.f32 %v8519_v59, %v8506_v44 }
0x190c   :  { %8777 = vmatpush.bf16.msra.mxu3 %v12200_v9  ;;  %v16048_v55 = vadd.f32 %v8533_v4, %v8520_v33  ;;  %v8575_v18 = vpop.f32.mrf.mxu0  ;;  %v6863_v9 = vperm.slane %v16043_v7, 3 }
0x190d   :  { %v8589_v39 = vpop.f32.mrf.mxu1 }
0x190e   :  { %v8574_v29 = vadd.f32 %v8573_v17, %v6863_v9  ;;  %v8576_v58 = vadd.f32 %v8575_v18, %v6863_v9 }
0x1910   :  { %8778 = vmatpush.bf16.msra.mxu3 %v12176_v30  ;;  %v8588_v12 = vadd.f32 %v8587_v61, %v8574_v29  ;;  %v8590_v37 = vadd.f32 %v8589_v39, %v8576_v58  ;;  %v16060_v61 = vadd.f32 %v16038_v63, %v15743_v43 }
0x1914   :  { %8779 = vmatpush.bf16.msra.mxu3 %v12152_v32  ;;  %v8629_v42 = vpop.f32.mrf.mxu0 }
0x1918   :  { %8780 = vmatpush.bf16.msra.mxu3 %v12128_v26 }
0x191b   :  { %v8601_v21 = vpop.f32.mrf.mxu2 }
0x191c   :  { %8781 = vmatpush.bf16.msra.mxu3 %v12104_v22  ;;  %v8643_v8 = vpop.f32.mrf.mxu1  ;;  %v8631_v0 = vpop.f32.mrf.mxu0  ;;  %v8602_v53 = vadd.f32 %v8601_v21, %v8588_v12  ;;  %v16972_v12 = vld [vmem:[#allocation56_spill] sm:$0xff] }
0x191f   :  { %8782 = vmatmul.bf16.vlgmr.msra.gmra.mxu3 %v15962_v15  ;;  %v8559_v50 = vpop.f32.mrf.mxu3 }
0x1920   :  { %v8560_v59 = vadd.f32 %v8559_v50, %v8546_v16 }
0x1922   :  { %v8818_v39 = vadd.f32 %v8560_v59, %v15774_v11  ;;  %v14006_v59 = vmov 768.0  }
0x1923   :  { %v8603_v10 = vpop.f32.mrf.mxu2  ;;  %13629 = vrcp.f32 %v14006_v59 }
0x1924   :  { %v16053_v27 = vpop.f32.mrf.mxu1  ;;  %v8685_v15 = vpop.f32.mrf.mxu0  ;;  %v8604_v4 = vadd.f32 %v8603_v10, %v8590_v37  ;;  %v8548_v10 = vadd.f32 %v8547_v47, %v16048_v55  ;;  %v16975_v37 = vld [vmem:[#allocation45_spill] sm:$0xff] }
0x1927   :  { %v16051_v24 = vpop.f32.mrf.mxu3 }
0x192c   :  { %v8687_v5 = vpop.f32.mrf.mxu0 }
0x193b   :  { %v8657_v56 = vpop.f32.mrf.mxu2 }
0x193c   :  { %v8699_v41 = vpop.f32.mrf.mxu1  ;;  %v8658_v38 = vadd.f32 %v8657_v56, %v6864_v2  ;;  %v8828_v56 = vadd.f32 %v16060_v61, %v8816_v51 }
0x193f   :  { %v8615_v34 = vpop.f32.mrf.mxu3 }
0x1940   :  { %v8616_v23 = vadd.f32 %v8615_v34, %v8602_v53 }
0x1942   :  { %v8630_v62 = vadd.f32 %v8629_v42, %v8616_v23 }
0x1943   :  { %v8659_v57 = vpop.f32.mrf.mxu2  ;;  %v8741_v35 = vpop.f32.mrf.mxu0 }
0x1944   :  { %v8701_v14 = vpop.f32.mrf.mxu1  ;;  %v8660_v45 = vadd.f32 %v8659_v57, %v6864_v2  ;;  %v8742_v17 = vadd.f32 %v8741_v35, %v6865_v46  ;;  %v8644_v18 = vadd.f32 %v8643_v8, %v8630_v62  ;;  %v8562_v57 = vadd.f32 %v16051_v24, %v8548_v10  ;;  %v16971_v35 = vld [vmem:[#allocation53_spill] sm:$0xff] }
0x1946   :  { %v8824_v24 = vadd.f32 %v8562_v57, %v16971_v35 }
0x1947   :  { %v8617_v48 = vpop.f32.mrf.mxu3 }
0x1948   :  { %v8618_v21 = vadd.f32 %v8617_v48, %v8604_v4 }
0x194a   :  { %v8632_v8 = vadd.f32 %v8631_v0, %v8618_v21 }
0x194b   :  { %v8743_v26 = vpop.f32.mrf.mxu0 }
0x194c   :  { %v8744_v40 = vadd.f32 %v8743_v26, %v6865_v46 }
0x195b   :  { %v8713_v28 = vpop.f32.mrf.mxu2 }
0x195c   :  { %v8755_v19 = vpop.f32.mrf.mxu1 }
0x195d   :  { %v8756_v7 = vadd.f32 %v8755_v19, %v8742_v17 }
0x195f   :  { %v8671_v6 = vpop.f32.mrf.mxu3 }
0x1960   :  { %v8672_v1 = vadd.f32 %v8671_v6, %v8658_v38 }
0x1962   :  { %v8686_v32 = vadd.f32 %v8685_v15, %v8672_v1  ;;  %v8819_v15 = vadd.f32 %v8644_v18, %v15780_v54  ;;  %v8646_v54 = vadd.f32 %v16053_v27, %v8632_v8 }
0x1963   :  { %v8715_v25 = vpop.f32.mrf.mxu2  ;;  %v8797_v43 = vpop.f32.mrf.mxu0 }
0x1964   :  { %v8700_v44 = vadd.f32 %v8699_v41, %v8686_v32  ;;  %v8757_v22 = vpop.f32.mrf.mxu1  ;;  %v8829_v41 = vadd.f32 %v8828_v56, %v8818_v39 }
0x1965   :  { %v8758_v47 = vadd.f32 %v8757_v22, %v8744_v40  ;;  %v13630_v22 = vpop.eup %13629 }
0x1966   :  { %v8714_v31 = vadd.f32 %v8713_v28, %v8700_v44  ;;  %v8830_v55 = vadd.f32 %v8829_v41, %v8819_v15  ;;  %vm8847_vm2 = vweird.f32 %v13630_v22 }
0x1967   :  { %v8673_v36 = vpop.f32.mrf.mxu3 }
0x1968   :  { %v8674_v60 = vadd.f32 %v8673_v36, %v8660_v45  ;;  %v16969_v36 = vld [vmem:[#allocation52_spill] sm:$0xff] }
0x1969   :  { %v8823_v28 = vadd.f32 %v16046_v20, %v16969_v36  ;;  %v16973_v20 = vld [vmem:[#allocation43_spill] sm:$0xff] }
0x196a   :  { %v8688_v34 = vadd.f32 %v8687_v5, %v8674_v60  ;;  %v8825_v23 = vadd.f32 %v8646_v54, %v16973_v20 }
0x196b   :  { %v8799_v27 = vpop.f32.mrf.mxu0 }
0x196c   :  { %v8702_v48 = vadd.f32 %v8701_v14, %v8688_v34  ;;  %v16970_v14 = vld [vmem:[#allocation41_spill] sm:$0xff] }
0x196d   :  { %v8822_v29 = vadd.f32 %v16034_v3, %v16970_v14 }
0x196e   :  { %v8716_v2 = vadd.f32 %v8715_v25, %v8702_v48  ;;  %v16974_v25 = vld [vmem:[#allocation57_spill] sm:$0xff] }
0x196f   :  { %v8835_v53 = vadd.f32 %v8823_v28, %v8822_v29 }
0x1971   :  { %v8836_v46 = vadd.f32 %v8835_v53, %v8824_v24 }
0x1973   :  { %v8837_v62 = vadd.f32 %v8836_v46, %v8825_v23 }
0x197a   :  { %v8811_v5 = vpop.f32.mrf.mxu1 }
0x197b   :  { %v8769_v33 = vpop.f32.mrf.mxu2 }
0x197c   :  { %v8770_v42 = vadd.f32 %v8769_v33, %v8756_v7  ;;  %v8843_v33 = vmul.f32 768.0, %v13630_v22 }
0x197e   :  { %v8844_v4 = vsub.f32 1.0, %v8843_v33 }
0x1980   :  { %v8845_v17 = vmul.f32 %v13630_v22, %v8844_v4 }
0x1982   :  { %v8727_v30 = vpop.f32.mrf.mxu3  ;;  %v8813_v3 = vpop.f32.mrf.mxu1  ;;  %v8846_v18 = vadd.f32 %v13630_v22, %v8845_v17 }
0x1983   :  { %v8728_v50 = vadd.f32 %v8727_v30, %v8714_v31  ;;  %v8771_v9 = vpop.f32.mrf.mxu2 }
0x1984   :  { %v8772_v30 = vadd.f32 %v8771_v9, %v8758_v47  ;;  %v8848_v21 = vsel %vm8847_vm2, %v13630_v22, %v8846_v18 }
0x1985   :  { %v8820_v11 = vadd.f32 %v8728_v50, %v15808_v13 }
0x1987   :  { %v8831_v19 = vadd.f32 %v8830_v55, %v8820_v11 }
0x198a   :  { %v8729_v52 = vpop.f32.mrf.mxu3 }
0x198b   :  { %v8730_v38 = vadd.f32 %v8729_v52, %v8716_v2 }
0x198d   :  { %v8826_v45 = vadd.f32 %v8730_v38, %v16974_v25  ;;  %v16129_v25 = vld [vmem:[#allocation20] sm:$0x3f] }
0x198e   :  { %v8932_v33 = vperm.slane %v16129_v25, 5 }
0x198f   :  { %v8838_v60 = vadd.f32 %v8837_v62, %v8826_v45  ;;  %v8927_v62 = vperm.slane %v16129_v25, 0 }
0x19a2   :  { %v8783_v63 = vpop.f32.mrf.mxu3 }
0x19a3   :  { %v8784_v6 = vadd.f32 %v8783_v63, %v8770_v42 }
0x19a5   :  { %v8798_v49 = vadd.f32 %v8797_v43, %v8784_v6 }
0x19a7   :  { %v8812_v0 = vadd.f32 %v8811_v5, %v8798_v49 }
0x19a9   :  { %v8821_v13 = vadd.f32 %v8812_v0, %v16972_v12 }
0x19aa   :  { %v8785_v1 = vpop.f32.mrf.mxu3 }
0x19ab   :  { %v8786_v32 = vadd.f32 %v8785_v1, %v8772_v30  ;;  %v8832_v58 = vadd.f32 %v8831_v19, %v8821_v13 }
0x19ad   :  { %v8800_v16 = vadd.f32 %v8799_v27, %v8786_v32  ;;  %8833 = vadd.xlane.f32.xlu0 %v8832_v58 }
0x19af   :  { %v8814_v26 = vadd.f32 %v8813_v3, %v8800_v16  ;;  %v16131_v16 = vld [vmem:[#allocation22] sm:$0x3f] }
0x19b0   :  { %v8953_v4 = vperm.slane %v16131_v16, 0  ;;  %v8954_v17 = vperm.slane %v16131_v16, 1  ;;  %v8955_v18 = vperm.slane %v16131_v16, 2 }
0x19b1   :  { %v8827_v52 = vadd.f32 %v8814_v26, %v16975_v37  ;;  %v8928_v37 = vperm.slane %v16129_v25, 1 }
0x19b3   :  { %v8839_v44 = vadd.f32 %v8838_v60, %v8827_v52  ;;  %v8930_v60 = vperm.slane %v16129_v25, 3 }
0x19b5   :  { %8840 = vadd.xlane.f32.xlu1 %v8839_v44  ;;  %v8931_v44 = vperm.slane %v16129_v25, 4 }
0x1a20   :  { %v8834_v7 = vpop.xlane.xlu0 %8833 }
0x1a21   :  { %v8849_v34 = vmul.f32 %v8848_v21, %v8834_v7  ;;  %v8957_v7 = vperm.slane %v16131_v16, 4 }
0x1a23   :  { %v16080_v31 = vsub.f32 %v8816_v51, %v8849_v34  ;;  %v16083_v42 = vsub.f32 %v16060_v61, %v8849_v34  ;;  %v16085_v50 = vsub.f32 %v8818_v39, %v8849_v34  ;;  %v16087_v56 = vsub.f32 %v8819_v15, %v8849_v34 }
0x1a24   :  { %v16093_v63 = vsub.f32 %v8820_v11, %v8849_v34  ;;  %v16097_v6 = vsub.f32 %v8821_v13, %v8849_v34 }
0x1a25   :  { %v8863_v10 = vmul.f32 %v16080_v31, %v16080_v31  ;;  %v8864_v43 = vmul.f32 %v16083_v42, %v16083_v42  ;;  %v8865_v8 = vmul.f32 %v16085_v50, %v16085_v50  ;;  %v8866_v39 = vmul.f32 %v16087_v56, %v16087_v56 }
0x1a26   :  { %v8867_v41 = vmul.f32 %v16093_v63, %v16093_v63  ;;  %v8868_v49 = vmul.f32 %v16097_v6, %v16097_v6 }
0x1a27   :  { %v8875_v51 = vadd.f32 %v8864_v43, %v8863_v10 }
0x1a28   :  { %v8841_v48 = vpop.xlane.xlu1 %8840 }
0x1a29   :  { %v8850_v61 = vmul.f32 %v8848_v21, %v8841_v48  ;;  %v8876_v15 = vadd.f32 %v8875_v51, %v8865_v8 }
0x1a2b   :  { %v8877_v57 = vadd.f32 %v8876_v15, %v8866_v39  ;;  %v16103_v5 = vsub.f32 %v8822_v29, %v8850_v61  ;;  %v16105_v40 = vsub.f32 %v8823_v28, %v8850_v61  ;;  %v16107_v11 = vsub.f32 %v8824_v24, %v8850_v61 }
0x1a2c   :  { %v16111_v9 = vsub.f32 %v8825_v23, %v8850_v61  ;;  %v16117_v2 = vsub.f32 %v8826_v45, %v8850_v61  ;;  %v16121_v14 = vsub.f32 %v8827_v52, %v8850_v61  ;;  %v8929_v52 = vperm.slane %v16129_v25, 2 }
0x1a2d   :  { %v8878_v36 = vadd.f32 %v8877_v57, %v8867_v41  ;;  %v8869_v55 = vmul.f32 %v16103_v5, %v16103_v5  ;;  %v8870_v54 = vmul.f32 %v16105_v40, %v16105_v40  ;;  %v8871_v28 = vmul.f32 %v16107_v11, %v16107_v11 }
0x1a2e   :  { %v8872_v29 = vmul.f32 %v16111_v9, %v16111_v9  ;;  %v8873_v24 = vmul.f32 %v16117_v2, %v16117_v2  ;;  %v8874_v38 = vmul.f32 %v16121_v14, %v16121_v14  ;;  %v8958_v61 = vperm.slane %v16131_v16, 5 }
0x1a2f   :  { %v8879_v47 = vadd.f32 %v8878_v36, %v8868_v49  ;;  %v8882_v0 = vadd.f32 %v8870_v54, %v8869_v55 }
0x1a31   :  { %8880 = vadd.xlane.f32.xlu2 %v8879_v47  ;;  %v8883_v35 = vadd.f32 %v8882_v0, %v8871_v28 }
0x1a33   :  { %v8884_v30 = vadd.f32 %v8883_v35, %v8872_v29 }
0x1a35   :  { %v8885_v12 = vadd.f32 %v8884_v30, %v8873_v24 }
0x1a37   :  { %v8886_v13 = vadd.f32 %v8885_v12, %v8874_v38 }
0x1a39   :  { %8887 = vadd.xlane.f32.xlu0 %v8886_v13 }
0x1aa4   :  { %v8881_v19 = vpop.xlane.xlu2 %8880 }
0x1aa5   :  { %v8889_v1 = vmul.f32 %v8881_v19, %v8848_v21 }
0x1aa7   :  { %v8891_v53 = vadd.f32 1e-05, %v8889_v1 }
0x1aa9   :  { %13631 = vrsqrt.f32 %v8891_v53  ;;  %vm8899_vm1 = vweird.f32 %v8891_v53 }
0x1aac   :  { %v8888_v20 = vpop.xlane.xlu0 %8887 }
0x1aad   :  { %v8890_v23 = vmul.f32 %v8888_v20, %v8848_v21  ;;  %v8956_v21 = vperm.slane %v16131_v16, 3 }
0x1aaf   :  { %v13632_v32 = vpop.eup %13631  ;;  %v8892_v58 = vadd.f32 1e-05, %v8890_v23 }
0x1ab0   :  { %v8894_v27 = vmul.f32 %v13632_v32, %v8891_v53  ;;  %vm8900_vm8 = vweird.f32 %v13632_v32 }
0x1ab1   :  { %13633 = vrsqrt.f32 %v8892_v58  ;;  %vm8901_vm9 = vmor %vm8899_vm1, %vm8900_vm8  ;;  %vm8909_vm11 = vweird.f32 %v8892_v58 }
0x1ab2   :  { %v8895_v46 = vmul.f32 %v13632_v32, %v8894_v27 }
0x1ab4   :  { %v8896_v45 = vmul.f32 0.5, %v8895_v46 }
0x1ab6   :  { %v8897_v3 = vsub.f32 1.5, %v8896_v45 }
0x1ab7   :  { %v13634_v26 = vpop.eup %13633 }
0x1ab8   :  { %v8898_v59 = vmul.f32 %v13632_v32, %v8897_v3  ;;  %v8904_v22 = vmul.f32 %v13634_v26, %v8892_v58  ;;  %vm8910_vm10 = vweird.f32 %v13634_v26 }
0x1ab9   :  { %vm8911_vm13 = vmor %vm8909_vm11, %vm8910_vm10 }
0x1aba   :  { %v8902_v34 = vsel %vm8901_vm9, %v13632_v32, %v8898_v59  ;;  %v8905_v10 = vmul.f32 %v13634_v26, %v8904_v22 }
0x1abb   :  { %v8913_v43 = vmul.f32 %v8902_v34, %v16080_v31  ;;  %v8914_v8 = vmul.f32 %v8902_v34, %v16083_v42  ;;  %v8915_v51 = vmul.f32 %v8902_v34, %v16085_v50  ;;  %v8916_v48 = vmul.f32 %v8902_v34, %v16087_v56 }
0x1abc   :  { %v8917_v39 = vmul.f32 %v8902_v34, %v16093_v63  ;;  %v8918_v15 = vmul.f32 %v8902_v34, %v16097_v6  ;;  %v8906_v41 = vmul.f32 0.5, %v8905_v10 }
0x1abd   :  { %v8939_v57 = vmul.f32 %v8927_v62, %v8913_v43  ;;  %v8940_v49 = vmul.f32 %v8928_v37, %v8914_v8  ;;  %v8941_v36 = vmul.f32 %v8929_v52, %v8915_v51  ;;  %v8942_v55 = vmul.f32 %v8930_v60, %v8916_v48 }
0x1abe   :  { %v8943_v54 = vmul.f32 %v8931_v44, %v8917_v39  ;;  %v8944_v47 = vmul.f32 %v8932_v33, %v8918_v15  ;;  %v8907_v31 = vsub.f32 1.5, %v8906_v41 }
0x1abf   :  { %v8965_v42 = vadd.f32 %v8953_v4, %v8939_v57  ;;  %v8966_v28 = vadd.f32 %v8954_v17, %v8940_v49  ;;  %v8967_v50 = vadd.f32 %v8955_v18, %v8941_v36  ;;  %v8968_v0 = vadd.f32 %v8956_v21, %v8942_v55 }
0x1ac0   :  { %v8908_v56 = vmul.f32 %v13634_v26, %v8907_v31  ;;  %v8969_v29 = vadd.f32 %v8957_v7, %v8943_v54  ;;  %v8970_v63 = vadd.f32 %v8958_v61, %v8944_v47 }
0x1ac1   :  { %8977 = vst [vmem:[#allocation23] sm:$0xff] %v8965_v42 }
0x1ac2   :  { %8978 = vst [vmem:[#allocation23 + $0x8] sm:$0xff] %v8966_v28  ;;  %v8912_v6 = vsel %vm8911_vm13, %v13634_v26, %v8908_v56 }
0x1ac3   :  { %8979 = vst [vmem:[#allocation23 + $0x10] sm:$0xff] %v8967_v50  ;;  %v8919_v35 = vmul.f32 %v8912_v6, %v16103_v5  ;;  %v8920_v24 = vmul.f32 %v8912_v6, %v16105_v40  ;;  %v8921_v30 = vmul.f32 %v8912_v6, %v16107_v11  ;;  %v8922_v38 = vmul.f32 %v8912_v6, %v16111_v9 }
0x1ac4   :  { %8980 = vst [vmem:[#allocation23 + $0x18] sm:$0xff] %v8968_v0  ;;  %v8923_v12 = vmul.f32 %v8912_v6, %v16117_v2  ;;  %v8924_v13 = vmul.f32 %v8912_v6, %v16121_v14 }
0x1ac5   :  { %8981 = vst [vmem:[#allocation23 + $0x20] sm:$0xff] %v8969_v29  ;;  %v8945_v19 = vmul.f32 %v8927_v62, %v8919_v35  ;;  %v8946_v1 = vmul.f32 %v8928_v37, %v8920_v24  ;;  %v8947_v53 = vmul.f32 %v8929_v52, %v8921_v30  ;;  %v8948_v20 = vmul.f32 %v8930_v60, %v8922_v38 }
0x1ac6   :  { %8982 = vst [vmem:[#allocation23 + $0x28] sm:$0xff] %v8970_v63  ;;  %v8949_v23 = vmul.f32 %v8931_v44, %v8923_v12  ;;  %v8950_v32 = vmul.f32 %v8932_v33, %v8924_v13 }
0x1ac7   :  { %v8971_v5 = vadd.f32 %v8953_v4, %v8945_v19  ;;  %v8972_v58 = vadd.f32 %v8954_v17, %v8946_v1  ;;  %v8973_v40 = vadd.f32 %v8955_v18, %v8947_v53  ;;  %v8974_v27 = vadd.f32 %v8956_v21, %v8948_v20 }
0x1ac8   :  { %v8975_v11 = vadd.f32 %v8957_v7, %v8949_v23  ;;  %v8976_v9 = vadd.f32 %v8958_v61, %v8950_v32 }
0x1ac9   :  { %8983 = vst [vmem:[#allocation23 + $0x30] sm:$0xff] %v8971_v5 }
0x1aca   :  { %8984 = vst [vmem:[#allocation23 + $0x38] sm:$0xff] %v8972_v58 }
0x1acb   :  { %8985 = vst [vmem:[#allocation23 + $0x40] sm:$0xff] %v8973_v40 }
0x1acc   :  { %8986 = vst [vmem:[#allocation23 + $0x48] sm:$0xff] %v8974_v27 }
0x1acd   :  { %8987 = vst [vmem:[#allocation23 + $0x50] sm:$0xff] %v8975_v11 }
0x1ace   :  { %8988 = vst [vmem:[#allocation23 + $0x58] sm:$0xff] %v8976_v9 }
0x1acf   :  { %9001 = dma.vmem_to_hbm [thread:$0]  %s8994_s23, 1536, %s8996_s2, [#allocation4], %s14008_s24, %s14008_s24, %s14009_s8  }
0x1ad0   :  { %13987 = dma.done.wait [#allocation4], 1536  }
0x1ad1   :  { %13988 = vsyncadd [#allocation4], 4294965760 }
0x1ad2   :  { %9006 = vsyncpa [#allocation3], 1 }
0x1ad3   :  { %9007 = vsyncpa [#allocation6], 1 }
0x1ad4   :  { %9008 = vsyncpa [#allocation9], 1 }
0x1ad5   :  { %9009 = vsyncpa [#allocation12], 1 }
0x1ad6   :  { %9010 = vsyncpa [#allocation15], 1 }
0x1ad7   :  { %9011 = vsyncpa [#allocation18], 1 }
0x1ad8   :  { %9012 = vsyncpa [#allocation21], 1 }
0x1ad9   :  { %9013 = vsyncpa [#allocation4], 1 }

</bundles_post_ra>
